<compile_context>
chip_gen: v7x
topology: tpu7x:2x2x1
jax: 0.10.0
libtpu: 0.0.40
codegen_flags: <defaults>
</compile_context>

<pallas_src>
import jax
import jax.numpy as jnp
from jax.experimental import pallas as pl
from jax.experimental.pallas import tpu as pltpu

# ----------------------- model-size constants (small) -----------------------
B = 2          # batch
T = 3          # frames per sample (Opple uses 3 frames)
C_IN = 3       # RGB channels
H = W = 16     # spatial
K_OBJ = 4      # object slots (incl. background)
FEAT = 16      # segmentation feature channels
LATENT = 32    # latent object code dim
F32 = jnp.float32

# order must match the kernel signature
WT_NAMES = ("sd", "su", "tile", "pool",
            "d1w", "d1b", "d2w", "d2b",
            "s1wr", "s1wd", "s1b", "s2w", "s2b",
            "zw", "zb", "mw1", "mw2", "mb",
            "i1wr", "i1wd", "i1wm", "i1b", "i2w", "i2b")


# ------------------------------ Pallas kernel -------------------------------

def _opple_kernel(x_ref,
                  sd_ref, su_ref, tile_ref, pool_ref,
                  d1w, d1b, d2w, d2b,
                  s1wr, s1wd, s1b, s2w, s2b,
                  zw, zb, mw1, mw2, mb,
                  i1wr, i1wd, i1wm, i1b, i2w, i2b,
                  depth_ref, masks_ref, z_ref,
                  aw_ref, al_ref, z1m_ref, mot_ref,
                  imag_ref, pred_ref):
    sd = sd_ref[...]            # (H, H)  row y -> x[y-1] (zero at boundary)
    su = su_ref[...]            # (H, H)  row y -> x[y+1] (zero at boundary)
    tilem = tile_ref[...]       # (W, FEAT*W)   broadcast a (H,W) plane over blocks
    poolm = pool_ref[...]       # (FEAT*W, FEAT) per-block lane sum

    def shift3(x):
        """Return (x[y-1], x[y], x[y+1]) row-shifted copies, zero padded."""
        return (jnp.dot(sd, x, preferred_element_type=F32), x,
                jnp.dot(su, x, preferred_element_type=F32))

    def conv3(parts, b_ref):
        """3x3 'same' conv; parts = [(shift3(x), (3, Cin*W, F*W) weight ref)]."""
        acc = None
        for (xm, x0, xp), wref in parts:
            c = (jnp.dot(xm, wref[0], preferred_element_type=F32)
                 + jnp.dot(x0, wref[1], preferred_element_type=F32)
                 + jnp.dot(xp, wref[2], preferred_element_type=F32))
            acc = c if acc is None else acc + c
        return acc + b_ref[...]

    zs = []
    frame1 = None
    for t in range(T):
        x = x_ref[0, t]                                        # (H, 3W) channel-major RGB
        xs = shift3(x)

        # ---- Depth_Inference: conv(3->8) relu -> conv(8->1) sigmoid ----
        h1 = jnp.maximum(conv3([(xs, d1w)], d1b), 0.0)         # (H, 8W)
        depth = jax.nn.sigmoid(conv3([(shift3(h1), d2w)], d2b))  # (H, W)
        depth_ref[0, t] = depth
        dsh = shift3(depth)

        # ---- Segmentation: conv(rgb+depth->FEAT) relu -> conv(FEAT->K) softmax ----
        feat = jnp.maximum(conv3([(xs, s1wr), (dsh, s1wd)], s1b), 0.0)   # (H, FEAT*W)
        logits = conv3([(shift3(feat), s2w)], s2b)             # (H, K*W)
        planes = [logits[:, k * W:(k + 1) * W] for k in range(K_OBJ)]
        mx = planes[0]
        for p in planes[1:]:
            mx = jnp.maximum(mx, p)
        es = [jnp.exp(p - mx) for p in planes]
        den = es[0]
        for e in es[1:]:
            den = den + e
        masks = [e / den for e in es]                          # K x (H, W)
        masks_cm = jnp.concatenate(masks, axis=1)              # (H, K*W)
        masks_ref[0, t] = masks_cm

        # ---- mask-pooled latent code + tanh projection (Segmentation latent head) ----
        zrows = []
        for k in range(K_OBJ):
            mk = masks[k]
            mk_b = jnp.dot(mk, tilem, preferred_element_type=F32)     # (H, FEAT*W)
            col = jnp.sum(feat * mk_b, axis=0, keepdims=True)         # (1, FEAT*W)
            num = jnp.dot(col, poolm, preferred_element_type=F32)     # (1, FEAT)
            cnt = jnp.sum(jnp.sum(mk, axis=1, keepdims=True),
                          axis=0, keepdims=True) + 1e-6               # (1, 1)
            zrows.append(num / cnt)
        zraw = jnp.concatenate(zrows, axis=0)                  # (K, FEAT)
        z = jnp.tanh(jnp.dot(zraw, zw[...], preferred_element_type=F32) + zb[...])
        z_ref[0, t] = z
        zs.append(z)

        if t == 1:
            frame1 = (x, xs, dsh, masks_cm)

    # ---- match_latent_obj_representations (align frame1 -> frame2) ----
    z1, z2 = zs[0], zs[1]
    logit12 = jax.lax.dot_general(z1, z2, (((1,), (1,)), ((), ())),
                                  preferred_element_type=F32) * (1.0 / (LATENT ** 0.5))
    mmax = jnp.max(logit12, axis=-1, keepdims=True)
    e12 = jnp.exp(logit12 - mmax)
    wts = e12 / jnp.sum(e12, axis=-1, keepdims=True)
    aw_ref[0] = wts
    al_ref[0] = logit12
    z1m = jnp.dot(wts, z2, preferred_element_type=F32)
    z1m_ref[0] = z1m

    # ---- Warping motion head (simplified) ----
    # TODO(synk): real Warping does camera/object-motion grid_sample image warping
    # (data-dependent gather), which is not implemented here.
    mot = jnp.tanh(jnp.dot(z1m, mw1[...], preferred_element_type=F32)
                   + jnp.dot(z2, mw2[...], preferred_element_type=F32) + mb[...])
    mot_ref[0] = mot

    # ---- Imagination: conv(rgb+depth+masks->16) relu -> conv(16->3) sigmoid ----
    x1, x1s, d1s, m1 = frame1
    ih = jnp.maximum(conv3([(x1s, i1wr), (d1s, i1wd), (shift3(m1), i1wm)], i1b), 0.0)
    imag = jax.nn.sigmoid(conv3([(shift3(ih), i2w)], i2b))     # (H, 3W)
    imag_ref[0] = imag

    # ---- utils.predict_next_frame: background-mask gated composite ----
    bg = m1[:, 0:W]                                            # (H, W) slot-0 mask
    bg3 = jnp.dot(bg, tilem[:, :C_IN * W], preferred_element_type=F32)   # (H, 3W)
    pred_ref[0] = bg3 * imag + (1.0 - bg3) * x1


# ------------------------------ pallas wrapper -------------------------------

def _rep_spec(arr):
    """Full-array block, same block every grid step (weights stay VMEM-resident)."""
    zeros = (0,) * arr.ndim
    return pl.BlockSpec(arr.shape, lambda b, _z=zeros: _z)


def opple_pallas(pw, x_cm):
    in_specs = [pl.BlockSpec((1, T, H, C_IN * W), lambda b: (b, 0, 0, 0))]
    in_specs += [_rep_spec(pw[n]) for n in WT_NAMES]
    out_shape = (
        jax.ShapeDtypeStruct((B, T, H, W), F32),               # depth per frame
        jax.ShapeDtypeStruct((B, T, H, K_OBJ * W), F32),       # masks (channel-major)
        jax.ShapeDtypeStruct((B, T, K_OBJ, LATENT), F32),      # latent codes per frame
        jax.ShapeDtypeStruct((B, K_OBJ, K_OBJ), F32),          # alignment weights
        jax.ShapeDtypeStruct((B, K_OBJ, K_OBJ), F32),          # alignment logits
        jax.ShapeDtypeStruct((B, K_OBJ, LATENT), F32),         # matched representation 1
        jax.ShapeDtypeStruct((B, K_OBJ, 2), F32),              # per-object motion
        jax.ShapeDtypeStruct((B, H, C_IN * W), F32),           # imagined frame (cm)
        jax.ShapeDtypeStruct((B, H, C_IN * W), F32),           # predicted frame (cm)
    )
    out_specs = [
        pl.BlockSpec((1, T, H, W), lambda b: (b, 0, 0, 0)),
        pl.BlockSpec((1, T, H, K_OBJ * W), lambda b: (b, 0, 0, 0)),
        pl.BlockSpec((1, T, K_OBJ, LATENT), lambda b: (b, 0, 0, 0)),
        pl.BlockSpec((1, K_OBJ, K_OBJ), lambda b: (b, 0, 0)),
        pl.BlockSpec((1, K_OBJ, K_OBJ), lambda b: (b, 0, 0)),
        pl.BlockSpec((1, K_OBJ, LATENT), lambda b: (b, 0, 0)),
        pl.BlockSpec((1, K_OBJ, 2), lambda b: (b, 0, 0)),
        pl.BlockSpec((1, H, C_IN * W), lambda b: (b, 0, 0)),
        pl.BlockSpec((1, H, C_IN * W), lambda b: (b, 0, 0)),
    ]
    return pl.pallas_call(
        _opple_kernel,
        out_shape=out_shape,
        grid=(B,),
        in_specs=in_specs,
        out_specs=out_specs,
        compiler_params=pltpu.CompilerParams(dimension_semantics=("parallel",)),
    )(x_cm, *[pw[n] for n in WT_NAMES])


# ------------------------------ parameter init ------------------------------

def _blockify_conv(w, b):
    """Fold a (3,3,Cin,F) conv weight into 3 channel-major block matrices.

    wblk[dy][c*W + x_src, f*W + x_out] = w[dy, x_src - x_out + 1, c, f]
    (zero where the x-shift falls outside the kernel), so a 'same' 3x3 conv is
        out = (Sdown @ x) @ wblk[0] + x @ wblk[1] + (Sup @ x) @ wblk[2]
    in the (H, C*W) channel-major layout.
    """
    cin, cout = w.shape[2], w.shape[3]
    mats = []
    for dy in range(3):
        m = jnp.zeros((cin * W, cout * W), F32)
        for dx in range(3):
            shift = jnp.eye(W, W, k=1 - dx, dtype=F32)
            m = m + jnp.kron(w[dy, dx], shift)
        mats.append(m)
    wblk = jnp.stack(mats, axis=0)                             # (3, Cin*W, F*W)
    bias = jnp.repeat(b.astype(F32), W).reshape(1, cout * W)
    return wblk, bias


def init_weights(key):
    ks = jax.random.split(key, 8)
    s = 0.1

    def conv_w(k, cin, cout):
        return s * jax.random.normal(k, (3, 3, cin, cout), F32)

    pw = {}
    # structural constants folded into "weights" (stay VMEM-resident)
    pw["sd"] = jnp.eye(H, H, k=-1, dtype=F32)                  # row y -> x[y-1]
    pw["su"] = jnp.eye(H, H, k=1, dtype=F32)                   # row y -> x[y+1]
    pw["tile"] = jnp.tile(jnp.eye(W, dtype=F32), (1, FEAT))    # (W, FEAT*W)
    pw["pool"] = jnp.kron(jnp.eye(FEAT, dtype=F32), jnp.ones((W, 1), F32))  # (FEAT*W, FEAT)
    # depth net: conv(3->8) relu, conv(8->1) sigmoid
    pw["d1w"], pw["d1b"] = _blockify_conv(conv_w(ks[0], C_IN, 8), jnp.zeros((8,), F32))
    pw["d2w"], pw["d2b"] = _blockify_conv(conv_w(ks[1], 8, 1), jnp.zeros((1,), F32))
    # segmentation net: conv(rgb+depth -> FEAT) relu, conv(FEAT -> K_OBJ)
    s1w, pw["s1b"] = _blockify_conv(conv_w(ks[2], C_IN + 1, FEAT), jnp.zeros((FEAT,), F32))
    pw["s1wr"], pw["s1wd"] = s1w[:, :C_IN * W, :], s1w[:, C_IN * W:, :]
    pw["s2w"], pw["s2b"] = _blockify_conv(conv_w(ks[3], FEAT, K_OBJ), jnp.zeros((K_OBJ,), F32))
    # latent projection: dense(FEAT -> LATENT) tanh
    pw["zw"] = s * jax.random.normal(ks[4], (FEAT, LATENT), F32)
    pw["zb"] = jnp.zeros((1, LATENT), F32)
    # warping motion head: dense(2*LATENT -> 2) tanh (split for its two inputs)
    m_w = s * jax.random.normal(ks[5], (2 * LATENT, 2), F32)
    pw["mw1"], pw["mw2"] = m_w[:LATENT], m_w[LATENT:]
    pw["mb"] = jnp.zeros((1, 2), F32)
    # imagination net: conv(rgb+depth+masks -> 16) relu, conv(16 -> 3) sigmoid
    i1w, pw["i1b"] = _blockify_conv(conv_w(ks[6], C_IN + 1 + K_OBJ, FEAT),
                                    jnp.zeros((FEAT,), F32))
    pw["i1wr"] = i1w[:, :C_IN * W, :]
    pw["i1wd"] = i1w[:, C_IN * W:(C_IN + 1) * W, :]
    pw["i1wm"] = i1w[:, (C_IN + 1) * W:, :]
    pw["i2w"], pw["i2b"] = _blockify_conv(conv_w(ks[7], FEAT, C_IN), jnp.zeros((C_IN,), F32))
    return pw


# -------------------------------- forward pass -------------------------------

def opple_forward(pw, X):
    # X: (B, T, C, H, W) float32 (PyTorch NCHW per frame)
    # single layout change: NCHW -> channel-major rows (B, T, H, C*W)
    x_cm = jnp.transpose(X, (0, 1, 3, 2, 4)).reshape(B, T, H, C_IN * W)

    (depth_pl, masks_pl, z_all, align_w, align_logit, z1_matched,
     object_motion, imag_pl, pred_pl) = opple_pallas(pw, x_cm)

    # -------- reassemble outputs in the original NHWC convention (JAX glue) --------
    frames_nhwc = jnp.transpose(X, (0, 1, 3, 4, 2))            # (B,T,H,W,C)
    depth_nhwc = depth_pl[..., None]                           # (B,T,H,W,1)
    depth_outputs = [depth_nhwc[:, t] for t in range(T)]
    X_updated = [jnp.concatenate([frames_nhwc[:, t], depth_nhwc[:, t]], axis=-1)
                 for t in range(T)]
    masks_nhwk = jnp.transpose(masks_pl.reshape(B, T, H, K_OBJ, W),
                               (0, 1, 2, 4, 3))                # (B,T,H,W,K)
    seg_outs = [{"masks": masks_nhwk[:, t],
                 "latent_representation_transformed": z_all[:, t]} for t in range(T)]
    matching_score_12 = jnp.mean(jnp.max(align_w, axis=-1), axis=-1)   # (B,)
    imag_frame = jnp.transpose(imag_pl.reshape(B, H, C_IN, W), (0, 1, 3, 2))  # (B,H,W,3)
    predicted = jnp.transpose(pred_pl.reshape(B, H, C_IN, W), (0, 1, 3, 2))   # (B,H,W,3)

    return {
        "X_updated": X_updated,
        "segment_outputs": {
            "seg_out1": seg_outs[0], "seg_out2": seg_outs[1], "seg_out3": seg_outs[2],
            "representation_aligned1": z1_matched,
            "representation_aligned2": z_all[:, 1],
            "matching_score_12": matching_score_12,
            "alignment_weight_12": align_w,
            "alignment_weight_logit_12": align_logit,
        },
        "depth_outputs": depth_outputs,
        "warping_outputs": {"object_motion": object_motion},
        "imag_outputs": {"imagined_frame": imag_frame},
        "predicted_outputs": {"predicted_frame": predicted},
    }


# ----------------------------------- main ------------------------------------

if __name__ == "__main__":
    pw = init_weights(jax.random.PRNGKey(42))
    X = jax.random.uniform(jax.random.PRNGKey(0), (B, T, C_IN, H, W), dtype=F32)
    fwd = jax.jit(opple_forward)
    outputs = fwd(pw, X)
    jax.block_until_ready(outputs)
    assert outputs["predicted_outputs"]["predicted_frame"].shape == (B, H, W, C_IN)
    assert outputs["segment_outputs"]["representation_aligned1"].shape == (B, K_OBJ, LATENT)
    assert outputs["imag_outputs"]["imagined_frame"].shape == (B, H, W, C_IN)
    assert outputs["segment_outputs"]["seg_out1"]["masks"].shape == (B, H, W, K_OBJ)
    print("KERNEL_OK")
</pallas_src>

<mosaic_0001>
module attributes {stable_mosaic.version = 11 : i64} {
  func.func @_opple_kernel(%arg0: i32, %arg1: memref<1x3x16x48xf32, #tpu.memory_space<vmem>>, %arg2: memref<16x16xf32, #tpu.memory_space<vmem>>, %arg3: memref<16x16xf32, #tpu.memory_space<vmem>>, %arg4: memref<16x256xf32, #tpu.memory_space<vmem>>, %arg5: memref<256x16xf32, #tpu.memory_space<vmem>>, %arg6: memref<3x48x128xf32, #tpu.memory_space<vmem>>, %arg7: memref<1x128xf32, #tpu.memory_space<vmem>>, %arg8: memref<3x128x16xf32, #tpu.memory_space<vmem>>, %arg9: memref<1x16xf32, #tpu.memory_space<vmem>>, %arg10: memref<3x48x256xf32, #tpu.memory_space<vmem>>, %arg11: memref<3x16x256xf32, #tpu.memory_space<vmem>>, %arg12: memref<1x256xf32, #tpu.memory_space<vmem>>, %arg13: memref<3x256x64xf32, #tpu.memory_space<vmem>>, %arg14: memref<1x64xf32, #tpu.memory_space<vmem>>, %arg15: memref<16x32xf32, #tpu.memory_space<vmem>>, %arg16: memref<1x32xf32, #tpu.memory_space<vmem>>, %arg17: memref<32x2xf32, #tpu.memory_space<vmem>>, %arg18: memref<32x2xf32, #tpu.memory_space<vmem>>, %arg19: memref<1x2xf32, #tpu.memory_space<vmem>>, %arg20: memref<3x48x256xf32, #tpu.memory_space<vmem>>, %arg21: memref<3x16x256xf32, #tpu.memory_space<vmem>>, %arg22: memref<3x64x256xf32, #tpu.memory_space<vmem>>, %arg23: memref<1x256xf32, #tpu.memory_space<vmem>>, %arg24: memref<3x256x48xf32, #tpu.memory_space<vmem>>, %arg25: memref<1x48xf32, #tpu.memory_space<vmem>>, %arg26: memref<1x3x16x16xf32, #tpu.memory_space<vmem>>, %arg27: memref<1x3x16x64xf32, #tpu.memory_space<vmem>>, %arg28: memref<1x3x4x32xf32, #tpu.memory_space<vmem>>, %arg29: memref<1x4x4xf32, #tpu.memory_space<vmem>>, %arg30: memref<1x4x4xf32, #tpu.memory_space<vmem>>, %arg31: memref<1x4x32xf32, #tpu.memory_space<vmem>>, %arg32: memref<1x4x2xf32, #tpu.memory_space<vmem>>, %arg33: memref<1x16x48xf32, #tpu.memory_space<vmem>>, %arg34: memref<1x16x48xf32, #tpu.memory_space<vmem>>) attributes {dimension_semantics = [#tpu.dimension_semantics<parallel>], iteration_bounds = array<i64: 2>, scalar_prefetch = 0 : i64, scratch_operands = 0 : i64, tpu.core_type = #tpu.core_type<tc>, window_params = [{transform_indices = @transform_0, window_bounds = array<i64: 1, 3, 16, 48>}, {pipeline_mode = #tpu.pipeline_mode<synchronous>, transform_indices = @transform_1, window_bounds = array<i64: 16, 16>}, {pipeline_mode = #tpu.pipeline_mode<synchronous>, transform_indices = @transform_2, window_bounds = array<i64: 16, 16>}, {pipeline_mode = #tpu.pipeline_mode<synchronous>, transform_indices = @transform_3, window_bounds = array<i64: 16, 256>}, {pipeline_mode = #tpu.pipeline_mode<synchronous>, transform_indices = @transform_4, window_bounds = array<i64: 256, 16>}, {pipeline_mode = #tpu.pipeline_mode<synchronous>, transform_indices = @transform_5, window_bounds = array<i64: 3, 48, 128>}, {pipeline_mode = #tpu.pipeline_mode<synchronous>, transform_indices = @transform_6, window_bounds = array<i64: 1, 128>}, {pipeline_mode = #tpu.pipeline_mode<synchronous>, transform_indices = @transform_7, window_bounds = array<i64: 3, 128, 16>}, {pipeline_mode = #tpu.pipeline_mode<synchronous>, transform_indices = @transform_8, window_bounds = array<i64: 1, 16>}, {pipeline_mode = #tpu.pipeline_mode<synchronous>, transform_indices = @transform_9, window_bounds = array<i64: 3, 48, 256>}, {pipeline_mode = #tpu.pipeline_mode<synchronous>, transform_indices = @transform_10, window_bounds = array<i64: 3, 16, 256>}, {pipeline_mode = #tpu.pipeline_mode<synchronous>, transform_indices = @transform_11, window_bounds = array<i64: 1, 256>}, {pipeline_mode = #tpu.pipeline_mode<synchronous>, transform_indices = @transform_12, window_bounds = array<i64: 3, 256, 64>}, {pipeline_mode = #tpu.pipeline_mode<synchronous>, transform_indices = @transform_13, window_bounds = array<i64: 1, 64>}, {pipeline_mode = #tpu.pipeline_mode<synchronous>, transform_indices = @transform_14, window_bounds = array<i64: 16, 32>}, {pipeline_mode = #tpu.pipeline_mode<synchronous>, transform_indices = @transform_15, window_bounds = array<i64: 1, 32>}, {pipeline_mode = #tpu.pipeline_mode<synchronous>, transform_indices = @transform_16, window_bounds = array<i64: 32, 2>}, {pipeline_mode = #tpu.pipeline_mode<synchronous>, transform_indices = @transform_17, window_bounds = array<i64: 32, 2>}, {pipeline_mode = #tpu.pipeline_mode<synchronous>, transform_indices = @transform_18, window_bounds = array<i64: 1, 2>}, {pipeline_mode = #tpu.pipeline_mode<synchronous>, transform_indices = @transform_19, window_bounds = array<i64: 3, 48, 256>}, {pipeline_mode = #tpu.pipeline_mode<synchronous>, transform_indices = @transform_20, window_bounds = array<i64: 3, 16, 256>}, {pipeline_mode = #tpu.pipeline_mode<synchronous>, transform_indices = @transform_21, window_bounds = array<i64: 3, 64, 256>}, {pipeline_mode = #tpu.pipeline_mode<synchronous>, transform_indices = @transform_22, window_bounds = array<i64: 1, 256>}, {pipeline_mode = #tpu.pipeline_mode<synchronous>, transform_indices = @transform_23, window_bounds = array<i64: 3, 256, 48>}, {pipeline_mode = #tpu.pipeline_mode<synchronous>, transform_indices = @transform_24, window_bounds = array<i64: 1, 48>}, {transform_indices = @transform_25, window_bounds = array<i64: 1, 3, 16, 16>}, {transform_indices = @transform_26, window_bounds = array<i64: 1, 3, 16, 64>}, {transform_indices = @transform_27, window_bounds = array<i64: 1, 3, 4, 32>}, {transform_indices = @transform_28, window_bounds = array<i64: 1, 4, 4>}, {transform_indices = @transform_29, window_bounds = array<i64: 1, 4, 4>}, {transform_indices = @transform_30, window_bounds = array<i64: 1, 4, 32>}, {transform_indices = @transform_31, window_bounds = array<i64: 1, 4, 2>}, {transform_indices = @transform_32, window_bounds = array<i64: 1, 16, 48>}, {transform_indices = @transform_33, window_bounds = array<i64: 1, 16, 48>}]} {
    %c0 = arith.constant 0 : index
    %c0_0 = arith.constant 0 : index
    %0 = vector.load %arg2[%c0, %c0_0] : memref<16x16xf32, #tpu.memory_space<vmem>>, vector<16x16xf32>
    %c0_1 = arith.constant 0 : index
    %c0_2 = arith.constant 0 : index
    %1 = vector.load %arg3[%c0_1, %c0_2] : memref<16x16xf32, #tpu.memory_space<vmem>>, vector<16x16xf32>
    %c0_3 = arith.constant 0 : index
    %c0_4 = arith.constant 0 : index
    %2 = vector.load %arg4[%c0_3, %c0_4] : memref<16x256xf32, #tpu.memory_space<vmem>>, vector<16x256xf32>
    %c0_5 = arith.constant 0 : index
    %c0_6 = arith.constant 0 : index
    %3 = vector.load %arg5[%c0_5, %c0_6] : memref<256x16xf32, #tpu.memory_space<vmem>>, vector<256x16xf32>
    %c0_7 = arith.constant 0 : index
    %c0_8 = arith.constant 0 : index
    %c0_9 = arith.constant 0 : index
    %c0_10 = arith.constant 0 : index
    %4 = vector.load %arg1[%c0_7, %c0_8, %c0_9, %c0_10] : memref<1x3x16x48xf32, #tpu.memory_space<vmem>>, vector<1x1x16x48xf32>
    %5 = vector.shape_cast %4 : vector<1x1x16x48xf32> to vector<16x48xf32>
    %cst = arith.constant dense<0.000000e+00> : vector<16x48xf32>
    %6 = tpu.matmul %0, %5, %cst {dimension_numbers = #tpu.dot_dimension_numbers<[1], [0], [0], [1], [0, 0, 1, 1], [], []>} : vector<16x16xf32>, vector<16x48xf32>, vector<16x48xf32> -> vector<16x48xf32>
    %cst_11 = arith.constant dense<0.000000e+00> : vector<16x48xf32>
    %7 = tpu.matmul %1, %5, %cst_11 {dimension_numbers = #tpu.dot_dimension_numbers<[1], [0], [0], [1], [0, 0, 1, 1], [], []>} : vector<16x16xf32>, vector<16x48xf32>, vector<16x48xf32> -> vector<16x48xf32>
    %c0_12 = arith.constant 0 : index
    %c0_13 = arith.constant 0 : index
    %c0_14 = arith.constant 0 : index
    %8 = vector.load %arg6[%c0_12, %c0_13, %c0_14] : memref<3x48x128xf32, #tpu.memory_space<vmem>>, vector<1x48x128xf32>
    %9 = vector.shape_cast %8 : vector<1x48x128xf32> to vector<48x128xf32>
    %cst_15 = arith.constant dense<0.000000e+00> : vector<16x128xf32>
    %10 = tpu.matmul %6, %9, %cst_15 {dimension_numbers = #tpu.dot_dimension_numbers<[1], [0], [0], [1], [0, 0, 1, 1], [], []>} : vector<16x48xf32>, vector<48x128xf32>, vector<16x128xf32> -> vector<16x128xf32>
    %c1 = arith.constant 1 : index
    %c0_16 = arith.constant 0 : index
    %c0_17 = arith.constant 0 : index
    %11 = vector.load %arg6[%c1, %c0_16, %c0_17] : memref<3x48x128xf32, #tpu.memory_space<vmem>>, vector<1x48x128xf32>
    %12 = vector.shape_cast %11 : vector<1x48x128xf32> to vector<48x128xf32>
    %cst_18 = arith.constant dense<0.000000e+00> : vector<16x128xf32>
    %13 = tpu.matmul %5, %12, %cst_18 {dimension_numbers = #tpu.dot_dimension_numbers<[1], [0], [0], [1], [0, 0, 1, 1], [], []>} : vector<16x48xf32>, vector<48x128xf32>, vector<16x128xf32> -> vector<16x128xf32>
    %14 = arith.addf %10, %13 : vector<16x128xf32>
    %c2 = arith.constant 2 : index
    %c0_19 = arith.constant 0 : index
    %c0_20 = arith.constant 0 : index
    %15 = vector.load %arg6[%c2, %c0_19, %c0_20] : memref<3x48x128xf32, #tpu.memory_space<vmem>>, vector<1x48x128xf32>
    %16 = vector.shape_cast %15 : vector<1x48x128xf32> to vector<48x128xf32>
    %cst_21 = arith.constant dense<0.000000e+00> : vector<16x128xf32>
    %17 = tpu.matmul %7, %16, %cst_21 {dimension_numbers = #tpu.dot_dimension_numbers<[1], [0], [0], [1], [0, 0, 1, 1], [], []>} : vector<16x48xf32>, vector<48x128xf32>, vector<16x128xf32> -> vector<16x128xf32>
    %18 = arith.addf %14, %17 : vector<16x128xf32>
    %c0_22 = arith.constant 0 : index
    %c0_23 = arith.constant 0 : index
    %19 = vector.load %arg7[%c0_22, %c0_23] : memref<1x128xf32, #tpu.memory_space<vmem>>, vector<1x128xf32>
    %20 = vector.broadcast %19 : vector<1x128xf32> to vector<16x128xf32>
    %21 = arith.addf %18, %20 : vector<16x128xf32>
    %cst_24 = arith.constant 0.000000e+00 : f32
    %22 = vector.broadcast %cst_24 : f32 to vector<16x128xf32>
    %23 = arith.maximumf %21, %22 : vector<16x128xf32>
    %cst_25 = arith.constant dense<0.000000e+00> : vector<16x128xf32>
    %24 = tpu.matmul %0, %23, %cst_25 {dimension_numbers = #tpu.dot_dimension_numbers<[1], [0], [0], [1], [0, 0, 1, 1], [], []>} : vector<16x16xf32>, vector<16x128xf32>, vector<16x128xf32> -> vector<16x128xf32>
    %cst_26 = arith.constant dense<0.000000e+00> : vector<16x128xf32>
    %25 = tpu.matmul %1, %23, %cst_26 {dimension_numbers = #tpu.dot_dimension_numbers<[1], [0], [0], [1], [0, 0, 1, 1], [], []>} : vector<16x16xf32>, vector<16x128xf32>, vector<16x128xf32> -> vector<16x128xf32>
    %c0_27 = arith.constant 0 : index
    %c0_28 = arith.constant 0 : index
    %c0_29 = arith.constant 0 : index
    %26 = vector.load %arg8[%c0_27, %c0_28, %c0_29] : memref<3x128x16xf32, #tpu.memory_space<vmem>>, vector<1x128x16xf32>
    %27 = vector.shape_cast %26 : vector<1x128x16xf32> to vector<128x16xf32>
    %cst_30 = arith.constant dense<0.000000e+00> : vector<16x16xf32>
    %28 = tpu.matmul %24, %27, %cst_30 {dimension_numbers = #tpu.dot_dimension_numbers<[1], [0], [0], [1], [0, 0, 1, 1], [], []>} : vector<16x128xf32>, vector<128x16xf32>, vector<16x16xf32> -> vector<16x16xf32>
    %c1_31 = arith.constant 1 : index
    %c0_32 = arith.constant 0 : index
    %c0_33 = arith.constant 0 : index
    %29 = vector.load %arg8[%c1_31, %c0_32, %c0_33] : memref<3x128x16xf32, #tpu.memory_space<vmem>>, vector<1x128x16xf32>
    %30 = vector.shape_cast %29 : vector<1x128x16xf32> to vector<128x16xf32>
    %cst_34 = arith.constant dense<0.000000e+00> : vector<16x16xf32>
    %31 = tpu.matmul %23, %30, %cst_34 {dimension_numbers = #tpu.dot_dimension_numbers<[1], [0], [0], [1], [0, 0, 1, 1], [], []>} : vector<16x128xf32>, vector<128x16xf32>, vector<16x16xf32> -> vector<16x16xf32>
    %32 = arith.addf %28, %31 : vector<16x16xf32>
    %c2_35 = arith.constant 2 : index
    %c0_36 = arith.constant 0 : index
    %c0_37 = arith.constant 0 : index
    %33 = vector.load %arg8[%c2_35, %c0_36, %c0_37] : memref<3x128x16xf32, #tpu.memory_space<vmem>>, vector<1x128x16xf32>
    %34 = vector.shape_cast %33 : vector<1x128x16xf32> to vector<128x16xf32>
    %cst_38 = arith.constant dense<0.000000e+00> : vector<16x16xf32>
    %35 = tpu.matmul %25, %34, %cst_38 {dimension_numbers = #tpu.dot_dimension_numbers<[1], [0], [0], [1], [0, 0, 1, 1], [], []>} : vector<16x128xf32>, vector<128x16xf32>, vector<16x16xf32> -> vector<16x16xf32>
    %36 = arith.addf %32, %35 : vector<16x16xf32>
    %c0_39 = arith.constant 0 : index
    %c0_40 = arith.constant 0 : index
    %37 = vector.load %arg9[%c0_39, %c0_40] : memref<1x16xf32, #tpu.memory_space<vmem>>, vector<1x16xf32>
    %38 = vector.broadcast %37 : vector<1x16xf32> to vector<16x16xf32>
    %39 = arith.addf %36, %38 : vector<16x16xf32>
    %40 = arith.negf %39 : vector<16x16xf32>
    %41 = math.exp %40 : vector<16x16xf32>
    %cst_41 = arith.constant 1.000000e+00 : f32
    %42 = vector.broadcast %cst_41 : f32 to vector<16x16xf32>
    %43 = arith.addf %42, %41 : vector<16x16xf32>
    %44 = arith.divf %42, %43 : vector<16x16xf32>
    %c0_42 = arith.constant 0 : index
    %c0_43 = arith.constant 0 : index
    %c0_44 = arith.constant 0 : index
    %c0_45 = arith.constant 0 : index
    %45 = vector.load %arg26[%c0_42, %c0_43, %c0_44, %c0_45] : memref<1x3x16x16xf32, #tpu.memory_space<vmem>>, vector<1x1x16x16xf32>
    %46 = vector.shape_cast %45 : vector<1x1x16x16xf32> to vector<16x16xf32>
    %47 = vector.shape_cast %44 : vector<16x16xf32> to vector<1x1x16x16xf32>
    tpu.vector_store %arg26[%c0_42, %c0_43, %c0_44, %c0_45], %47 {strides = array<i32>} : memref<1x3x16x16xf32, #tpu.memory_space<vmem>>, vector<1x1x16x16xf32>,
    %cst_46 = arith.constant dense<0.000000e+00> : vector<16x16xf32>
    %48 = tpu.matmul %0, %44, %cst_46 {dimension_numbers = #tpu.dot_dimension_numbers<[1], [0], [0], [1], [0, 0, 1, 1], [], []>} : vector<16x16xf32>, vector<16x16xf32>, vector<16x16xf32> -> vector<16x16xf32>
    %cst_47 = arith.constant dense<0.000000e+00> : vector<16x16xf32>
    %49 = tpu.matmul %1, %44, %cst_47 {dimension_numbers = #tpu.dot_dimension_numbers<[1], [0], [0], [1], [0, 0, 1, 1], [], []>} : vector<16x16xf32>, vector<16x16xf32>, vector<16x16xf32> -> vector<16x16xf32>
    %c0_48 = arith.constant 0 : index
    %c0_49 = arith.constant 0 : index
    %c0_50 = arith.constant 0 : index
    %50 = vector.load %arg10[%c0_48, %c0_49, %c0_50] : memref<3x48x256xf32, #tpu.memory_space<vmem>>, vector<1x48x256xf32>
    %51 = vector.shape_cast %50 : vector<1x48x256xf32> to vector<48x256xf32>
    %cst_51 = arith.constant dense<0.000000e+00> : vector<16x256xf32>
    %52 = tpu.matmul %6, %51, %cst_51 {dimension_numbers = #tpu.dot_dimension_numbers<[1], [0], [0], [1], [0, 0, 1, 1], [], []>} : vector<16x48xf32>, vector<48x256xf32>, vector<16x256xf32> -> vector<16x256xf32>
    %c1_52 = arith.constant 1 : index
    %c0_53 = arith.constant 0 : index
    %c0_54 = arith.constant 0 : index
    %53 = vector.load %arg10[%c1_52, %c0_53, %c0_54] : memref<3x48x256xf32, #tpu.memory_space<vmem>>, vector<1x48x256xf32>
    %54 = vector.shape_cast %53 : vector<1x48x256xf32> to vector<48x256xf32>
    %cst_55 = arith.constant dense<0.000000e+00> : vector<16x256xf32>
    %55 = tpu.matmul %5, %54, %cst_55 {dimension_numbers = #tpu.dot_dimension_numbers<[1], [0], [0], [1], [0, 0, 1, 1], [], []>} : vector<16x48xf32>, vector<48x256xf32>, vector<16x256xf32> -> vector<16x256xf32>
    %56 = arith.addf %52, %55 : vector<16x256xf32>
    %c2_56 = arith.constant 2 : index
    %c0_57 = arith.constant 0 : index
    %c0_58 = arith.constant 0 : index
    %57 = vector.load %arg10[%c2_56, %c0_57, %c0_58] : memref<3x48x256xf32, #tpu.memory_space<vmem>>, vector<1x48x256xf32>
    %58 = vector.shape_cast %57 : vector<1x48x256xf32> to vector<48x256xf32>
    %cst_59 = arith.constant dense<0.000000e+00> : vector<16x256xf32>
    %59 = tpu.matmul %7, %58, %cst_59 {dimension_numbers = #tpu.dot_dimension_numbers<[1], [0], [0], [1], [0, 0, 1, 1], [], []>} : vector<16x48xf32>, vector<48x256xf32>, vector<16x256xf32> -> vector<16x256xf32>
    %60 = arith.addf %56, %59 : vector<16x256xf32>
    %c0_60 = arith.constant 0 : index
    %c0_61 = arith.constant 0 : index
    %c0_62 = arith.constant 0 : index
    %61 = vector.load %arg11[%c0_60, %c0_61, %c0_62] : memref<3x16x256xf32, #tpu.memory_space<vmem>>, vector<1x16x256xf32>
    %62 = vector.shape_cast %61 : vector<1x16x256xf32> to vector<16x256xf32>
    %cst_63 = arith.constant dense<0.000000e+00> : vector<16x256xf32>
    %63 = tpu.matmul %48, %62, %cst_63 {dimension_numbers = #tpu.dot_dimension_numbers<[1], [0], [0], [1], [0, 0, 1, 1], [], []>} : vector<16x16xf32>, vector<16x256xf32>, vector<16x256xf32> -> vector<16x256xf32>
    %c1_64 = arith.constant 1 : index
    %c0_65 = arith.constant 0 : index
    %c0_66 = arith.constant 0 : index
    %64 = vector.load %arg11[%c1_64, %c0_65, %c0_66] : memref<3x16x256xf32, #tpu.memory_space<vmem>>, vector<1x16x256xf32>
    %65 = vector.shape_cast %64 : vector<1x16x256xf32> to vector<16x256xf32>
    %cst_67 = arith.constant dense<0.000000e+00> : vector<16x256xf32>
    %66 = tpu.matmul %44, %65, %cst_67 {dimension_numbers = #tpu.dot_dimension_numbers<[1], [0], [0], [1], [0, 0, 1, 1], [], []>} : vector<16x16xf32>, vector<16x256xf32>, vector<16x256xf32> -> vector<16x256xf32>
    %67 = arith.addf %63, %66 : vector<16x256xf32>
    %c2_68 = arith.constant 2 : index
    %c0_69 = arith.constant 0 : index
    %c0_70 = arith.constant 0 : index
    %68 = vector.load %arg11[%c2_68, %c0_69, %c0_70] : memref<3x16x256xf32, #tpu.memory_space<vmem>>, vector<1x16x256xf32>
    %69 = vector.shape_cast %68 : vector<1x16x256xf32> to vector<16x256xf32>
    %cst_71 = arith.constant dense<0.000000e+00> : vector<16x256xf32>
    %70 = tpu.matmul %49, %69, %cst_71 {dimension_numbers = #tpu.dot_dimension_numbers<[1], [0], [0], [1], [0, 0, 1, 1], [], []>} : vector<16x16xf32>, vector<16x256xf32>, vector<16x256xf32> -> vector<16x256xf32>
    %71 = arith.addf %67, %70 : vector<16x256xf32>
    %72 = arith.addf %60, %71 : vector<16x256xf32>
    %c0_72 = arith.constant 0 : index
    %c0_73 = arith.constant 0 : index
    %73 = vector.load %arg12[%c0_72, %c0_73] : memref<1x256xf32, #tpu.memory_space<vmem>>, vector<1x256xf32>
    %74 = vector.broadcast %73 : vector<1x256xf32> to vector<16x256xf32>
    %75 = arith.addf %72, %74 : vector<16x256xf32>
    %cst_74 = arith.constant 0.000000e+00 : f32
    %76 = vector.broadcast %cst_74 : f32 to vector<16x256xf32>
    %77 = arith.maximumf %75, %76 : vector<16x256xf32>
    %cst_75 = arith.constant dense<0.000000e+00> : vector<16x256xf32>
    %78 = tpu.matmul %0, %77, %cst_75 {dimension_numbers = #tpu.dot_dimension_numbers<[1], [0], [0], [1], [0, 0, 1, 1], [], []>} : vector<16x16xf32>, vector<16x256xf32>, vector<16x256xf32> -> vector<16x256xf32>
    %cst_76 = arith.constant dense<0.000000e+00> : vector<16x256xf32>
    %79 = tpu.matmul %1, %77, %cst_76 {dimension_numbers = #tpu.dot_dimension_numbers<[1], [0], [0], [1], [0, 0, 1, 1], [], []>} : vector<16x16xf32>, vector<16x256xf32>, vector<16x256xf32> -> vector<16x256xf32>
    %c0_77 = arith.constant 0 : index
    %c0_78 = arith.constant 0 : index
    %c0_79 = arith.constant 0 : index
    %80 = vector.load %arg13[%c0_77, %c0_78, %c0_79] : memref<3x256x64xf32, #tpu.memory_space<vmem>>, vector<1x256x64xf32>
    %81 = vector.shape_cast %80 : vector<1x256x64xf32> to vector<256x64xf32>
    %cst_80 = arith.constant dense<0.000000e+00> : vector<16x64xf32>
    %82 = tpu.matmul %78, %81, %cst_80 {dimension_numbers = #tpu.dot_dimension_numbers<[1], [0], [0], [1], [0, 0, 1, 1], [], []>} : vector<16x256xf32>, vector<256x64xf32>, vector<16x64xf32> -> vector<16x64xf32>
    %c1_81 = arith.constant 1 : index
    %c0_82 = arith.constant 0 : index
    %c0_83 = arith.constant 0 : index
    %83 = vector.load %arg13[%c1_81, %c0_82, %c0_83] : memref<3x256x64xf32, #tpu.memory_space<vmem>>, vector<1x256x64xf32>
    %84 = vector.shape_cast %83 : vector<1x256x64xf32> to vector<256x64xf32>
    %cst_84 = arith.constant dense<0.000000e+00> : vector<16x64xf32>
    %85 = tpu.matmul %77, %84, %cst_84 {dimension_numbers = #tpu.dot_dimension_numbers<[1], [0], [0], [1], [0, 0, 1, 1], [], []>} : vector<16x256xf32>, vector<256x64xf32>, vector<16x64xf32> -> vector<16x64xf32>
    %86 = arith.addf %82, %85 : vector<16x64xf32>
    %c2_85 = arith.constant 2 : index
    %c0_86 = arith.constant 0 : index
    %c0_87 = arith.constant 0 : index
    %87 = vector.load %arg13[%c2_85, %c0_86, %c0_87] : memref<3x256x64xf32, #tpu.memory_space<vmem>>, vector<1x256x64xf32>
    %88 = vector.shape_cast %87 : vector<1x256x64xf32> to vector<256x64xf32>
    %cst_88 = arith.constant dense<0.000000e+00> : vector<16x64xf32>
    %89 = tpu.matmul %79, %88, %cst_88 {dimension_numbers = #tpu.dot_dimension_numbers<[1], [0], [0], [1], [0, 0, 1, 1], [], []>} : vector<16x256xf32>, vector<256x64xf32>, vector<16x64xf32> -> vector<16x64xf32>
    %90 = arith.addf %86, %89 : vector<16x64xf32>
    %c0_89 = arith.constant 0 : index
    %c0_90 = arith.constant 0 : index
    %91 = vector.load %arg14[%c0_89, %c0_90] : memref<1x64xf32, #tpu.memory_space<vmem>>, vector<1x64xf32>
    %92 = vector.broadcast %91 : vector<1x64xf32> to vector<16x64xf32>
    %93 = arith.addf %90, %92 : vector<16x64xf32>
    %94 = vector.extract_strided_slice %93 {offsets = [0, 0], sizes = [16, 16], strides = [1, 1]} : vector<16x64xf32> to vector<16x16xf32>
    %95 = vector.extract_strided_slice %93 {offsets = [0, 16], sizes = [16, 16], strides = [1, 1]} : vector<16x64xf32> to vector<16x16xf32>
    %96 = vector.extract_strided_slice %93 {offsets = [0, 32], sizes = [16, 16], strides = [1, 1]} : vector<16x64xf32> to vector<16x16xf32>
    %97 = vector.extract_strided_slice %93 {offsets = [0, 48], sizes = [16, 16], strides = [1, 1]} : vector<16x64xf32> to vector<16x16xf32>
    %98 = arith.maximumf %94, %95 : vector<16x16xf32>
    %99 = arith.maximumf %98, %96 : vector<16x16xf32>
    %100 = arith.maximumf %99, %97 : vector<16x16xf32>
    %101 = arith.subf %94, %100 : vector<16x16xf32>
    %102 = math.exp %101 : vector<16x16xf32>
    %103 = arith.subf %95, %100 : vector<16x16xf32>
    %104 = math.exp %103 : vector<16x16xf32>
    %105 = arith.subf %96, %100 : vector<16x16xf32>
    %106 = math.exp %105 : vector<16x16xf32>
    %107 = arith.subf %97, %100 : vector<16x16xf32>
    %108 = math.exp %107 : vector<16x16xf32>
    %109 = arith.addf %102, %104 : vector<16x16xf32>
    %110 = arith.addf %109, %106 : vector<16x16xf32>
    %111 = arith.addf %110, %108 : vector<16x16xf32>
    %112 = arith.divf %102, %111 : vector<16x16xf32>
    %113 = arith.divf %104, %111 : vector<16x16xf32>
    %114 = arith.divf %106, %111 : vector<16x16xf32>
    %115 = arith.divf %108, %111 : vector<16x16xf32>
    %116 = tpu.concatenate %112, %113, %114, %115 in 1 : vector<16x16xf32>, vector<16x16xf32>, vector<16x16xf32>, vector<16x16xf32> -> vector<16x64xf32>
    %c0_91 = arith.constant 0 : index
    %c0_92 = arith.constant 0 : index
    %c0_93 = arith.constant 0 : index
    %c0_94 = arith.constant 0 : index
    %117 = vector.load %arg27[%c0_91, %c0_92, %c0_93, %c0_94] : memref<1x3x16x64xf32, #tpu.memory_space<vmem>>, vector<1x1x16x64xf32>
    %118 = vector.shape_cast %117 : vector<1x1x16x64xf32> to vector<16x64xf32>
    %119 = vector.shape_cast %116 : vector<16x64xf32> to vector<1x1x16x64xf32>
    tpu.vector_store %arg27[%c0_91, %c0_92, %c0_93, %c0_94], %119 {strides = array<i32>} : memref<1x3x16x64xf32, #tpu.memory_space<vmem>>, vector<1x1x16x64xf32>,
    %cst_95 = arith.constant dense<0.000000e+00> : vector<16x256xf32>
    %120 = tpu.matmul %112, %2, %cst_95 {dimension_numbers = #tpu.dot_dimension_numbers<[1], [0], [0], [1], [0, 0, 1, 1], [], []>} : vector<16x16xf32>, vector<16x256xf32>, vector<16x256xf32> -> vector<16x256xf32>
    %121 = arith.mulf %77, %120 : vector<16x256xf32>
    %cst_96 = arith.constant dense<0.000000e+00> : vector<256xf32>
    %122 = vector.multi_reduction <add>, %121, %cst_96 [0] : vector<16x256xf32> to vector<256xf32>
    %123 = vector.shape_cast %122 : vector<256xf32> to vector<1x256xf32>
    %cst_97 = arith.constant dense<0.000000e+00> : vector<1x16xf32>
    %124 = tpu.matmul %123, %3, %cst_97 {dimension_numbers = #tpu.dot_dimension_numbers<[1], [0], [0], [1], [0, 0, 1, 1], [], []>} : vector<1x256xf32>, vector<256x16xf32>, vector<1x16xf32> -> vector<1x16xf32>
    %cst_98 = arith.constant dense<0.000000e+00> : vector<16xf32>
    %125 = vector.multi_reduction <add>, %112, %cst_98 [1] : vector<16x16xf32> to vector<16xf32>
    %126 = vector.shape_cast %125 : vector<16xf32> to vector<16x1xf32>
    %cst_99 = arith.constant dense<0.000000e+00> : vector<1xf32>
    %127 = vector.multi_reduction <add>, %126, %cst_99 [0] : vector<16x1xf32> to vector<1xf32>
    %128 = vector.shape_cast %127 : vector<1xf32> to vector<1x1xf32>
    %cst_100 = arith.constant 9.99999997E-7 : f32
    %129 = vector.broadcast %cst_100 : f32 to vector<1x1xf32>
    %130 = arith.addf %128, %129 : vector<1x1xf32>
    %131 = vector.broadcast %130 : vector<1x1xf32> to vector<1x16xf32>
    %132 = arith.divf %124, %131 : vector<1x16xf32>
    %cst_101 = arith.constant dense<0.000000e+00> : vector<16x256xf32>
    %133 = tpu.matmul %113, %2, %cst_101 {dimension_numbers = #tpu.dot_dimension_numbers<[1], [0], [0], [1], [0, 0, 1, 1], [], []>} : vector<16x16xf32>, vector<16x256xf32>, vector<16x256xf32> -> vector<16x256xf32>
    %134 = arith.mulf %77, %133 : vector<16x256xf32>
    %cst_102 = arith.constant dense<0.000000e+00> : vector<256xf32>
    %135 = vector.multi_reduction <add>, %134, %cst_102 [0] : vector<16x256xf32> to vector<256xf32>
    %136 = vector.shape_cast %135 : vector<256xf32> to vector<1x256xf32>
    %cst_103 = arith.constant dense<0.000000e+00> : vector<1x16xf32>
    %137 = tpu.matmul %136, %3, %cst_103 {dimension_numbers = #tpu.dot_dimension_numbers<[1], [0], [0], [1], [0, 0, 1, 1], [], []>} : vector<1x256xf32>, vector<256x16xf32>, vector<1x16xf32> -> vector<1x16xf32>
    %cst_104 = arith.constant dense<0.000000e+00> : vector<16xf32>
    %138 = vector.multi_reduction <add>, %113, %cst_104 [1] : vector<16x16xf32> to vector<16xf32>
    %139 = vector.shape_cast %138 : vector<16xf32> to vector<16x1xf32>
    %cst_105 = arith.constant dense<0.000000e+00> : vector<1xf32>
    %140 = vector.multi_reduction <add>, %139, %cst_105 [0] : vector<16x1xf32> to vector<1xf32>
    %141 = vector.shape_cast %140 : vector<1xf32> to vector<1x1xf32>
    %cst_106 = arith.constant 9.99999997E-7 : f32
    %142 = vector.broadcast %cst_106 : f32 to vector<1x1xf32>
    %143 = arith.addf %141, %142 : vector<1x1xf32>
    %144 = vector.broadcast %143 : vector<1x1xf32> to vector<1x16xf32>
    %145 = arith.divf %137, %144 : vector<1x16xf32>
    %cst_107 = arith.constant dense<0.000000e+00> : vector<16x256xf32>
    %146 = tpu.matmul %114, %2, %cst_107 {dimension_numbers = #tpu.dot_dimension_numbers<[1], [0], [0], [1], [0, 0, 1, 1], [], []>} : vector<16x16xf32>, vector<16x256xf32>, vector<16x256xf32> -> vector<16x256xf32>
    %147 = arith.mulf %77, %146 : vector<16x256xf32>
    %cst_108 = arith.constant dense<0.000000e+00> : vector<256xf32>
    %148 = vector.multi_reduction <add>, %147, %cst_108 [0] : vector<16x256xf32> to vector<256xf32>
    %149 = vector.shape_cast %148 : vector<256xf32> to vector<1x256xf32>
    %cst_109 = arith.constant dense<0.000000e+00> : vector<1x16xf32>
    %150 = tpu.matmul %149, %3, %cst_109 {dimension_numbers = #tpu.dot_dimension_numbers<[1], [0], [0], [1], [0, 0, 1, 1], [], []>} : vector<1x256xf32>, vector<256x16xf32>, vector<1x16xf32> -> vector<1x16xf32>
    %cst_110 = arith.constant dense<0.000000e+00> : vector<16xf32>
    %151 = vector.multi_reduction <add>, %114, %cst_110 [1] : vector<16x16xf32> to vector<16xf32>
    %152 = vector.shape_cast %151 : vector<16xf32> to vector<16x1xf32>
    %cst_111 = arith.constant dense<0.000000e+00> : vector<1xf32>
    %153 = vector.multi_reduction <add>, %152, %cst_111 [0] : vector<16x1xf32> to vector<1xf32>
    %154 = vector.shape_cast %153 : vector<1xf32> to vector<1x1xf32>
    %cst_112 = arith.constant 9.99999997E-7 : f32
    %155 = vector.broadcast %cst_112 : f32 to vector<1x1xf32>
    %156 = arith.addf %154, %155 : vector<1x1xf32>
    %157 = vector.broadcast %156 : vector<1x1xf32> to vector<1x16xf32>
    %158 = arith.divf %150, %157 : vector<1x16xf32>
    %cst_113 = arith.constant dense<0.000000e+00> : vector<16x256xf32>
    %159 = tpu.matmul %115, %2, %cst_113 {dimension_numbers = #tpu.dot_dimension_numbers<[1], [0], [0], [1], [0, 0, 1, 1], [], []>} : vector<16x16xf32>, vector<16x256xf32>, vector<16x256xf32> -> vector<16x256xf32>
    %160 = arith.mulf %77, %159 : vector<16x256xf32>
    %cst_114 = arith.constant dense<0.000000e+00> : vector<256xf32>
    %161 = vector.multi_reduction <add>, %160, %cst_114 [0] : vector<16x256xf32> to vector<256xf32>
    %162 = vector.shape_cast %161 : vector<256xf32> to vector<1x256xf32>
    %cst_115 = arith.constant dense<0.000000e+00> : vector<1x16xf32>
    %163 = tpu.matmul %162, %3, %cst_115 {dimension_numbers = #tpu.dot_dimension_numbers<[1], [0], [0], [1], [0, 0, 1, 1], [], []>} : vector<1x256xf32>, vector<256x16xf32>, vector<1x16xf32> -> vector<1x16xf32>
    %cst_116 = arith.constant dense<0.000000e+00> : vector<16xf32>
    %164 = vector.multi_reduction <add>, %115, %cst_116 [1] : vector<16x16xf32> to vector<16xf32>
    %165 = vector.shape_cast %164 : vector<16xf32> to vector<16x1xf32>
    %cst_117 = arith.constant dense<0.000000e+00> : vector<1xf32>
    %166 = vector.multi_reduction <add>, %165, %cst_117 [0] : vector<16x1xf32> to vector<1xf32>
    %167 = vector.shape_cast %166 : vector<1xf32> to vector<1x1xf32>
    %cst_118 = arith.constant 9.99999997E-7 : f32
    %168 = vector.broadcast %cst_118 : f32 to vector<1x1xf32>
    %169 = arith.addf %167, %168 : vector<1x1xf32>
    %170 = vector.broadcast %169 : vector<1x1xf32> to vector<1x16xf32>
    %171 = arith.divf %163, %170 : vector<1x16xf32>
    %172 = tpu.concatenate %132, %145, %158, %171 in 0 : vector<1x16xf32>, vector<1x16xf32>, vector<1x16xf32>, vector<1x16xf32> -> vector<4x16xf32>
    %c0_119 = arith.constant 0 : index
    %c0_120 = arith.constant 0 : index
    %173 = vector.load %arg15[%c0_119, %c0_120] : memref<16x32xf32, #tpu.memory_space<vmem>>, vector<16x32xf32>
    %cst_121 = arith.constant dense<0.000000e+00> : vector<4x32xf32>
    %174 = tpu.matmul %172, %173, %cst_121 {dimension_numbers = #tpu.dot_dimension_numbers<[1], [0], [0], [1], [0, 0, 1, 1], [], []>} : vector<4x16xf32>, vector<16x32xf32>, vector<4x32xf32> -> vector<4x32xf32>
    %c0_122 = arith.constant 0 : index
    %c0_123 = arith.constant 0 : index
    %175 = vector.load %arg16[%c0_122, %c0_123] : memref<1x32xf32, #tpu.memory_space<vmem>>, vector<1x32xf32>
    %176 = vector.broadcast %175 : vector<1x32xf32> to vector<4x32xf32>
    %177 = arith.addf %174, %176 : vector<4x32xf32>
    %178 = math.tanh %177 : vector<4x32xf32>
    %c0_124 = arith.constant 0 : index
    %c0_125 = arith.constant 0 : index
    %c0_126 = arith.constant 0 : index
    %c0_127 = arith.constant 0 : index
    %179 = vector.load %arg28[%c0_124, %c0_125, %c0_126, %c0_127] : memref<1x3x4x32xf32, #tpu.memory_space<vmem>>, vector<1x1x4x32xf32>
    %180 = vector.shape_cast %179 : vector<1x1x4x32xf32> to vector<4x32xf32>
    %181 = vector.shape_cast %178 : vector<4x32xf32> to vector<1x1x4x32xf32>
    tpu.vector_store %arg28[%c0_124, %c0_125, %c0_126, %c0_127], %181 {strides = array<i32>} : memref<1x3x4x32xf32, #tpu.memory_space<vmem>>, vector<1x1x4x32xf32>,
    %c0_128 = arith.constant 0 : index
    %c1_129 = arith.constant 1 : index
    %c0_130 = arith.constant 0 : index
    %c0_131 = arith.constant 0 : index
    %182 = vector.load %arg1[%c0_128, %c1_129, %c0_130, %c0_131] : memref<1x3x16x48xf32, #tpu.memory_space<vmem>>, vector<1x1x16x48xf32>
    %183 = vector.shape_cast %182 : vector<1x1x16x48xf32> to vector<16x48xf32>
    %cst_132 = arith.constant dense<0.000000e+00> : vector<16x48xf32>
    %184 = tpu.matmul %0, %183, %cst_132 {dimension_numbers = #tpu.dot_dimension_numbers<[1], [0], [0], [1], [0, 0, 1, 1], [], []>} : vector<16x16xf32>, vector<16x48xf32>, vector<16x48xf32> -> vector<16x48xf32>
    %cst_133 = arith.constant dense<0.000000e+00> : vector<16x48xf32>
    %185 = tpu.matmul %1, %183, %cst_133 {dimension_numbers = #tpu.dot_dimension_numbers<[1], [0], [0], [1], [0, 0, 1, 1], [], []>} : vector<16x16xf32>, vector<16x48xf32>, vector<16x48xf32> -> vector<16x48xf32>
    %c0_134 = arith.constant 0 : index
    %c0_135 = arith.constant 0 : index
    %c0_136 = arith.constant 0 : index
    %186 = vector.load %arg6[%c0_134, %c0_135, %c0_136] : memref<3x48x128xf32, #tpu.memory_space<vmem>>, vector<1x48x128xf32>
    %187 = vector.shape_cast %186 : vector<1x48x128xf32> to vector<48x128xf32>
    %cst_137 = arith.constant dense<0.000000e+00> : vector<16x128xf32>
    %188 = tpu.matmul %184, %187, %cst_137 {dimension_numbers = #tpu.dot_dimension_numbers<[1], [0], [0], [1], [0, 0, 1, 1], [], []>} : vector<16x48xf32>, vector<48x128xf32>, vector<16x128xf32> -> vector<16x128xf32>
    %c1_138 = arith.constant 1 : index
    %c0_139 = arith.constant 0 : index
    %c0_140 = arith.constant 0 : index
    %189 = vector.load %arg6[%c1_138, %c0_139, %c0_140] : memref<3x48x128xf32, #tpu.memory_space<vmem>>, vector<1x48x128xf32>
    %190 = vector.shape_cast %189 : vector<1x48x128xf32> to vector<48x128xf32>
    %cst_141 = arith.constant dense<0.000000e+00> : vector<16x128xf32>
    %191 = tpu.matmul %183, %190, %cst_141 {dimension_numbers = #tpu.dot_dimension_numbers<[1], [0], [0], [1], [0, 0, 1, 1], [], []>} : vector<16x48xf32>, vector<48x128xf32>, vector<16x128xf32> -> vector<16x128xf32>
    %192 = arith.addf %188, %191 : vector<16x128xf32>
    %c2_142 = arith.constant 2 : index
    %c0_143 = arith.constant 0 : index
    %c0_144 = arith.constant 0 : index
    %193 = vector.load %arg6[%c2_142, %c0_143, %c0_144] : memref<3x48x128xf32, #tpu.memory_space<vmem>>, vector<1x48x128xf32>
    %194 = vector.shape_cast %193 : vector<1x48x128xf32> to vector<48x128xf32>
    %cst_145 = arith.constant dense<0.000000e+00> : vector<16x128xf32>
    %195 = tpu.matmul %185, %194, %cst_145 {dimension_numbers = #tpu.dot_dimension_numbers<[1], [0], [0], [1], [0, 0, 1, 1], [], []>} : vector<16x48xf32>, vector<48x128xf32>, vector<16x128xf32> -> vector<16x128xf32>
    %196 = arith.addf %192, %195 : vector<16x128xf32>
    %c0_146 = arith.constant 0 : index
    %c0_147 = arith.constant 0 : index
    %197 = vector.load %arg7[%c0_146, %c0_147] : memref<1x128xf32, #tpu.memory_space<vmem>>, vector<1x128xf32>
    %198 = vector.broadcast %197 : vector<1x128xf32> to vector<16x128xf32>
    %199 = arith.addf %196, %198 : vector<16x128xf32>
    %cst_148 = arith.constant 0.000000e+00 : f32
    %200 = vector.broadcast %cst_148 : f32 to vector<16x128xf32>
    %201 = arith.maximumf %199, %200 : vector<16x128xf32>
    %cst_149 = arith.constant dense<0.000000e+00> : vector<16x128xf32>
    %202 = tpu.matmul %0, %201, %cst_149 {dimension_numbers = #tpu.dot_dimension_numbers<[1], [0], [0], [1], [0, 0, 1, 1], [], []>} : vector<16x16xf32>, vector<16x128xf32>, vector<16x128xf32> -> vector<16x128xf32>
    %cst_150 = arith.constant dense<0.000000e+00> : vector<16x128xf32>
    %203 = tpu.matmul %1, %201, %cst_150 {dimension_numbers = #tpu.dot_dimension_numbers<[1], [0], [0], [1], [0, 0, 1, 1], [], []>} : vector<16x16xf32>, vector<16x128xf32>, vector<16x128xf32> -> vector<16x128xf32>
    %c0_151 = arith.constant 0 : index
    %c0_152 = arith.constant 0 : index
    %c0_153 = arith.constant 0 : index
    %204 = vector.load %arg8[%c0_151, %c0_152, %c0_153] : memref<3x128x16xf32, #tpu.memory_space<vmem>>, vector<1x128x16xf32>
    %205 = vector.shape_cast %204 : vector<1x128x16xf32> to vector<128x16xf32>
    %cst_154 = arith.constant dense<0.000000e+00> : vector<16x16xf32>
    %206 = tpu.matmul %202, %205, %cst_154 {dimension_numbers = #tpu.dot_dimension_numbers<[1], [0], [0], [1], [0, 0, 1, 1], [], []>} : vector<16x128xf32>, vector<128x16xf32>, vector<16x16xf32> -> vector<16x16xf32>
    %c1_155 = arith.constant 1 : index
    %c0_156 = arith.constant 0 : index
    %c0_157 = arith.constant 0 : index
    %207 = vector.load %arg8[%c1_155, %c0_156, %c0_157] : memref<3x128x16xf32, #tpu.memory_space<vmem>>, vector<1x128x16xf32>
    %208 = vector.shape_cast %207 : vector<1x128x16xf32> to vector<128x16xf32>
    %cst_158 = arith.constant dense<0.000000e+00> : vector<16x16xf32>
    %209 = tpu.matmul %201, %208, %cst_158 {dimension_numbers = #tpu.dot_dimension_numbers<[1], [0], [0], [1], [0, 0, 1, 1], [], []>} : vector<16x128xf32>, vector<128x16xf32>, vector<16x16xf32> -> vector<16x16xf32>
    %210 = arith.addf %206, %209 : vector<16x16xf32>
    %c2_159 = arith.constant 2 : index
    %c0_160 = arith.constant 0 : index
    %c0_161 = arith.constant 0 : index
    %211 = vector.load %arg8[%c2_159, %c0_160, %c0_161] : memref<3x128x16xf32, #tpu.memory_space<vmem>>, vector<1x128x16xf32>
    %212 = vector.shape_cast %211 : vector<1x128x16xf32> to vector<128x16xf32>
    %cst_162 = arith.constant dense<0.000000e+00> : vector<16x16xf32>
    %213 = tpu.matmul %203, %212, %cst_162 {dimension_numbers = #tpu.dot_dimension_numbers<[1], [0], [0], [1], [0, 0, 1, 1], [], []>} : vector<16x128xf32>, vector<128x16xf32>, vector<16x16xf32> -> vector<16x16xf32>
    %214 = arith.addf %210, %213 : vector<16x16xf32>
    %c0_163 = arith.constant 0 : index
    %c0_164 = arith.constant 0 : index
    %215 = vector.load %arg9[%c0_163, %c0_164] : memref<1x16xf32, #tpu.memory_space<vmem>>, vector<1x16xf32>
    %216 = vector.broadcast %215 : vector<1x16xf32> to vector<16x16xf32>
    %217 = arith.addf %214, %216 : vector<16x16xf32>
    %218 = arith.negf %217 : vector<16x16xf32>
    %219 = math.exp %218 : vector<16x16xf32>
    %cst_165 = arith.constant 1.000000e+00 : f32
    %220 = vector.broadcast %cst_165 : f32 to vector<16x16xf32>
    %221 = arith.addf %220, %219 : vector<16x16xf32>
    %222 = arith.divf %220, %221 : vector<16x16xf32>
    %c0_166 = arith.constant 0 : index
    %c1_167 = arith.constant 1 : index
    %c0_168 = arith.constant 0 : index
    %c0_169 = arith.constant 0 : index
    %223 = vector.load %arg26[%c0_166, %c1_167, %c0_168, %c0_169] : memref<1x3x16x16xf32, #tpu.memory_space<vmem>>, vector<1x1x16x16xf32>
    %224 = vector.shape_cast %223 : vector<1x1x16x16xf32> to vector<16x16xf32>
    %225 = vector.shape_cast %222 : vector<16x16xf32> to vector<1x1x16x16xf32>
    tpu.vector_store %arg26[%c0_166, %c1_167, %c0_168, %c0_169], %225 {strides = array<i32>} : memref<1x3x16x16xf32, #tpu.memory_space<vmem>>, vector<1x1x16x16xf32>,
    %cst_170 = arith.constant dense<0.000000e+00> : vector<16x16xf32>
    %226 = tpu.matmul %0, %222, %cst_170 {dimension_numbers = #tpu.dot_dimension_numbers<[1], [0], [0], [1], [0, 0, 1, 1], [], []>} : vector<16x16xf32>, vector<16x16xf32>, vector<16x16xf32> -> vector<16x16xf32>
    %cst_171 = arith.constant dense<0.000000e+00> : vector<16x16xf32>
    %227 = tpu.matmul %1, %222, %cst_171 {dimension_numbers = #tpu.dot_dimension_numbers<[1], [0], [0], [1], [0, 0, 1, 1], [], []>} : vector<16x16xf32>, vector<16x16xf32>, vector<16x16xf32> -> vector<16x16xf32>
    %c0_172 = arith.constant 0 : index
    %c0_173 = arith.constant 0 : index
    %c0_174 = arith.constant 0 : index
    %228 = vector.load %arg10[%c0_172, %c0_173, %c0_174] : memref<3x48x256xf32, #tpu.memory_space<vmem>>, vector<1x48x256xf32>
    %229 = vector.shape_cast %228 : vector<1x48x256xf32> to vector<48x256xf32>
    %cst_175 = arith.constant dense<0.000000e+00> : vector<16x256xf32>
    %230 = tpu.matmul %184, %229, %cst_175 {dimension_numbers = #tpu.dot_dimension_numbers<[1], [0], [0], [1], [0, 0, 1, 1], [], []>} : vector<16x48xf32>, vector<48x256xf32>, vector<16x256xf32> -> vector<16x256xf32>
    %c1_176 = arith.constant 1 : index
    %c0_177 = arith.constant 0 : index
    %c0_178 = arith.constant 0 : index
    %231 = vector.load %arg10[%c1_176, %c0_177, %c0_178] : memref<3x48x256xf32, #tpu.memory_space<vmem>>, vector<1x48x256xf32>
    %232 = vector.shape_cast %231 : vector<1x48x256xf32> to vector<48x256xf32>
    %cst_179 = arith.constant dense<0.000000e+00> : vector<16x256xf32>
    %233 = tpu.matmul %183, %232, %cst_179 {dimension_numbers = #tpu.dot_dimension_numbers<[1], [0], [0], [1], [0, 0, 1, 1], [], []>} : vector<16x48xf32>, vector<48x256xf32>, vector<16x256xf32> -> vector<16x256xf32>
    %234 = arith.addf %230, %233 : vector<16x256xf32>
    %c2_180 = arith.constant 2 : index
    %c0_181 = arith.constant 0 : index
    %c0_182 = arith.constant 0 : index
    %235 = vector.load %arg10[%c2_180, %c0_181, %c0_182] : memref<3x48x256xf32, #tpu.memory_space<vmem>>, vector<1x48x256xf32>
    %236 = vector.shape_cast %235 : vector<1x48x256xf32> to vector<48x256xf32>
    %cst_183 = arith.constant dense<0.000000e+00> : vector<16x256xf32>
    %237 = tpu.matmul %185, %236, %cst_183 {dimension_numbers = #tpu.dot_dimension_numbers<[1], [0], [0], [1], [0, 0, 1, 1], [], []>} : vector<16x48xf32>, vector<48x256xf32>, vector<16x256xf32> -> vector<16x256xf32>
    %238 = arith.addf %234, %237 : vector<16x256xf32>
    %c0_184 = arith.constant 0 : index
    %c0_185 = arith.constant 0 : index
    %c0_186 = arith.constant 0 : index
    %239 = vector.load %arg11[%c0_184, %c0_185, %c0_186] : memref<3x16x256xf32, #tpu.memory_space<vmem>>, vector<1x16x256xf32>
    %240 = vector.shape_cast %239 : vector<1x16x256xf32> to vector<16x256xf32>
    %cst_187 = arith.constant dense<0.000000e+00> : vector<16x256xf32>
    %241 = tpu.matmul %226, %240, %cst_187 {dimension_numbers = #tpu.dot_dimension_numbers<[1], [0], [0], [1], [0, 0, 1, 1], [], []>} : vector<16x16xf32>, vector<16x256xf32>, vector<16x256xf32> -> vector<16x256xf32>
    %c1_188 = arith.constant 1 : index
    %c0_189 = arith.constant 0 : index
    %c0_190 = arith.constant 0 : index
    %242 = vector.load %arg11[%c1_188, %c0_189, %c0_190] : memref<3x16x256xf32, #tpu.memory_space<vmem>>, vector<1x16x256xf32>
    %243 = vector.shape_cast %242 : vector<1x16x256xf32> to vector<16x256xf32>
    %cst_191 = arith.constant dense<0.000000e+00> : vector<16x256xf32>
    %244 = tpu.matmul %222, %243, %cst_191 {dimension_numbers = #tpu.dot_dimension_numbers<[1], [0], [0], [1], [0, 0, 1, 1], [], []>} : vector<16x16xf32>, vector<16x256xf32>, vector<16x256xf32> -> vector<16x256xf32>
    %245 = arith.addf %241, %244 : vector<16x256xf32>
    %c2_192 = arith.constant 2 : index
    %c0_193 = arith.constant 0 : index
    %c0_194 = arith.constant 0 : index
    %246 = vector.load %arg11[%c2_192, %c0_193, %c0_194] : memref<3x16x256xf32, #tpu.memory_space<vmem>>, vector<1x16x256xf32>
    %247 = vector.shape_cast %246 : vector<1x16x256xf32> to vector<16x256xf32>
    %cst_195 = arith.constant dense<0.000000e+00> : vector<16x256xf32>
    %248 = tpu.matmul %227, %247, %cst_195 {dimension_numbers = #tpu.dot_dimension_numbers<[1], [0], [0], [1], [0, 0, 1, 1], [], []>} : vector<16x16xf32>, vector<16x256xf32>, vector<16x256xf32> -> vector<16x256xf32>
    %249 = arith.addf %245, %248 : vector<16x256xf32>
    %250 = arith.addf %238, %249 : vector<16x256xf32>
    %c0_196 = arith.constant 0 : index
    %c0_197 = arith.constant 0 : index
    %251 = vector.load %arg12[%c0_196, %c0_197] : memref<1x256xf32, #tpu.memory_space<vmem>>, vector<1x256xf32>
    %252 = vector.broadcast %251 : vector<1x256xf32> to vector<16x256xf32>
    %253 = arith.addf %250, %252 : vector<16x256xf32>
    %cst_198 = arith.constant 0.000000e+00 : f32
    %254 = vector.broadcast %cst_198 : f32 to vector<16x256xf32>
    %255 = arith.maximumf %253, %254 : vector<16x256xf32>
    %cst_199 = arith.constant dense<0.000000e+00> : vector<16x256xf32>
    %256 = tpu.matmul %0, %255, %cst_199 {dimension_numbers = #tpu.dot_dimension_numbers<[1], [0], [0], [1], [0, 0, 1, 1], [], []>} : vector<16x16xf32>, vector<16x256xf32>, vector<16x256xf32> -> vector<16x256xf32>
    %cst_200 = arith.constant dense<0.000000e+00> : vector<16x256xf32>
    %257 = tpu.matmul %1, %255, %cst_200 {dimension_numbers = #tpu.dot_dimension_numbers<[1], [0], [0], [1], [0, 0, 1, 1], [], []>} : vector<16x16xf32>, vector<16x256xf32>, vector<16x256xf32> -> vector<16x256xf32>
    %c0_201 = arith.constant 0 : index
    %c0_202 = arith.constant 0 : index
    %c0_203 = arith.constant 0 : index
    %258 = vector.load %arg13[%c0_201, %c0_202, %c0_203] : memref<3x256x64xf32, #tpu.memory_space<vmem>>, vector<1x256x64xf32>
    %259 = vector.shape_cast %258 : vector<1x256x64xf32> to vector<256x64xf32>
    %cst_204 = arith.constant dense<0.000000e+00> : vector<16x64xf32>
    %260 = tpu.matmul %256, %259, %cst_204 {dimension_numbers = #tpu.dot_dimension_numbers<[1], [0], [0], [1], [0, 0, 1, 1], [], []>} : vector<16x256xf32>, vector<256x64xf32>, vector<16x64xf32> -> vector<16x64xf32>
    %c1_205 = arith.constant 1 : index
    %c0_206 = arith.constant 0 : index
    %c0_207 = arith.constant 0 : index
    %261 = vector.load %arg13[%c1_205, %c0_206, %c0_207] : memref<3x256x64xf32, #tpu.memory_space<vmem>>, vector<1x256x64xf32>
    %262 = vector.shape_cast %261 : vector<1x256x64xf32> to vector<256x64xf32>
    %cst_208 = arith.constant dense<0.000000e+00> : vector<16x64xf32>
    %263 = tpu.matmul %255, %262, %cst_208 {dimension_numbers = #tpu.dot_dimension_numbers<[1], [0], [0], [1], [0, 0, 1, 1], [], []>} : vector<16x256xf32>, vector<256x64xf32>, vector<16x64xf32> -> vector<16x64xf32>
    %264 = arith.addf %260, %263 : vector<16x64xf32>
    %c2_209 = arith.constant 2 : index
    %c0_210 = arith.constant 0 : index
    %c0_211 = arith.constant 0 : index
    %265 = vector.load %arg13[%c2_209, %c0_210, %c0_211] : memref<3x256x64xf32, #tpu.memory_space<vmem>>, vector<1x256x64xf32>
    %266 = vector.shape_cast %265 : vector<1x256x64xf32> to vector<256x64xf32>
    %cst_212 = arith.constant dense<0.000000e+00> : vector<16x64xf32>
    %267 = tpu.matmul %257, %266, %cst_212 {dimension_numbers = #tpu.dot_dimension_numbers<[1], [0], [0], [1], [0, 0, 1, 1], [], []>} : vector<16x256xf32>, vector<256x64xf32>, vector<16x64xf32> -> vector<16x64xf32>
    %268 = arith.addf %264, %267 : vector<16x64xf32>
    %c0_213 = arith.constant 0 : index
    %c0_214 = arith.constant 0 : index
    %269 = vector.load %arg14[%c0_213, %c0_214] : memref<1x64xf32, #tpu.memory_space<vmem>>, vector<1x64xf32>
    %270 = vector.broadcast %269 : vector<1x64xf32> to vector<16x64xf32>
    %271 = arith.addf %268, %270 : vector<16x64xf32>
    %272 = vector.extract_strided_slice %271 {offsets = [0, 0], sizes = [16, 16], strides = [1, 1]} : vector<16x64xf32> to vector<16x16xf32>
    %273 = vector.extract_strided_slice %271 {offsets = [0, 16], sizes = [16, 16], strides = [1, 1]} : vector<16x64xf32> to vector<16x16xf32>
    %274 = vector.extract_strided_slice %271 {offsets = [0, 32], sizes = [16, 16], strides = [1, 1]} : vector<16x64xf32> to vector<16x16xf32>
    %275 = vector.extract_strided_slice %271 {offsets = [0, 48], sizes = [16, 16], strides = [1, 1]} : vector<16x64xf32> to vector<16x16xf32>
    %276 = arith.maximumf %272, %273 : vector<16x16xf32>
    %277 = arith.maximumf %276, %274 : vector<16x16xf32>
    %278 = arith.maximumf %277, %275 : vector<16x16xf32>
    %279 = arith.subf %272, %278 : vector<16x16xf32>
    %280 = math.exp %279 : vector<16x16xf32>
    %281 = arith.subf %273, %278 : vector<16x16xf32>
    %282 = math.exp %281 : vector<16x16xf32>
    %283 = arith.subf %274, %278 : vector<16x16xf32>
    %284 = math.exp %283 : vector<16x16xf32>
    %285 = arith.subf %275, %278 : vector<16x16xf32>
    %286 = math.exp %285 : vector<16x16xf32>
    %287 = arith.addf %280, %282 : vector<16x16xf32>
    %288 = arith.addf %287, %284 : vector<16x16xf32>
    %289 = arith.addf %288, %286 : vector<16x16xf32>
    %290 = arith.divf %280, %289 : vector<16x16xf32>
    %291 = arith.divf %282, %289 : vector<16x16xf32>
    %292 = arith.divf %284, %289 : vector<16x16xf32>
    %293 = arith.divf %286, %289 : vector<16x16xf32>
    %294 = tpu.concatenate %290, %291, %292, %293 in 1 : vector<16x16xf32>, vector<16x16xf32>, vector<16x16xf32>, vector<16x16xf32> -> vector<16x64xf32>
    %c0_215 = arith.constant 0 : index
    %c1_216 = arith.constant 1 : index
    %c0_217 = arith.constant 0 : index
    %c0_218 = arith.constant 0 : index
    %295 = vector.load %arg27[%c0_215, %c1_216, %c0_217, %c0_218] : memref<1x3x16x64xf32, #tpu.memory_space<vmem>>, vector<1x1x16x64xf32>
    %296 = vector.shape_cast %295 : vector<1x1x16x64xf32> to vector<16x64xf32>
    %297 = vector.shape_cast %294 : vector<16x64xf32> to vector<1x1x16x64xf32>
    tpu.vector_store %arg27[%c0_215, %c1_216, %c0_217, %c0_218], %297 {strides = array<i32>} : memref<1x3x16x64xf32, #tpu.memory_space<vmem>>, vector<1x1x16x64xf32>,
    %cst_219 = arith.constant dense<0.000000e+00> : vector<16x256xf32>
    %298 = tpu.matmul %290, %2, %cst_219 {dimension_numbers = #tpu.dot_dimension_numbers<[1], [0], [0], [1], [0, 0, 1, 1], [], []>} : vector<16x16xf32>, vector<16x256xf32>, vector<16x256xf32> -> vector<16x256xf32>
    %299 = arith.mulf %255, %298 : vector<16x256xf32>
    %cst_220 = arith.constant dense<0.000000e+00> : vector<256xf32>
    %300 = vector.multi_reduction <add>, %299, %cst_220 [0] : vector<16x256xf32> to vector<256xf32>
    %301 = vector.shape_cast %300 : vector<256xf32> to vector<1x256xf32>
    %cst_221 = arith.constant dense<0.000000e+00> : vector<1x16xf32>
    %302 = tpu.matmul %301, %3, %cst_221 {dimension_numbers = #tpu.dot_dimension_numbers<[1], [0], [0], [1], [0, 0, 1, 1], [], []>} : vector<1x256xf32>, vector<256x16xf32>, vector<1x16xf32> -> vector<1x16xf32>
    %cst_222 = arith.constant dense<0.000000e+00> : vector<16xf32>
    %303 = vector.multi_reduction <add>, %290, %cst_222 [1] : vector<16x16xf32> to vector<16xf32>
    %304 = vector.shape_cast %303 : vector<16xf32> to vector<16x1xf32>
    %cst_223 = arith.constant dense<0.000000e+00> : vector<1xf32>
    %305 = vector.multi_reduction <add>, %304, %cst_223 [0] : vector<16x1xf32> to vector<1xf32>
    %306 = vector.shape_cast %305 : vector<1xf32> to vector<1x1xf32>
    %cst_224 = arith.constant 9.99999997E-7 : f32
    %307 = vector.broadcast %cst_224 : f32 to vector<1x1xf32>
    %308 = arith.addf %306, %307 : vector<1x1xf32>
    %309 = vector.broadcast %308 : vector<1x1xf32> to vector<1x16xf32>
    %310 = arith.divf %302, %309 : vector<1x16xf32>
    %cst_225 = arith.constant dense<0.000000e+00> : vector<16x256xf32>
    %311 = tpu.matmul %291, %2, %cst_225 {dimension_numbers = #tpu.dot_dimension_numbers<[1], [0], [0], [1], [0, 0, 1, 1], [], []>} : vector<16x16xf32>, vector<16x256xf32>, vector<16x256xf32> -> vector<16x256xf32>
    %312 = arith.mulf %255, %311 : vector<16x256xf32>
    %cst_226 = arith.constant dense<0.000000e+00> : vector<256xf32>
    %313 = vector.multi_reduction <add>, %312, %cst_226 [0] : vector<16x256xf32> to vector<256xf32>
    %314 = vector.shape_cast %313 : vector<256xf32> to vector<1x256xf32>
    %cst_227 = arith.constant dense<0.000000e+00> : vector<1x16xf32>
    %315 = tpu.matmul %314, %3, %cst_227 {dimension_numbers = #tpu.dot_dimension_numbers<[1], [0], [0], [1], [0, 0, 1, 1], [], []>} : vector<1x256xf32>, vector<256x16xf32>, vector<1x16xf32> -> vector<1x16xf32>
    %cst_228 = arith.constant dense<0.000000e+00> : vector<16xf32>
    %316 = vector.multi_reduction <add>, %291, %cst_228 [1] : vector<16x16xf32> to vector<16xf32>
    %317 = vector.shape_cast %316 : vector<16xf32> to vector<16x1xf32>
    %cst_229 = arith.constant dense<0.000000e+00> : vector<1xf32>
    %318 = vector.multi_reduction <add>, %317, %cst_229 [0] : vector<16x1xf32> to vector<1xf32>
    %319 = vector.shape_cast %318 : vector<1xf32> to vector<1x1xf32>
    %cst_230 = arith.constant 9.99999997E-7 : f32
    %320 = vector.broadcast %cst_230 : f32 to vector<1x1xf32>
    %321 = arith.addf %319, %320 : vector<1x1xf32>
    %322 = vector.broadcast %321 : vector<1x1xf32> to vector<1x16xf32>
    %323 = arith.divf %315, %322 : vector<1x16xf32>
    %cst_231 = arith.constant dense<0.000000e+00> : vector<16x256xf32>
    %324 = tpu.matmul %292, %2, %cst_231 {dimension_numbers = #tpu.dot_dimension_numbers<[1], [0], [0], [1], [0, 0, 1, 1], [], []>} : vector<16x16xf32>, vector<16x256xf32>, vector<16x256xf32> -> vector<16x256xf32>
    %325 = arith.mulf %255, %324 : vector<16x256xf32>
    %cst_232 = arith.constant dense<0.000000e+00> : vector<256xf32>
    %326 = vector.multi_reduction <add>, %325, %cst_232 [0] : vector<16x256xf32> to vector<256xf32>
    %327 = vector.shape_cast %326 : vector<256xf32> to vector<1x256xf32>
    %cst_233 = arith.constant dense<0.000000e+00> : vector<1x16xf32>
    %328 = tpu.matmul %327, %3, %cst_233 {dimension_numbers = #tpu.dot_dimension_numbers<[1], [0], [0], [1], [0, 0, 1, 1], [], []>} : vector<1x256xf32>, vector<256x16xf32>, vector<1x16xf32> -> vector<1x16xf32>
    %cst_234 = arith.constant dense<0.000000e+00> : vector<16xf32>
    %329 = vector.multi_reduction <add>, %292, %cst_234 [1] : vector<16x16xf32> to vector<16xf32>
    %330 = vector.shape_cast %329 : vector<16xf32> to vector<16x1xf32>
    %cst_235 = arith.constant dense<0.000000e+00> : vector<1xf32>
    %331 = vector.multi_reduction <add>, %330, %cst_235 [0] : vector<16x1xf32> to vector<1xf32>
    %332 = vector.shape_cast %331 : vector<1xf32> to vector<1x1xf32>
    %cst_236 = arith.constant 9.99999997E-7 : f32
    %333 = vector.broadcast %cst_236 : f32 to vector<1x1xf32>
    %334 = arith.addf %332, %333 : vector<1x1xf32>
    %335 = vector.broadcast %334 : vector<1x1xf32> to vector<1x16xf32>
    %336 = arith.divf %328, %335 : vector<1x16xf32>
    %cst_237 = arith.constant dense<0.000000e+00> : vector<16x256xf32>
    %337 = tpu.matmul %293, %2, %cst_237 {dimension_numbers = #tpu.dot_dimension_numbers<[1], [0], [0], [1], [0, 0, 1, 1], [], []>} : vector<16x16xf32>, vector<16x256xf32>, vector<16x256xf32> -> vector<16x256xf32>
    %338 = arith.mulf %255, %337 : vector<16x256xf32>
    %cst_238 = arith.constant dense<0.000000e+00> : vector<256xf32>
    %339 = vector.multi_reduction <add>, %338, %cst_238 [0] : vector<16x256xf32> to vector<256xf32>
    %340 = vector.shape_cast %339 : vector<256xf32> to vector<1x256xf32>
    %cst_239 = arith.constant dense<0.000000e+00> : vector<1x16xf32>
    %341 = tpu.matmul %340, %3, %cst_239 {dimension_numbers = #tpu.dot_dimension_numbers<[1], [0], [0], [1], [0, 0, 1, 1], [], []>} : vector<1x256xf32>, vector<256x16xf32>, vector<1x16xf32> -> vector<1x16xf32>
    %cst_240 = arith.constant dense<0.000000e+00> : vector<16xf32>
    %342 = vector.multi_reduction <add>, %293, %cst_240 [1] : vector<16x16xf32> to vector<16xf32>
    %343 = vector.shape_cast %342 : vector<16xf32> to vector<16x1xf32>
    %cst_241 = arith.constant dense<0.000000e+00> : vector<1xf32>
    %344 = vector.multi_reduction <add>, %343, %cst_241 [0] : vector<16x1xf32> to vector<1xf32>
    %345 = vector.shape_cast %344 : vector<1xf32> to vector<1x1xf32>
    %cst_242 = arith.constant 9.99999997E-7 : f32
    %346 = vector.broadcast %cst_242 : f32 to vector<1x1xf32>
    %347 = arith.addf %345, %346 : vector<1x1xf32>
    %348 = vector.broadcast %347 : vector<1x1xf32> to vector<1x16xf32>
    %349 = arith.divf %341, %348 : vector<1x16xf32>
    %350 = tpu.concatenate %310, %323, %336, %349 in 0 : vector<1x16xf32>, vector<1x16xf32>, vector<1x16xf32>, vector<1x16xf32> -> vector<4x16xf32>
    %c0_243 = arith.constant 0 : index
    %c0_244 = arith.constant 0 : index
    %351 = vector.load %arg15[%c0_243, %c0_244] : memref<16x32xf32, #tpu.memory_space<vmem>>, vector<16x32xf32>
    %cst_245 = arith.constant dense<0.000000e+00> : vector<4x32xf32>
    %352 = tpu.matmul %350, %351, %cst_245 {dimension_numbers = #tpu.dot_dimension_numbers<[1], [0], [0], [1], [0, 0, 1, 1], [], []>} : vector<4x16xf32>, vector<16x32xf32>, vector<4x32xf32> -> vector<4x32xf32>
    %c0_246 = arith.constant 0 : index
    %c0_247 = arith.constant 0 : index
    %353 = vector.load %arg16[%c0_246, %c0_247] : memref<1x32xf32, #tpu.memory_space<vmem>>, vector<1x32xf32>
    %354 = vector.broadcast %353 : vector<1x32xf32> to vector<4x32xf32>
    %355 = arith.addf %352, %354 : vector<4x32xf32>
    %356 = math.tanh %355 : vector<4x32xf32>
    %c0_248 = arith.constant 0 : index
    %c1_249 = arith.constant 1 : index
    %c0_250 = arith.constant 0 : index
    %c0_251 = arith.constant 0 : index
    %357 = vector.load %arg28[%c0_248, %c1_249, %c0_250, %c0_251] : memref<1x3x4x32xf32, #tpu.memory_space<vmem>>, vector<1x1x4x32xf32>
    %358 = vector.shape_cast %357 : vector<1x1x4x32xf32> to vector<4x32xf32>
    %359 = vector.shape_cast %356 : vector<4x32xf32> to vector<1x1x4x32xf32>
    tpu.vector_store %arg28[%c0_248, %c1_249, %c0_250, %c0_251], %359 {strides = array<i32>} : memref<1x3x4x32xf32, #tpu.memory_space<vmem>>, vector<1x1x4x32xf32>,
    %c0_252 = arith.constant 0 : index
    %c2_253 = arith.constant 2 : index
    %c0_254 = arith.constant 0 : index
    %c0_255 = arith.constant 0 : index
    %360 = vector.load %arg1[%c0_252, %c2_253, %c0_254, %c0_255] : memref<1x3x16x48xf32, #tpu.memory_space<vmem>>, vector<1x1x16x48xf32>
    %361 = vector.shape_cast %360 : vector<1x1x16x48xf32> to vector<16x48xf32>
    %cst_256 = arith.constant dense<0.000000e+00> : vector<16x48xf32>
    %362 = tpu.matmul %0, %361, %cst_256 {dimension_numbers = #tpu.dot_dimension_numbers<[1], [0], [0], [1], [0, 0, 1, 1], [], []>} : vector<16x16xf32>, vector<16x48xf32>, vector<16x48xf32> -> vector<16x48xf32>
    %cst_257 = arith.constant dense<0.000000e+00> : vector<16x48xf32>
    %363 = tpu.matmul %1, %361, %cst_257 {dimension_numbers = #tpu.dot_dimension_numbers<[1], [0], [0], [1], [0, 0, 1, 1], [], []>} : vector<16x16xf32>, vector<16x48xf32>, vector<16x48xf32> -> vector<16x48xf32>
    %c0_258 = arith.constant 0 : index
    %c0_259 = arith.constant 0 : index
    %c0_260 = arith.constant 0 : index
    %364 = vector.load %arg6[%c0_258, %c0_259, %c0_260] : memref<3x48x128xf32, #tpu.memory_space<vmem>>, vector<1x48x128xf32>
    %365 = vector.shape_cast %364 : vector<1x48x128xf32> to vector<48x128xf32>
    %cst_261 = arith.constant dense<0.000000e+00> : vector<16x128xf32>
    %366 = tpu.matmul %362, %365, %cst_261 {dimension_numbers = #tpu.dot_dimension_numbers<[1], [0], [0], [1], [0, 0, 1, 1], [], []>} : vector<16x48xf32>, vector<48x128xf32>, vector<16x128xf32> -> vector<16x128xf32>
    %c1_262 = arith.constant 1 : index
    %c0_263 = arith.constant 0 : index
    %c0_264 = arith.constant 0 : index
    %367 = vector.load %arg6[%c1_262, %c0_263, %c0_264] : memref<3x48x128xf32, #tpu.memory_space<vmem>>, vector<1x48x128xf32>
    %368 = vector.shape_cast %367 : vector<1x48x128xf32> to vector<48x128xf32>
    %cst_265 = arith.constant dense<0.000000e+00> : vector<16x128xf32>
    %369 = tpu.matmul %361, %368, %cst_265 {dimension_numbers = #tpu.dot_dimension_numbers<[1], [0], [0], [1], [0, 0, 1, 1], [], []>} : vector<16x48xf32>, vector<48x128xf32>, vector<16x128xf32> -> vector<16x128xf32>
    %370 = arith.addf %366, %369 : vector<16x128xf32>
    %c2_266 = arith.constant 2 : index
    %c0_267 = arith.constant 0 : index
    %c0_268 = arith.constant 0 : index
    %371 = vector.load %arg6[%c2_266, %c0_267, %c0_268] : memref<3x48x128xf32, #tpu.memory_space<vmem>>, vector<1x48x128xf32>
    %372 = vector.shape_cast %371 : vector<1x48x128xf32> to vector<48x128xf32>
    %cst_269 = arith.constant dense<0.000000e+00> : vector<16x128xf32>
    %373 = tpu.matmul %363, %372, %cst_269 {dimension_numbers = #tpu.dot_dimension_numbers<[1], [0], [0], [1], [0, 0, 1, 1], [], []>} : vector<16x48xf32>, vector<48x128xf32>, vector<16x128xf32> -> vector<16x128xf32>
    %374 = arith.addf %370, %373 : vector<16x128xf32>
    %c0_270 = arith.constant 0 : index
    %c0_271 = arith.constant 0 : index
    %375 = vector.load %arg7[%c0_270, %c0_271] : memref<1x128xf32, #tpu.memory_space<vmem>>, vector<1x128xf32>
    %376 = vector.broadcast %375 : vector<1x128xf32> to vector<16x128xf32>
    %377 = arith.addf %374, %376 : vector<16x128xf32>
    %cst_272 = arith.constant 0.000000e+00 : f32
    %378 = vector.broadcast %cst_272 : f32 to vector<16x128xf32>
    %379 = arith.maximumf %377, %378 : vector<16x128xf32>
    %cst_273 = arith.constant dense<0.000000e+00> : vector<16x128xf32>
    %380 = tpu.matmul %0, %379, %cst_273 {dimension_numbers = #tpu.dot_dimension_numbers<[1], [0], [0], [1], [0, 0, 1, 1], [], []>} : vector<16x16xf32>, vector<16x128xf32>, vector<16x128xf32> -> vector<16x128xf32>
    %cst_274 = arith.constant dense<0.000000e+00> : vector<16x128xf32>
    %381 = tpu.matmul %1, %379, %cst_274 {dimension_numbers = #tpu.dot_dimension_numbers<[1], [0], [0], [1], [0, 0, 1, 1], [], []>} : vector<16x16xf32>, vector<16x128xf32>, vector<16x128xf32> -> vector<16x128xf32>
    %c0_275 = arith.constant 0 : index
    %c0_276 = arith.constant 0 : index
    %c0_277 = arith.constant 0 : index
    %382 = vector.load %arg8[%c0_275, %c0_276, %c0_277] : memref<3x128x16xf32, #tpu.memory_space<vmem>>, vector<1x128x16xf32>
    %383 = vector.shape_cast %382 : vector<1x128x16xf32> to vector<128x16xf32>
    %cst_278 = arith.constant dense<0.000000e+00> : vector<16x16xf32>
    %384 = tpu.matmul %380, %383, %cst_278 {dimension_numbers = #tpu.dot_dimension_numbers<[1], [0], [0], [1], [0, 0, 1, 1], [], []>} : vector<16x128xf32>, vector<128x16xf32>, vector<16x16xf32> -> vector<16x16xf32>
    %c1_279 = arith.constant 1 : index
    %c0_280 = arith.constant 0 : index
    %c0_281 = arith.constant 0 : index
    %385 = vector.load %arg8[%c1_279, %c0_280, %c0_281] : memref<3x128x16xf32, #tpu.memory_space<vmem>>, vector<1x128x16xf32>
    %386 = vector.shape_cast %385 : vector<1x128x16xf32> to vector<128x16xf32>
    %cst_282 = arith.constant dense<0.000000e+00> : vector<16x16xf32>
    %387 = tpu.matmul %379, %386, %cst_282 {dimension_numbers = #tpu.dot_dimension_numbers<[1], [0], [0], [1], [0, 0, 1, 1], [], []>} : vector<16x128xf32>, vector<128x16xf32>, vector<16x16xf32> -> vector<16x16xf32>
    %388 = arith.addf %384, %387 : vector<16x16xf32>
    %c2_283 = arith.constant 2 : index
    %c0_284 = arith.constant 0 : index
    %c0_285 = arith.constant 0 : index
    %389 = vector.load %arg8[%c2_283, %c0_284, %c0_285] : memref<3x128x16xf32, #tpu.memory_space<vmem>>, vector<1x128x16xf32>
    %390 = vector.shape_cast %389 : vector<1x128x16xf32> to vector<128x16xf32>
    %cst_286 = arith.constant dense<0.000000e+00> : vector<16x16xf32>
    %391 = tpu.matmul %381, %390, %cst_286 {dimension_numbers = #tpu.dot_dimension_numbers<[1], [0], [0], [1], [0, 0, 1, 1], [], []>} : vector<16x128xf32>, vector<128x16xf32>, vector<16x16xf32> -> vector<16x16xf32>
    %392 = arith.addf %388, %391 : vector<16x16xf32>
    %c0_287 = arith.constant 0 : index
    %c0_288 = arith.constant 0 : index
    %393 = vector.load %arg9[%c0_287, %c0_288] : memref<1x16xf32, #tpu.memory_space<vmem>>, vector<1x16xf32>
    %394 = vector.broadcast %393 : vector<1x16xf32> to vector<16x16xf32>
    %395 = arith.addf %392, %394 : vector<16x16xf32>
    %396 = arith.negf %395 : vector<16x16xf32>
    %397 = math.exp %396 : vector<16x16xf32>
    %cst_289 = arith.constant 1.000000e+00 : f32
    %398 = vector.broadcast %cst_289 : f32 to vector<16x16xf32>
    %399 = arith.addf %398, %397 : vector<16x16xf32>
    %400 = arith.divf %398, %399 : vector<16x16xf32>
    %c0_290 = arith.constant 0 : index
    %c2_291 = arith.constant 2 : index
    %c0_292 = arith.constant 0 : index
    %c0_293 = arith.constant 0 : index
    %401 = vector.load %arg26[%c0_290, %c2_291, %c0_292, %c0_293] : memref<1x3x16x16xf32, #tpu.memory_space<vmem>>, vector<1x1x16x16xf32>
    %402 = vector.shape_cast %401 : vector<1x1x16x16xf32> to vector<16x16xf32>
    %403 = vector.shape_cast %400 : vector<16x16xf32> to vector<1x1x16x16xf32>
    tpu.vector_store %arg26[%c0_290, %c2_291, %c0_292, %c0_293], %403 {strides = array<i32>} : memref<1x3x16x16xf32, #tpu.memory_space<vmem>>, vector<1x1x16x16xf32>,
    %cst_294 = arith.constant dense<0.000000e+00> : vector<16x16xf32>
    %404 = tpu.matmul %0, %400, %cst_294 {dimension_numbers = #tpu.dot_dimension_numbers<[1], [0], [0], [1], [0, 0, 1, 1], [], []>} : vector<16x16xf32>, vector<16x16xf32>, vector<16x16xf32> -> vector<16x16xf32>
    %cst_295 = arith.constant dense<0.000000e+00> : vector<16x16xf32>
    %405 = tpu.matmul %1, %400, %cst_295 {dimension_numbers = #tpu.dot_dimension_numbers<[1], [0], [0], [1], [0, 0, 1, 1], [], []>} : vector<16x16xf32>, vector<16x16xf32>, vector<16x16xf32> -> vector<16x16xf32>
    %c0_296 = arith.constant 0 : index
    %c0_297 = arith.constant 0 : index
    %c0_298 = arith.constant 0 : index
    %406 = vector.load %arg10[%c0_296, %c0_297, %c0_298] : memref<3x48x256xf32, #tpu.memory_space<vmem>>, vector<1x48x256xf32>
    %407 = vector.shape_cast %406 : vector<1x48x256xf32> to vector<48x256xf32>
    %cst_299 = arith.constant dense<0.000000e+00> : vector<16x256xf32>
    %408 = tpu.matmul %362, %407, %cst_299 {dimension_numbers = #tpu.dot_dimension_numbers<[1], [0], [0], [1], [0, 0, 1, 1], [], []>} : vector<16x48xf32>, vector<48x256xf32>, vector<16x256xf32> -> vector<16x256xf32>
    %c1_300 = arith.constant 1 : index
    %c0_301 = arith.constant 0 : index
    %c0_302 = arith.constant 0 : index
    %409 = vector.load %arg10[%c1_300, %c0_301, %c0_302] : memref<3x48x256xf32, #tpu.memory_space<vmem>>, vector<1x48x256xf32>
    %410 = vector.shape_cast %409 : vector<1x48x256xf32> to vector<48x256xf32>
    %cst_303 = arith.constant dense<0.000000e+00> : vector<16x256xf32>
    %411 = tpu.matmul %361, %410, %cst_303 {dimension_numbers = #tpu.dot_dimension_numbers<[1], [0], [0], [1], [0, 0, 1, 1], [], []>} : vector<16x48xf32>, vector<48x256xf32>, vector<16x256xf32> -> vector<16x256xf32>
    %412 = arith.addf %408, %411 : vector<16x256xf32>
    %c2_304 = arith.constant 2 : index
    %c0_305 = arith.constant 0 : index
    %c0_306 = arith.constant 0 : index
    %413 = vector.load %arg10[%c2_304, %c0_305, %c0_306] : memref<3x48x256xf32, #tpu.memory_space<vmem>>, vector<1x48x256xf32>
    %414 = vector.shape_cast %413 : vector<1x48x256xf32> to vector<48x256xf32>
    %cst_307 = arith.constant dense<0.000000e+00> : vector<16x256xf32>
    %415 = tpu.matmul %363, %414, %cst_307 {dimension_numbers = #tpu.dot_dimension_numbers<[1], [0], [0], [1], [0, 0, 1, 1], [], []>} : vector<16x48xf32>, vector<48x256xf32>, vector<16x256xf32> -> vector<16x256xf32>
    %416 = arith.addf %412, %415 : vector<16x256xf32>
    %c0_308 = arith.constant 0 : index
    %c0_309 = arith.constant 0 : index
    %c0_310 = arith.constant 0 : index
    %417 = vector.load %arg11[%c0_308, %c0_309, %c0_310] : memref<3x16x256xf32, #tpu.memory_space<vmem>>, vector<1x16x256xf32>
    %418 = vector.shape_cast %417 : vector<1x16x256xf32> to vector<16x256xf32>
    %cst_311 = arith.constant dense<0.000000e+00> : vector<16x256xf32>
    %419 = tpu.matmul %404, %418, %cst_311 {dimension_numbers = #tpu.dot_dimension_numbers<[1], [0], [0], [1], [0, 0, 1, 1], [], []>} : vector<16x16xf32>, vector<16x256xf32>, vector<16x256xf32> -> vector<16x256xf32>
    %c1_312 = arith.constant 1 : index
    %c0_313 = arith.constant 0 : index
    %c0_314 = arith.constant 0 : index
    %420 = vector.load %arg11[%c1_312, %c0_313, %c0_314] : memref<3x16x256xf32, #tpu.memory_space<vmem>>, vector<1x16x256xf32>
    %421 = vector.shape_cast %420 : vector<1x16x256xf32> to vector<16x256xf32>
    %cst_315 = arith.constant dense<0.000000e+00> : vector<16x256xf32>
    %422 = tpu.matmul %400, %421, %cst_315 {dimension_numbers = #tpu.dot_dimension_numbers<[1], [0], [0], [1], [0, 0, 1, 1], [], []>} : vector<16x16xf32>, vector<16x256xf32>, vector<16x256xf32> -> vector<16x256xf32>
    %423 = arith.addf %419, %422 : vector<16x256xf32>
    %c2_316 = arith.constant 2 : index
    %c0_317 = arith.constant 0 : index
    %c0_318 = arith.constant 0 : index
    %424 = vector.load %arg11[%c2_316, %c0_317, %c0_318] : memref<3x16x256xf32, #tpu.memory_space<vmem>>, vector<1x16x256xf32>
    %425 = vector.shape_cast %424 : vector<1x16x256xf32> to vector<16x256xf32>
    %cst_319 = arith.constant dense<0.000000e+00> : vector<16x256xf32>
    %426 = tpu.matmul %405, %425, %cst_319 {dimension_numbers = #tpu.dot_dimension_numbers<[1], [0], [0], [1], [0, 0, 1, 1], [], []>} : vector<16x16xf32>, vector<16x256xf32>, vector<16x256xf32> -> vector<16x256xf32>
    %427 = arith.addf %423, %426 : vector<16x256xf32>
    %428 = arith.addf %416, %427 : vector<16x256xf32>
    %c0_320 = arith.constant 0 : index
    %c0_321 = arith.constant 0 : index
    %429 = vector.load %arg12[%c0_320, %c0_321] : memref<1x256xf32, #tpu.memory_space<vmem>>, vector<1x256xf32>
    %430 = vector.broadcast %429 : vector<1x256xf32> to vector<16x256xf32>
    %431 = arith.addf %428, %430 : vector<16x256xf32>
    %cst_322 = arith.constant 0.000000e+00 : f32
    %432 = vector.broadcast %cst_322 : f32 to vector<16x256xf32>
    %433 = arith.maximumf %431, %432 : vector<16x256xf32>
    %cst_323 = arith.constant dense<0.000000e+00> : vector<16x256xf32>
    %434 = tpu.matmul %0, %433, %cst_323 {dimension_numbers = #tpu.dot_dimension_numbers<[1], [0], [0], [1], [0, 0, 1, 1], [], []>} : vector<16x16xf32>, vector<16x256xf32>, vector<16x256xf32> -> vector<16x256xf32>
    %cst_324 = arith.constant dense<0.000000e+00> : vector<16x256xf32>
    %435 = tpu.matmul %1, %433, %cst_324 {dimension_numbers = #tpu.dot_dimension_numbers<[1], [0], [0], [1], [0, 0, 1, 1], [], []>} : vector<16x16xf32>, vector<16x256xf32>, vector<16x256xf32> -> vector<16x256xf32>
    %c0_325 = arith.constant 0 : index
    %c0_326 = arith.constant 0 : index
    %c0_327 = arith.constant 0 : index
    %436 = vector.load %arg13[%c0_325, %c0_326, %c0_327] : memref<3x256x64xf32, #tpu.memory_space<vmem>>, vector<1x256x64xf32>
    %437 = vector.shape_cast %436 : vector<1x256x64xf32> to vector<256x64xf32>
    %cst_328 = arith.constant dense<0.000000e+00> : vector<16x64xf32>
    %438 = tpu.matmul %434, %437, %cst_328 {dimension_numbers = #tpu.dot_dimension_numbers<[1], [0], [0], [1], [0, 0, 1, 1], [], []>} : vector<16x256xf32>, vector<256x64xf32>, vector<16x64xf32> -> vector<16x64xf32>
    %c1_329 = arith.constant 1 : index
    %c0_330 = arith.constant 0 : index
    %c0_331 = arith.constant 0 : index
    %439 = vector.load %arg13[%c1_329, %c0_330, %c0_331] : memref<3x256x64xf32, #tpu.memory_space<vmem>>, vector<1x256x64xf32>
    %440 = vector.shape_cast %439 : vector<1x256x64xf32> to vector<256x64xf32>
    %cst_332 = arith.constant dense<0.000000e+00> : vector<16x64xf32>
    %441 = tpu.matmul %433, %440, %cst_332 {dimension_numbers = #tpu.dot_dimension_numbers<[1], [0], [0], [1], [0, 0, 1, 1], [], []>} : vector<16x256xf32>, vector<256x64xf32>, vector<16x64xf32> -> vector<16x64xf32>
    %442 = arith.addf %438, %441 : vector<16x64xf32>
    %c2_333 = arith.constant 2 : index
    %c0_334 = arith.constant 0 : index
    %c0_335 = arith.constant 0 : index
    %443 = vector.load %arg13[%c2_333, %c0_334, %c0_335] : memref<3x256x64xf32, #tpu.memory_space<vmem>>, vector<1x256x64xf32>
    %444 = vector.shape_cast %443 : vector<1x256x64xf32> to vector<256x64xf32>
    %cst_336 = arith.constant dense<0.000000e+00> : vector<16x64xf32>
    %445 = tpu.matmul %435, %444, %cst_336 {dimension_numbers = #tpu.dot_dimension_numbers<[1], [0], [0], [1], [0, 0, 1, 1], [], []>} : vector<16x256xf32>, vector<256x64xf32>, vector<16x64xf32> -> vector<16x64xf32>
    %446 = arith.addf %442, %445 : vector<16x64xf32>
    %c0_337 = arith.constant 0 : index
    %c0_338 = arith.constant 0 : index
    %447 = vector.load %arg14[%c0_337, %c0_338] : memref<1x64xf32, #tpu.memory_space<vmem>>, vector<1x64xf32>
    %448 = vector.broadcast %447 : vector<1x64xf32> to vector<16x64xf32>
    %449 = arith.addf %446, %448 : vector<16x64xf32>
    %450 = vector.extract_strided_slice %449 {offsets = [0, 0], sizes = [16, 16], strides = [1, 1]} : vector<16x64xf32> to vector<16x16xf32>
    %451 = vector.extract_strided_slice %449 {offsets = [0, 16], sizes = [16, 16], strides = [1, 1]} : vector<16x64xf32> to vector<16x16xf32>
    %452 = vector.extract_strided_slice %449 {offsets = [0, 32], sizes = [16, 16], strides = [1, 1]} : vector<16x64xf32> to vector<16x16xf32>
    %453 = vector.extract_strided_slice %449 {offsets = [0, 48], sizes = [16, 16], strides = [1, 1]} : vector<16x64xf32> to vector<16x16xf32>
    %454 = arith.maximumf %450, %451 : vector<16x16xf32>
    %455 = arith.maximumf %454, %452 : vector<16x16xf32>
    %456 = arith.maximumf %455, %453 : vector<16x16xf32>
    %457 = arith.subf %450, %456 : vector<16x16xf32>
    %458 = math.exp %457 : vector<16x16xf32>
    %459 = arith.subf %451, %456 : vector<16x16xf32>
    %460 = math.exp %459 : vector<16x16xf32>
    %461 = arith.subf %452, %456 : vector<16x16xf32>
    %462 = math.exp %461 : vector<16x16xf32>
    %463 = arith.subf %453, %456 : vector<16x16xf32>
    %464 = math.exp %463 : vector<16x16xf32>
    %465 = arith.addf %458, %460 : vector<16x16xf32>
    %466 = arith.addf %465, %462 : vector<16x16xf32>
    %467 = arith.addf %466, %464 : vector<16x16xf32>
    %468 = arith.divf %458, %467 : vector<16x16xf32>
    %469 = arith.divf %460, %467 : vector<16x16xf32>
    %470 = arith.divf %462, %467 : vector<16x16xf32>
    %471 = arith.divf %464, %467 : vector<16x16xf32>
    %472 = tpu.concatenate %468, %469, %470, %471 in 1 : vector<16x16xf32>, vector<16x16xf32>, vector<16x16xf32>, vector<16x16xf32> -> vector<16x64xf32>
    %c0_339 = arith.constant 0 : index
    %c2_340 = arith.constant 2 : index
    %c0_341 = arith.constant 0 : index
    %c0_342 = arith.constant 0 : index
    %473 = vector.load %arg27[%c0_339, %c2_340, %c0_341, %c0_342] : memref<1x3x16x64xf32, #tpu.memory_space<vmem>>, vector<1x1x16x64xf32>
    %474 = vector.shape_cast %473 : vector<1x1x16x64xf32> to vector<16x64xf32>
    %475 = vector.shape_cast %472 : vector<16x64xf32> to vector<1x1x16x64xf32>
    tpu.vector_store %arg27[%c0_339, %c2_340, %c0_341, %c0_342], %475 {strides = array<i32>} : memref<1x3x16x64xf32, #tpu.memory_space<vmem>>, vector<1x1x16x64xf32>,
    %cst_343 = arith.constant dense<0.000000e+00> : vector<16x256xf32>
    %476 = tpu.matmul %468, %2, %cst_343 {dimension_numbers = #tpu.dot_dimension_numbers<[1], [0], [0], [1], [0, 0, 1, 1], [], []>} : vector<16x16xf32>, vector<16x256xf32>, vector<16x256xf32> -> vector<16x256xf32>
    %477 = arith.mulf %433, %476 : vector<16x256xf32>
    %cst_344 = arith.constant dense<0.000000e+00> : vector<256xf32>
    %478 = vector.multi_reduction <add>, %477, %cst_344 [0] : vector<16x256xf32> to vector<256xf32>
    %479 = vector.shape_cast %478 : vector<256xf32> to vector<1x256xf32>
    %cst_345 = arith.constant dense<0.000000e+00> : vector<1x16xf32>
    %480 = tpu.matmul %479, %3, %cst_345 {dimension_numbers = #tpu.dot_dimension_numbers<[1], [0], [0], [1], [0, 0, 1, 1], [], []>} : vector<1x256xf32>, vector<256x16xf32>, vector<1x16xf32> -> vector<1x16xf32>
    %cst_346 = arith.constant dense<0.000000e+00> : vector<16xf32>
    %481 = vector.multi_reduction <add>, %468, %cst_346 [1] : vector<16x16xf32> to vector<16xf32>
    %482 = vector.shape_cast %481 : vector<16xf32> to vector<16x1xf32>
    %cst_347 = arith.constant dense<0.000000e+00> : vector<1xf32>
    %483 = vector.multi_reduction <add>, %482, %cst_347 [0] : vector<16x1xf32> to vector<1xf32>
    %484 = vector.shape_cast %483 : vector<1xf32> to vector<1x1xf32>
    %cst_348 = arith.constant 9.99999997E-7 : f32
    %485 = vector.broadcast %cst_348 : f32 to vector<1x1xf32>
    %486 = arith.addf %484, %485 : vector<1x1xf32>
    %487 = vector.broadcast %486 : vector<1x1xf32> to vector<1x16xf32>
    %488 = arith.divf %480, %487 : vector<1x16xf32>
    %cst_349 = arith.constant dense<0.000000e+00> : vector<16x256xf32>
    %489 = tpu.matmul %469, %2, %cst_349 {dimension_numbers = #tpu.dot_dimension_numbers<[1], [0], [0], [1], [0, 0, 1, 1], [], []>} : vector<16x16xf32>, vector<16x256xf32>, vector<16x256xf32> -> vector<16x256xf32>
    %490 = arith.mulf %433, %489 : vector<16x256xf32>
    %cst_350 = arith.constant dense<0.000000e+00> : vector<256xf32>
    %491 = vector.multi_reduction <add>, %490, %cst_350 [0] : vector<16x256xf32> to vector<256xf32>
    %492 = vector.shape_cast %491 : vector<256xf32> to vector<1x256xf32>
    %cst_351 = arith.constant dense<0.000000e+00> : vector<1x16xf32>
    %493 = tpu.matmul %492, %3, %cst_351 {dimension_numbers = #tpu.dot_dimension_numbers<[1], [0], [0], [1], [0, 0, 1, 1], [], []>} : vector<1x256xf32>, vector<256x16xf32>, vector<1x16xf32> -> vector<1x16xf32>
    %cst_352 = arith.constant dense<0.000000e+00> : vector<16xf32>
    %494 = vector.multi_reduction <add>, %469, %cst_352 [1] : vector<16x16xf32> to vector<16xf32>
    %495 = vector.shape_cast %494 : vector<16xf32> to vector<16x1xf32>
    %cst_353 = arith.constant dense<0.000000e+00> : vector<1xf32>
    %496 = vector.multi_reduction <add>, %495, %cst_353 [0] : vector<16x1xf32> to vector<1xf32>
    %497 = vector.shape_cast %496 : vector<1xf32> to vector<1x1xf32>
    %cst_354 = arith.constant 9.99999997E-7 : f32
    %498 = vector.broadcast %cst_354 : f32 to vector<1x1xf32>
    %499 = arith.addf %497, %498 : vector<1x1xf32>
    %500 = vector.broadcast %499 : vector<1x1xf32> to vector<1x16xf32>
    %501 = arith.divf %493, %500 : vector<1x16xf32>
    %cst_355 = arith.constant dense<0.000000e+00> : vector<16x256xf32>
    %502 = tpu.matmul %470, %2, %cst_355 {dimension_numbers = #tpu.dot_dimension_numbers<[1], [0], [0], [1], [0, 0, 1, 1], [], []>} : vector<16x16xf32>, vector<16x256xf32>, vector<16x256xf32> -> vector<16x256xf32>
    %503 = arith.mulf %433, %502 : vector<16x256xf32>
    %cst_356 = arith.constant dense<0.000000e+00> : vector<256xf32>
    %504 = vector.multi_reduction <add>, %503, %cst_356 [0] : vector<16x256xf32> to vector<256xf32>
    %505 = vector.shape_cast %504 : vector<256xf32> to vector<1x256xf32>
    %cst_357 = arith.constant dense<0.000000e+00> : vector<1x16xf32>
    %506 = tpu.matmul %505, %3, %cst_357 {dimension_numbers = #tpu.dot_dimension_numbers<[1], [0], [0], [1], [0, 0, 1, 1], [], []>} : vector<1x256xf32>, vector<256x16xf32>, vector<1x16xf32> -> vector<1x16xf32>
    %cst_358 = arith.constant dense<0.000000e+00> : vector<16xf32>
    %507 = vector.multi_reduction <add>, %470, %cst_358 [1] : vector<16x16xf32> to vector<16xf32>
    %508 = vector.shape_cast %507 : vector<16xf32> to vector<16x1xf32>
    %cst_359 = arith.constant dense<0.000000e+00> : vector<1xf32>
    %509 = vector.multi_reduction <add>, %508, %cst_359 [0] : vector<16x1xf32> to vector<1xf32>
    %510 = vector.shape_cast %509 : vector<1xf32> to vector<1x1xf32>
    %cst_360 = arith.constant 9.99999997E-7 : f32
    %511 = vector.broadcast %cst_360 : f32 to vector<1x1xf32>
    %512 = arith.addf %510, %511 : vector<1x1xf32>
    %513 = vector.broadcast %512 : vector<1x1xf32> to vector<1x16xf32>
    %514 = arith.divf %506, %513 : vector<1x16xf32>
    %cst_361 = arith.constant dense<0.000000e+00> : vector<16x256xf32>
    %515 = tpu.matmul %471, %2, %cst_361 {dimension_numbers = #tpu.dot_dimension_numbers<[1], [0], [0], [1], [0, 0, 1, 1], [], []>} : vector<16x16xf32>, vector<16x256xf32>, vector<16x256xf32> -> vector<16x256xf32>
    %516 = arith.mulf %433, %515 : vector<16x256xf32>
    %cst_362 = arith.constant dense<0.000000e+00> : vector<256xf32>
    %517 = vector.multi_reduction <add>, %516, %cst_362 [0] : vector<16x256xf32> to vector<256xf32>
    %518 = vector.shape_cast %517 : vector<256xf32> to vector<1x256xf32>
    %cst_363 = arith.constant dense<0.000000e+00> : vector<1x16xf32>
    %519 = tpu.matmul %518, %3, %cst_363 {dimension_numbers = #tpu.dot_dimension_numbers<[1], [0], [0], [1], [0, 0, 1, 1], [], []>} : vector<1x256xf32>, vector<256x16xf32>, vector<1x16xf32> -> vector<1x16xf32>
    %cst_364 = arith.constant dense<0.000000e+00> : vector<16xf32>
    %520 = vector.multi_reduction <add>, %471, %cst_364 [1] : vector<16x16xf32> to vector<16xf32>
    %521 = vector.shape_cast %520 : vector<16xf32> to vector<16x1xf32>
    %cst_365 = arith.constant dense<0.000000e+00> : vector<1xf32>
    %522 = vector.multi_reduction <add>, %521, %cst_365 [0] : vector<16x1xf32> to vector<1xf32>
    %523 = vector.shape_cast %522 : vector<1xf32> to vector<1x1xf32>
    %cst_366 = arith.constant 9.99999997E-7 : f32
    %524 = vector.broadcast %cst_366 : f32 to vector<1x1xf32>
    %525 = arith.addf %523, %524 : vector<1x1xf32>
    %526 = vector.broadcast %525 : vector<1x1xf32> to vector<1x16xf32>
    %527 = arith.divf %519, %526 : vector<1x16xf32>
    %528 = tpu.concatenate %488, %501, %514, %527 in 0 : vector<1x16xf32>, vector<1x16xf32>, vector<1x16xf32>, vector<1x16xf32> -> vector<4x16xf32>
    %c0_367 = arith.constant 0 : index
    %c0_368 = arith.constant 0 : index
    %529 = vector.load %arg15[%c0_367, %c0_368] : memref<16x32xf32, #tpu.memory_space<vmem>>, vector<16x32xf32>
    %cst_369 = arith.constant dense<0.000000e+00> : vector<4x32xf32>
    %530 = tpu.matmul %528, %529, %cst_369 {dimension_numbers = #tpu.dot_dimension_numbers<[1], [0], [0], [1], [0, 0, 1, 1], [], []>} : vector<4x16xf32>, vector<16x32xf32>, vector<4x32xf32> -> vector<4x32xf32>
    %c0_370 = arith.constant 0 : index
    %c0_371 = arith.constant 0 : index
    %531 = vector.load %arg16[%c0_370, %c0_371] : memref<1x32xf32, #tpu.memory_space<vmem>>, vector<1x32xf32>
    %532 = vector.broadcast %531 : vector<1x32xf32> to vector<4x32xf32>
    %533 = arith.addf %530, %532 : vector<4x32xf32>
    %534 = math.tanh %533 : vector<4x32xf32>
    %c0_372 = arith.constant 0 : index
    %c2_373 = arith.constant 2 : index
    %c0_374 = arith.constant 0 : index
    %c0_375 = arith.constant 0 : index
    %535 = vector.load %arg28[%c0_372, %c2_373, %c0_374, %c0_375] : memref<1x3x4x32xf32, #tpu.memory_space<vmem>>, vector<1x1x4x32xf32>
    %536 = vector.shape_cast %535 : vector<1x1x4x32xf32> to vector<4x32xf32>
    %537 = vector.shape_cast %534 : vector<4x32xf32> to vector<1x1x4x32xf32>
    tpu.vector_store %arg28[%c0_372, %c2_373, %c0_374, %c0_375], %537 {strides = array<i32>} : memref<1x3x4x32xf32, #tpu.memory_space<vmem>>, vector<1x1x4x32xf32>,
    %cst_376 = arith.constant dense<0.000000e+00> : vector<4x4xf32>
    %538 = tpu.matmul %178, %356, %cst_376 {dimension_numbers = #tpu.dot_dimension_numbers<[1], [1], [0], [0], [0, 0, 1, 0], [], []>} : vector<4x32xf32>, vector<4x32xf32>, vector<4x4xf32> -> vector<4x4xf32>
    %cst_377 = arith.constant 0.176776692 : f32
    %539 = vector.broadcast %cst_377 : f32 to vector<4x4xf32>
    %540 = arith.mulf %538, %539 : vector<4x4xf32>
    %cst_378 = arith.constant dense<0xFF800000> : vector<4xf32>
    %541 = vector.multi_reduction <maximumf>, %540, %cst_378 [1] : vector<4x4xf32> to vector<4xf32>
    %542 = vector.shape_cast %541 : vector<4xf32> to vector<4x1xf32>
    %543 = vector.broadcast %542 : vector<4x1xf32> to vector<4x4xf32>
    %544 = arith.subf %540, %543 : vector<4x4xf32>
    %545 = math.exp %544 : vector<4x4xf32>
    %cst_379 = arith.constant dense<0.000000e+00> : vector<4xf32>
    %546 = vector.multi_reduction <add>, %545, %cst_379 [1] : vector<4x4xf32> to vector<4xf32>
    %547 = vector.shape_cast %546 : vector<4xf32> to vector<4x1xf32>
    %548 = vector.broadcast %547 : vector<4x1xf32> to vector<4x4xf32>
    %549 = arith.divf %545, %548 : vector<4x4xf32>
    %c0_380 = arith.constant 0 : index
    %c0_381 = arith.constant 0 : index
    %c0_382 = arith.constant 0 : index
    %550 = vector.load %arg29[%c0_380, %c0_381, %c0_382] : memref<1x4x4xf32, #tpu.memory_space<vmem>>, vector<1x4x4xf32>
    %551 = vector.shape_cast %550 : vector<1x4x4xf32> to vector<4x4xf32>
    %552 = vector.shape_cast %549 : vector<4x4xf32> to vector<1x4x4xf32>
    tpu.vector_store %arg29[%c0_380, %c0_381, %c0_382], %552 {strides = array<i32>} : memref<1x4x4xf32, #tpu.memory_space<vmem>>, vector<1x4x4xf32>,
    %c0_383 = arith.constant 0 : index
    %c0_384 = arith.constant 0 : index
    %c0_385 = arith.constant 0 : index
    %553 = vector.load %arg30[%c0_383, %c0_384, %c0_385] : memref<1x4x4xf32, #tpu.memory_space<vmem>>, vector<1x4x4xf32>
    %554 = vector.shape_cast %553 : vector<1x4x4xf32> to vector<4x4xf32>
    %555 = vector.shape_cast %540 : vector<4x4xf32> to vector<1x4x4xf32>
    tpu.vector_store %arg30[%c0_383, %c0_384, %c0_385], %555 {strides = array<i32>} : memref<1x4x4xf32, #tpu.memory_space<vmem>>, vector<1x4x4xf32>,
    %cst_386 = arith.constant dense<0.000000e+00> : vector<4x32xf32>
    %556 = tpu.matmul %549, %356, %cst_386 {dimension_numbers = #tpu.dot_dimension_numbers<[1], [0], [0], [1], [0, 0, 1, 1], [], []>} : vector<4x4xf32>, vector<4x32xf32>, vector<4x32xf32> -> vector<4x32xf32>
    %c0_387 = arith.constant 0 : index
    %c0_388 = arith.constant 0 : index
    %c0_389 = arith.constant 0 : index
    %557 = vector.load %arg31[%c0_387, %c0_388, %c0_389] : memref<1x4x32xf32, #tpu.memory_space<vmem>>, vector<1x4x32xf32>
    %558 = vector.shape_cast %557 : vector<1x4x32xf32> to vector<4x32xf32>
    %559 = vector.shape_cast %556 : vector<4x32xf32> to vector<1x4x32xf32>
    tpu.vector_store %arg31[%c0_387, %c0_388, %c0_389], %559 {strides = array<i32>} : memref<1x4x32xf32, #tpu.memory_space<vmem>>, vector<1x4x32xf32>,
    %c0_390 = arith.constant 0 : index
    %c0_391 = arith.constant 0 : index
    %560 = vector.load %arg17[%c0_390, %c0_391] : memref<32x2xf32, #tpu.memory_space<vmem>>, vector<32x2xf32>
    %cst_392 = arith.constant dense<0.000000e+00> : vector<4x2xf32>
    %561 = tpu.matmul %556, %560, %cst_392 {dimension_numbers = #tpu.dot_dimension_numbers<[1], [0], [0], [1], [0, 0, 1, 1], [], []>} : vector<4x32xf32>, vector<32x2xf32>, vector<4x2xf32> -> vector<4x2xf32>
    %c0_393 = arith.constant 0 : index
    %c0_394 = arith.constant 0 : index
    %562 = vector.load %arg18[%c0_393, %c0_394] : memref<32x2xf32, #tpu.memory_space<vmem>>, vector<32x2xf32>
    %cst_395 = arith.constant dense<0.000000e+00> : vector<4x2xf32>
    %563 = tpu.matmul %356, %562, %cst_395 {dimension_numbers = #tpu.dot_dimension_numbers<[1], [0], [0], [1], [0, 0, 1, 1], [], []>} : vector<4x32xf32>, vector<32x2xf32>, vector<4x2xf32> -> vector<4x2xf32>
    %564 = arith.addf %561, %563 : vector<4x2xf32>
    %c0_396 = arith.constant 0 : index
    %c0_397 = arith.constant 0 : index
    %565 = vector.load %arg19[%c0_396, %c0_397] : memref<1x2xf32, #tpu.memory_space<vmem>>, vector<1x2xf32>
    %566 = vector.broadcast %565 : vector<1x2xf32> to vector<4x2xf32>
    %567 = arith.addf %564, %566 : vector<4x2xf32>
    %568 = math.tanh %567 : vector<4x2xf32>
    %c0_398 = arith.constant 0 : index
    %c0_399 = arith.constant 0 : index
    %c0_400 = arith.constant 0 : index
    %569 = vector.load %arg32[%c0_398, %c0_399, %c0_400] : memref<1x4x2xf32, #tpu.memory_space<vmem>>, vector<1x4x2xf32>
    %570 = vector.shape_cast %569 : vector<1x4x2xf32> to vector<4x2xf32>
    %571 = vector.shape_cast %568 : vector<4x2xf32> to vector<1x4x2xf32>
    tpu.vector_store %arg32[%c0_398, %c0_399, %c0_400], %571 {strides = array<i32>} : memref<1x4x2xf32, #tpu.memory_space<vmem>>, vector<1x4x2xf32>,
    %cst_401 = arith.constant dense<0.000000e+00> : vector<16x64xf32>
    %572 = tpu.matmul %0, %294, %cst_401 {dimension_numbers = #tpu.dot_dimension_numbers<[1], [0], [0], [1], [0, 0, 1, 1], [], []>} : vector<16x16xf32>, vector<16x64xf32>, vector<16x64xf32> -> vector<16x64xf32>
    %cst_402 = arith.constant dense<0.000000e+00> : vector<16x64xf32>
    %573 = tpu.matmul %1, %294, %cst_402 {dimension_numbers = #tpu.dot_dimension_numbers<[1], [0], [0], [1], [0, 0, 1, 1], [], []>} : vector<16x16xf32>, vector<16x64xf32>, vector<16x64xf32> -> vector<16x64xf32>
    %c0_403 = arith.constant 0 : index
    %c0_404 = arith.constant 0 : index
    %c0_405 = arith.constant 0 : index
    %574 = vector.load %arg20[%c0_403, %c0_404, %c0_405] : memref<3x48x256xf32, #tpu.memory_space<vmem>>, vector<1x48x256xf32>
    %575 = vector.shape_cast %574 : vector<1x48x256xf32> to vector<48x256xf32>
    %cst_406 = arith.constant dense<0.000000e+00> : vector<16x256xf32>
    %576 = tpu.matmul %184, %575, %cst_406 {dimension_numbers = #tpu.dot_dimension_numbers<[1], [0], [0], [1], [0, 0, 1, 1], [], []>} : vector<16x48xf32>, vector<48x256xf32>, vector<16x256xf32> -> vector<16x256xf32>
    %c1_407 = arith.constant 1 : index
    %c0_408 = arith.constant 0 : index
    %c0_409 = arith.constant 0 : index
    %577 = vector.load %arg20[%c1_407, %c0_408, %c0_409] : memref<3x48x256xf32, #tpu.memory_space<vmem>>, vector<1x48x256xf32>
    %578 = vector.shape_cast %577 : vector<1x48x256xf32> to vector<48x256xf32>
    %cst_410 = arith.constant dense<0.000000e+00> : vector<16x256xf32>
    %579 = tpu.matmul %183, %578, %cst_410 {dimension_numbers = #tpu.dot_dimension_numbers<[1], [0], [0], [1], [0, 0, 1, 1], [], []>} : vector<16x48xf32>, vector<48x256xf32>, vector<16x256xf32> -> vector<16x256xf32>
    %580 = arith.addf %576, %579 : vector<16x256xf32>
    %c2_411 = arith.constant 2 : index
    %c0_412 = arith.constant 0 : index
    %c0_413 = arith.constant 0 : index
    %581 = vector.load %arg20[%c2_411, %c0_412, %c0_413] : memref<3x48x256xf32, #tpu.memory_space<vmem>>, vector<1x48x256xf32>
    %582 = vector.shape_cast %581 : vector<1x48x256xf32> to vector<48x256xf32>
    %cst_414 = arith.constant dense<0.000000e+00> : vector<16x256xf32>
    %583 = tpu.matmul %185, %582, %cst_414 {dimension_numbers = #tpu.dot_dimension_numbers<[1], [0], [0], [1], [0, 0, 1, 1], [], []>} : vector<16x48xf32>, vector<48x256xf32>, vector<16x256xf32> -> vector<16x256xf32>
    %584 = arith.addf %580, %583 : vector<16x256xf32>
    %c0_415 = arith.constant 0 : index
    %c0_416 = arith.constant 0 : index
    %c0_417 = arith.constant 0 : index
    %585 = vector.load %arg21[%c0_415, %c0_416, %c0_417] : memref<3x16x256xf32, #tpu.memory_space<vmem>>, vector<1x16x256xf32>
    %586 = vector.shape_cast %585 : vector<1x16x256xf32> to vector<16x256xf32>
    %cst_418 = arith.constant dense<0.000000e+00> : vector<16x256xf32>
    %587 = tpu.matmul %226, %586, %cst_418 {dimension_numbers = #tpu.dot_dimension_numbers<[1], [0], [0], [1], [0, 0, 1, 1], [], []>} : vector<16x16xf32>, vector<16x256xf32>, vector<16x256xf32> -> vector<16x256xf32>
    %c1_419 = arith.constant 1 : index
    %c0_420 = arith.constant 0 : index
    %c0_421 = arith.constant 0 : index
    %588 = vector.load %arg21[%c1_419, %c0_420, %c0_421] : memref<3x16x256xf32, #tpu.memory_space<vmem>>, vector<1x16x256xf32>
    %589 = vector.shape_cast %588 : vector<1x16x256xf32> to vector<16x256xf32>
    %cst_422 = arith.constant dense<0.000000e+00> : vector<16x256xf32>
    %590 = tpu.matmul %222, %589, %cst_422 {dimension_numbers = #tpu.dot_dimension_numbers<[1], [0], [0], [1], [0, 0, 1, 1], [], []>} : vector<16x16xf32>, vector<16x256xf32>, vector<16x256xf32> -> vector<16x256xf32>
    %591 = arith.addf %587, %590 : vector<16x256xf32>
    %c2_423 = arith.constant 2 : index
    %c0_424 = arith.constant 0 : index
    %c0_425 = arith.constant 0 : index
    %592 = vector.load %arg21[%c2_423, %c0_424, %c0_425] : memref<3x16x256xf32, #tpu.memory_space<vmem>>, vector<1x16x256xf32>
    %593 = vector.shape_cast %592 : vector<1x16x256xf32> to vector<16x256xf32>
    %cst_426 = arith.constant dense<0.000000e+00> : vector<16x256xf32>
    %594 = tpu.matmul %227, %593, %cst_426 {dimension_numbers = #tpu.dot_dimension_numbers<[1], [0], [0], [1], [0, 0, 1, 1], [], []>} : vector<16x16xf32>, vector<16x256xf32>, vector<16x256xf32> -> vector<16x256xf32>
    %595 = arith.addf %591, %594 : vector<16x256xf32>
    %596 = arith.addf %584, %595 : vector<16x256xf32>
    %c0_427 = arith.constant 0 : index
    %c0_428 = arith.constant 0 : index
    %c0_429 = arith.constant 0 : index
    %597 = vector.load %arg22[%c0_427, %c0_428, %c0_429] : memref<3x64x256xf32, #tpu.memory_space<vmem>>, vector<1x64x256xf32>
    %598 = vector.shape_cast %597 : vector<1x64x256xf32> to vector<64x256xf32>
    %cst_430 = arith.constant dense<0.000000e+00> : vector<16x256xf32>
    %599 = tpu.matmul %572, %598, %cst_430 {dimension_numbers = #tpu.dot_dimension_numbers<[1], [0], [0], [1], [0, 0, 1, 1], [], []>} : vector<16x64xf32>, vector<64x256xf32>, vector<16x256xf32> -> vector<16x256xf32>
    %c1_431 = arith.constant 1 : index
    %c0_432 = arith.constant 0 : index
    %c0_433 = arith.constant 0 : index
    %600 = vector.load %arg22[%c1_431, %c0_432, %c0_433] : memref<3x64x256xf32, #tpu.memory_space<vmem>>, vector<1x64x256xf32>
    %601 = vector.shape_cast %600 : vector<1x64x256xf32> to vector<64x256xf32>
    %cst_434 = arith.constant dense<0.000000e+00> : vector<16x256xf32>
    %602 = tpu.matmul %294, %601, %cst_434 {dimension_numbers = #tpu.dot_dimension_numbers<[1], [0], [0], [1], [0, 0, 1, 1], [], []>} : vector<16x64xf32>, vector<64x256xf32>, vector<16x256xf32> -> vector<16x256xf32>
    %603 = arith.addf %599, %602 : vector<16x256xf32>
    %c2_435 = arith.constant 2 : index
    %c0_436 = arith.constant 0 : index
    %c0_437 = arith.constant 0 : index
    %604 = vector.load %arg22[%c2_435, %c0_436, %c0_437] : memref<3x64x256xf32, #tpu.memory_space<vmem>>, vector<1x64x256xf32>
    %605 = vector.shape_cast %604 : vector<1x64x256xf32> to vector<64x256xf32>
    %cst_438 = arith.constant dense<0.000000e+00> : vector<16x256xf32>
    %606 = tpu.matmul %573, %605, %cst_438 {dimension_numbers = #tpu.dot_dimension_numbers<[1], [0], [0], [1], [0, 0, 1, 1], [], []>} : vector<16x64xf32>, vector<64x256xf32>, vector<16x256xf32> -> vector<16x256xf32>
    %607 = arith.addf %603, %606 : vector<16x256xf32>
    %608 = arith.addf %596, %607 : vector<16x256xf32>
    %c0_439 = arith.constant 0 : index
    %c0_440 = arith.constant 0 : index
    %609 = vector.load %arg23[%c0_439, %c0_440] : memref<1x256xf32, #tpu.memory_space<vmem>>, vector<1x256xf32>
    %610 = vector.broadcast %609 : vector<1x256xf32> to vector<16x256xf32>
    %611 = arith.addf %608, %610 : vector<16x256xf32>
    %cst_441 = arith.constant 0.000000e+00 : f32
    %612 = vector.broadcast %cst_441 : f32 to vector<16x256xf32>
    %613 = arith.maximumf %611, %612 : vector<16x256xf32>
    %cst_442 = arith.constant dense<0.000000e+00> : vector<16x256xf32>
    %614 = tpu.matmul %0, %613, %cst_442 {dimension_numbers = #tpu.dot_dimension_numbers<[1], [0], [0], [1], [0, 0, 1, 1], [], []>} : vector<16x16xf32>, vector<16x256xf32>, vector<16x256xf32> -> vector<16x256xf32>
    %cst_443 = arith.constant dense<0.000000e+00> : vector<16x256xf32>
    %615 = tpu.matmul %1, %613, %cst_443 {dimension_numbers = #tpu.dot_dimension_numbers<[1], [0], [0], [1], [0, 0, 1, 1], [], []>} : vector<16x16xf32>, vector<16x256xf32>, vector<16x256xf32> -> vector<16x256xf32>
    %c0_444 = arith.constant 0 : index
    %c0_445 = arith.constant 0 : index
    %c0_446 = arith.constant 0 : index
    %616 = vector.load %arg24[%c0_444, %c0_445, %c0_446] : memref<3x256x48xf32, #tpu.memory_space<vmem>>, vector<1x256x48xf32>
    %617 = vector.shape_cast %616 : vector<1x256x48xf32> to vector<256x48xf32>
    %cst_447 = arith.constant dense<0.000000e+00> : vector<16x48xf32>
    %618 = tpu.matmul %614, %617, %cst_447 {dimension_numbers = #tpu.dot_dimension_numbers<[1], [0], [0], [1], [0, 0, 1, 1], [], []>} : vector<16x256xf32>, vector<256x48xf32>, vector<16x48xf32> -> vector<16x48xf32>
    %c1_448 = arith.constant 1 : index
    %c0_449 = arith.constant 0 : index
    %c0_450 = arith.constant 0 : index
    %619 = vector.load %arg24[%c1_448, %c0_449, %c0_450] : memref<3x256x48xf32, #tpu.memory_space<vmem>>, vector<1x256x48xf32>
    %620 = vector.shape_cast %619 : vector<1x256x48xf32> to vector<256x48xf32>
    %cst_451 = arith.constant dense<0.000000e+00> : vector<16x48xf32>
    %621 = tpu.matmul %613, %620, %cst_451 {dimension_numbers = #tpu.dot_dimension_numbers<[1], [0], [0], [1], [0, 0, 1, 1], [], []>} : vector<16x256xf32>, vector<256x48xf32>, vector<16x48xf32> -> vector<16x48xf32>
    %622 = arith.addf %618, %621 : vector<16x48xf32>
    %c2_452 = arith.constant 2 : index
    %c0_453 = arith.constant 0 : index
    %c0_454 = arith.constant 0 : index
    %623 = vector.load %arg24[%c2_452, %c0_453, %c0_454] : memref<3x256x48xf32, #tpu.memory_space<vmem>>, vector<1x256x48xf32>
    %624 = vector.shape_cast %623 : vector<1x256x48xf32> to vector<256x48xf32>
    %cst_455 = arith.constant dense<0.000000e+00> : vector<16x48xf32>
    %625 = tpu.matmul %615, %624, %cst_455 {dimension_numbers = #tpu.dot_dimension_numbers<[1], [0], [0], [1], [0, 0, 1, 1], [], []>} : vector<16x256xf32>, vector<256x48xf32>, vector<16x48xf32> -> vector<16x48xf32>
    %626 = arith.addf %622, %625 : vector<16x48xf32>
    %c0_456 = arith.constant 0 : index
    %c0_457 = arith.constant 0 : index
    %627 = vector.load %arg25[%c0_456, %c0_457] : memref<1x48xf32, #tpu.memory_space<vmem>>, vector<1x48xf32>
    %628 = vector.broadcast %627 : vector<1x48xf32> to vector<16x48xf32>
    %629 = arith.addf %626, %628 : vector<16x48xf32>
    %630 = arith.negf %629 : vector<16x48xf32>
    %631 = math.exp %630 : vector<16x48xf32>
    %cst_458 = arith.constant 1.000000e+00 : f32
    %632 = vector.broadcast %cst_458 : f32 to vector<16x48xf32>
    %633 = arith.addf %632, %631 : vector<16x48xf32>
    %634 = arith.divf %632, %633 : vector<16x48xf32>
    %c0_459 = arith.constant 0 : index
    %c0_460 = arith.constant 0 : index
    %c0_461 = arith.constant 0 : index
    %635 = vector.load %arg33[%c0_459, %c0_460, %c0_461] : memref<1x16x48xf32, #tpu.memory_space<vmem>>, vector<1x16x48xf32>
    %636 = vector.shape_cast %635 : vector<1x16x48xf32> to vector<16x48xf32>
    %637 = vector.shape_cast %634 : vector<16x48xf32> to vector<1x16x48xf32>
    tpu.vector_store %arg33[%c0_459, %c0_460, %c0_461], %637 {strides = array<i32>} : memref<1x16x48xf32, #tpu.memory_space<vmem>>, vector<1x16x48xf32>,
    %638 = vector.extract_strided_slice %294 {offsets = [0, 0], sizes = [16, 16], strides = [1, 1]} : vector<16x64xf32> to vector<16x16xf32>
    %639 = vector.extract_strided_slice %2 {offsets = [0, 0], sizes = [16, 48], strides = [1, 1]} : vector<16x256xf32> to vector<16x48xf32>
    %cst_462 = arith.constant dense<0.000000e+00> : vector<16x48xf32>
    %640 = tpu.matmul %638, %639, %cst_462 {dimension_numbers = #tpu.dot_dimension_numbers<[1], [0], [0], [1], [0, 0, 1, 1], [], []>} : vector<16x16xf32>, vector<16x48xf32>, vector<16x48xf32> -> vector<16x48xf32>
    %641 = arith.mulf %640, %634 : vector<16x48xf32>
    %cst_463 = arith.constant 1.000000e+00 : f32
    %642 = vector.broadcast %cst_463 : f32 to vector<16x48xf32>
    %643 = arith.subf %642, %640 : vector<16x48xf32>
    %644 = arith.mulf %643, %183 : vector<16x48xf32>
    %645 = arith.addf %641, %644 : vector<16x48xf32>
    %c0_464 = arith.constant 0 : index
    %c0_465 = arith.constant 0 : index
    %c0_466 = arith.constant 0 : index
    %646 = vector.load %arg34[%c0_464, %c0_465, %c0_466] : memref<1x16x48xf32, #tpu.memory_space<vmem>>, vector<1x16x48xf32>
    %647 = vector.shape_cast %646 : vector<1x16x48xf32> to vector<16x48xf32>
    %648 = vector.shape_cast %645 : vector<16x48xf32> to vector<1x16x48xf32>
    tpu.vector_store %arg34[%c0_464, %c0_465, %c0_466], %648 {strides = array<i32>} : memref<1x16x48xf32, #tpu.memory_space<vmem>>, vector<1x16x48xf32>,
    return
  }
  func.func @transform_0(%arg0: i32) -> (i32, i32, i32, i32) {
    %c0_i32 = arith.constant 0 : i32
    %c0_i32_0 = arith.constant 0 : i32
    %c0_i32_1 = arith.constant 0 : i32
    %c0_i32_2 = arith.constant 0 : i32
    return %arg0, %c0_i32, %c0_i32_0, %c0_i32_1 : i32, i32, i32, i32
  }
  func.func @transform_1(%arg0: i32) -> (i32, i32) {
    %c0_i32 = arith.constant 0 : i32
    %c0_i32_0 = arith.constant 0 : i32
    %c0_i32_1 = arith.constant 0 : i32
    return %c0_i32, %c0_i32_0 : i32, i32
  }
  func.func @transform_2(%arg0: i32) -> (i32, i32) {
    %c0_i32 = arith.constant 0 : i32
    %c0_i32_0 = arith.constant 0 : i32
    %c0_i32_1 = arith.constant 0 : i32
    return %c0_i32, %c0_i32_0 : i32, i32
  }
  func.func @transform_3(%arg0: i32) -> (i32, i32) {
    %c0_i32 = arith.constant 0 : i32
    %c0_i32_0 = arith.constant 0 : i32
    %c0_i32_1 = arith.constant 0 : i32
    return %c0_i32, %c0_i32_0 : i32, i32
  }
  func.func @transform_4(%arg0: i32) -> (i32, i32) {
    %c0_i32 = arith.constant 0 : i32
    %c0_i32_0 = arith.constant 0 : i32
    %c0_i32_1 = arith.constant 0 : i32
    return %c0_i32, %c0_i32_0 : i32, i32
  }
  func.func @transform_5(%arg0: i32) -> (i32, i32, i32) {
    %c0_i32 = arith.constant 0 : i32
    %c0_i32_0 = arith.constant 0 : i32
    %c0_i32_1 = arith.constant 0 : i32
    %c0_i32_2 = arith.constant 0 : i32
    return %c0_i32, %c0_i32_0, %c0_i32_1 : i32, i32, i32
  }
  func.func @transform_6(%arg0: i32) -> (i32, i32) {
    %c0_i32 = arith.constant 0 : i32
    %c0_i32_0 = arith.constant 0 : i32
    %c0_i32_1 = arith.constant 0 : i32
    return %c0_i32, %c0_i32_0 : i32, i32
  }
  func.func @transform_7(%arg0: i32) -> (i32, i32, i32) {
    %c0_i32 = arith.constant 0 : i32
    %c0_i32_0 = arith.constant 0 : i32
    %c0_i32_1 = arith.constant 0 : i32
    %c0_i32_2 = arith.constant 0 : i32
    return %c0_i32, %c0_i32_0, %c0_i32_1 : i32, i32, i32
  }
  func.func @transform_8(%arg0: i32) -> (i32, i32) {
    %c0_i32 = arith.constant 0 : i32
    %c0_i32_0 = arith.constant 0 : i32
    %c0_i32_1 = arith.constant 0 : i32
    return %c0_i32, %c0_i32_0 : i32, i32
  }
  func.func @transform_9(%arg0: i32) -> (i32, i32, i32) {
    %c0_i32 = arith.constant 0 : i32
    %c0_i32_0 = arith.constant 0 : i32
    %c0_i32_1 = arith.constant 0 : i32
    %c0_i32_2 = arith.constant 0 : i32
    return %c0_i32, %c0_i32_0, %c0_i32_1 : i32, i32, i32
  }
  func.func @transform_10(%arg0: i32) -> (i32, i32, i32) {
    %c0_i32 = arith.constant 0 : i32
    %c0_i32_0 = arith.constant 0 : i32
    %c0_i32_1 = arith.constant 0 : i32
    %c0_i32_2 = arith.constant 0 : i32
    return %c0_i32, %c0_i32_0, %c0_i32_1 : i32, i32, i32
  }
  func.func @transform_11(%arg0: i32) -> (i32, i32) {
    %c0_i32 = arith.constant 0 : i32
    %c0_i32_0 = arith.constant 0 : i32
    %c0_i32_1 = arith.constant 0 : i32
    return %c0_i32, %c0_i32_0 : i32, i32
  }
  func.func @transform_12(%arg0: i32) -> (i32, i32, i32) {
    %c0_i32 = arith.constant 0 : i32
    %c0_i32_0 = arith.constant 0 : i32
    %c0_i32_1 = arith.constant 0 : i32
    %c0_i32_2 = arith.constant 0 : i32
    return %c0_i32, %c0_i32_0, %c0_i32_1 : i32, i32, i32
  }
  func.func @transform_13(%arg0: i32) -> (i32, i32) {
    %c0_i32 = arith.constant 0 : i32
    %c0_i32_0 = arith.constant 0 : i32
    %c0_i32_1 = arith.constant 0 : i32
    return %c0_i32, %c0_i32_0 : i32, i32
  }
  func.func @transform_14(%arg0: i32) -> (i32, i32) {
    %c0_i32 = arith.constant 0 : i32
    %c0_i32_0 = arith.constant 0 : i32
    %c0_i32_1 = arith.constant 0 : i32
    return %c0_i32, %c0_i32_0 : i32, i32
  }
  func.func @transform_15(%arg0: i32) -> (i32, i32) {
    %c0_i32 = arith.constant 0 : i32
    %c0_i32_0 = arith.constant 0 : i32
    %c0_i32_1 = arith.constant 0 : i32
    return %c0_i32, %c0_i32_0 : i32, i32
  }
  func.func @transform_16(%arg0: i32) -> (i32, i32) {
    %c0_i32 = arith.constant 0 : i32
    %c0_i32_0 = arith.constant 0 : i32
    %c0_i32_1 = arith.constant 0 : i32
    return %c0_i32, %c0_i32_0 : i32, i32
  }
  func.func @transform_17(%arg0: i32) -> (i32, i32) {
    %c0_i32 = arith.constant 0 : i32
    %c0_i32_0 = arith.constant 0 : i32
    %c0_i32_1 = arith.constant 0 : i32
    return %c0_i32, %c0_i32_0 : i32, i32
  }
  func.func @transform_18(%arg0: i32) -> (i32, i32) {
    %c0_i32 = arith.constant 0 : i32
    %c0_i32_0 = arith.constant 0 : i32
    %c0_i32_1 = arith.constant 0 : i32
    return %c0_i32, %c0_i32_0 : i32, i32
  }
  func.func @transform_19(%arg0: i32) -> (i32, i32, i32) {
    %c0_i32 = arith.constant 0 : i32
    %c0_i32_0 = arith.constant 0 : i32
    %c0_i32_1 = arith.constant 0 : i32
    %c0_i32_2 = arith.constant 0 : i32
    return %c0_i32, %c0_i32_0, %c0_i32_1 : i32, i32, i32
  }
  func.func @transform_20(%arg0: i32) -> (i32, i32, i32) {
    %c0_i32 = arith.constant 0 : i32
    %c0_i32_0 = arith.constant 0 : i32
    %c0_i32_1 = arith.constant 0 : i32
    %c0_i32_2 = arith.constant 0 : i32
    return %c0_i32, %c0_i32_0, %c0_i32_1 : i32, i32, i32
  }
  func.func @transform_21(%arg0: i32) -> (i32, i32, i32) {
    %c0_i32 = arith.constant 0 : i32
    %c0_i32_0 = arith.constant 0 : i32
    %c0_i32_1 = arith.constant 0 : i32
    %c0_i32_2 = arith.constant 0 : i32
    return %c0_i32, %c0_i32_0, %c0_i32_1 : i32, i32, i32
  }
  func.func @transform_22(%arg0: i32) -> (i32, i32) {
    %c0_i32 = arith.constant 0 : i32
    %c0_i32_0 = arith.constant 0 : i32
    %c0_i32_1 = arith.constant 0 : i32
    return %c0_i32, %c0_i32_0 : i32, i32
  }
  func.func @transform_23(%arg0: i32) -> (i32, i32, i32) {
    %c0_i32 = arith.constant 0 : i32
    %c0_i32_0 = arith.constant 0 : i32
    %c0_i32_1 = arith.constant 0 : i32
    %c0_i32_2 = arith.constant 0 : i32
    return %c0_i32, %c0_i32_0, %c0_i32_1 : i32, i32, i32
  }
  func.func @transform_24(%arg0: i32) -> (i32, i32) {
    %c0_i32 = arith.constant 0 : i32
    %c0_i32_0 = arith.constant 0 : i32
    %c0_i32_1 = arith.constant 0 : i32
    return %c0_i32, %c0_i32_0 : i32, i32
  }
  func.func @transform_25(%arg0: i32) -> (i32, i32, i32, i32) {
    %c0_i32 = arith.constant 0 : i32
    %c0_i32_0 = arith.constant 0 : i32
    %c0_i32_1 = arith.constant 0 : i32
    %c0_i32_2 = arith.constant 0 : i32
    return %arg0, %c0_i32, %c0_i32_0, %c0_i32_1 : i32, i32, i32, i32
  }
  func.func @transform_26(%arg0: i32) -> (i32, i32, i32, i32) {
    %c0_i32 = arith.constant 0 : i32
    %c0_i32_0 = arith.constant 0 : i32
    %c0_i32_1 = arith.constant 0 : i32
    %c0_i32_2 = arith.constant 0 : i32
    return %arg0, %c0_i32, %c0_i32_0, %c0_i32_1 : i32, i32, i32, i32
  }
  func.func @transform_27(%arg0: i32) -> (i32, i32, i32, i32) {
    %c0_i32 = arith.constant 0 : i32
    %c0_i32_0 = arith.constant 0 : i32
    %c0_i32_1 = arith.constant 0 : i32
    %c0_i32_2 = arith.constant 0 : i32
    return %arg0, %c0_i32, %c0_i32_0, %c0_i32_1 : i32, i32, i32, i32
  }
  func.func @transform_28(%arg0: i32) -> (i32, i32, i32) {
    %c0_i32 = arith.constant 0 : i32
    %c0_i32_0 = arith.constant 0 : i32
    %c0_i32_1 = arith.constant 0 : i32
    return %arg0, %c0_i32, %c0_i32_0 : i32, i32, i32
  }
  func.func @transform_29(%arg0: i32) -> (i32, i32, i32) {
    %c0_i32 = arith.constant 0 : i32
    %c0_i32_0 = arith.constant 0 : i32
    %c0_i32_1 = arith.constant 0 : i32
    return %arg0, %c0_i32, %c0_i32_0 : i32, i32, i32
  }
  func.func @transform_30(%arg0: i32) -> (i32, i32, i32) {
    %c0_i32 = arith.constant 0 : i32
    %c0_i32_0 = arith.constant 0 : i32
    %c0_i32_1 = arith.constant 0 : i32
    return %arg0, %c0_i32, %c0_i32_0 : i32, i32, i32
  }
  func.func @transform_31(%arg0: i32) -> (i32, i32, i32) {
    %c0_i32 = arith.constant 0 : i32
    %c0_i32_0 = arith.constant 0 : i32
    %c0_i32_1 = arith.constant 0 : i32
    return %arg0, %c0_i32, %c0_i32_0 : i32, i32, i32
  }
  func.func @transform_32(%arg0: i32) -> (i32, i32, i32) {
    %c0_i32 = arith.constant 0 : i32
    %c0_i32_0 = arith.constant 0 : i32
    %c0_i32_1 = arith.constant 0 : i32
    return %arg0, %c0_i32, %c0_i32_0 : i32, i32, i32
  }
  func.func @transform_33(%arg0: i32) -> (i32, i32, i32) {
    %c0_i32 = arith.constant 0 : i32
    %c0_i32_0 = arith.constant 0 : i32
    %c0_i32_1 = arith.constant 0 : i32
    return %arg0, %c0_i32, %c0_i32_0 : i32, i32, i32
  }
}

</mosaic_0001>

<bundles_post_ra>
// kernel: opple_forward.1
= control target key start
LH: loop header
LB: loop body
LE: loop exit
PB: predicated region body
PF: predicated region fallthrough
CT: control target
= control target key end

     0   :  { %s17423_s6 = smov 1   ;;  %s17424_s10 = smov 2   ;;  %s20041_s0 = inlined_call_operand.smem [shape: u32[34], index: -1, kind: input, shape index: {}] }
   0x1   :  { %s17475_s5 = sld [smem:[%s20041_s0]]   ;;  %s17425_s14 = smov 3  }
   0x2   :  { %s17480_s9 = sld [smem:[%s20041_s0 + %s17423_s6]]   ;;  %s17426_s18 = smov 4  }
   0x3   :  { %s17485_s13 = sld [smem:[%s20041_s0 + %s17424_s10]]   ;;  %s17427_s22 = smov 5  }
   0x4   :  { %s17490_s17 = sld [smem:[%s20041_s0 + %s17425_s14]]   ;;  %s17428_s26 = smov 6  }
   0x5   :  { %s17495_s21 = sld [smem:[%s20041_s0 + %s17426_s18]]   ;;  %s17429_s30 = smov 7  }
   0x6   :  { %s17500_s25 = sld [smem:[%s20041_s0 + %s17427_s22]]   ;;  %s17430_s4 = smov 8  }
   0x7   :  { %20084 = sst [smem:[#allocation8_spill]] %s17475_s5  ;;  %s17431_s10 = smov 9  }
   0x8   :  { %20085 = sst [smem:[#allocation9_spill]] %s17480_s9  ;;  %s17432_s15 = smov 10  }
   0x9   :  { %20086 = sst [smem:[#allocation10_spill]] %s17485_s13  ;;  %s17433_s20 = smov 11  }
   0xa   :  { %20087 = sst [smem:[#allocation11_spill]] %s17490_s17  ;;  %s17435_s1 = smov 13  }
   0xb   :  { %20088 = sst [smem:[#allocation12_spill]] %s17495_s21  ;;  %s17436_s7 = smov 14  }
   0xc   :  { %s17505_s29 = sld [smem:[%s20041_s0 + %s17428_s26]]   ;;  %s17434_s26 = smov 12  }
   0xd   :  { %s17510_s3 = sld [smem:[%s20041_s0 + %s17429_s30]]   ;;  %s17438_s22 = smov 16  }
   0xe   :  { %s17515_s8 = sld [smem:[%s20041_s0 + %s17430_s4]]   ;;  %s17439_s28 = smov 17  }
   0xf   :  { %s17520_s14 = sld [smem:[%s20041_s0 + %s17431_s10]]  }
  0x10   :  { %s17525_s19 = sld [smem:[%s20041_s0 + %s17432_s15]]   ;;  %s17437_s15 = smov 15  }
  0x11   :  { %s17530_s24 = sld [smem:[%s20041_s0 + %s17433_s20]]  }
  0x12   :  { %s17535_s30 = sld [smem:[%s20041_s0 + %s17434_s26]]  }
  0x13   :  { %20089 = sst [smem:[#allocation13_spill]] %s17510_s3 }
  0x14   :  { %20090 = sst [smem:[#allocation14_spill]] %s17515_s8 }
  0x15   :  { %20091 = sst [smem:[#allocation15_spill]] %s17520_s14 }
  0x16   :  { %s17540_s6 = sld [smem:[%s20041_s0 + %s17435_s1]]  }
  0x17   :  { %s17545_s12 = sld [smem:[%s20041_s0 + %s17436_s7]]   ;;  %s17440_s7 = smov 18  }
  0x18   :  { %s17550_s20 = sld [smem:[%s20041_s0 + %s17437_s15]]   ;;  %s17441_s15 = smov 19  }
  0x19   :  { %s17555_s27 = sld [smem:[%s20041_s0 + %s17438_s22]]   ;;  %s17442_s22 = smov 20  }
  0x1a   :  { %s17560_s4 = sld [smem:[%s20041_s0 + %s17439_s28]]   ;;  %s17443_s28 = smov 21  }
  0x1c   :  { %20092 = sst [smem:[#allocation16_spill]] %s17540_s6 }
  0x1d   :  { %20093 = sst [smem:[#allocation17_spill]] %s17545_s12 }
  0x1e   :  { %20094 = sst [smem:[#allocation18_spill]] %s17550_s20 }
  0x1f   :  { %20095 = sst [smem:[#allocation19_spill]] %s17555_s27 }
  0x20   :  { %20096 = sst [smem:[#allocation20_spill]] %s17560_s4 }
  0x21   :  { %s17565_s12 = sld [smem:[%s20041_s0 + %s17440_s7]]   ;;  %s17444_s7 = smov 22  }
  0x22   :  { %s17570_s20 = sld [smem:[%s20041_s0 + %s17441_s15]]   ;;  %s17445_s15 = smov 23  }
  0x23   :  { %s17575_s27 = sld [smem:[%s20041_s0 + %s17442_s22]]   ;;  %s17446_s22 = smov 24  }
  0x24   :  { %s17580_s4 = sld [smem:[%s20041_s0 + %s17443_s28]]   ;;  %s17447_s28 = smov 25  }
  0x27   :  { %20097 = sst [smem:[#allocation21_spill]] %s17565_s12 }
  0x28   :  { %20098 = sst [smem:[#allocation22_spill]] %s17570_s20 }
  0x29   :  { %20099 = sst [smem:[#allocation23_spill]] %s17575_s27 }
  0x2a   :  { %20100 = sst [smem:[#allocation24_spill]] %s17580_s4 }
  0x2b   :  { %s17585_s12 = sld [smem:[%s20041_s0 + %s17444_s7]]   ;;  %s17448_s7 = smov 26  }
  0x2c   :  { %s17590_s20 = sld [smem:[%s20041_s0 + %s17445_s15]]   ;;  %s17449_s15 = smov 27  }
  0x2d   :  { %s17595_s27 = sld [smem:[%s20041_s0 + %s17446_s22]]   ;;  %s17450_s22 = smov 28  }
  0x2e   :  { %s17600_s4 = sld [smem:[%s20041_s0 + %s17447_s28]]   ;;  %s17451_s28 = smov 29  }
  0x2f   :  { %s17620_s21 = sld [smem:[%s20041_s0 + %s17451_s28]]   ;;  %s17455_s28 = smov 33  }
  0x31   :  { %20101 = sst [smem:[#allocation25_spill]] %s17585_s12 }
  0x32   :  { %20102 = sst [smem:[#allocation26_spill]] %s17590_s20 }
  0x33   :  { %20103 = sst [smem:[#allocation27_spill]] %s17595_s27 }
  0x34   :  { %20104 = sst [smem:[#allocation28_spill]] %s17600_s4 }
  0x35   :  { %s17605_s12 = sld [smem:[%s20041_s0 + %s17448_s7]]   ;;  %s17452_s7 = smov 30  }
  0x36   :  { %s17610_s20 = sld [smem:[%s20041_s0 + %s17449_s15]]   ;;  %s17453_s15 = smov 31  }
  0x37   :  { %s17615_s27 = sld [smem:[%s20041_s0 + %s17450_s22]]   ;;  %s17454_s22 = smov 32  }
  0x38   :  { %20108 = sst [smem:[#allocation32_spill]] %s17620_s21 }
  0x39   :  { %s17640_s21 = sld [smem:[%s20041_s0 + %s17455_s28]]  }
  0x3b   :  { %20105 = sst [smem:[#allocation29_spill]] %s17605_s12 }
  0x3c   :  { %20106 = sst [smem:[#allocation30_spill]] %s17610_s20 }
  0x3d   :  { %20107 = sst [smem:[#allocation31_spill]] %s17615_s27 }
  0x3e   :  { %s17625_s12 = sld [smem:[%s20041_s0 + %s17452_s7]]  }
  0x3f   :  { %s17630_s20 = sld [smem:[%s20041_s0 + %s17453_s15]]  }
  0x40   :  { %s17635_s27 = sld [smem:[%s20041_s0 + %s17454_s22]]  }
  0x41   :  { %20110 = sst [smem:[#allocation34_spill]] %s17640_s21 }
  0x46   :  { %20109 = sst [smem:[#allocation33_spill]] %s17635_s27 }
  0x47   :  { %73 = vsyncpa [#allocation3], 0 }
  0x48   :  { %75 = vsyncpa [#allocation3 + $0x1], 0 }
  0x49   :  { %76 = vsyncpa [#allocation5], 0 }
  0x4a   :  { %78 = vsyncpa [#allocation5 + $0x1], 0  ;;  %s17642_s7 = smov 0   ;;  %s17644_s10 = smov 0  }
  0x4b   :  { %s17646_s11 = smov 0   ;;  %s17648_s15 = smov 0  }
  0x4c LB: > { %s20111_s14 = sld [smem:[#allocation15_spill]]  ;;  %s20112_s13 = sld [smem:[#allocation10_spill]]  ;;  %s17417_s11 = sphi %s17646_s11, %s20163_s11   ;;  %s17413_s10 = sphi %s17644_s10, %s20165_s10   ;;  %s17409_s7 = sphi %s17642_s7, %s20164_s7   ;;  %s17421_s15 = sphi %s17648_s15, %s20161_s15  }
  0x4d   : > { %s20113_s9 = sld [smem:[#allocation9_spill]]  ;;  %s20114_s8 = sld [smem:[#allocation14_spill]] }
  0x4e   : > { %s20115_s6 = sld [smem:[#allocation16_spill]]  ;;  %s20116_s3 = sld [smem:[#allocation13_spill]] }
  0x4f   : > { %s20117_s17 = sld [smem:[#allocation11_spill]]  ;;  %20118 = sst [smem:[#allocation35_spill]] %s17409_s7 }
  0x50   : > { %20119 = sst [smem:[#allocation36_spill]] %s17417_s11  ;;  %s17663_s0 = sadd.s32 4294967295, %s17421_s15  }
  0x51   : > { %20120 = sst [smem:[#allocation37_spill]] %s17421_s15  ;;  %s12718_s16 = sadd.s32 4294967294, %s17421_s15  }
  0x52   : > { %s17667_s18 = sadd.s32 1, %s17421_s15   ;;  %s725_s22 = sadd.s32 1, %s17417_s11 }
  0x53   : > { %20121 = sst [smem:[#allocation38_spill]] %s17667_s18  ;;  %s722_s23 = ssub.s32 %s17421_s15, %s17667_s18 }
  0x54   : > { %p735_p0 = scmp.ne.s32.totalorder %s17417_s11, %s17413_s10  ;;  %p723_p1 = scmp.eq.s32.totalorder %s722_s23, 0 }
  0x55   : > { %p736_p2 = scmp.eq.s32.totalorder %s17663_s0, 1  ;;  %p741_p3 = scmp.ne.s32.totalorder %s17413_s10, %s17409_s7 }
  0x56   : > { %p742_p4 = scmp.eq.s32.totalorder %s12718_s16, 1  ;;  %p12721_p7 = scmp.ge.s32.totalorder %s17421_s15, 1 }
  0x57   : > { %s17678_s26 = scalar_select %p723_p1, %s17417_s11, %s725_s22  }
  0x58   : > { %p17680_p5 = por %p736_p2, %p735_p0  ;;  %p17684_p6 = por %p742_p4, %p741_p3 }
  0x59   : > { %20122 = sst [smem:[#allocation39_spill]] %s17678_s26  ;;  %p944_p8 = scmp.lt.s32.totalorder %s17421_s15, 3 }
  0x5a   : > { %s20124_s1 = scalar_select %p17684_p6, 1, 0 }
  0x5b   : > { %p945_p9 = pnand %p12721_p7, %p944_p8 }
  0x5c   : > { %20125 = sst [smem:[#allocation40_spill]] %s20124_s1  ;;  %p1066_p10 = scmp.lt.s32.totalorder (!%p945_p9), %s17663_s0, 1  ;;  %v17692_v0 = vld [vmem:[%s20113_s9] sm:$0xff] (!%p945_p9)  ;;  %vm1146_vm0 = vcmask (!%p945_p9), 130048   ;;  %v12738_v2 = vld [vmem:[%s17500_s25 + $0x30] sm:$0xff] (!%p945_p9)  ;;  %v12739_v3 = vld [vmem:[%s17500_s25 + $0x38] sm:$0xff] (!%p945_p9) }
  0x5d   : > { %948 = sbr.rel (%p945_p9) target bundleno = 11249 (0x2bf1), region = 120  ;;  %s20126_s5 = sld [smem:[#allocation8_spill]] (!%p945_p9)  ;;  %v17695_v1 = vld [vmem:[%s20112_s13] sm:$0xff] (!%p945_p9)  ;;  %14710 = vmatprep.mubr.msk.f32.mxu0 (!%p945_p9), %vm1146_vm0, %v17692_v0  ;;  %v15364_v7 = vpack.c.bf16 (!%p945_p9), %v12739_v3, %v12738_v2  ;;  %v12741_v9 = vld [vmem:[%s17500_s25 + $0x48] sm:$0xff] (!%p945_p9)  ;;  %vm1322_vm1 = vcmask (!%p945_p9), 392192   ;;  %v12742_v13 = vld [vmem:[%s17500_s25 + $0x50] sm:$0xff] (!%p945_p9) }
  0x5e   : > { %14717 = vmatprep.mubr.msk.f32.mxu1 (!%p945_p9), %vm1146_vm0, %v17695_v1  ;;  %v12740_v8 = vld [vmem:[%s17500_s25 + $0x40] sm:$0xff] (!%p945_p9)  ;;  %v17724_v10 = vld [vmem:[%s20113_s9 + $0x8] sm:$0xff] (!%p945_p9)  ;;  %v12743_v14 = vld [vmem:[%s17500_s25 + $0x58] sm:$0xff] (!%p945_p9)  ;;  %s20127_s4 = sld [smem:[#allocation28_spill]] (!%p945_p9)  ;;  %s20064_s26 = smov (!%p945_p9), 96   ;;  %vm3376_vm2 = vcmask (!%p945_p9), 261120  }
  0x5f   : > { %v17727_v11 = vld [vmem:[%s20112_s13 + $0x8] sm:$0xff] (!%p945_p9)  ;;  %v15368_v12 = vpack.c.bf16 (!%p945_p9), %v12741_v9, %v12740_v8  ;;  %v15372_v15 = vpack.c.bf16 (!%p945_p9), %v12743_v14, %v12742_v13  ;;  %v1309_v16 = vld [vmem:[%s17500_s25] sm:$0xff] (!%p945_p9)  ;;  %v1311_v19 = vld [vmem:[%s17500_s25 + $0x10] sm:$0xff] (!%p945_p9)  ;;  %s20061_s11 = smov (!%p945_p9), 16   ;;  %s20135_s18 = sld [smem:[#allocation29_spill]] (!%p945_p9)  ;;  %vm3381_vm3 = vcmask (!%p945_p9), 523264  }
  0x60   : > { %v1310_v17 = vld [vmem:[%s17500_s25 + $0x8] sm:$0xff] (!%p945_p9)  ;;  %v1312_v20 = vld [vmem:[%s17500_s25 + $0x18] sm:$0xff] (!%p945_p9)  ;;  %v1313_v22 = vld [vmem:[%s17500_s25 + $0x20] sm:$0xff] (!%p945_p9)  ;;  %s20136_s1 = smov (!%p945_p9), 96   ;;  %vm4159_vm4 = vcmask (!%p945_p9), 1040384   ;;  %vm17464_vm5 = vmmov (!%p945_p9), 0  }
  0x61   : > { %v15376_v18 = vpack.c.bf16 (!%p945_p9), %v1310_v17, %v1309_v16  ;;  %v15380_v21 = vpack.c.bf16 (!%p945_p9), %v1312_v20, %v1311_v19  ;;  %v1314_v23 = vld [vmem:[%s17500_s25 + $0x28] sm:$0xff] (!%p945_p9)  ;;  %v12748_v25 = vld [vmem:[%s17500_s25 + $0x60] sm:$0xff] (!%p945_p9)  ;;  %v12750_v28 = vld [vmem:[%s17500_s25 + $0x70] sm:$0xff] (!%p945_p9)  ;;  %vm4161_vm6 = vcmask (!%p945_p9), 1041408   ;;  %vm4163_vm7 = vcmask (!%p945_p9), 1042432   ;;  %s20139_s15 = sld [smem:[#allocation30_spill]] (!%p945_p9) }
  0x62   : > { %v15384_v24 = vpack.c.bf16 (!%p945_p9), %v1314_v23, %v1313_v22  ;;  %v12749_v26 = vld [vmem:[%s17500_s25 + $0x68] sm:$0xff] (!%p945_p9)  ;;  %v12751_v29 = vld [vmem:[%s17500_s25 + $0x78] sm:$0xff] (!%p945_p9)  ;;  %v12752_v35 = vld [vmem:[%s17500_s25 + $0x80] sm:$0xff] (!%p945_p9)  ;;  %vm4248_vm8 = vcmask (!%p945_p9), 257024   ;;  %vm10505_vm9 = vcmask (!%p945_p9), 1043456   ;;  %vm10487_vm10 = vcmask (!%p945_p9), 27648  }
  0x63   : > { %v15388_v27 = vpack.c.bf16 (!%p945_p9), %v12749_v26, %v12748_v25  ;;  %v15392_v33 = vpack.c.bf16 (!%p945_p9), %v12751_v29, %v12750_v28  ;;  %v12753_v36 = vld [vmem:[%s17500_s25 + $0x88] sm:$0xff] (!%p945_p9)  ;;  %v12756_v38 = vld [vmem:[%s17505_s29] ss:$0 sm:$0xff] (!%p945_p9)  ;;  %v12763_v49 = vld [vmem:[%s20116_s3 + $0x90] sm:$0xff] (!%p945_p9)  ;;  %vm10501_vm11 = vcmask (!%p945_p9), 31744   ;;  %vm10739_vm12 = vcmask (!%p945_p9), 11264  }
  0x64   : > { %s17702_s2 = scalar_select %p1066_p10, %s17663_s0, 1  ;;  %v15396_v37 = vpack.c.bf16 %v12753_v36, %v12752_v35  ;;  %v12761_v46 = vld [vmem:[%s20116_s3 + $0x80] sm:$0xff]  ;;  %v12762_v47 = vld [vmem:[%s20116_s3 + $0x88] sm:$0xff]  ;;  %v12764_v50 = vld [vmem:[%s20116_s3 + $0x98] sm:$0xff] }
  0x65   : > { %v15408_v48 = vpack.c.bf16 %v12762_v47, %v12761_v46  ;;  %v15412_v51 = vpack.c.bf16 %v12764_v50, %v12763_v49  ;;  %v12765_v52 = vld [vmem:[%s20116_s3 + $0xa0] sm:$0xff]  ;;  %v12766_v53 = vld [vmem:[%s20116_s3 + $0xa8] sm:$0xff]  ;;  %v12767_v55 = vld [vmem:[%s20116_s3 + $0xb0] sm:$0xff] }
  0x66   : > { %s17705_s16 = smul.u32 48, %s17702_s2  ;;  %v15416_v54 = vpack.c.bf16 %v12766_v53, %v12765_v52  ;;  %v12768_v56 = vld [vmem:[%s20116_s3 + $0xb8] sm:$0xff]  ;;  %v12769_v58 = vld [vmem:[%s20116_s3 + $0xc0] sm:$0xff]  ;;  %v12770_v59 = vld [vmem:[%s20116_s3 + $0xc8] sm:$0xff] }
  0x67   : > { %v15420_v57 = vpack.c.bf16 %v12768_v56, %v12767_v55  ;;  %v15424_v60 = vpack.c.bf16 %v12770_v59, %v12769_v58  ;;  %v12771_v61 = vld [vmem:[%s20116_s3 + $0xd0] sm:$0xff]  ;;  %v12772_v62 = vld [vmem:[%s20116_s3 + $0xd8] sm:$0xff]  ;;  %v12773_v2 = vld [vmem:[%s20116_s3 + $0xe0] sm:$0xff]  ;;  %s17062_s21 = smul.u32 12, %s17702_s2 }
  0x68   : > { %s17711_s22 = scalar_lea.vmem %s20126_s5, %s17705_s16  ;;  %v15428_v63 = vpack.c.bf16 %v12772_v62, %v12771_v61  ;;  %v12774_v3 = vld [vmem:[%s20116_s3 + $0xe8] sm:$0xff]  ;;  %v12776_v8 = vld [vmem:[%s20116_s3 + $0xf8] sm:$0xff]  ;;  %v12783_v53 = vld [vmem:[%s20116_s3 + $0x130] sm:$0xff]  ;;  %s17833_s23 = scalar_lea.vmem %s20127_s4, %s17705_s16 }
  0x69   : > { %v17714_v4 = vld [vmem:[%s17711_s22] sm:$0xff]  ;;  %v17717_v5 = vld [vmem:[%s17711_s22 + $0x8] sm:$0xff]  ;;  %v1739_v16 = vld [vmem:[%s20116_s3 + $0x18] sm:$0xff]  ;;  %s20055_s4 = smov 80   ;;  %s20052_s5 = smov 112  }
  0x6a   : > { %v15356_v6 = vpack.c.bf16 %v17717_v5, %v17714_v4  ;;  %v1737_v13 = vld [vmem:[%s20116_s3 + $0x8] sm:$0xff]  ;;  %v1743_v22 = vld [vmem:[%s20116_s3 + $0x38] sm:$0xff]  ;;  %v12785_v56 = vld [vmem:[%s20116_s3 + $0x140] sm:$0xff]  ;;  %s18285_s7 = scalar_lea.vmem %s20135_s18, %s17705_s16  ;;  %s20137_s18 = sld [smem:[#allocation17_spill]] }
  0x6b   : > { %v1741_v19 = vld [vmem:[%s20116_s3 + $0x28] sm:$0xff]  ;;  %v1747_v28 = vld [vmem:[%s20116_s3 + $0x58] sm:$0xff]  ;;  %v12787_v59 = vld [vmem:[%s20116_s3 + $0x150] sm:$0xff]  ;;  %s20138_s16 = sld [smem:[#allocation18_spill]]  ;;  %s18451_s27 = scalar_lea.vmem %s20139_s15, %s17062_s21 }
  0x6c   : > { %15357 = vmatprep.subr.bf16.mxu0 %v15356_v6  ;;  %15361 = vmatprep.subr.bf16.mxu1 %v15356_v6  ;;  %v1745_v25 = vld [vmem:[%s20116_s3 + $0x48] sm:$0xff]  ;;  %v12789_v62 = vld [vmem:[%s20116_s3 + $0x160] sm:$0xff]  ;;  %s20142_s21 = sld [smem:[#allocation20_spill]]  ;;  %s12728_s15 = sshll.u32 %s17702_s2, 2 }
  0x6d   : > { %15359 = vmatpush3.bf16.msra.mxu0 %v15356_v6  ;;  %15363 = vmatpush3.bf16.msra.mxu1 %v15356_v6  ;;  %v15432_v6 = vpack.c.bf16 %v12774_v3, %v12773_v2  ;;  %v1749_v35 = vld [vmem:[%s20116_s3 + $0x68] sm:$0xff]  ;;  %v12791_v3 = vld [vmem:[%s20116_s3 + $0x170] sm:$0xff] }
  0x6e   : > { %15365 = vmatprep.subr.bf16.mxu0 %v15364_v7  ;;  %v12782_v49 = vld [vmem:[%s20116_s3 + $0x128] sm:$0xff] }
  0x70   : > { %14711 = vmatmul.mubr.msk.f32.vlgmr.msra.gmra.mrb[0].mxu0 %vm1146_vm0, %v17724_v10  ;;  %14718 = vmatmul.mubr.msk.f32.vlgmr.msra.gmra.mrb[0].mxu1 %vm1146_vm0, %v17727_v11 }
  0x71   : > { %15367 = vmatpush3.bf16.msra.mxu0 %v15364_v7  ;;  %14732 = vmatprep.mubr.msk.f32.mxu0 %vm1322_vm1, %v17714_v4  ;;  %v12775_v7 = vld [vmem:[%s20116_s3 + $0xf0] sm:$0xff] }
  0x72   : > { %15369 = vmatprep.subr.bf16.mxu0 %v15368_v12  ;;  %14769 = vmatprep.mubr.msk.f32.mxu1 %vm1146_vm0, %v17692_v0  ;;  %v15436_v9 = vpack.c.bf16 %v12776_v8, %v12775_v7  ;;  %v20074_v8 = vmov 0.0  }
  0x75   : > { %15371 = vmatpush3.bf16.msra.mxu0 %v15368_v12  ;;  %v1736_v12 = vld [vmem:[%s20116_s3] sm:$0xff] }
  0x76   : > { %15373 = vmatprep.subr.bf16.mxu0 %v15372_v15  ;;  %v15440_v14 = vpack.c.bf16 %v1737_v13, %v1736_v12 }
  0x79   : > { %15375 = vmatpush3.bf16.msra.mxu0 %v15372_v15  ;;  %v1738_v15 = vld [vmem:[%s20116_s3 + $0x10] sm:$0xff] }
  0x7a   : > { %15377 = vmatprep.subr.bf16.mxu0 %v15376_v18  ;;  %v15444_v17 = vpack.c.bf16 %v1739_v16, %v1738_v15 }
  0x7c   : > { %14733 = vmatmul.mubr.msk.f32.vlgmr.msra.gmra.mrb[2].mxu0 %vm1322_vm1, %v17717_v5 }
  0x7d   : > { %15379 = vmatpush3.bf16.msra.mxu0 %v15376_v18  ;;  %v1740_v18 = vld [vmem:[%s20116_s3 + $0x20] sm:$0xff] }
  0x7e   : > { %15381 = vmatprep.subr.bf16.mxu0 %v15380_v21  ;;  %v15448_v20 = vpack.c.bf16 %v1741_v19, %v1740_v18 }
  0x81   : > { %15383 = vmatpush3.bf16.msra.mxu0 %v15380_v21  ;;  %v1742_v21 = vld [vmem:[%s20116_s3 + $0x30] sm:$0xff] }
  0x82   : > { %15385 = vmatprep.subr.bf16.mxu0 %v15384_v24  ;;  %v15452_v23 = vpack.c.bf16 %v1743_v22, %v1742_v21 }
  0x85   : > { %15387 = vmatpush3.bf16.msra.mxu0 %v15384_v24  ;;  %v1744_v24 = vld [vmem:[%s20116_s3 + $0x40] sm:$0xff] }
  0x86   : > { %15389 = vmatprep.subr.bf16.mxu0 %v15388_v27  ;;  %v15456_v26 = vpack.c.bf16 %v1745_v25, %v1744_v24  ;;  %v12801_v25 = vld [vmem:[%s20111_s14 + $0x68] sm:$0xff] }
 0x143   : > { %v17751_v30 = vpop.f32.mrb[0].mxu0  ;;  %v17753_v31 = vpop.f32.mrb[0].mxu1 }
 0x144   : > { %v17755_v32 = vpop.f32.mrb[1].mxu0  ;;  %v17757_v34 = vpop.f32.mrb[1].mxu1 }
 0x145   : > { %14747 = vmatprep.mubr.msk.f32.mxu0 %vm1322_vm1, %v17755_v32 }
 0x146   : > { %14748 = vmatmul.mubr.msk.f32.vlgmr.msra.gmra.mrb[2].mxu0 %vm1322_vm1, %v17751_v30 }
 0x147   : > { %15391 = vmatpush3.bf16.msra.mxu0 %v15388_v27  ;;  %14762 = vmatprep.mubr.msk.f32.mxu0 %vm1322_vm1, %v17757_v34  ;;  %v1746_v27 = vld [vmem:[%s20116_s3 + $0x50] sm:$0xff] }
 0x148   : > { %15393 = vmatprep.subr.bf16.mxu0 %v15392_v33  ;;  %v15460_v29 = vpack.c.bf16 %v1747_v28, %v1746_v27  ;;  %v12800_v28 = vld [vmem:[%s20111_s14 + $0x60] sm:$0xff] }
 0x14b   : > { %15395 = vmatpush3.bf16.msra.mxu0 %v15392_v33  ;;  %v1748_v33 = vld [vmem:[%s20116_s3 + $0x60] sm:$0xff] }
 0x14c   : > { %15397 = vmatprep.subr.bf16.mxu0 %v15396_v37  ;;  %v15464_v36 = vpack.c.bf16 %v1749_v35, %v1748_v33  ;;  %v12805_v33 = vld [vmem:[%s20111_s14 + $0x88] sm:$0xff]  ;;  %v12807_v35 = vld [vmem:[%s20111_s14 + $0x98] sm:$0xff] }
 0x14f   : > { %15399 = vmatpush3.bf16.msra.mxu0 %v15396_v37  ;;  %v1750_v37 = vld [vmem:[%s20116_s3 + $0x70] sm:$0xff] }
 0x152   : > { %14763 = vmatmul.mubr.msk.f32.vlgmr.msra.gmra.mrb[2].mxu0 %vm1322_vm1, %v17753_v31 }
 0x153   : > { %14888 = vmatprep.mubr.msk.f32.mxu0 %vm1146_vm0, %v17692_v0 }
 0x225   : > { %v14764_v39 = vpop.f32.mrb[2].mxu0 }
 0x226   : > { %v17772_v40 = vadd.f32 %v14764_v39, %v12756_v38  ;;  %v1564_v41 = vpop.f32.mrb[3].mxu0 }
 0x227   : > { %v1582_v42 = vadd.f32 %v12756_v38, %v1564_v41  ;;  %v1751_v38 = vld [vmem:[%s20116_s3 + $0x78] sm:$0xff]  ;;  %v12778_v41 = vld [vmem:[%s20116_s3 + $0x108] sm:$0xff] }
 0x228   : > { %v1585_v43 = vmax.f32 %v17772_v40, 0.0  ;;  %v15468_v39 = vpack.c.bf16 %v1751_v38, %v1750_v37  ;;  %v12777_v40 = vld [vmem:[%s20116_s3 + $0x100] sm:$0xff]  ;;  %v15516_v37 = vpack.c.bf16 %v12807_v35, %v12805_v33  ;;  %v2460_v33 = vld [vmem:[%s17525_s19 + $0x8] sm:$0xff]  ;;  %v2462_v35 = vld [vmem:[%s17525_s19 + $0x18] sm:$0xff] }
 0x229   : > { %v1584_v44 = vmax.f32 %v1582_v42, 0.0  ;;  %v15472_v42 = vpack.c.bf16 %v12778_v41, %v12777_v40  ;;  %v12804_v38 = vld [vmem:[%s20111_s14 + $0x80] sm:$0xff]  ;;  %v12809_v40 = vld [vmem:[%s20111_s14 + $0xa8] sm:$0xff]  ;;  %v12811_v41 = vld [vmem:[%s20111_s14 + $0xb8] sm:$0xff] }
 0x22b   : > { %v15400_v45 = vpack.c.bf16 %v1585_v43, %v1584_v44 }
 0x22d   : > { %15401 = vmatprep.subr.bf16.mxu1 %v15400_v45 }
 0x22e   : > { %15403 = vmatpush3.bf16.msra.mxu1 %v15400_v45 }
 0x22f   : > { %15405 = vmatprep.subr.bf16.mxu1 %v15400_v45 }
 0x231   : > { %14770 = vmatmul.mubr.msk.f32.vlgmr.msra.gmra.mrb[2].mxu1 %vm1146_vm0, %v17724_v10 }
 0x232   : > { %15407 = vmatpush3.bf16.msra.mxu1 %v15400_v45  ;;  %14776 = vmatprep.mubr.msk.f32.mxu1 %vm1146_vm0, %v17695_v1 }
 0x233   : > { %15409 = vmatprep.subr.bf16.mxu1 %v15408_v48 }
 0x235   : > { %14777 = vmatmul.mubr.msk.f32.vlgmr.msra.gmra.mrb[4].mxu1 %vm1146_vm0, %v17727_v11 }
 0x236   : > { %15411 = vmatpush3.bf16.msra.mxu1 %v15408_v48  ;;  %14811 = vmatprep.mubr.f32.mxu1 %v1584_v44  ;;  %v12780_v44 = vld [vmem:[%s20116_s3 + $0x118] sm:$0xff]  ;;  %v12781_v48 = vld [vmem:[%s20116_s3 + $0x120] sm:$0xff] }
 0x237   : > { %15413 = vmatprep.subr.bf16.mxu1 %v15412_v51 }
 0x23a   : > { %15415 = vmatpush3.bf16.msra.mxu1 %v15412_v51  ;;  %v15480_v51 = vpack.c.bf16 %v12782_v49, %v12781_v48 }
 0x23b   : > { %15417 = vmatprep.subr.bf16.mxu1 %v15416_v54 }
 0x23e   : > { %15419 = vmatpush3.bf16.msra.mxu1 %v15416_v54  ;;  %v12784_v54 = vld [vmem:[%s20116_s3 + $0x138] sm:$0xff] }
 0x23f   : > { %15421 = vmatprep.subr.bf16.mxu1 %v15420_v57  ;;  %v15484_v55 = vpack.c.bf16 %v12784_v54, %v12783_v53  ;;  %v2193_v53 = vld [vmem:[%s20111_s14 + $0x38] sm:$0xff] }
 0x242   : > { %15423 = vmatpush3.bf16.msra.mxu1 %v15420_v57  ;;  %v12786_v57 = vld [vmem:[%s20116_s3 + $0x148] sm:$0xff] }
 0x243   : > { %15425 = vmatprep.subr.bf16.mxu1 %v15424_v60  ;;  %v15488_v58 = vpack.c.bf16 %v12786_v57, %v12785_v56  ;;  %v2190_v56 = vld [vmem:[%s20111_s14 + $0x20] sm:$0xff]  ;;  %v2192_v57 = vld [vmem:[%s20111_s14 + $0x30] sm:$0xff] }
 0x246   : > { %15427 = vmatpush3.bf16.msra.mxu1 %v15424_v60  ;;  %v12788_v60 = vld [vmem:[%s20116_s3 + $0x158] sm:$0xff] }
 0x247   : > { %15429 = vmatprep.subr.bf16.mxu1 %v15428_v63  ;;  %v15492_v61 = vpack.c.bf16 %v12788_v60, %v12787_v59  ;;  %v2197_v59 = vld [vmem:[%s20111_s14 + $0x58] sm:$0xff]  ;;  %v15530_v60 = vpack.c.bf16 %v2192_v57, %v2190_v56 }
 0x24a   : > { %15431 = vmatpush3.bf16.msra.mxu1 %v15428_v63  ;;  %v12790_v63 = vld [vmem:[%s20116_s3 + $0x168] sm:$0xff] }
 0x24b   : > { %15433 = vmatprep.subr.bf16.mxu1 %v15432_v6  ;;  %v15496_v2 = vpack.c.bf16 %v12790_v63, %v12789_v62  ;;  %v2194_v62 = vld [vmem:[%s20111_s14 + $0x40] sm:$0xff]  ;;  %v2196_v63 = vld [vmem:[%s20111_s14 + $0x50] sm:$0xff] }
 0x24e   : > { %15435 = vmatpush3.bf16.msra.mxu1 %v15432_v6  ;;  %v12792_v6 = vld [vmem:[%s20116_s3 + $0x178] sm:$0xff] }
 0x24f   : > { %15437 = vmatprep.subr.bf16.mxu1 %v15436_v9  ;;  %v15500_v7 = vpack.c.bf16 %v12792_v6, %v12791_v3  ;;  %v12819_v3 = vld [vmem:[%s20111_s14 + $0xd8] sm:$0xff] }
 0x252   : > { %15439 = vmatpush3.bf16.msra.mxu1 %v15436_v9  ;;  %v12793_v9 = vld [vmem:[%s20114_s8] ss:$0 sm:$0xff] }
 0x253   : > { %15441 = vmatprep.subr.bf16.mxu1 %v15440_v14 }
 0x255   : > { %14812 = vmatmul.mubr.f32.vlgmr.msra.gmra.mrb[6].mxu1 %v1585_v43  ;;  %v12779_v43 = vld [vmem:[%s20116_s3 + $0x110] sm:$0xff] }
 0x256   : > { %15443 = vmatpush3.bf16.msra.mxu1 %v15440_v14  ;;  %v15476_v47 = vpack.c.bf16 %v12780_v44, %v12779_v43  ;;  %v15520_v43 = vpack.c.bf16 %v12811_v41, %v12809_v40  ;;  %v12808_v44 = vld [vmem:[%s20111_s14 + $0xa0] sm:$0xff]  ;;  %v12841_v40 = vld [vmem:[%s17525_s19 + $0x58] sm:$0xff] }
 0x257   : > { %15445 = vmatprep.subr.bf16.mxu1 %v15444_v17 }
 0x25a   : > { %15447 = vmatpush3.bf16.msra.mxu1 %v15444_v17 }
 0x25b   : > { %15449 = vmatprep.subr.bf16.mxu1 %v15448_v20 }
 0x25e   : > { %15451 = vmatpush3.bf16.msra.mxu1 %v15448_v20 }
 0x25f   : > { %15453 = vmatprep.subr.bf16.mxu1 %v15452_v23 }
 0x262   : > { %15455 = vmatpush3.bf16.msra.mxu1 %v15452_v23 }
 0x263   : > { %15457 = vmatprep.subr.bf16.mxu1 %v15456_v26 }
 0x266   : > { %15459 = vmatpush3.bf16.msra.mxu1 %v15456_v26  ;;  %v12803_v26 = vld [vmem:[%s20111_s14 + $0x78] sm:$0xff] }
 0x267   : > { %15461 = vmatprep.subr.bf16.mxu1 %v15460_v29  ;;  %v15512_v27 = vpack.c.bf16 %v12803_v26, %v12801_v25  ;;  %v12831_v25 = vld [vmem:[%s17525_s19 + $0x28] sm:$0xff]  ;;  %v12833_v26 = vld [vmem:[%s17525_s19 + $0x38] sm:$0xff] }
 0x26a   : > { %15463 = vmatpush3.bf16.msra.mxu1 %v15460_v29  ;;  %v12802_v29 = vld [vmem:[%s20111_s14 + $0x70] sm:$0xff] }
 0x26b   : > { %15465 = vmatprep.subr.bf16.mxu1 %v15464_v36 }
 0x26e   : > { %15467 = vmatpush3.bf16.msra.mxu1 %v15464_v36  ;;  %v15514_v36 = vpack.c.bf16 %v12802_v29, %v12800_v28  ;;  %v12830_v28 = vld [vmem:[%s17525_s19 + $0x20] sm:$0xff]  ;;  %v12832_v29 = vld [vmem:[%s17525_s19 + $0x30] sm:$0xff] }
 0x26f   : > { %15469 = vmatprep.subr.bf16.mxu1 %v15468_v39 }
 0x272   : > { %15471 = vmatpush3.bf16.msra.mxu1 %v15468_v39  ;;  %v12806_v39 = vld [vmem:[%s20111_s14 + $0x90] sm:$0xff] }
 0x273   : > { %15473 = vmatprep.subr.bf16.mxu1 %v15472_v42 }
 0x304   : > { %v14771_v45 = vpop.f32.mrb[2].mxu1 }
 0x305   : > { %v1652_v46 = vpop.f32.mrb[3].mxu1 }
 0x306   : > { %14846 = vmatprep.mubr.f32.mxu1 %v1652_v46  ;;  %v2187_v46 = vld [vmem:[%s20111_s14 + $0x8] sm:$0xff] }
 0x307   : > { %14847 = vmatmul.mubr.f32.vlgmr.msra.gmra.mrb[6].mxu1 %v14771_v45  ;;  %v12810_v45 = vld [vmem:[%s20111_s14 + $0xb0] sm:$0xff] }
 0x308   : > { %15475 = vmatpush3.bf16.msra.mxu1 %v15472_v42  ;;  %v14778_v50 = vpop.f32.mrb[4].mxu1  ;;  %v15518_v42 = vpack.c.bf16 %v12806_v39, %v12804_v38  ;;  %v15522_v48 = vpack.c.bf16 %v12810_v45, %v12808_v44  ;;  %v2461_v38 = vld [vmem:[%s17525_s19 + $0x10] sm:$0xff] }
 0x309   : > { %15477 = vmatprep.subr.bf16.mxu1 %v15476_v47  ;;  %v1727_v52 = vpop.f32.mrb[5].mxu1 }
 0x30a   : > { %14881 = vmatprep.mubr.f32.mxu1 %v1727_v52  ;;  %v2191_v52 = vld [vmem:[%s20111_s14 + $0x28] sm:$0xff] }
 0x30c   : > { %15479 = vmatpush3.bf16.msra.mxu1 %v15476_v47  ;;  %v2189_v47 = vld [vmem:[%s20111_s14 + $0x18] sm:$0xff] }
 0x30d   : > { %15481 = vmatprep.subr.bf16.mxu1 %v15480_v51  ;;  %v15524_v49 = vpack.c.bf16 %v2189_v47, %v2187_v46 }
 0x310   : > { %15483 = vmatpush3.bf16.msra.mxu1 %v15480_v51  ;;  %v2188_v51 = vld [vmem:[%s20111_s14 + $0x10] sm:$0xff] }
 0x311   : > { %15485 = vmatprep.subr.bf16.mxu1 %v15484_v55 }
 0x314   : > { %15487 = vmatpush3.bf16.msra.mxu1 %v15484_v55  ;;  %v15528_v55 = vpack.c.bf16 %v2193_v53, %v2191_v52 }
 0x315   : > { %15489 = vmatprep.subr.bf16.mxu1 %v15488_v58 }
 0x318   : > { %15491 = vmatpush3.bf16.msra.mxu1 %v15488_v58  ;;  %v2195_v58 = vld [vmem:[%s20111_s14 + $0x48] sm:$0xff] }
 0x319   : > { %15493 = vmatprep.subr.bf16.mxu1 %v15492_v61 }
 0x31c   : > { %15495 = vmatpush3.bf16.msra.mxu1 %v15492_v61  ;;  %v15532_v61 = vpack.c.bf16 %v2197_v59, %v2195_v58 }
 0x31d   : > { %15497 = vmatprep.subr.bf16.mxu1 %v15496_v2 }
 0x320   : > { %15499 = vmatpush3.bf16.msra.mxu1 %v15496_v2  ;;  %v12817_v2 = vld [vmem:[%s20111_s14 + $0xc8] sm:$0xff] }
 0x321   : > { %15501 = vmatprep.subr.bf16.mxu1 %v15500_v7  ;;  %v15536_v6 = vpack.c.bf16 %v12819_v3, %v12817_v2  ;;  %v2920_v2 = vld [vmem:[%s17535_s30 + $0x80] sm:$0xff]  ;;  %v2921_v3 = vld [vmem:[%s17535_s30 + $0x88] sm:$0xff] }
 0x324   : > { %15503 = vmatpush3.bf16.msra.mxu1 %v15500_v7  ;;  %v12816_v7 = vld [vmem:[%s20111_s14 + $0xc0] sm:$0xff] }
 0x327   : > { %14882 = vmatmul.mubr.f32.vlgmr.msra.gmra.mrb[6].mxu1 %v14778_v50  ;;  %v2186_v50 = vld [vmem:[%s20111_s14] sm:$0xff] }
 0x328   : > { %2814 = vmatprep.mubr.f32.mxu1 %v20074_v8  ;;  %v15526_v54 = vpack.c.bf16 %v2188_v51, %v2186_v50 }
 0x3fa   : > { %v14883_v12 = vpop.f32.mrb[6].mxu1 }
 0x3fb   : > { %v2021_v13 = vadd.f32 %v14883_v12, %v12793_v9  ;;  %v2002_v14 = vpop.f32.mrb[7].mxu1  ;;  %v12821_v12 = vld [vmem:[%s20111_s14 + $0xe8] sm:$0xff] }
 0x3fc   : > { %v2020_v15 = vadd.f32 %v12793_v9, %v2002_v14  ;;  %v12818_v9 = vld [vmem:[%s20111_s14 + $0xd0] sm:$0xff] }
 0x3fd   : > { %v12795_v16 = vmul.f32 -1.442695, %v2021_v13  ;;  %v12823_v13 = vld [vmem:[%s20111_s14 + $0xf8] sm:$0xff]  ;;  %v15538_v14 = vpack.c.bf16 %v12818_v9, %v12816_v7 }
 0x3fe   : > { %v12794_v17 = vmul.f32 -1.442695, %v2020_v15  ;;  %v12820_v15 = vld [vmem:[%s20111_s14 + $0xe0] sm:$0xff] }
 0x3ff   : > { %17149 = vpow2.f32 %v12795_v16  ;;  %v12822_v16 = vld [vmem:[%s20111_s14 + $0xf0] sm:$0xff] }
 0x400   : > { %17151 = vpow2.f32 %v12794_v17  ;;  %v12825_v17 = vld [vmem:[%s20111_s14 + $0x108] sm:$0xff] }
 0x409   : > { %v17150_v18 = vpop.eup %17149 }
 0x40a   : > { %v17152_v19 = vpop.eup %17151  ;;  %v2029_v20 = vadd.f32 1.0, %v17150_v18  ;;  %v12827_v18 = vld [vmem:[%s20111_s14 + $0x118] sm:$0xff] }
 0x40b   : > { %v2028_v21 = vadd.f32 1.0, %v17152_v19  ;;  %v15542_v19 = vpack.c.bf16 %v12822_v16, %v12820_v15  ;;  %v12866_v16 = vld [vmem:[%s17535_s30 + $0x190] sm:$0xff] }
 0x40c   : > { %17153 = vrcp.f32 %v2029_v20  ;;  %v15544_v20 = vpack.c.bf16 %v12827_v18, %v12825_v17  ;;  %v12867_v17 = vld [vmem:[%s17535_s30 + $0x198] sm:$0xff]  ;;  %v2904_v18 = vld [vmem:[%s17535_s30] sm:$0xff] }
 0x40d   : > { %17155 = vrcp.f32 %v2028_v21  ;;  %v12824_v21 = vld [vmem:[%s20111_s14 + $0x100] sm:$0xff] }
 0x416   : > { %v17835_v22 = vpop.eup %17153 }
 0x417   : > { %v17837_v23 = vpop.eup %17155  ;;  %2035 = vst.msk [vmem:[%s17833_s23 + $0x8] sm:$0xff] %vm1146_vm0, %v17835_v22 }
 0x418   : > { %2034 = vst.msk [vmem:[%s17833_s23] sm:$0xff] %vm1146_vm0, %v17837_v23  ;;  %v15504_v24 = vpack.c.bf16 %v17835_v22, %v17837_v23 }
 0x41a   : > { %15505 = vmatprep.subr.bf16.mxu0 %v15504_v24 }
 0x41b   : > { %15507 = vmatpush3.bf16.msra.mxu0 %v15504_v24 }
 0x41c   : > { %15509 = vmatprep.subr.bf16.mxu0 %v15504_v24 }
 0x41e   : > { %14889 = vmatmul.mubr.msk.f32.vlgmr.msra.gmra.mrb[4].mxu0 %vm1146_vm0, %v17724_v10 }
 0x41f   : > { %15511 = vmatpush3.bf16.msra.mxu0 %v15504_v24  ;;  %14895 = vmatprep.mubr.msk.f32.mxu0 %vm1146_vm0, %v17695_v1  ;;  %v12826_v24 = vld [vmem:[%s20111_s14 + $0x110] sm:$0xff] }
 0x420   : > { %15513 = vmatprep.subr.bf16.mxu0 %v15512_v27  ;;  %v15546_v27 = vpack.c.bf16 %v12826_v24, %v12824_v21  ;;  %v15572_v21 = vpack.c.bf16 %v12867_v17, %v12866_v16  ;;  %v12850_v24 = vld [vmem:[%s17535_s30 + $0x110] sm:$0xff]  ;;  %v12859_v16 = vld [vmem:[%s17535_s30 + $0x158] sm:$0xff]  ;;  %v12876_v17 = vld [vmem:[%s17535_s30 + $0x1e0] sm:$0xff] }
 0x422   : > { %14896 = vmatmul.mubr.msk.f32.vlgmr.msra.gmra.mrb[6].mxu0 %vm1146_vm0, %v17727_v11 }
 0x423   : > { %15515 = vmatpush1.bf16.msra.mxu0 %v15514_v36  ;;  %2275 = vmatprep.mubr.f32.mxu0 %v20074_v8  ;;  %v15550_v36 = vpack.c.bf16 %v12832_v29, %v12830_v28  ;;  %v2922_v28 = vld [vmem:[%s17535_s30 + $0x90] sm:$0xff]  ;;  %v2923_v29 = vld [vmem:[%s17535_s30 + $0x98] sm:$0xff] }
 0x424   : > { %15517 = vmatprep.subr.bf16.mxu0 %v15516_v37  ;;  %v15552_v37 = vpack.c.bf16 %v2462_v35, %v2460_v33  ;;  %v2906_v33 = vld [vmem:[%s17535_s30 + $0x10] sm:$0xff]  ;;  %v2907_v35 = vld [vmem:[%s17535_s30 + $0x18] sm:$0xff] }
 0x427   : > { %15519 = vmatpush1.bf16.msra.mxu0 %v15518_v42  ;;  %v12838_v42 = vld [vmem:[%s17525_s19 + $0x40] sm:$0xff] }
 0x428   : > { %15521 = vmatprep.subr.bf16.mxu0 %v15520_v43 }
 0x42b   : > { %15523 = vmatpush1.bf16.msra.mxu0 %v15522_v48 }
 0x42c   : > { %15525 = vmatprep.subr.bf16.mxu0 %v15524_v49  ;;  %v2730_v49 = vld [vmem:[%s17530_s24] sm:$0x3] }
 0x42e   : > { %12812 = vmatmul.mubr.msk.f32.vlgmr.msra.gmra.mrb[8].mxu0 %vm1322_vm1, %v17714_v4  ;;  %v15534_v4 = vpack.c.bf16 %v2196_v63, %v2194_v62  ;;  %v12865_v63 = vld [vmem:[%s17535_s30 + $0x188] sm:$0xff] }
 0x42f   : > { %15527 = vmatpush1.bf16.msra.mxu0 %v15526_v54  ;;  %2281 = vmatprep.mubr.f32.mxu0 %v20074_v8 }
 0x430   : > { %15529 = vmatprep.subr.bf16.mxu0 %v15528_v55 }
 0x432   : > { %12813 = vmatmul.mubr.msk.f32.gmra.mrb[10].mxu0 %vm1322_vm1, %v17717_v5  ;;  %v15540_v5 = vpack.c.bf16 %v12823_v13, %v12821_v12  ;;  %v12848_v13 = vld [vmem:[%s17535_s30 + $0x100] sm:$0xff] }
 0x433   : > { %15531 = vmatpush1.bf16.msra.mxu0 %v15530_v60  ;;  %2352 = vmatprep.mubr.f32.mxu0 %v20074_v8 }
 0x434   : > { %15533 = vmatprep.subr.bf16.mxu0 %v15532_v61  ;;  %v12864_v61 = vld [vmem:[%s17535_s30 + $0x180] sm:$0xff] }
 0x435   : > { %v15568_v12 = vpack.c.bf16 %v12865_v63, %v12864_v61  ;;  %v12875_v61 = vld [vmem:[%s17535_s30 + $0x1d8] sm:$0xff] }
 0x437   : > { %15535 = vmatpush1.bf16.msra.mxu0 %v15534_v4 }
 0x438   : > { %15537 = vmatprep.subr.bf16.mxu0 %v15536_v6 }
 0x43a   : > { %12814 = vmatmul.mubr.msk.f32.vlgmr.msra.gmra.mrb[8].mxu0 %vm1322_vm1, %v17755_v32  ;;  %v15548_v32 = vpack.c.bf16 %v12833_v26, %v12831_v25  ;;  %v12851_v25 = vld [vmem:[%s17535_s30 + $0x118] sm:$0xff]  ;;  %v12868_v26 = vld [vmem:[%s17535_s30 + $0x1a0] sm:$0xff] }
 0x43b   : > { %15539 = vmatpush1.bf16.msra.mxu0 %v15538_v14  ;;  %2358 = vmatprep.mubr.f32.mxu0 %v20074_v8  ;;  %v12849_v14 = vld [vmem:[%s17535_s30 + $0x108] sm:$0xff] }
 0x43c   : > { %15541 = vmatprep.subr.bf16.mxu0 %v15540_v5  ;;  %v15600_v5 = vpack.c.bf16 %v2921_v3, %v2920_v2  ;;  %v2912_v3 = vld [vmem:[%s17535_s30 + $0x40] sm:$0xff] }
 0x43e   : > { %12815 = vmatmul.mubr.msk.f32.gmra.mrb[10].mxu0 %vm1322_vm1, %v17751_v30  ;;  %v2459_v30 = vld [vmem:[%s17525_s19] sm:$0xff] }
 0x43f   : > { %15543 = vmatpush1.bf16.msra.mxu0 %v15542_v19  ;;  %2442 = vmatprep.mubr.f32.mxu0 %v20074_v8  ;;  %v15554_v39 = vpack.c.bf16 %v2461_v38, %v2459_v30  ;;  %v2905_v19 = vld [vmem:[%s17535_s30 + $0x8] sm:$0xff] }
 0x440   : > { %15545 = vmatprep.subr.bf16.mxu0 %v15544_v20  ;;  %v15570_v20 = vpack.c.bf16 %v12849_v14, %v12848_v13  ;;  %v2925_v30 = vld [vmem:[%s17535_s30 + $0xa8] sm:$0xff]  ;;  %v2930_v13 = vld [vmem:[%s17535_s30 + $0xd0] sm:$0xff]  ;;  %v2931_v14 = vld [vmem:[%s17535_s30 + $0xd8] sm:$0xff] }
 0x443   : > { %15547 = vmatpush1.bf16.msra.mxu0 %v15546_v27  ;;  %v12869_v27 = vld [vmem:[%s17535_s30 + $0x1a8] sm:$0xff] }
 0x444   : > { %15549 = vmatprep.subr.bf16.mxu0 %v15548_v32  ;;  %v15602_v32 = vpack.c.bf16 %v2905_v19, %v2904_v18  ;;  %v15576_v38 = vpack.c.bf16 %v12869_v27, %v12868_v26  ;;  %v12877_v18 = vld [vmem:[%s17535_s30 + $0x1e8] sm:$0xff]  ;;  %v2932_v26 = vld [vmem:[%s17535_s30 + $0xe0] sm:$0xff] }
 0x445   : > { %v2933_v27 = vld [vmem:[%s17535_s30 + $0xe8] sm:$0xff] }
 0x446   : > { %12828 = vmatmul.mubr.msk.f32.vlgmr.msra.gmra.mrb[8].mxu0 %vm1322_vm1, %v17757_v34  ;;  %v12839_v34 = vld [vmem:[%s17525_s19 + $0x48] sm:$0xff] }
 0x447   : > { %2448 = vmatprep.mubr.f32.mxu0 %v20074_v8  ;;  %15551 = vmatpush1.bf16.msra.mxu0 %v15550_v36  ;;  %v15556_v41 = vpack.c.bf16 %v12841_v40, %v12839_v34  ;;  %v15574_v36 = vpack.c.bf16 %v12851_v25, %v12850_v24  ;;  %v15604_v34 = vpack.c.bf16 %v2923_v29, %v2922_v28  ;;  %v12871_v40 = vld [vmem:[%s17535_s30 + $0x1b8] sm:$0xff]  ;;  %v12860_v28 = vld [vmem:[%s17535_s30 + $0x160] sm:$0xff]  ;;  %v12861_v29 = vld [vmem:[%s17535_s30 + $0x168] sm:$0xff] }
 0x448   : > { %15553 = vmatprep.subr.bf16.mxu0 %v15552_v37  ;;  %v2924_v37 = vld [vmem:[%s17535_s30 + $0xa0] sm:$0xff]  ;;  %v2915_v24 = vld [vmem:[%s17535_s30 + $0x58] sm:$0xff] }
 0x44a   : > { %12829 = vmatmul.mubr.msk.f32.gmra.mrb[10].mxu0 %vm1322_vm1, %v17753_v31  ;;  %v12840_v31 = vld [vmem:[%s17525_s19 + $0x50] sm:$0xff] }
 0x44b   : > { %2538 = vmatprep.mubr.f32.mxu0 %v20074_v8  ;;  %v15558_v43 = vpack.c.bf16 %v12840_v31, %v12838_v42  ;;  %v15608_v42 = vpack.c.bf16 %v2925_v30, %v2924_v37  ;;  %v2908_v31 = vld [vmem:[%s17535_s30 + $0x20] sm:$0xff]  ;;  %v15624_v37 = vpack.c.bf16 %v2933_v27, %v2932_v26 }
 0x44c   : > { %v2916_v30 = vld [vmem:[%s17535_s30 + $0x60] sm:$0xff] }
 0x44e   : > { %12834 = vmatmul.mubr.msk.f32.vlgmr.msra.gmra.mrb[8].mxu0 %vm1146_vm0, %v17837_v23 }
 0x44f   : > { %2544 = vmatprep.mubr.f32.mxu0 %v20074_v8  ;;  %15555 = vmatpush1.bf16.msra.mxu0 %v15554_v39  ;;  %v12853_v39 = vld [vmem:[%s17535_s30 + $0x128] sm:$0xff] }
 0x450   : > { %15557 = vmatprep.subr.bf16.mxu0 %v15556_v41  ;;  %v15606_v41 = vpack.c.bf16 %v2907_v35, %v2906_v33  ;;  %v12878_v33 = vld [vmem:[%s17535_s30 + $0x1f0] sm:$0xff]  ;;  %v12879_v35 = vld [vmem:[%s17535_s30 + $0x1f8] sm:$0xff] }
 0x452   : > { %12835 = vmatmul.mubr.msk.f32.gmra.mrb[10].mxu0 %vm1146_vm0, %v17835_v22  ;;  %v2732_v22 = vlaneseq }
 0x453   : > { %2621 = vmatprep.mubr.f32.mxu0 %v20074_v8 }
 0x454   : > { %v2733_v47 = vshrl.u32 %v2732_v22, 7  ;;  %v12855_v22 = vld [vmem:[%s17535_s30 + $0x138] sm:$0xff] }
 0x456   : > { %v17934_v48 = vsub.s32 1, %v2733_v47  ;;  %v17937_v50 = vsub.s32 0, %v2733_v47  ;;  %v12873_v47 = vld [vmem:[%s17535_s30 + $0x1c8] sm:$0xff] }
 0x458   : > { %v2739_v52 = vrot.slane %v2730_v49, %v17934_v48  ;;  %v2735_v53 = vrot.slane %v2730_v49, %v17937_v50 }
 0x4f1   : > { %v14890_v44 = vpop.f32.mrb[4].mxu0 }
 0x4f2   : > { %v2102_v45 = vpop.f32.mrb[5].mxu0 }
 0x4f3   : > { %12836 = vmatmul.mubr.msk.f32.vlgmr.msra.gmra.mrb[8].mxu0 %vm1146_vm0, %v2102_v45  ;;  %v2926_v45 = vld [vmem:[%s17535_s30 + $0xb0] sm:$0xff] }
 0x4f4   : > { %2627 = vmatprep.mubr.f32.mxu0 %v20074_v8  ;;  %15559 = vmatpush1.bf16.msra.mxu0 %v15558_v43  ;;  %v2909_v43 = vld [vmem:[%s17535_s30 + $0x28] sm:$0xff] }
 0x4f5   : > { %v14897_v23 = vpop.f32.mrb[6].mxu0  ;;  %v15610_v49 = vpack.c.bf16 %v2909_v43, %v2908_v31  ;;  %v12897_v31 = vld [vmem:[%s17535_s30 + $0x288] sm:$0xff] }
 0x4f6   : > { %v2177_v46 = vpop.f32.mrb[7].mxu0 }
 0x4f7   : > { %12837 = vmatmul.mubr.msk.f32.gmra.mrb[10].mxu0 %vm1146_vm0, %v14890_v44 }
 0x4f8   : > { %2709 = vmatprep.mubr.f32.mxu0 %v20074_v8 }
 0x4fb   : > { %12842 = vmatmul.mubr.msk.f32.vlgmr.msra.gmra.mrb[8].mxu0 %vm1146_vm0, %v2177_v46 }
 0x4fc   : > { %2715 = vmatprep.mubr.f32.mxu0 %v20074_v8 }
 0x4ff   : > { %12843 = vmatmul.mubr.msk.f32.gmra.mrb[10].mxu0 %vm1146_vm0, %v14897_v23  ;;  %v2927_v23 = vld [vmem:[%s17535_s30 + $0xb8] sm:$0xff] }
 0x500   : > { %2891 = vmatprep.mubr.f32.mxu0 %v20074_v8 }
 0x5ce   : > { %v2711_v51 = vpop.f32.mrb[8].mxu0 }
 0x5cf   : > { %v2713_v54 = vpop.f32.mrb[9].mxu0  ;;  %v2742_v57 = vadd.f32 %v2735_v53, %v2711_v51  ;;  %v15612_v51 = vpack.c.bf16 %v2927_v23, %v2926_v45 }
 0x5d0   : > { %v2743_v55 = vadd.f32 %v2739_v52, %v2713_v54 }
 0x5d1   : > { %v17951_v7 = vmax.f32 %v2742_v57, 0.0 }
 0x5d2   : > { %v2717_v56 = vpop.f32.mrb[10].mxu0  ;;  %v17947_v4 = vmax.f32 %v2743_v55, 0.0  ;;  %v2928_v55 = vld [vmem:[%s17535_s30 + $0xc0] sm:$0xff] }
 0x5d3   : > { %v2744_v58 = vadd.f32 %v2735_v53, %v2717_v56  ;;  %v2719_v59 = vpop.f32.mrb[11].mxu0  ;;  %v2911_v53 = vld [vmem:[%s17535_s30 + $0x38] sm:$0xff]  ;;  %v2929_v56 = vld [vmem:[%s17535_s30 + $0xc8] sm:$0xff] }
 0x5d4   : > { %v2745_v60 = vadd.f32 %v2739_v52, %v2719_v59  ;;  %v2910_v52 = vld [vmem:[%s17535_s30 + $0x30] sm:$0xff]  ;;  %v12857_v59 = vld [vmem:[%s17535_s30 + $0x148] sm:$0xff]  ;;  %v15616_v2 = vpack.c.bf16 %v2929_v56, %v2928_v55 }
 0x5d5   : > { %v17942_v62 = vmax.f32 %v2744_v58, 0.0  ;;  %v12856_v58 = vld [vmem:[%s17535_s30 + $0x140] sm:$0xff]  ;;  %v15614_v63 = vpack.c.bf16 %v2911_v53, %v2910_v52  ;;  %v12883_v52 = vld [vmem:[%s17535_s30 + $0x218] sm:$0xff] }
 0x5d6   : > { %v17949_v6 = vmax.f32 %v2745_v60, 0.0  ;;  %v12874_v60 = vld [vmem:[%s17535_s30 + $0x1d0] sm:$0xff]  ;;  %v12900_v53 = vld [vmem:[%s17535_s30 + $0x2a0] sm:$0xff] }
 0x5d7   : > { %v15562_v15 = vpack.c.bf16 %v17942_v62, %v17951_v7 }
 0x5d8   : > { %v15560_v9 = vpack.c.bf16 %v17949_v6, %v17947_v4 }
 0x5da   : > { %15561 = vmatprep.subr.bf16.mxu1 %v15560_v9  ;;  %15565 = vmatprep.subr.bf16.mxu0 %v15560_v9  ;;  %v2913_v9 = vld [vmem:[%s17535_s30 + $0x48] sm:$0xff] }
 0x5db   : > { %15563 = vmatpush1.bf16.msra.mxu1 %v15562_v15  ;;  %15567 = vmatpush1.bf16.msra.mxu0 %v15562_v15  ;;  %v12858_v15 = vld [vmem:[%s17535_s30 + $0x150] sm:$0xff]  ;;  %v15618_v19 = vpack.c.bf16 %v2913_v9, %v2912_v3  ;;  %v12887_v3 = vld [vmem:[%s17535_s30 + $0x238] sm:$0xff]  ;;  %v12904_v9 = vld [vmem:[%s17535_s30 + $0x2c0] sm:$0xff] }
 0x5dc   : > { %15569 = vmatprep.subr.bf16.mxu1 %v15568_v12  ;;  %15601 = vmatprep.subr.bf16.mxu0 %v15600_v5  ;;  %v15586_v12 = vpack.c.bf16 %v12857_v59, %v12856_v58  ;;  %v15588_v5 = vpack.c.bf16 %v12875_v61, %v12874_v60  ;;  %v15590_v25 = vpack.c.bf16 %v12859_v16, %v12858_v15  ;;  %v12885_v58 = vld [vmem:[%s17535_s30 + $0x228] sm:$0xff]  ;;  %v12902_v59 = vld [vmem:[%s17535_s30 + $0x2b0] sm:$0xff]  ;;  %v12903_v60 = vld [vmem:[%s17535_s30 + $0x2b8] sm:$0xff] }
 0x5dd   : > { %v12889_v15 = vld [vmem:[%s17535_s30 + $0x248] sm:$0xff]  ;;  %v12906_v16 = vld [vmem:[%s17535_s30 + $0x2d0] sm:$0xff] }
 0x5de   : > { %12844 = vmatmul.mubr.msk.f32.vlgmr.msra.gmra.mrb[8].mxu1 %vm1146_vm0, %v17692_v0  ;;  %12846 = vmatmul.mubr.msk.f32.vlgmr.msra.gmra.mrb[12].mxu0 %vm1146_vm0, %v17695_v1  ;;  %v12852_v0 = vld [vmem:[%s17535_s30 + $0x120] sm:$0xff]  ;;  %v12870_v1 = vld [vmem:[%s17535_s30 + $0x1b0] sm:$0xff] }
 0x5df   : > { %15571 = vmatpush3.bf16.msra.mxu1 %v15570_v20  ;;  %2820 = vmatprep.mubr.f32.mxu1 %v20074_v8  ;;  %v15578_v44 = vpack.c.bf16 %v12853_v39, %v12852_v0  ;;  %v15580_v46 = vpack.c.bf16 %v12871_v40, %v12870_v1  ;;  %v15620_v20 = vpack.c.bf16 %v2931_v14, %v2930_v13  ;;  %v2934_v39 = vld [vmem:[%s17535_s30 + $0xf0] sm:$0xff] }
 0x5e0   : > { %2897 = vmatprep.mubr.f32.mxu0 %v20074_v8  ;;  %15573 = vmatprep.subr.bf16.mxu1 %v15572_v21  ;;  %v2914_v21 = vld [vmem:[%s17535_s30 + $0x50] sm:$0xff]  ;;  %v15594_v0 = vpack.c.bf16 %v12861_v29, %v12860_v28  ;;  %v15596_v1 = vpack.c.bf16 %v12879_v35, %v12878_v33  ;;  %v12893_v28 = vld [vmem:[%s17535_s30 + $0x268] sm:$0xff]  ;;  %v12911_v33 = vld [vmem:[%s17535_s30 + $0x2f8] sm:$0xff] }
 0x5e1   : > { %15603 = vmatpush3.bf16.msra.mxu0 %v15602_v32  ;;  %v15592_v32 = vpack.c.bf16 %v12877_v18, %v12876_v17  ;;  %v12862_v40 = vld [vmem:[%s17535_s30 + $0x170] sm:$0xff]  ;;  %v12907_v17 = vld [vmem:[%s17535_s30 + $0x2d8] sm:$0xff] }
 0x5e2   : > { %12845 = vmatmul.mubr.msk.f32.gmra.mrb[10].mxu1 %vm1146_vm0, %v17724_v10  ;;  %12847 = vmatmul.mubr.msk.f32.gmra.mrb[14].mxu0 %vm1146_vm0, %v17727_v11  ;;  %v12854_v10 = vld [vmem:[%s17535_s30 + $0x130] sm:$0xff]  ;;  %v12872_v11 = vld [vmem:[%s17535_s30 + $0x1c0] sm:$0xff] }
 0x5e3   : > { %15575 = vmatpush3.bf16.msra.mxu1 %v15574_v36  ;;  %3033 = vmatprep.mubr.f32.mxu1 %v17947_v4  ;;  %v15582_v54 = vpack.c.bf16 %v12855_v22, %v12854_v10  ;;  %v15584_v57 = vpack.c.bf16 %v12873_v47, %v12872_v11  ;;  %v15622_v36 = vpack.c.bf16 %v2915_v24, %v2914_v21  ;;  %v12881_v10 = vld [vmem:[%s17535_s30 + $0x208] sm:$0xff]  ;;  %v12898_v22 = vld [vmem:[%s17535_s30 + $0x290] sm:$0xff]  ;;  %v12899_v11 = vld [vmem:[%s17535_s30 + $0x298] sm:$0xff] }
 0x5e4   : > { %15577 = vmatprep.subr.bf16.mxu1 %v15576_v38  ;;  %15605 = vmatprep.subr.bf16.mxu0 %v15604_v34  ;;  %v2917_v38 = vld [vmem:[%s17535_s30 + $0x68] sm:$0xff]  ;;  %v2935_v34 = vld [vmem:[%s17535_s30 + $0xf8] sm:$0xff]  ;;  %v12908_v24 = vld [vmem:[%s17535_s30 + $0x2e0] sm:$0xff] }
 0x5e5   : > { %15607 = vmatpush3.bf16.msra.mxu0 %v15606_v41  ;;  %v12863_v41 = vld [vmem:[%s17535_s30 + $0x178] sm:$0xff]  ;;  %v15626_v43 = vpack.c.bf16 %v2917_v38, %v2916_v30  ;;  %v12910_v29 = vld [vmem:[%s17535_s30 + $0x2f0] sm:$0xff] }
 0x5e6   : > { %15609 = vmatprep.subr.bf16.mxu0 %v15608_v42  ;;  %v12896_v42 = vld [vmem:[%s17535_s30 + $0x280] sm:$0xff]  ;;  %v15598_v45 = vpack.c.bf16 %v12863_v41, %v12862_v40  ;;  %v12891_v21 = vld [vmem:[%s17535_s30 + $0x258] sm:$0xff]  ;;  %v12894_v38 = vld [vmem:[%s17535_s30 + $0x270] sm:$0xff] }
 0x5e7   : > { %15579 = vmatpush3.bf16.msra.mxu1 %v15578_v44  ;;  %v15628_v44 = vpack.c.bf16 %v2935_v34, %v2934_v39  ;;  %v15632_v23 = vpack.c.bf16 %v12897_v31, %v12896_v42  ;;  %v2919_v30 = vld [vmem:[%s17535_s30 + $0x78] sm:$0xff] }
 0x5e8   : > { %15581 = vmatprep.subr.bf16.mxu1 %v15580_v46  ;;  %v12880_v46 = vld [vmem:[%s17535_s30 + $0x200] sm:$0xff]  ;;  %v12895_v39 = vld [vmem:[%s17535_s30 + $0x278] sm:$0xff] }
 0x5e9   : > { %15611 = vmatpush3.bf16.msra.mxu0 %v15610_v49  ;;  %v15634_v47 = vpack.c.bf16 %v12881_v10, %v12880_v46  ;;  %v15636_v49 = vpack.c.bf16 %v12899_v11, %v12898_v22  ;;  %v15662_v34 = vpack.c.bf16 %v12895_v39, %v12894_v38 }
 0x5ea   : > { %15613 = vmatprep.subr.bf16.mxu0 %v15612_v51  ;;  %v12882_v51 = vld [vmem:[%s17535_s30 + $0x210] sm:$0xff] }
 0x5eb   : > { %15583 = vmatpush3.bf16.msra.mxu1 %v15582_v54  ;;  %v12901_v54 = vld [vmem:[%s17535_s30 + $0x2a8] sm:$0xff]  ;;  %v15638_v55 = vpack.c.bf16 %v12883_v52, %v12882_v51 }
 0x5ec   : > { %15585 = vmatprep.subr.bf16.mxu1 %v15584_v57  ;;  %v15640_v56 = vpack.c.bf16 %v12901_v54, %v12900_v53  ;;  %v12884_v57 = vld [vmem:[%s17535_s30 + $0x220] sm:$0xff] }
 0x5ed   : > { %15615 = vmatpush3.bf16.msra.mxu0 %v15614_v63  ;;  %v15642_v61 = vpack.c.bf16 %v12885_v58, %v12884_v57  ;;  %v15644_v63 = vpack.c.bf16 %v12903_v60, %v12902_v59  ;;  %v12912_v59 = vld [vmem:[%s20115_s6] ss:$0 sm:$0xff] }
 0x5ee   : > { %15617 = vmatprep.subr.bf16.mxu0 %v15616_v2  ;;  %v12886_v2 = vld [vmem:[%s17535_s30 + $0x230] sm:$0xff] }
 0x5ef   : > { %15587 = vmatpush3.bf16.msra.mxu1 %v15586_v12  ;;  %v12905_v12 = vld [vmem:[%s17535_s30 + $0x2c8] sm:$0xff]  ;;  %v15646_v13 = vpack.c.bf16 %v12887_v3, %v12886_v2 }
 0x5f0   : > { %15589 = vmatprep.subr.bf16.mxu1 %v15588_v5  ;;  %v15648_v14 = vpack.c.bf16 %v12905_v12, %v12904_v9  ;;  %v12888_v5 = vld [vmem:[%s17535_s30 + $0x240] sm:$0xff] }
 0x5f1   : > { %15619 = vmatpush3.bf16.msra.mxu0 %v15618_v19  ;;  %v15650_v18 = vpack.c.bf16 %v12889_v15, %v12888_v5  ;;  %v15652_v19 = vpack.c.bf16 %v12907_v17, %v12906_v16 }
 0x5f2   : > { %15621 = vmatprep.subr.bf16.mxu0 %v15620_v20  ;;  %v12890_v20 = vld [vmem:[%s17535_s30 + $0x250] sm:$0xff] }
 0x5f3   : > { %15591 = vmatpush3.bf16.msra.mxu1 %v15590_v25  ;;  %v12909_v25 = vld [vmem:[%s17535_s30 + $0x2e8] sm:$0xff]  ;;  %v15654_v26 = vpack.c.bf16 %v12891_v21, %v12890_v20 }
 0x5f4   : > { %15593 = vmatprep.subr.bf16.mxu1 %v15592_v32  ;;  %v15656_v27 = vpack.c.bf16 %v12909_v25, %v12908_v24  ;;  %v12892_v32 = vld [vmem:[%s17535_s30 + $0x260] sm:$0xff] }
 0x5f5   : > { %15623 = vmatpush3.bf16.msra.mxu0 %v15622_v36  ;;  %v15658_v35 = vpack.c.bf16 %v12893_v28, %v12892_v32  ;;  %v15660_v36 = vpack.c.bf16 %v12911_v33, %v12910_v29 }
 0x5f6   : > { %15625 = vmatprep.subr.bf16.mxu0 %v15624_v37  ;;  %v2918_v37 = vld [vmem:[%s17535_s30 + $0x70] sm:$0xff] }
 0x5f7   : > { %15595 = vmatpush3.bf16.msra.mxu1 %v15594_v0  ;;  %v15630_v0 = vpack.c.bf16 %v2919_v30, %v2918_v37 }
 0x5f8   : > { %15597 = vmatprep.subr.bf16.mxu1 %v15596_v1 }
 0x5f9   : > { %15627 = vmatpush3.bf16.msra.mxu0 %v15626_v43 }
 0x5fa   : > { %15629 = vmatprep.subr.bf16.mxu0 %v15628_v44 }
 0x5fb   : > { %15599 = vmatpush3.bf16.msra.mxu1 %v15598_v45 }
 0x5fc   : > { %15633 = vmatprep.subr.bf16.mxu1 %v15632_v23 }
 0x5fd   : > { %15631 = vmatpush3.bf16.msra.mxu0 %v15630_v0 }
 0x5fe   : > { %3034 = vmatmul.mubr.f32.vlgmr.msra.gmra.mrb[12].mxu1 %v17951_v7 }
 0x5ff   : > { %3038 = vmatprep.mubr.f32.mxu1 %v17949_v6  ;;  %15635 = vmatpush3.bf16.msra.mxu1 %v15634_v47 }
 0x600   : > { %15637 = vmatprep.subr.bf16.mxu1 %v15636_v49 }
 0x602   : > { %3039 = vmatmul.mubr.f32.gmra.mrb[14].mxu1 %v17942_v62 }
 0x603   : > { %15639 = vmatpush3.bf16.msra.mxu1 %v15638_v55 }
 0x604   : > { %15641 = vmatprep.subr.bf16.mxu1 %v15640_v56 }
 0x607   : > { %15643 = vmatpush3.bf16.msra.mxu1 %v15642_v61 }
 0x608   : > { %15645 = vmatprep.subr.bf16.mxu1 %v15644_v63 }
 0x60b   : > { %15647 = vmatpush3.bf16.msra.mxu1 %v15646_v13 }
 0x60c   : > { %15649 = vmatprep.subr.bf16.mxu1 %v15648_v14 }
 0x60f   : > { %15651 = vmatpush3.bf16.msra.mxu1 %v15650_v18 }
 0x610   : > { %15653 = vmatprep.subr.bf16.mxu1 %v15652_v19 }
 0x613   : > { %15655 = vmatpush3.bf16.msra.mxu1 %v15654_v26 }
 0x614   : > { %15657 = vmatprep.subr.bf16.mxu1 %v15656_v27 }
 0x617   : > { %15659 = vmatpush3.bf16.msra.mxu1 %v15658_v35 }
 0x618   : > { %15661 = vmatprep.subr.bf16.mxu1 %v15660_v36 }
 0x61b   : > { %15663 = vmatpush3.bf16.msra.mxu1 %v15662_v34 }
 0x6b1   : > { %v2816_v1 = vpop.f32.mrb[8].mxu1  ;;  %v2893_v40 = vpop.f32.mrb[12].mxu0 }
 0x6b2   : > { %v2818_v41 = vpop.f32.mrb[9].mxu1  ;;  %v2895_v42 = vpop.f32.mrb[13].mxu0 }
 0x6b3   : > { %3108 = vmatprep.mubr.f32.mxu0 %v2818_v41  ;;  %3216 = vmatprep.mubr.f32.mxu1 %v2895_v42 }
 0x6b4   : > { %3109 = vmatmul.mubr.f32.vlgmr.msra.gmra.mrb[16].mxu0 %v2816_v1  ;;  %3217 = vmatmul.mubr.f32.vlgmr.msra.gmra.mrb[16].mxu1 %v2893_v40 }
 0x6b5   : > { %v2822_v31 = vpop.f32.mrb[10].mxu1  ;;  %v2899_v43 = vpop.f32.mrb[14].mxu0 }
 0x6b6   : > { %v2824_v44 = vpop.f32.mrb[11].mxu1  ;;  %v2901_v45 = vpop.f32.mrb[15].mxu0 }
 0x6b7   : > { %3113 = vmatprep.mubr.f32.mxu0 %v2824_v44  ;;  %3221 = vmatprep.mubr.f32.mxu1 %v2901_v45 }
 0x6b8   : > { %3114 = vmatmul.mubr.f32.gmra.mrb[18].mxu0 %v2822_v31  ;;  %3222 = vmatmul.mubr.f32.gmra.mrb[18].mxu1 %v2899_v43 }
 0x6b9   : > { %3454 = vmatprep.mubr.f32.mxu0 %v20074_v8  ;;  %3645 = vmatprep.mubr.f32.mxu1 %v20074_v8 }
 0x6d1   : > { %v13623_v23 = vpop.f32.mrb[12].mxu1 }
 0x6d2   : > { %v13624_v46 = vpop.f32.mrb[13].mxu1 }
 0x6d3   : > { %v13625_v10 = vadd.f32 %v13624_v46, %v13623_v23  ;;  %v1109_v23 = vld [vmem:[%s20117_s17 + $0x8] sm:$0xff]  ;;  %v1111_v46 = vld [vmem:[%s20117_s17 + $0x18] sm:$0xff] }
 0x6d5   : > { %v13626_v22 = vpop.f32.mrb[14].mxu1 }
 0x6d6   : > { %v13627_v11 = vpop.f32.mrb[15].mxu1 }
 0x6d7   : > { %v13628_v47 = vadd.f32 %v13627_v11, %v13626_v22  ;;  %v18107_v22 = vpack.c.bf16 %v1111_v46, %v1109_v23  ;;  %v1110_v11 = vld [vmem:[%s20117_s17 + $0x10] sm:$0xff] }
 0x6d9   : > { %15665 = vmatprep.subr.bf16.mxu0 %v18107_v22  ;;  %15701 = vmatprep.subr.bf16.mxu1 %v18107_v22 }
 0x787   : > { %v13661_v49 = vpop.f32.mrb[16].mxu0  ;;  %v13699_v51 = vpop.f32.mrb[16].mxu1 }
 0x788   : > { %v13662_v52 = vpop.f32.mrb[17].mxu0  ;;  %v13700_v53 = vpop.f32.mrb[17].mxu1 }
 0x789   : > { %v13663_v54 = vadd.f32 %v13662_v52, %v13661_v49  ;;  %v13701_v55 = vadd.f32 %v13700_v53, %v13699_v51 }
 0x78b   : > { %v3111_v56 = vadd.f32 %v13663_v54, %v13625_v10  ;;  %v13664_v57 = vpop.f32.mrb[18].mxu0  ;;  %v13702_v58 = vpop.f32.mrb[18].mxu1  ;;  %v1108_v10 = vld [vmem:[%s20117_s17] sm:$0xff] }
 0x78c   : > { %v13665_v60 = vpop.f32.mrb[19].mxu0  ;;  %v13703_v61 = vpop.f32.mrb[19].mxu1 }
 0x78d   : > { %v3227_v63 = vadd.f32 %v13701_v55, %v3111_v56  ;;  %v13666_v2 = vadd.f32 %v13665_v60, %v13664_v57  ;;  %v13704_v3 = vadd.f32 %v13703_v61, %v13702_v58 }
 0x78f   : > { %v18066_v9 = vadd.f32 %v12912_v59, %v3227_v63  ;;  %v3116_v12 = vadd.f32 %v13666_v2, %v13628_v47  ;;  %v18110_v47 = vpack.c.bf16 %v1110_v11, %v1108_v10 }
 0x791   : > { %v3228_v13 = vadd.f32 %v13704_v3, %v3116_v12  ;;  %3256 = vrot.lane.b32.xlu1 %v18066_v9, %s20055_s4  ;;  %3240 = vrot.lane.b32.xlu0 %v18066_v9, %s20052_s5 }
 0x792   : > { %15667 = vmatpush1.bf16.msra.mxu0 %v18110_v47  ;;  %15703 = vmatpush1.bf16.msra.mxu1 %v18110_v47 }
 0x793   : > { %v18072_v14 = vadd.f32 %v12912_v59, %v3228_v13 }
 0x795   : > { %3242 = vrot.lane.b32.xlu1 %v18072_v14, %s20052_s5  ;;  %3248 = vrot.lane.b32.xlu0 %v18066_v9, %s20064_s26  ;;  %s20059_s5 = smov 32  }
 0x799   : > { %3258 = vrot.lane.b32.xlu1 %v18072_v14, %s20055_s4  ;;  %3250 = vrot.lane.b32.xlu0 %v18072_v14, %s20064_s26  ;;  %s20057_s4 = smov 48  }
 0x803   : > { %v3257_v5 = vpop.permute.xlu1 %3256  ;;  %v3241_v15 = vpop.permute.xlu0 %3240 }
 0x804   : > { %v3246_v16 = vmax.f32 %v18066_v9, %v3241_v15 }
 0x807   : > { %v3243_v17 = vpop.permute.xlu1 %3242  ;;  %v3249_v18 = vpop.permute.xlu0 %3248 }
 0x808   : > { %v3254_v19 = vmax.f32 %v3246_v16, %v3249_v18  ;;  %v3247_v20 = vmax.f32 %v18072_v14, %v3243_v17 }
 0x80a   : > { %v3262_v21 = vmax.f32 %v3254_v19, %v3257_v5 }
 0x80b   : > { %v3251_v24 = vpop.permute.xlu0 %3250  ;;  %v3259_v26 = vpop.permute.xlu1 %3258 }
 0x80c   : > { %v3255_v25 = vmax.f32 %v3247_v20, %v3251_v24  ;;  %3284 = vrot.lane.b32.xlu1 %v3262_v21, %s20059_s5  ;;  %3272 = vrot.lane.b32.xlu0 %v3262_v21, %s20061_s11  ;;  %v3264_v54 = vsub.f32 %v18066_v9, %v3262_v21 }
 0x80e   : > { %v3263_v27 = vmax.f32 %v3255_v25, %v3259_v26  ;;  %v3266_v55 = vmul.f32 1.442695, %v3264_v54 }
 0x810   : > { %3296 = vrot.lane.b32.xlu1 %v3262_v21, %s20057_s4  ;;  %3274 = vrot.lane.b32.xlu0 %v3263_v27, %s20061_s11  ;;  %v3265_v56 = vsub.f32 %v18072_v14, %v3263_v27  ;;  %s20130_s11 = sld [smem:[#allocation12_spill]] }
 0x812   : > { %v3268_v57 = vmul.f32 1.442695, %v3265_v56 }
 0x814   : > { %3298 = vrot.lane.b32.xlu1 %v3263_v27, %s20057_s4  ;;  %3286 = vrot.lane.b32.xlu0 %v3263_v27, %s20059_s5  ;;  %s20128_s4 = smov 112   ;;  %s20129_s5 = smov 80  }
 0x816   : > { %s20131_s17 = smov %s20130_s11  ;;  %v1128_v19 = vld [vmem:[%s20130_s11 + $0x80] sm:$0xff]  ;;  %s20133_s11 = smov 32  }
 0x817   : > { %v1129_v20 = vld [vmem:[%s20131_s17 + $0x88] sm:$0xff]  ;;  %v1112_v21 = vld [vmem:[%s20131_s17] sm:$0xff]  ;;  %v1130_v26 = vld [vmem:[%s20131_s17 + $0x90] sm:$0xff] }
 0x818   : > { %v18152_v24 = vpack.c.bf16 %v1129_v20, %v1128_v19  ;;  %v1113_v25 = vld [vmem:[%s20131_s17 + $0x8] sm:$0xff]  ;;  %v1131_v27 = vld [vmem:[%s20131_s17 + $0x98] sm:$0xff]  ;;  %v1136_v46 = vld [vmem:[%s20131_s17 + $0xc0] sm:$0xff] }
 0x819   : > { %v1137_v10 = vld [vmem:[%s20131_s17 + $0xc8] sm:$0xff]  ;;  %v1120_v54 = vld [vmem:[%s20131_s17 + $0x40] sm:$0xff]  ;;  %v1143_v19 = vld [vmem:[%s20131_s17 + $0xf8] sm:$0xff] }
 0x81a   : > { %15669 = vmatprep.subr.bf16.mxu0 %v18152_v24  ;;  %15705 = vmatprep.subr.bf16.mxu1 %v18152_v24  ;;  %v18196_v11 = vpack.c.bf16 %v1137_v10, %v1136_v46 }
 0x87e   : > { %v3285_v32 = vpop.permute.xlu1 %3284  ;;  %v3273_v28 = vpop.permute.xlu0 %3272 }
 0x87f   : > { %v3290_v29 = vsub.f32 %v18066_v9, %v3285_v32  ;;  %v3278_v33 = vsub.f32 %v18066_v9, %v3273_v28  ;;  %v18157_v28 = vpack.c.bf16 %v1113_v25, %v1112_v21  ;;  %v1126_v21 = vld [vmem:[%s20131_s17 + $0x70] sm:$0xff]  ;;  %v1127_v25 = vld [vmem:[%s20131_s17 + $0x78] sm:$0xff] }
 0x881   : > { %v3292_v35 = vmul.f32 1.442695, %v3290_v29  ;;  %v3280_v36 = vmul.f32 1.442695, %v3278_v33  ;;  %v18159_v29 = vpack.c.bf16 %v1131_v27, %v1130_v26  ;;  %v1114_v33 = vld [vmem:[%s20131_s17 + $0x10] sm:$0xff]  ;;  %v18230_v26 = vpack.c.bf16 %v1127_v25, %v1126_v21 }
 0x882   : > { %v3297_v37 = vpop.permute.xlu1 %3296  ;;  %v3275_v30 = vpop.permute.xlu0 %3274 }
 0x883   : > { %17157 = vpow2.f32 %v3292_v35  ;;  %v3302_v38 = vsub.f32 %v18066_v9, %v3297_v37  ;;  %v3279_v0 = vsub.f32 %v18072_v14, %v3275_v30  ;;  %v1115_v35 = vld [vmem:[%s20131_s17 + $0x18] sm:$0xff]  ;;  %v1132_v30 = vld [vmem:[%s20131_s17 + $0xa0] sm:$0xff] }
 0x884   : > { %17159 = vpow2.f32 %v3280_v36  ;;  %v18168_v37 = vpack.c.bf16 %v1115_v35, %v1114_v33 }
 0x885   : > { %v3304_v39 = vmul.f32 1.442695, %v3302_v38  ;;  %v3282_v34 = vmul.f32 1.442695, %v3279_v0  ;;  %v1133_v38 = vld [vmem:[%s20131_s17 + $0xa8] sm:$0xff] }
 0x886   : > { %v3299_v1 = vpop.permute.xlu1 %3298  ;;  %v3287_v40 = vpop.permute.xlu0 %3286  ;;  %v18176_v0 = vpack.c.bf16 %v1133_v38, %v1132_v30 }
 0x887   : > { %17161 = vpow2.f32 %v3304_v39  ;;  %v3303_v41 = vsub.f32 %v18072_v14, %v3299_v1  ;;  %v3291_v42 = vsub.f32 %v18072_v14, %v3287_v40  ;;  %v1116_v39 = vld [vmem:[%s20131_s17 + $0x20] sm:$0xff]  ;;  %v1134_v40 = vld [vmem:[%s20131_s17 + $0xb0] sm:$0xff] }
 0x888   : > { %17163 = vpow2.f32 %v3282_v34  ;;  %v1117_v34 = vld [vmem:[%s20131_s17 + $0x28] sm:$0xff] }
 0x889   : > { %v3306_v31 = vmul.f32 1.442695, %v3303_v41  ;;  %v3294_v43 = vmul.f32 1.442695, %v3291_v42  ;;  %v18180_v1 = vpack.c.bf16 %v1117_v34, %v1116_v39  ;;  %v1135_v41 = vld [vmem:[%s20131_s17 + $0xb8] sm:$0xff] }
 0x88a   : > { %v18186_v42 = vpack.c.bf16 %v1135_v41, %v1134_v40 }
 0x88b   : > { %17165 = vpow2.f32 %v3306_v31  ;;  %v1118_v31 = vld [vmem:[%s20131_s17 + $0x30] sm:$0xff] }
 0x88c   : > { %17167 = vpow2.f32 %v3294_v43  ;;  %v1119_v43 = vld [vmem:[%s20131_s17 + $0x38] sm:$0xff] }
 0x88d   : > { %v18096_v44 = vpop.eup %17157  ;;  %17169 = vpow2.f32 %v3266_v55  ;;  %v18190_v23 = vpack.c.bf16 %v1119_v43, %v1118_v31  ;;  %v1121_v55 = vld [vmem:[%s20131_s17 + $0x48] sm:$0xff] }
 0x88e   : > { %v18098_v45 = vpop.eup %17159  ;;  %3320 = vrot.lane.b32.xlu1 %v18096_v44, %s20064_s26  ;;  %17171 = vpow2.f32 %v3268_v57  ;;  %v18200_v56 = vpack.c.bf16 %v1121_v55, %v1120_v54  ;;  %v1138_v57 = vld [vmem:[%s20131_s17 + $0xd0] sm:$0xff] }
 0x88f   : > { %3310 = vrot.lane.b32.xlu0 %v18098_v45, %s20128_s4 }
 0x891   : > { %v18112_v49 = vpop.eup %17161 }
 0x892   : > { %v18116_v51 = vpop.eup %17163  ;;  %3330 = vrot.lane.b32.xlu1 %v18112_v49, %s20129_s5 }
 0x893   : > { %3312 = vrot.lane.b32.xlu0 %v18116_v51, %s20128_s4 }
 0x895   : > { %v18124_v52 = vpop.eup %17165 }
 0x896   : > { %v18126_v53 = vpop.eup %17167  ;;  %3332 = vrot.lane.b32.xlu1 %v18124_v52, %s20129_s5 }
 0x897   : > { %3322 = vrot.lane.b32.xlu0 %v18126_v53, %s20064_s26  ;;  %v17170_v59 = vpop.eup %17169  ;;  %s20132_s26 = smov 16  }
 0x898   : > { %v17172_v13 = vpop.eup %17171 }
 0x900   : > { %v3321_v58 = vpop.permute.xlu1 %3320 }
 0x901   : > { %v3311_v60 = vpop.permute.xlu0 %3310 }
 0x902   : > { %v3316_v61 = vadd.f32 %v17170_v59, %v3311_v60  ;;  %v1122_v60 = vld [vmem:[%s20131_s17 + $0x50] sm:$0xff] }
 0x904   : > { %v3331_v63 = vpop.permute.xlu1 %3330  ;;  %v3326_v2 = vadd.f32 %v3321_v58, %v3316_v61  ;;  %v1139_v58 = vld [vmem:[%s20131_s17 + $0xd8] sm:$0xff] }
 0x905   : > { %v3313_v3 = vpop.permute.xlu0 %3312  ;;  %v1123_v61 = vld [vmem:[%s20131_s17 + $0x58] sm:$0xff] }
 0x906   : > { %v18134_v12 = vadd.f32 %v3331_v63, %v3326_v2  ;;  %v3317_v9 = vadd.f32 %v17172_v13, %v3313_v3  ;;  %v18210_v63 = vpack.c.bf16 %v1123_v61, %v1122_v60  ;;  %v1140_v2 = vld [vmem:[%s20131_s17 + $0xe0] sm:$0xff]  ;;  %v1141_v3 = vld [vmem:[%s20131_s17 + $0xe8] sm:$0xff] }
 0x908   : > { %17173 = vrcp.f32 %v18134_v12  ;;  %3344 = vrot.lane.b32.xlu0 %v18134_v12, %s20132_s26  ;;  %v3333_v15 = vpop.permute.xlu1 %3332 }
 0x909   : > { %v3323_v14 = vpop.permute.xlu0 %3322 }
 0x90a   : > { %v3327_v5 = vadd.f32 %v3323_v14, %v3317_v9  ;;  %v1124_v9 = vld [vmem:[%s20131_s17 + $0x60] sm:$0xff]  ;;  %v1125_v14 = vld [vmem:[%s20131_s17 + $0x68] sm:$0xff] }
 0x90c   : > { %v18139_v16 = vadd.f32 %v3333_v15, %v3327_v5  ;;  %v18220_v5 = vpack.c.bf16 %v1125_v14, %v1124_v9 }
 0x90e   : > { %17175 = vrcp.f32 %v18139_v16  ;;  %3346 = vrot.lane.b32.xlu1 %v18139_v16, %s20132_s26 }
 0x912   : > { %v17174_v17 = vpop.eup %17173 }
 0x913   : > { %v18144_v18 = vmul.f32 %v17174_v17, %v17170_v59  ;;  %v18206_v59 = vpack.c.bf16 %v1139_v58, %v1138_v57  ;;  %v1142_v17 = vld [vmem:[%s20131_s17 + $0xf0] sm:$0xff]  ;;  %s20134_s17 = smov 48  }
 0x914   : > { %v18226_v20 = vpack.c.bf16 %v1143_v19, %v1142_v17 }
 0x915   : > { %12913 = vmatmul.mubr.msk.f32.vlgmr.msra.gmra.mrb[20].mxu0 %vm1146_vm0, %v18144_v18 }
 0x916   : > { %3460 = vmatprep.mubr.f32.mxu0 %v20074_v8  ;;  %15671 = vmatpush3.bf16.msra.mxu0 %v18157_v28 }
 0x917   : > { %15673 = vmatprep.subr.bf16.mxu0 %v18159_v29 }
 0x918   : > { %v17176_v32 = vpop.eup %17175 }
 0x919   : > { %v18163_v36 = vmul.f32 %v17176_v32, %v17172_v13  ;;  %v18216_v13 = vpack.c.bf16 %v1141_v3, %v1140_v2 }
 0x91a   : > { %15675 = vmatpush3.bf16.msra.mxu0 %v18168_v37 }
 0x91b   : > { %12914 = vmatmul.mubr.msk.f32.gmra.mrb[22].mxu0 %vm1146_vm0, %v18163_v36  ;;  %15677 = vmatprep.subr.bf16.mxu0 %v18176_v0 }
 0x91e   : > { %15679 = vmatpush3.bf16.msra.mxu0 %v18180_v1 }
 0x91f   : > { %15681 = vmatprep.subr.bf16.mxu0 %v18186_v42 }
 0x922   : > { %15683 = vmatpush3.bf16.msra.mxu0 %v18190_v23 }
 0x923   : > { %15685 = vmatprep.subr.bf16.mxu0 %v18196_v11 }
 0x926   : > { %15687 = vmatpush3.bf16.msra.mxu0 %v18200_v56 }
 0x927   : > { %15689 = vmatprep.subr.bf16.mxu0 %v18206_v59 }
 0x92a   : > { %15691 = vmatpush3.bf16.msra.mxu0 %v18210_v63 }
 0x92b   : > { %15693 = vmatprep.subr.bf16.mxu0 %v18216_v13 }
 0x92e   : > { %15695 = vmatpush3.bf16.msra.mxu0 %v18220_v5 }
 0x92f   : > { %15697 = vmatprep.subr.bf16.mxu0 %v18226_v20 }
 0x932   : > { %15699 = vmatpush3.bf16.msra.mxu0 %v18230_v26 }
 0x933   : > { %15737 = vmatprep.subr.bf16.mxu0 %v18107_v22 }
 0x97a   : > { %v3345_v15 = vpop.permute.xlu0 %3344 }
 0x97b   : > { %17177 = vrcp.f32 %v3345_v15 }
 0x980   : > { %v3347_v27 = vpop.permute.xlu1 %3346 }
 0x981   : > { %17179 = vrcp.f32 %v3347_v27 }
 0x985   : > { %v17178_v32 = vpop.eup %17177 }
 0x986   : > { %v18236_v33 = vmul.f32 %v17178_v32, %v18098_v45 }
 0x988   : > { %3573 = vrot.lane.b32.xlu0 %v18236_v33, %s20128_s4 }
 0x98b   : > { %v17180_v35 = vpop.eup %17179 }
 0x98c   : > { %3354 = vrot.lane.b32.xlu0 %v18134_v12, %s20133_s11  ;;  %v18243_v30 = vmul.f32 %v17180_v35, %v18116_v51 }
 0x98e   : > { %3575 = vrot.lane.b32.xlu1 %v18243_v30, %s20128_s4 }
 0x990   : > { %3356 = vrot.lane.b32.xlu0 %v18139_v16, %s20133_s11 }
 0x992   : > { %3364 = vrot.lane.b32.xlu1 %v18134_v12, %s20134_s17 }
 0x996   : > { %3366 = vrot.lane.b32.xlu1 %v18139_v16, %s20134_s17 }
 0x9e8   : > { %v3456_v45 = vpop.f32.mrb[20].mxu0 }
 0x9e9   : > { %v3458_v38 = vpop.f32.mrb[21].mxu0  ;;  %v3467_v34 = vmul.f32 %v3456_v45, %v17951_v7 }
 0x9ea   : > { %v3468_v41 = vmul.f32 %v3458_v38, %v17947_v4 }
 0x9ee   : > { %v3462_v39 = vpop.f32.mrb[22].mxu0 }
 0x9ef   : > { %v3469_v51 = vmul.f32 %v3462_v39, %v17942_v62  ;;  %v3464_v40 = vpop.f32.mrb[23].mxu0  ;;  %v3374_v39 = vsel %vm1146_vm0, %v18144_v18, %v18236_v33 }
 0x9f0   : > { %v3470_v31 = vmul.f32 %v3464_v40, %v17949_v6 }
 0x9f1   : > { %v3471_v43 = vadd.f32 %v3469_v51, %v3467_v34  ;;  %v3375_v51 = vsel %vm1146_vm0, %v18163_v36, %v18243_v30  ;;  %v3558_v30 = vsel %vm1146_vm0, %v18163_v36, 0.0 }
 0x9f2   : > { %v3478_v46 = vadd.f32 %v3470_v31, %v3468_v41  ;;  %v3555_v31 = vsel %vm1146_vm0, %v18144_v18, 0.0 }
 0x9f3   : > { %v3472_v10 = vrot.slane %v3471_v43, 4 }
 0x9f4   : > { %v3479_v54 = vrot.slane %v3478_v46, 4 }
 0x9f5   : > { %v3473_v12 = vadd.f32 %v3472_v10, %v3471_v43 }
 0x9f6   : > { %v3480_v55 = vadd.f32 %v3479_v54, %v3478_v46 }
 0x9f7   : > { %v3474_v57 = vrot.slane %v3473_v12, 2 }
 0x9f8   : > { %v3481_v16 = vrot.slane %v3480_v55, 2 }
 0x9f9   : > { %v3475_v58 = vadd.f32 %v3474_v57, %v3473_v12 }
 0x9fa   : > { %v18257_v60 = vpop.permute.xlu0 %3573  ;;  %v3482_v61 = vadd.f32 %v3481_v16, %v3480_v55 }
 0x9fb   : > { %v3476_v2 = vrot.slane %v3475_v58, 1  ;;  %12915 = vmatmul.mubr.msk.f32.vlgmr.msra.gmra.mrb[20].mxu1 %vm1146_vm0, %v18257_v60 }
 0x9fc   : > { %v3483_v3 = vrot.slane %v3482_v61, 1  ;;  %3651 = vmatprep.mubr.f32.mxu1 %v20074_v8  ;;  %15707 = vmatpush3.bf16.msra.mxu1 %v18157_v28 }
 0x9fd   : > { %15709 = vmatprep.subr.bf16.mxu1 %v18159_v29  ;;  %v3477_v15 = vadd.f32 %v3476_v2, %v3475_v58 }
 0x9fe   : > { %v3355_v9 = vpop.permute.xlu0 %3354  ;;  %v3484_v14 = vadd.f32 %v3483_v3, %v3482_v61 }
 0x9ff   : > { %17181 = vrcp.f32 %v3355_v9 }
 0xa00   : > { %v3576_v17 = vpop.permute.xlu1 %3575  ;;  %3549 = vmatprep.mubr.f32.mxu0 %v3484_v14  ;;  %15711 = vmatpush3.bf16.msra.mxu1 %v18168_v37 }
 0xa01   : > { %3550 = vmatmul.mubr.f32.vlgmr.msra.gmra.mrb[24].mxu0 %v3477_v15  ;;  %12916 = vmatmul.mubr.msk.f32.gmra.mrb[22].mxu1 %vm1146_vm0, %v3576_v17  ;;  %v3751_v43 = vsel %vm1146_vm0, %v3576_v17, 0.0 }
 0xa02   : > { %v3357_v19 = vpop.permute.xlu0 %3356  ;;  %15739 = vmatpush1.bf16.msra.mxu0 %v18110_v47  ;;  %3838 = vmatprep.mubr.f32.mxu0 %v20074_v8 }
 0xa03   : > { %17183 = vrcp.f32 %v3357_v19  ;;  %15713 = vmatprep.subr.bf16.mxu1 %v18176_v0  ;;  %15741 = vmatprep.subr.bf16.mxu0 %v18152_v24 }
 0xa04   : > { %v3365_v21 = vpop.permute.xlu1 %3364  ;;  %15715 = vmatpush3.bf16.msra.mxu1 %v18180_v1 }
 0xa05   : > { %17185 = vrcp.f32 %v3365_v21  ;;  %15717 = vmatprep.subr.bf16.mxu1 %v18186_v42 }
 0xa08   : > { %v3367_v25 = vpop.permute.xlu1 %3366  ;;  %15719 = vmatpush3.bf16.msra.mxu1 %v18190_v23 }
 0xa09   : > { %v17182_v27 = vpop.eup %17181  ;;  %17187 = vrcp.f32 %v3367_v25  ;;  %15721 = vmatprep.subr.bf16.mxu1 %v18196_v11 }
 0xa0a   : > { %v3361_v32 = vmul.f32 %v17182_v27, %v18096_v44 }
 0xa0c   : > { %3766 = vrot.lane.b32.xlu0 %v3361_v32, %s20136_s1  ;;  %15723 = vmatpush3.bf16.msra.mxu1 %v18200_v56  ;;  %v3377_v34 = vsel %vm3376_vm2, %v3374_v39, %v3361_v32 }
 0xa0d   : > { %v17184_v35 = vpop.eup %17183  ;;  %15725 = vmatprep.subr.bf16.mxu1 %v18206_v59 }
 0xa0e   : > { %v3363_v45 = vmul.f32 %v17184_v35, %v18126_v53 }
 0xa0f   : > { %v17186_v38 = vpop.eup %17185 }
 0xa10   : > { %3768 = vrot.lane.b32.xlu0 %v3363_v45, %s20136_s1  ;;  %v3371_v44 = vmul.f32 %v17186_v38, %v18112_v49  ;;  %15727 = vmatpush3.bf16.msra.mxu1 %v18210_v63  ;;  %v3378_v40 = vsel %vm3376_vm2, %v3375_v51, %v3363_v45 }
 0xa11   : > { %15729 = vmatprep.subr.bf16.mxu1 %v18216_v13 }
 0xa12   : > { %3959 = vrot.lane.b32.xlu1 %v3371_v44, %s20129_s5  ;;  %v3379_v53 = vsel %vm1322_vm1, %v3377_v34, %v3371_v44 }
 0xa13   : > { %v17188_v33 = vpop.eup %17187  ;;  %3382 = vst.msk [vmem:[%s18285_s7] sm:$0xff] %vm3381_vm3, %v3379_v53 }
 0xa14   : > { %v3373_v49 = vmul.f32 %v17188_v33, %v18124_v52  ;;  %15731 = vmatpush3.bf16.msra.mxu1 %v18220_v5  ;;  %v3748_v52 = vsel %vm1146_vm0, %v18257_v60, 0.0 }
 0xa15   : > { %15733 = vmatprep.subr.bf16.mxu1 %v18226_v20 }
 0xa16   : > { %3961 = vrot.lane.b32.xlu1 %v3373_v49, %s20129_s5  ;;  %v3380_v41 = vsel %vm1322_vm1, %v3378_v40, %v3373_v49 }
 0xa17   : > { %3383 = vst.msk [vmem:[%s18285_s7 + $0x8] sm:$0xff] %vm3381_vm3, %v3380_v41 }
 0xa18   : > { %15735 = vmatpush3.bf16.msra.mxu1 %v18230_v26 }
 0xa19   : > { %15773 = vmatprep.subr.bf16.mxu1 %v18107_v22 }
 0xa2f   : > { %3559 = vadd.xlane.f32.xlu0 %v3558_v30 }
 0xa33   : > { %3749 = vadd.xlane.f32.xlu0 %v3748_v52 }
 0xa3a   : > { %3556 = vadd.xlane.f32.xlu1 %v3555_v31 }
 0xa3e   : > { %3752 = vadd.xlane.f32.xlu1 %v3751_v43 }
 0xa7e   : > { %v3767_v46 = vpop.permute.xlu0 %3766 }
 0xa7f   : > { %12917 = vmatmul.mubr.msk.f32.vlgmr.msra.gmra.mrb[26].mxu0 %vm1146_vm0, %v3767_v46  ;;  %v3941_v10 = vsel %vm1146_vm0, %v3767_v46, 0.0 }
 0xa80   : > { %3942 = vadd.xlane.f32.xlu0 %v3941_v10  ;;  %3844 = vmatprep.mubr.f32.mxu0 %v20074_v8 }
 0xa81   : > { %15743 = vmatpush3.bf16.msra.mxu0 %v18157_v28 }
 0xa82   : > { %v3769_v36 = vpop.permute.xlu0 %3768  ;;  %15745 = vmatprep.subr.bf16.mxu0 %v18159_v29 }
 0xa83   : > { %12918 = vmatmul.mubr.msk.f32.gmra.mrb[28].mxu0 %vm1146_vm0, %v3769_v36  ;;  %v3944_v18 = vsel %vm1146_vm0, %v3769_v36, 0.0 }
 0xa84   : > { %v3960_v54 = vpop.permute.xlu1 %3959  ;;  %3945 = vadd.xlane.f32.xlu0 %v3944_v18 }
 0xa85   : > { %v4134_v12 = vsel %vm1146_vm0, %v3960_v54, 0.0  ;;  %15747 = vmatpush3.bf16.msra.mxu0 %v18168_v37 }
 0xa86   : > { %4135 = vadd.xlane.f32.xlu1 %v4134_v12  ;;  %15749 = vmatprep.subr.bf16.mxu0 %v18176_v0 }
 0xa88   : > { %v3962_v55 = vpop.permute.xlu1 %3961 }
 0xa89   : > { %v4137_v57 = vsel %vm1146_vm0, %v3962_v55, 0.0  ;;  %15751 = vmatpush3.bf16.msra.mxu0 %v18180_v1 }
 0xa8a   : > { %4138 = vadd.xlane.f32.xlu0 %v4137_v57  ;;  %15753 = vmatprep.subr.bf16.mxu0 %v18186_v42 }
 0xa8d   : > { %15755 = vmatpush3.bf16.msra.mxu0 %v18190_v23 }
 0xa8e   : > { %15757 = vmatprep.subr.bf16.mxu0 %v18196_v11 }
 0xa91   : > { %15759 = vmatpush3.bf16.msra.mxu0 %v18200_v56 }
 0xa92   : > { %15761 = vmatprep.subr.bf16.mxu0 %v18206_v59 }
 0xa95   : > { %15763 = vmatpush3.bf16.msra.mxu0 %v18210_v63 }
 0xa96   : > { %15765 = vmatprep.subr.bf16.mxu0 %v18216_v13 }
 0xa99   : > { %15767 = vmatpush3.bf16.msra.mxu0 %v18220_v5 }
 0xa9a   : > { %15769 = vmatprep.subr.bf16.mxu0 %v18226_v20 }
 0xa9d   : > { %15771 = vmatpush3.bf16.msra.mxu0 %v18230_v26 }
 0xace   : > { %v3647_v16 = vpop.f32.mrb[20].mxu1 }
 0xacf   : > { %v3649_v58 = vpop.f32.mrb[21].mxu1  ;;  %v3658_v2 = vmul.f32 %v3647_v16, %v17951_v7 }
 0xad0   : > { %v3659_v15 = vmul.f32 %v3649_v58, %v17947_v4 }
 0xad4   : > { %v13737_v60 = vpop.f32.mrb[24].mxu0  ;;  %v3653_v61 = vpop.f32.mrb[22].mxu1 }
 0xad5   : > { %v3660_v3 = vmul.f32 %v3653_v61, %v17942_v62  ;;  %v13738_v9 = vpop.f32.mrb[25].mxu0  ;;  %v3655_v14 = vpop.f32.mrb[23].mxu1 }
 0xad6   : > { %v18340_v17 = vadd.f32 %v13738_v9, %v13737_v60  ;;  %v3661_v19 = vmul.f32 %v3655_v14, %v17949_v6 }
 0xad7   : > { %v3662_v21 = vadd.f32 %v3660_v3, %v3658_v2 }
 0xad8   : > { %v3669_v25 = vadd.f32 %v3661_v19, %v3659_v15  ;;  %v3557_v15 = vpop.xlane.xlu1 %3556  ;;  %v3560_v19 = vpop.xlane.xlu0 %3559 }
 0xad9   : > { %v3663_v27 = vrot.slane %v3662_v21, 4 }
 0xada   : > { %v3670_v32 = vrot.slane %v3669_v25, 4 }
 0xadb   : > { %v3664_v35 = vadd.f32 %v3663_v27, %v3662_v21  ;;  %v3561_v27 = vadd.f32 %v3560_v19, %v3557_v15 }
 0xadc   : > { %v3671_v45 = vadd.f32 %v3670_v32, %v3669_v25  ;;  %v3753_v21 = vpop.xlane.xlu1 %3752  ;;  %v3750_v25 = vpop.xlane.xlu0 %3749 }
 0xadd   : > { %v3665_v38 = vrot.slane %v3664_v35, 2  ;;  %v3754_v32 = vadd.f32 %v3753_v21, %v3750_v25 }
 0xade   : > { %v3672_v39 = vrot.slane %v3671_v45, 2 }
 0xadf   : > { %v3666_v44 = vadd.f32 %v3665_v38, %v3664_v35  ;;  %v3562_v35 = vrot.slane %v3561_v27, 4 }
 0xae0   : > { %v3673_v34 = vadd.f32 %v3672_v39, %v3671_v45  ;;  %v3755_v45 = vrot.slane %v3754_v32, 4 }
 0xae1   : > { %v3667_v53 = vrot.slane %v3666_v44, 1  ;;  %v3563_v38 = vadd.f32 %v3562_v35, %v3561_v27 }
 0xae2   : > { %v3674_v33 = vrot.slane %v3673_v34, 1  ;;  %v3756_v39 = vadd.f32 %v3755_v45, %v3754_v32 }
 0xae3   : > { %v3668_v49 = vadd.f32 %v3667_v53, %v3666_v44  ;;  %v3564_v44 = vrot.slane %v3563_v38, 2 }
 0xae4   : > { %v3675_v51 = vadd.f32 %v3674_v33, %v3673_v34  ;;  %v3757_v34 = vrot.slane %v3756_v39, 2 }
 0xae5   : > { %v3565_v53 = vadd.f32 %v3564_v44, %v3563_v38 }
 0xae6   : > { %3740 = vmatprep.mubr.f32.mxu1 %v3675_v51  ;;  %v3758_v33 = vadd.f32 %v3757_v34, %v3756_v39 }
 0xae7   : > { %3741 = vmatmul.mubr.f32.vlgmr.msra.gmra.mrb[24].mxu1 %v3668_v49  ;;  %v3566_v51 = vrot.slane %v3565_v53, 1 }
 0xae8   : > { %15775 = vmatpush1.bf16.msra.mxu1 %v18110_v47  ;;  %4031 = vmatprep.mubr.f32.mxu1 %v20074_v8  ;;  %v3759_v49 = vrot.slane %v3758_v33, 1 }
 0xae9   : > { %15777 = vmatprep.subr.bf16.mxu1 %v18152_v24 }
 0xaeb   : > { %12919 = vmatmul.mubr.msk.f32.vlgmr.msra.gmra.mrb[26].mxu1 %vm1146_vm0, %v3960_v54 }
 0xaec   : > { %4037 = vmatprep.mubr.f32.mxu1 %v20074_v8  ;;  %15779 = vmatpush3.bf16.msra.mxu1 %v18157_v28 }
 0xaed   : > { %15781 = vmatprep.subr.bf16.mxu1 %v18159_v29 }
 0xaef   : > { %12920 = vmatmul.mubr.msk.f32.gmra.mrb[28].mxu1 %vm1146_vm0, %v3962_v55 }
 0xaf0   : > { %15783 = vmatpush3.bf16.msra.mxu1 %v18168_v37 }
 0xaf1   : > { %15785 = vmatprep.subr.bf16.mxu1 %v18176_v0 }
 0xaf4   : > { %15787 = vmatpush3.bf16.msra.mxu1 %v18180_v1 }
 0xaf5   : > { %15789 = vmatprep.subr.bf16.mxu1 %v18186_v42 }
 0xaf8   : > { %15791 = vmatpush3.bf16.msra.mxu1 %v18190_v23 }
 0xaf9   : > { %15793 = vmatprep.subr.bf16.mxu1 %v18196_v11 }
 0xafc   : > { %15795 = vmatpush3.bf16.msra.mxu1 %v18200_v56 }
 0xafd   : > { %15797 = vmatprep.subr.bf16.mxu1 %v18206_v59 }
 0xb00   : > { %15799 = vmatpush3.bf16.msra.mxu1 %v18210_v63 }
 0xb01   : > { %15801 = vmatprep.subr.bf16.mxu1 %v18216_v13 }
 0xb04   : > { %15803 = vmatpush3.bf16.msra.mxu1 %v18220_v5 }
 0xb05   : > { %15805 = vmatprep.subr.bf16.mxu1 %v18226_v20 }
 0xb08   : > { %15807 = vmatpush3.bf16.msra.mxu1 %v18230_v26 }
 0xb52   : > { %v3840_v40 = vpop.f32.mrb[26].mxu0 }
 0xb53   : > { %v3842_v41 = vpop.f32.mrb[27].mxu0  ;;  %v3851_v52 = vmul.f32 %v3840_v40, %v17951_v7  ;;  %v3567_v40 = vadd.f32 %v3566_v51, %v3565_v53 }
 0xb54   : > { %v3852_v46 = vmul.f32 %v3842_v41, %v17947_v4  ;;  %v3760_v41 = vadd.f32 %v3759_v49, %v3758_v33 }
 0xb56   : > { %v3846_v30 = vpop.f32.mrb[28].mxu0 }
 0xb57   : > { %v3853_v31 = vmul.f32 %v3846_v30, %v17942_v62  ;;  %v3848_v43 = vpop.f32.mrb[29].mxu0  ;;  %v3568_v30 = vadd.f32 1e-06, %v3567_v40 }
 0xb58   : > { %v3854_v10 = vmul.f32 %v3848_v43, %v17949_v6 }
 0xb59   : > { %v3855_v36 = vadd.f32 %v3853_v31, %v3851_v52  ;;  %v3761_v52 = vadd.f32 1e-06, %v3760_v41  ;;  %17189 = vrcp.f32 %v3568_v30  ;;  %v4165_v41 = vld [vmem:[%s20137_s18] sm:$0xff]  ;;  %v4166_v30 = vld [vmem:[%s20137_s18 + $0x8] sm:$0xff] }
 0xb5a   : > { %v3862_v18 = vadd.f32 %v3854_v10, %v3852_v46 }
 0xb5b   : > { %v3856_v54 = vrot.slane %v3855_v36, 4  ;;  %17191 = vrcp.f32 %v3761_v52  ;;  %v15809_v52 = vpack.c.bf16 %v4166_v30, %v4165_v41  ;;  %v12934_v41 = vld [vmem:[%s17500_s25 + $0x58] sm:$0xff]  ;;  %v18414_v30 = vld [vmem:[%s20112_s13 + $0x8] sm:$0xff] }
 0xb5c   : > { %v3863_v12 = vrot.slane %v3862_v18, 4 }
 0xb5d   : > { %v3857_v55 = vadd.f32 %v3856_v54, %v3855_v36 }
 0xb5e   : > { %v3864_v57 = vadd.f32 %v3863_v12, %v3862_v18 }
 0xb5f   : > { %v3858_v16 = vrot.slane %v3857_v55, 2 }
 0xb60   : > { %v3865_v58 = vrot.slane %v3864_v57, 2 }
 0xb61   : > { %v3859_v60 = vadd.f32 %v3858_v16, %v3857_v55 }
 0xb62   : > { %v3866_v61 = vadd.f32 %v3865_v58, %v3864_v57 }
 0xb63   : > { %v3860_v2 = vrot.slane %v3859_v60, 1  ;;  %v17190_v46 = vpop.eup %17189 }
 0xb64   : > { %v3867_v3 = vrot.slane %v3866_v61, 1  ;;  %v3570_v55 = vmul.f32 %v17190_v46, %v18340_v17  ;;  %v18383_v46 = vld [vmem:[%s17711_s22 + $0x10] sm:$0xff] }
 0xb65   : > { %v3861_v14 = vadd.f32 %v3860_v2, %v3859_v60  ;;  %v17192_v36 = vpop.eup %17191 }
 0xb66   : > { %v3868_v9 = vadd.f32 %v3867_v3, %v3866_v61 }
 0xb68   : > { %3933 = vmatprep.mubr.f32.mxu0 %v3868_v9 }
 0xb69   : > { %3934 = vmatmul.mubr.f32.vlgmr.msra.gmra.mrb[30].mxu0 %v3861_v14 }
 0xb6a   : > { %14902 = vmatprep.mubr.msk.f32.mxu0 %vm17464_vm5, %v20074_v8 }
 0xbba   : > { %v13772_v31 = vpop.f32.mrb[24].mxu1 }
 0xbbb   : > { %v13773_v43 = vpop.f32.mrb[25].mxu1 }
 0xbbc   : > { %v13774_v10 = vadd.f32 %v13773_v43, %v13772_v31  ;;  %v20072_v43 = vmov 0.0|0.0  }
 0xbbd   : > { %15808 = vmatprep.subr.bf16.mxu0 %v20072_v43 }
 0xbbe   : > { %v3763_v18 = vmul.f32 %v17192_v36, %v13774_v10  ;;  %v4033_v54 = vpop.f32.mrb[26].mxu1  ;;  %15810 = vmatpush3.bf16.msra.mxu0 %v15809_v52  ;;  %v18386_v10 = vld [vmem:[%s17711_s22 + $0x18] sm:$0xff] }
 0xbbf   : > { %v4035_v12 = vpop.f32.mrb[27].mxu1  ;;  %v4044_v60 = vmul.f32 %v4033_v54, %v17951_v7  ;;  %v15811_v36 = vpack.c.bf16 %v18386_v10, %v18383_v46 }
 0xbc0   : > { %v4151_v57 = vrot.slane %v3763_v18, 7  ;;  %v4045_v3 = vmul.f32 %v4035_v12, %v17947_v4  ;;  %v18375_v4 = vld [vmem:[%s20113_s9] sm:$0xff] }
 0xbc1   : > { %15812 = vmatprep.subr.bf16.mxu0 %v15811_v36 }
 0xbc2   : > { %v4160_v16 = vsel %vm4159_vm4, %v3570_v55, %v4151_v57  ;;  %v4039_v58 = vpop.f32.mrb[28].mxu1 }
 0xbc3   : > { %v4046_v61 = vmul.f32 %v4039_v58, %v17942_v62  ;;  %v4041_v2 = vpop.f32.mrb[29].mxu1 }
 0xbc4   : > { %v4047_v9 = vmul.f32 %v4041_v2, %v17949_v6  ;;  %v3943_v6 = vpop.xlane.xlu0 %3942 }
 0xbc5   : > { %v4048_v14 = vadd.f32 %v4046_v61, %v4044_v60 }
 0xbc6   : > { %v4055_v15 = vadd.f32 %v4047_v9, %v4045_v3  ;;  %v4136_v3 = vpop.xlane.xlu1 %4135 }
 0xbc7   : > { %v4049_v19 = vrot.slane %v4048_v14, 4 }
 0xbc8   : > { %v4056_v21 = vrot.slane %v4055_v15, 4  ;;  %v3946_v44 = vpop.xlane.xlu0 %3945 }
 0xbc9   : > { %v4050_v25 = vadd.f32 %v4049_v19, %v4048_v14  ;;  %v3947_v34 = vadd.f32 %v3946_v44, %v3943_v6  ;;  %v12930_v6 = vld [vmem:[%s17500_s25 + $0x38] sm:$0xff] }
 0xbca   : > { %v4057_v17 = vadd.f32 %v4056_v21, %v4055_v15 }
 0xbcb   : > { %v4051_v27 = vrot.slane %v4050_v25, 2  ;;  %v3948_v53 = vrot.slane %v3947_v34, 4 }
 0xbcc   : > { %v4058_v32 = vrot.slane %v4057_v17, 2  ;;  %v4139_v2 = vpop.xlane.xlu0 %4138 }
 0xbcd   : > { %v4052_v35 = vadd.f32 %v4051_v27, %v4050_v25  ;;  %v3949_v33 = vadd.f32 %v3948_v53, %v3947_v34  ;;  %v4140_v9 = vadd.f32 %v4139_v2, %v4136_v3  ;;  %v12931_v34 = vld [vmem:[%s17500_s25 + $0x40] sm:$0xff]  ;;  %v12932_v53 = vld [vmem:[%s17500_s25 + $0x48] sm:$0xff] }
 0xbce   : > { %v4059_v45 = vadd.f32 %v4058_v32, %v4057_v17  ;;  %v12940_v2 = vld [vmem:[%s17500_s25 + $0x68] sm:$0xff] }
 0xbcf   : > { %v4053_v38 = vrot.slane %v4052_v35, 1  ;;  %v3950_v51 = vrot.slane %v3949_v33, 2  ;;  %v4141_v14 = vrot.slane %v4140_v9, 4 }
 0xbd0   : > { %v4060_v7 = vrot.slane %v4059_v45, 1 }
 0xbd1   : > { %v4054_v39 = vadd.f32 %v4053_v38, %v4052_v35  ;;  %v3951_v49 = vadd.f32 %v3950_v51, %v3949_v33  ;;  %v4142_v15 = vadd.f32 %v4141_v14, %v4140_v9  ;;  %v18402_v33 = vld [vmem:[%s20113_s9 + $0x8] sm:$0xff]  ;;  %v18407_v51 = vld [vmem:[%s20112_s13] sm:$0xff] }
 0xbd2   : > { %v4061_v62 = vadd.f32 %v4060_v7, %v4059_v45  ;;  %v12921_v9 = vld [vmem:[%s20138_s16] ss:$0 sm:$0xff] }
 0xbd3   : > { %v3952_v40 = vrot.slane %v3951_v49, 1  ;;  %v4143_v19 = vrot.slane %v4142_v15, 2 }
 0xbd4   : > { %4126 = vmatprep.mubr.f32.mxu1 %v4061_v62 }
 0xbd5   : > { %4127 = vmatmul.mubr.f32.vlgmr.msra.gmra.mrb[30].mxu1 %v4054_v39  ;;  %v3953_v31 = vadd.f32 %v3952_v40, %v3951_v49  ;;  %v4144_v21 = vadd.f32 %v4143_v19, %v4142_v15  ;;  %v12929_v39 = vld [vmem:[%s17500_s25 + $0x30] sm:$0xff]  ;;  %v15823_v49 = vpack.c.bf16 %v12932_v53, %v12931_v34 }
 0xbd6   : > { %14968 = vmatprep.mubr.msk.f32.mxu1 %vm1146_vm0, %v18375_v4  ;;  %v15819_v44 = vpack.c.bf16 %v12930_v6, %v12929_v39  ;;  %v12933_v40 = vld [vmem:[%s17500_s25 + $0x50] sm:$0xff]  ;;  %v12947_v39 = vld [vmem:[%s17505_s29] ss:$0 sm:$0xff] }
 0xbd7   : > { %v3954_v18 = vadd.f32 1e-06, %v3953_v31  ;;  %v4145_v25 = vrot.slane %v4144_v21, 1  ;;  %v15827_v52 = vpack.c.bf16 %v12934_v41, %v12933_v40  ;;  %v4403_v31 = vld [vmem:[%s17500_s25] sm:$0xff] }
 0xbd9   : > { %17193 = vrcp.f32 %v3954_v18  ;;  %v4146_v17 = vadd.f32 %v4145_v25, %v4144_v21  ;;  %v12941_v21 = vld [vmem:[%s17500_s25 + $0x70] sm:$0xff]  ;;  %v12942_v25 = vld [vmem:[%s17500_s25 + $0x78] sm:$0xff] }
 0xbdb   : > { %v4147_v27 = vadd.f32 1e-06, %v4146_v17 }
 0xbdd   : > { %17195 = vrcp.f32 %v4147_v27 }
 0xbe3   : > { %v17194_v57 = vpop.eup %17193 }
 0xc3c   : > { %v13807_v54 = vpop.f32.mrb[30].mxu0 }
 0xc3d   : > { %v13808_v12 = vpop.f32.mrb[31].mxu0 }
 0xc3e   : > { %v13809_v55 = vadd.f32 %v13808_v12, %v13807_v54  ;;  %v4405_v54 = vld [vmem:[%s17500_s25 + $0x10] sm:$0xff]  ;;  %v4406_v12 = vld [vmem:[%s17500_s25 + $0x18] sm:$0xff] }
 0xc40   : > { %v3956_v58 = vmul.f32 %v17194_v57, %v13809_v55  ;;  %v15835_v55 = vpack.c.bf16 %v4406_v12, %v4405_v54  ;;  %v4407_v57 = vld [vmem:[%s17500_s25 + $0x20] sm:$0xff]  ;;  %v12955_v54 = vld [vmem:[%s20116_s3 + $0x98] sm:$0xff] }
 0xc42   : > { %v4154_v60 = vrot.slane %v3956_v58, 6  ;;  %v4408_v58 = vld [vmem:[%s17500_s25 + $0x28] sm:$0xff] }
 0xc44   : > { %v4162_v61 = vsel %vm4161_vm6, %v4160_v16, %v4154_v60  ;;  %v17196_v16 = vpop.eup %17195  ;;  %v15839_v60 = vpack.c.bf16 %v4408_v58, %v4407_v57  ;;  %v12957_v57 = vld [vmem:[%s20116_s3 + $0xa8] sm:$0xff] }
 0xca8   : > { %v13842_v32 = vpop.f32.mrb[30].mxu1 }
 0xca9   : > { %v13843_v35 = vpop.f32.mrb[31].mxu1 }
 0xcaa   : > { %v13844_v45 = vadd.f32 %v13843_v35, %v13842_v32  ;;  %v15847_v32 = vpack.c.bf16 %v12942_v25, %v12941_v21  ;;  %v12943_v35 = vld [vmem:[%s17500_s25 + $0x80] sm:$0xff] }
 0xcab   : > { %v12964_v25 = vld [vmem:[%s20116_s3 + $0xe0] sm:$0xff] }
 0xcac   : > { %v4149_v38 = vmul.f32 %v17196_v16, %v13844_v45  ;;  %v12944_v45 = vld [vmem:[%s17500_s25 + $0x88] sm:$0xff] }
 0xcae   : > { %v4157_v7 = vrot.slane %v4149_v38, 5  ;;  %v15851_v38 = vpack.c.bf16 %v12944_v45, %v12943_v35  ;;  %v12966_v45 = vld [vmem:[%s20116_s3 + $0xf0] sm:$0xff] }
 0xcb0   : > { %v4164_v62 = vsel %vm4163_vm7, %v4162_v61, %v4157_v7  ;;  %v12939_v61 = vld [vmem:[%s17500_s25 + $0x60] sm:$0xff] }
 0xcb1   : > { %14903 = vmatmul.mubr.msk.f32.vlgmr.msra.gmra.mrb[32].mxu0 %vm1146_vm0, %v4164_v62  ;;  %v15843_v3 = vpack.c.bf16 %v12940_v2, %v12939_v61  ;;  %v12959_v61 = vld [vmem:[%s20116_s3 + $0xb8] sm:$0xff] }
 0xcb2   : > { %15814 = vmatpush3.bf16.msra.mxu0 %v15811_v36  ;;  %14909 = vmatprep.mubr.msk.f32.mxu0 %vm1146_vm0, %v18375_v4 }
 0xcb3   : > { %15816 = vmatprep.subr.bf16.mxu0 %v15811_v36 }
 0xcb5   : > { %14910 = vmatmul.mubr.msk.f32.vlgmr.msra.gmra.mrb[34].mxu0 %vm1146_vm0, %v18402_v33 }
 0xcb6   : > { %15818 = vmatpush3.bf16.msra.mxu0 %v15811_v36  ;;  %14916 = vmatprep.mubr.msk.f32.mxu0 %vm1146_vm0, %v18407_v51  ;;  %v4404_v36 = vld [vmem:[%s17500_s25 + $0x8] sm:$0xff] }
 0xcb7   : > { %15820 = vmatprep.subr.bf16.mxu0 %v15819_v44  ;;  %v15831_v18 = vpack.c.bf16 %v4404_v36, %v4403_v31  ;;  %v12953_v31 = vld [vmem:[%s20116_s3 + $0x88] sm:$0xff] }
 0xcb9   : > { %14917 = vmatmul.mubr.msk.f32.vlgmr.msra.gmra.mrb[36].mxu0 %vm1146_vm0, %v18414_v30 }
 0xcba   : > { %15822 = vmatpush3.bf16.msra.mxu0 %v15819_v44  ;;  %14931 = vmatprep.mubr.msk.f32.mxu0 %vm1322_vm1, %v18383_v46 }
 0xcbb   : > { %15824 = vmatprep.subr.bf16.mxu0 %v15823_v49 }
 0xcbe   : > { %15826 = vmatpush3.bf16.msra.mxu0 %v15823_v49 }
 0xcbf   : > { %15828 = vmatprep.subr.bf16.mxu0 %v15827_v52 }
 0xcc2   : > { %15830 = vmatpush3.bf16.msra.mxu0 %v15827_v52  ;;  %v12952_v52 = vld [vmem:[%s20116_s3 + $0x80] sm:$0xff] }
 0xcc3   : > { %15832 = vmatprep.subr.bf16.mxu0 %v15831_v18  ;;  %v15863_v36 = vpack.c.bf16 %v12953_v31, %v12952_v52  ;;  %v4831_v52 = vld [vmem:[%s20116_s3 + $0x20] sm:$0xff]  ;;  %v4832_v31 = vld [vmem:[%s20116_s3 + $0x28] sm:$0xff] }
 0xcc5   : > { %14932 = vmatmul.mubr.msk.f32.vlgmr.msra.gmra.mrb[38].mxu0 %vm1322_vm1, %v18386_v10 }
 0xcc6   : > { %15834 = vmatpush3.bf16.msra.mxu0 %v15831_v18  ;;  %v12954_v18 = vld [vmem:[%s20116_s3 + $0x90] sm:$0xff] }
 0xcc7   : > { %15836 = vmatprep.subr.bf16.mxu0 %v15835_v55  ;;  %v15867_v12 = vpack.c.bf16 %v12955_v54, %v12954_v18  ;;  %v4833_v18 = vld [vmem:[%s20116_s3 + $0x30] sm:$0xff]  ;;  %v4834_v54 = vld [vmem:[%s20116_s3 + $0x38] sm:$0xff] }
 0xcca   : > { %15838 = vmatpush3.bf16.msra.mxu0 %v15835_v55  ;;  %v12956_v55 = vld [vmem:[%s20116_s3 + $0xa0] sm:$0xff] }
 0xccb   : > { %15840 = vmatprep.subr.bf16.mxu0 %v15839_v60  ;;  %v15871_v58 = vpack.c.bf16 %v12957_v57, %v12956_v55  ;;  %v4835_v55 = vld [vmem:[%s20116_s3 + $0x40] sm:$0xff]  ;;  %v4836_v57 = vld [vmem:[%s20116_s3 + $0x48] sm:$0xff] }
 0xcce   : > { %15842 = vmatpush3.bf16.msra.mxu0 %v15839_v60  ;;  %v12958_v60 = vld [vmem:[%s20116_s3 + $0xb0] sm:$0xff] }
 0xccf   : > { %15844 = vmatprep.subr.bf16.mxu0 %v15843_v3  ;;  %v15875_v2 = vpack.c.bf16 %v12959_v61, %v12958_v60  ;;  %v4837_v60 = vld [vmem:[%s20116_s3 + $0x50] sm:$0xff]  ;;  %v4838_v61 = vld [vmem:[%s20116_s3 + $0x58] sm:$0xff] }
 0xd84   : > { %v4243_v14 = vpop.f32.mrb[32].mxu0 }
 0xd85   : > { %v4244_v15 = vadd.f32 %v12921_v9, %v4243_v14  ;;  %v14904_v19 = vpop.f32.mrb[33].mxu0  ;;  %v12961_v9 = vld [vmem:[%s20116_s3 + $0xc8] sm:$0xff] }
 0xd86   : > { %v12963_v19 = vld [vmem:[%s20116_s3 + $0xd8] sm:$0xff] }
 0xd87   : > { %17197 = vtanh.f32 %v4244_v15  ;;  %v12962_v15 = vld [vmem:[%s20116_s3 + $0xd0] sm:$0xff] }
 0xd88   : > { %v18433_v17 = vpop.f32.mrb[34].mxu0  ;;  %v15883_v21 = vpack.c.bf16 %v12963_v19, %v12962_v15  ;;  %v4842_v15 = vld [vmem:[%s20116_s3 + $0x78] sm:$0xff] }
 0xd89   : > { %v18435_v27 = vpop.f32.mrb[35].mxu0 }
 0xd8a   : > { %14946 = vmatprep.mubr.msk.f32.mxu0 %vm1322_vm1, %v18435_v27 }
 0xd8b   : > { %14947 = vmatmul.mubr.msk.f32.vlgmr.msra.gmra.mrb[38].mxu0 %vm1322_vm1, %v18433_v17 }
 0xd8c   : > { %15846 = vmatpush3.bf16.msra.mxu0 %v15843_v3  ;;  %v18444_v16 = vpop.f32.mrb[36].mxu0  ;;  %v12960_v3 = vld [vmem:[%s20116_s3 + $0xc0] sm:$0xff] }
 0xd8d   : > { %15848 = vmatprep.subr.bf16.mxu0 %v15847_v32  ;;  %v18446_v7 = vpop.f32.mrb[37].mxu0  ;;  %v15879_v14 = vpack.c.bf16 %v12961_v9, %v12960_v3  ;;  %v4840_v3 = vld [vmem:[%s20116_s3 + $0x68] sm:$0xff] }
 0xd8e   : > { %14961 = vmatprep.mubr.msk.f32.mxu0 %vm1322_vm1, %v18446_v7 }
 0xd90   : > { %15850 = vmatpush3.bf16.msra.mxu0 %v15847_v32  ;;  %v12965_v32 = vld [vmem:[%s20116_s3 + $0xe8] sm:$0xff] }
 0xd91   : > { %v18453_v62 = vpop.eup %17197  ;;  %15852 = vmatprep.subr.bf16.mxu0 %v15851_v38  ;;  %v15887_v35 = vpack.c.bf16 %v12965_v32, %v12964_v25  ;;  %v12969_v25 = vld [vmem:[%s20116_s3 + $0x108] sm:$0xff] }
 0xd92   : > { %4249 = vst.msk [vmem:[%s18451_s27] sm:$0xf] %vm4248_vm8, %v18453_v62 }
 0xd94   : > { %15854 = vmatpush3.bf16.msra.mxu0 %v15851_v38  ;;  %v12967_v38 = vld [vmem:[%s20116_s3 + $0xf8] sm:$0xff] }
 0xd97   : > { %14962 = vmatmul.mubr.msk.f32.vlgmr.msra.gmra.mrb[38].mxu0 %vm1322_vm1, %v18444_v16 }
 0xd98   : > { %15087 = vmatprep.mubr.msk.f32.mxu0 %vm1146_vm0, %v18375_v4 }
 0xe6a   : > { %v14963_v6 = vpop.f32.mrb[38].mxu0 }
 0xe6b   : > { %v18463_v44 = vadd.f32 %v14963_v6, %v12947_v39  ;;  %v4655_v34 = vpop.f32.mrb[39].mxu0  ;;  %v4827_v6 = vld [vmem:[%s20116_s3] sm:$0xff] }
 0xe6c   : > { %v4673_v53 = vadd.f32 %v12947_v39, %v4655_v34  ;;  %v15891_v39 = vpack.c.bf16 %v12967_v38, %v12966_v45  ;;  %v12971_v45 = vld [vmem:[%s20116_s3 + $0x118] sm:$0xff] }
 0xe6d   : > { %v4676_v49 = vmax.f32 %v18463_v44, 0.0  ;;  %v4828_v44 = vld [vmem:[%s20116_s3 + $0x8] sm:$0xff] }
 0xe6e   : > { %v4675_v40 = vmax.f32 %v4673_v53, 0.0  ;;  %v15895_v34 = vpack.c.bf16 %v4828_v44, %v4827_v6  ;;  %v4829_v53 = vld [vmem:[%s20116_s3 + $0x10] sm:$0xff]  ;;  %v12972_v44 = vld [vmem:[%s20116_s3 + $0x120] sm:$0xff] }
 0xe70   : > { %v15855_v41 = vpack.c.bf16 %v4676_v49, %v4675_v40 }
 0xe72   : > { %15856 = vmatprep.subr.bf16.mxu1 %v15855_v41 }
 0xe73   : > { %15858 = vmatpush3.bf16.msra.mxu1 %v15855_v41 }
 0xe74   : > { %15860 = vmatprep.subr.bf16.mxu1 %v15855_v41 }
 0xe76   : > { %14969 = vmatmul.mubr.msk.f32.vlgmr.msra.gmra.mrb[32].mxu1 %vm1146_vm0, %v18402_v33 }
 0xe77   : > { %15862 = vmatpush3.bf16.msra.mxu1 %v15855_v41  ;;  %14975 = vmatprep.mubr.msk.f32.mxu1 %vm1146_vm0, %v18407_v51 }
 0xe78   : > { %15864 = vmatprep.subr.bf16.mxu1 %v15863_v36 }
 0xe7a   : > { %14976 = vmatmul.mubr.msk.f32.vlgmr.msra.gmra.mrb[34].mxu1 %vm1146_vm0, %v18414_v30 }
 0xe7b   : > { %15866 = vmatpush3.bf16.msra.mxu1 %v15863_v36  ;;  %15010 = vmatprep.mubr.f32.mxu1 %v4675_v40  ;;  %v4830_v40 = vld [vmem:[%s20116_s3 + $0x18] sm:$0xff]  ;;  %v15903_v36 = vpack.c.bf16 %v4832_v31, %v4831_v52  ;;  %v12974_v52 = vld [vmem:[%s20116_s3 + $0x130] sm:$0xff] }
 0xe7c   : > { %15868 = vmatprep.subr.bf16.mxu1 %v15867_v12  ;;  %v15899_v41 = vpack.c.bf16 %v4830_v40, %v4829_v53  ;;  %v12975_v31 = vld [vmem:[%s20116_s3 + $0x138] sm:$0xff] }
 0xe7f   : > { %15870 = vmatpush3.bf16.msra.mxu1 %v15867_v12  ;;  %v15907_v12 = vpack.c.bf16 %v4834_v54, %v4833_v18  ;;  %v12976_v18 = vld [vmem:[%s20116_s3 + $0x140] sm:$0xff]  ;;  %v12977_v54 = vld [vmem:[%s20116_s3 + $0x148] sm:$0xff] }
 0xe80   : > { %15872 = vmatprep.subr.bf16.mxu1 %v15871_v58 }
 0xe83   : > { %15874 = vmatpush3.bf16.msra.mxu1 %v15871_v58  ;;  %v15911_v58 = vpack.c.bf16 %v4836_v57, %v4835_v55  ;;  %v12978_v55 = vld [vmem:[%s20116_s3 + $0x150] sm:$0xff]  ;;  %v12979_v57 = vld [vmem:[%s20116_s3 + $0x158] sm:$0xff] }
 0xe84   : > { %15876 = vmatprep.subr.bf16.mxu1 %v15875_v2 }
 0xe87   : > { %15878 = vmatpush3.bf16.msra.mxu1 %v15875_v2  ;;  %v4839_v2 = vld [vmem:[%s20116_s3 + $0x60] sm:$0xff] }
 0xe88   : > { %15880 = vmatprep.subr.bf16.mxu1 %v15879_v14  ;;  %v15919_v9 = vpack.c.bf16 %v4840_v3, %v4839_v2  ;;  %v12982_v2 = vld [vmem:[%s20116_s3 + $0x170] sm:$0xff]  ;;  %v12983_v3 = vld [vmem:[%s20116_s3 + $0x178] sm:$0xff] }
 0xe8b   : > { %15882 = vmatpush3.bf16.msra.mxu1 %v15879_v14  ;;  %v4841_v14 = vld [vmem:[%s20116_s3 + $0x70] sm:$0xff] }
 0xe8c   : > { %15884 = vmatprep.subr.bf16.mxu1 %v15883_v21  ;;  %v15923_v19 = vpack.c.bf16 %v4842_v15, %v4841_v14  ;;  %v12984_v14 = vld [vmem:[%s20114_s8] ss:$0 sm:$0xff] }
 0xe8f   : > { %15886 = vmatpush3.bf16.msra.mxu1 %v15883_v21  ;;  %v12968_v21 = vld [vmem:[%s20116_s3 + $0x100] sm:$0xff] }
 0xe90   : > { %15888 = vmatprep.subr.bf16.mxu1 %v15887_v35  ;;  %v15927_v32 = vpack.c.bf16 %v12969_v25, %v12968_v21 }
 0xe93   : > { %15890 = vmatpush3.bf16.msra.mxu1 %v15887_v35  ;;  %v12970_v35 = vld [vmem:[%s20116_s3 + $0x110] sm:$0xff] }
 0xe94   : > { %15892 = vmatprep.subr.bf16.mxu1 %v15891_v39  ;;  %v15931_v6 = vpack.c.bf16 %v12971_v45, %v12970_v35 }
 0xe97   : > { %15894 = vmatpush3.bf16.msra.mxu1 %v15891_v39 }
 0xe98   : > { %15896 = vmatprep.subr.bf16.mxu1 %v15895_v34 }
 0xe9a   : > { %15011 = vmatmul.mubr.f32.vlgmr.msra.gmra.mrb[36].mxu1 %v4676_v49  ;;  %v15915_v49 = vpack.c.bf16 %v4838_v61, %v4837_v60  ;;  %v12980_v60 = vld [vmem:[%s20116_s3 + $0x160] sm:$0xff]  ;;  %v12981_v61 = vld [vmem:[%s20116_s3 + $0x168] sm:$0xff] }
 0xe9b   : > { %15898 = vmatpush3.bf16.msra.mxu1 %v15895_v34  ;;  %v12973_v34 = vld [vmem:[%s20116_s3 + $0x128] sm:$0xff] }
 0xe9c   : > { %15900 = vmatprep.subr.bf16.mxu1 %v15899_v41  ;;  %v15935_v40 = vpack.c.bf16 %v12973_v34, %v12972_v44 }
 0xe9f   : > { %15902 = vmatpush3.bf16.msra.mxu1 %v15899_v41 }
 0xea0   : > { %15904 = vmatprep.subr.bf16.mxu1 %v15903_v36 }
 0xea3   : > { %15906 = vmatpush3.bf16.msra.mxu1 %v15903_v36  ;;  %v15939_v36 = vpack.c.bf16 %v12975_v31, %v12974_v52  ;;  %v12993_v31 = vld [vmem:[%s20111_s14 + $0x60] sm:$0xff] }
 0xea4   : > { %15908 = vmatprep.subr.bf16.mxu1 %v15907_v12 }
 0xea7   : > { %15910 = vmatpush3.bf16.msra.mxu1 %v15907_v12  ;;  %v15943_v12 = vpack.c.bf16 %v12977_v54, %v12976_v18  ;;  %v12998_v18 = vld [vmem:[%s20111_s14 + $0x88] sm:$0xff]  ;;  %v13000_v54 = vld [vmem:[%s20111_s14 + $0x98] sm:$0xff] }
 0xea8   : > { %15912 = vmatprep.subr.bf16.mxu1 %v15911_v58 }
 0xeab   : > { %15914 = vmatpush3.bf16.msra.mxu1 %v15911_v58  ;;  %v15947_v58 = vpack.c.bf16 %v12979_v57, %v12978_v55  ;;  %v15971_v55 = vpack.c.bf16 %v13000_v54, %v12998_v18  ;;  %v12997_v57 = vld [vmem:[%s20111_s14 + $0x80] sm:$0xff]  ;;  %v5286_v18 = vld [vmem:[%s20111_s14 + $0x50] sm:$0xff]  ;;  %v13010_v54 = vld [vmem:[%s20111_s14 + $0xc8] sm:$0xff] }
 0xeac   : > { %15916 = vmatprep.subr.bf16.mxu1 %v15915_v49 }
 0xeaf   : > { %15918 = vmatpush3.bf16.msra.mxu1 %v15915_v49  ;;  %v15951_v49 = vpack.c.bf16 %v12981_v61, %v12980_v60  ;;  %v13002_v60 = vld [vmem:[%s20111_s14 + $0xa8] sm:$0xff]  ;;  %v13004_v61 = vld [vmem:[%s20111_s14 + $0xb8] sm:$0xff] }
 0xeb0   : > { %15920 = vmatprep.subr.bf16.mxu1 %v15919_v9 }
 0xeb3   : > { %15922 = vmatpush3.bf16.msra.mxu1 %v15919_v9  ;;  %v15955_v9 = vpack.c.bf16 %v12983_v3, %v12982_v2  ;;  %v15975_v2 = vpack.c.bf16 %v13004_v61, %v13002_v60  ;;  %v13001_v3 = vld [vmem:[%s20111_s14 + $0xa0] sm:$0xff]  ;;  %v13014_v60 = vld [vmem:[%s20111_s14 + $0xe8] sm:$0xff]  ;;  %v13016_v61 = vld [vmem:[%s20111_s14 + $0xf8] sm:$0xff] }
 0xeb4   : > { %15924 = vmatprep.subr.bf16.mxu1 %v15923_v19 }
 0xeb7   : > { %15926 = vmatpush3.bf16.msra.mxu1 %v15923_v19 }
 0xeb8   : > { %15928 = vmatprep.subr.bf16.mxu1 %v15927_v32 }
 0xf49   : > { %v14970_v38 = vpop.f32.mrb[32].mxu1 }
 0xf4a   : > { %v4743_v39 = vpop.f32.mrb[33].mxu1 }
 0xf4b   : > { %15045 = vmatprep.mubr.f32.mxu1 %v4743_v39 }
 0xf4c   : > { %15046 = vmatmul.mubr.f32.vlgmr.msra.gmra.mrb[36].mxu1 %v14970_v38 }
 0xf4d   : > { %15930 = vmatpush3.bf16.msra.mxu1 %v15927_v32  ;;  %v14977_v53 = vpop.f32.mrb[34].mxu1 }
 0xf4e   : > { %15932 = vmatprep.subr.bf16.mxu1 %v15931_v6  ;;  %v4818_v41 = vpop.f32.mrb[35].mxu1 }
 0xf4f   : > { %15080 = vmatprep.mubr.f32.mxu1 %v4818_v41  ;;  %v12996_v41 = vld [vmem:[%s20111_s14 + $0x78] sm:$0xff] }
 0xf51   : > { %15934 = vmatpush3.bf16.msra.mxu1 %v15931_v6 }
 0xf52   : > { %15936 = vmatprep.subr.bf16.mxu1 %v15935_v40 }
 0xf55   : > { %15938 = vmatpush3.bf16.msra.mxu1 %v15935_v40  ;;  %v12994_v40 = vld [vmem:[%s20111_s14 + $0x68] sm:$0xff] }
 0xf56   : > { %15940 = vmatprep.subr.bf16.mxu1 %v15939_v36  ;;  %v15967_v52 = vpack.c.bf16 %v12996_v41, %v12994_v40  ;;  %v5285_v40 = vld [vmem:[%s20111_s14 + $0x48] sm:$0xff]  ;;  %v5287_v41 = vld [vmem:[%s20111_s14 + $0x58] sm:$0xff] }
 0xf59   : > { %15942 = vmatpush3.bf16.msra.mxu1 %v15939_v36  ;;  %v12995_v36 = vld [vmem:[%s20111_s14 + $0x70] sm:$0xff] }
 0xf5a   : > { %15944 = vmatprep.subr.bf16.mxu1 %v15943_v12 }
 0xf5d   : > { %15946 = vmatpush3.bf16.msra.mxu1 %v15943_v12  ;;  %v15969_v12 = vpack.c.bf16 %v12995_v36, %v12993_v31  ;;  %v15987_v31 = vpack.c.bf16 %v5287_v41, %v5285_v40  ;;  %v5284_v36 = vld [vmem:[%s20111_s14 + $0x40] sm:$0xff]  ;;  %v5550_v40 = vld [vmem:[%s17525_s19 + $0x18] sm:$0xff] }
 0xf5e   : > { %15948 = vmatprep.subr.bf16.mxu1 %v15947_v58 }
 0xf61   : > { %15950 = vmatpush3.bf16.msra.mxu1 %v15947_v58  ;;  %v12999_v58 = vld [vmem:[%s20111_s14 + $0x90] sm:$0xff] }
 0xf62   : > { %15952 = vmatprep.subr.bf16.mxu1 %v15951_v49 }
 0xf65   : > { %15954 = vmatpush3.bf16.msra.mxu1 %v15951_v49  ;;  %v15973_v49 = vpack.c.bf16 %v12999_v58, %v12997_v57  ;;  %v13009_v57 = vld [vmem:[%s20111_s14 + $0xc0] sm:$0xff]  ;;  %v13011_v58 = vld [vmem:[%s20111_s14 + $0xd0] sm:$0xff] }
 0xf66   : > { %15956 = vmatprep.subr.bf16.mxu1 %v15955_v9 }
 0xf69   : > { %15958 = vmatpush3.bf16.msra.mxu1 %v15955_v9  ;;  %v13003_v9 = vld [vmem:[%s20111_s14 + $0xb0] sm:$0xff] }
 0xf6c   : > { %15081 = vmatmul.mubr.f32.vlgmr.msra.gmra.mrb[36].mxu1 %v14977_v53 }
0x103f   : > { %v15082_v15 = vpop.f32.mrb[36].mxu1 }
0x1040   : > { %v5110_v19 = vadd.f32 %v15082_v15, %v12984_v14  ;;  %v5091_v21 = vpop.f32.mrb[37].mxu1  ;;  %v5279_v15 = vld [vmem:[%s20111_s14 + $0x18] sm:$0xff] }
0x1041   : > { %v5109_v25 = vadd.f32 %v12984_v14, %v5091_v21  ;;  %v5277_v14 = vld [vmem:[%s20111_s14 + $0x8] sm:$0xff] }
0x1042   : > { %v12986_v32 = vmul.f32 -1.442695, %v5110_v19  ;;  %v15977_v19 = vpack.c.bf16 %v13003_v9, %v13001_v3  ;;  %v15979_v21 = vpack.c.bf16 %v5279_v15, %v5277_v14  ;;  %v13015_v3 = vld [vmem:[%s20111_s14 + $0xf0] sm:$0xff]  ;;  %v13018_v9 = vld [vmem:[%s20111_s14 + $0x108] sm:$0xff]  ;;  %v13020_v14 = vld [vmem:[%s20111_s14 + $0x118] sm:$0xff] }
0x1043   : > { %v12985_v35 = vmul.f32 -1.442695, %v5109_v25  ;;  %v5276_v25 = vld [vmem:[%s20111_s14] sm:$0xff] }
0x1044   : > { %17199 = vpow2.f32 %v12986_v32  ;;  %v5278_v32 = vld [vmem:[%s20111_s14 + $0x10] sm:$0xff] }
0x1045   : > { %17201 = vpow2.f32 %v12985_v35  ;;  %v5281_v35 = vld [vmem:[%s20111_s14 + $0x28] sm:$0xff] }
0x104e   : > { %v17200_v45 = vpop.eup %17199 }
0x104f   : > { %v17202_v38 = vpop.eup %17201  ;;  %v5118_v39 = vadd.f32 1.0, %v17200_v45  ;;  %v5283_v45 = vld [vmem:[%s20111_s14 + $0x38] sm:$0xff] }
0x1050   : > { %v5117_v6 = vadd.f32 1.0, %v17202_v38  ;;  %v15981_v38 = vpack.c.bf16 %v5278_v32, %v5276_v25  ;;  %v13019_v25 = vld [vmem:[%s20111_s14 + $0x110] sm:$0xff]  ;;  %v13024_v32 = vld [vmem:[%s17525_s19 + $0x28] sm:$0xff] }
0x1051   : > { %17203 = vrcp.f32 %v5118_v39  ;;  %v15983_v39 = vpack.c.bf16 %v5283_v45, %v5281_v35  ;;  %v13026_v35 = vld [vmem:[%s17525_s19 + $0x38] sm:$0xff] }
0x1052   : > { %17205 = vrcp.f32 %v5117_v6  ;;  %v5280_v6 = vld [vmem:[%s20111_s14 + $0x20] sm:$0xff] }
0x105b   : > { %v18521_v44 = vpop.eup %17203 }
0x105c   : > { %v18523_v34 = vpop.eup %17205  ;;  %12988 = vst.msk [vmem:[%s17833_s23 + $0x18] sm:$0xff] %vm1146_vm0, %v18521_v44 }
0x105d   : > { %12987 = vst.msk [vmem:[%s17833_s23 + $0x10] sm:$0xff] %vm1146_vm0, %v18523_v34  ;;  %v15959_v53 = vpack.c.bf16 %v18521_v44, %v18523_v34 }
0x105f   : > { %15960 = vmatprep.subr.bf16.mxu0 %v15959_v53 }
0x1060   : > { %15962 = vmatpush3.bf16.msra.mxu0 %v15959_v53 }
0x1061   : > { %15964 = vmatprep.subr.bf16.mxu0 %v15959_v53 }
0x1063   : > { %15088 = vmatmul.mubr.msk.f32.vlgmr.msra.gmra.mrb[40].mxu0 %vm1146_vm0, %v18402_v33 }
0x1064   : > { %15966 = vmatpush3.bf16.msra.mxu0 %v15959_v53  ;;  %15094 = vmatprep.mubr.msk.f32.mxu0 %vm1146_vm0, %v18407_v51  ;;  %v5282_v53 = vld [vmem:[%s20111_s14 + $0x30] sm:$0xff] }
0x1065   : > { %15968 = vmatprep.subr.bf16.mxu0 %v15967_v52  ;;  %v15985_v52 = vpack.c.bf16 %v5282_v53, %v5280_v6  ;;  %v13025_v6 = vld [vmem:[%s17525_s19 + $0x30] sm:$0xff]  ;;  %v5548_v53 = vld [vmem:[%s17525_s19 + $0x8] sm:$0xff] }
0x1067   : > { %15095 = vmatmul.mubr.msk.f32.vlgmr.msra.gmra.mrb[42].mxu0 %vm1146_vm0, %v18414_v30 }
0x1068   : > { %15970 = vmatpush1.bf16.msra.mxu0 %v15969_v12  ;;  %5364 = vmatprep.mubr.f32.mxu0 %v20074_v8  ;;  %v13012_v12 = vld [vmem:[%s20111_s14 + $0xd8] sm:$0xff] }
0x1069   : > { %15972 = vmatprep.subr.bf16.mxu0 %v15971_v55  ;;  %v15991_v55 = vpack.c.bf16 %v13012_v12, %v13010_v54  ;;  %v13032_v54 = vld [vmem:[%s17525_s19 + $0x48] sm:$0xff]  ;;  %v13034_v12 = vld [vmem:[%s17525_s19 + $0x58] sm:$0xff] }
0x106c   : > { %15974 = vmatpush1.bf16.msra.mxu0 %v15973_v49  ;;  %v15993_v49 = vpack.c.bf16 %v13011_v58, %v13009_v57  ;;  %v13033_v57 = vld [vmem:[%s17525_s19 + $0x50] sm:$0xff] }
0x106d   : > { %15976 = vmatprep.subr.bf16.mxu0 %v15975_v2  ;;  %v13013_v2 = vld [vmem:[%s20111_s14 + $0xe0] sm:$0xff] }
0x106e   : > { %v15997_v15 = vpack.c.bf16 %v13015_v3, %v13013_v2  ;;  %v6006_v2 = vld [vmem:[%s17535_s30 + $0x80] sm:$0xff]  ;;  %v6007_v3 = vld [vmem:[%s17535_s30 + $0x88] sm:$0xff] }
0x1070   : > { %15978 = vmatpush1.bf16.msra.mxu0 %v15977_v19  ;;  %v15999_v19 = vpack.c.bf16 %v13020_v14, %v13018_v9  ;;  %v5990_v9 = vld [vmem:[%s17535_s30] sm:$0xff]  ;;  %v16055_v14 = vpack.c.bf16 %v6007_v3, %v6006_v2  ;;  %v5999_v3 = vld [vmem:[%s17535_s30 + $0x48] sm:$0xff] }
0x1071   : > { %15980 = vmatprep.subr.bf16.mxu0 %v15979_v21  ;;  %v13017_v21 = vld [vmem:[%s20111_s14 + $0x100] sm:$0xff] }
0x1072   : > { %v16001_v45 = vpack.c.bf16 %v13019_v25, %v13017_v21  ;;  %v6009_v21 = vld [vmem:[%s17535_s30 + $0x98] sm:$0xff]  ;;  %16056 = vmatprep.subr.bf16.mxu1 %v16055_v14  ;;  %v5998_v2 = vld [vmem:[%s17535_s30 + $0x40] sm:$0xff] }
0x1073   : > { %13005 = vmatmul.mubr.msk.f32.vlgmr.msra.gmra.mrb[44].mxu0 %vm1322_vm1, %v18383_v46  ;;  %v15989_v46 = vpack.c.bf16 %v5286_v18, %v5284_v36  ;;  %v5549_v36 = vld [vmem:[%s17525_s19 + $0x10] sm:$0xff]  ;;  %v6017_v14 = vld [vmem:[%s17535_s30 + $0xd8] sm:$0xff] }
0x1074   : > { %15982 = vmatpush1.bf16.msra.mxu0 %v15981_v38  ;;  %5370 = vmatprep.mubr.f32.mxu0 %v20074_v8  ;;  %v16003_v38 = vpack.c.bf16 %v13026_v35, %v13024_v32  ;;  %v5992_v35 = vld [vmem:[%s17535_s30 + $0x10] sm:$0xff] }
0x1075   : > { %15984 = vmatprep.subr.bf16.mxu0 %v15983_v39  ;;  %v13023_v39 = vld [vmem:[%s17525_s19 + $0x20] sm:$0xff] }
0x1076   : > { %v16005_v41 = vpack.c.bf16 %v13025_v6, %v13023_v39  ;;  %v6011_v39 = vld [vmem:[%s17535_s30 + $0xa8] sm:$0xff] }
0x1077   : > { %13006 = vmatmul.mubr.msk.f32.gmra.mrb[46].mxu0 %vm1322_vm1, %v18386_v10  ;;  %v15995_v10 = vpack.c.bf16 %v13016_v61, %v13014_v60 }
0x1078   : > { %15986 = vmatpush1.bf16.msra.mxu0 %v15985_v52  ;;  %5441 = vmatprep.mubr.f32.mxu0 %v20074_v8  ;;  %v16007_v52 = vpack.c.bf16 %v5550_v40, %v5548_v53  ;;  %v5994_v40 = vld [vmem:[%s17535_s30 + $0x20] sm:$0xff] }
0x1079   : > { %15988 = vmatprep.subr.bf16.mxu0 %v15987_v31  ;;  %v5547_v31 = vld [vmem:[%s17525_s19] sm:$0xff] }
0x107a   : > { %v16009_v18 = vpack.c.bf16 %v5549_v36, %v5547_v31  ;;  %v6013_v31 = vld [vmem:[%s17535_s30 + $0xb8] sm:$0xff] }
0x107c   : > { %15990 = vmatpush1.bf16.msra.mxu0 %v15989_v46  ;;  %v16011_v46 = vpack.c.bf16 %v13034_v12, %v13032_v54  ;;  %v5996_v54 = vld [vmem:[%s17535_s30 + $0x30] sm:$0xff]  ;;  %v5997_v12 = vld [vmem:[%s17535_s30 + $0x38] sm:$0xff] }
0x107d   : > { %15992 = vmatprep.subr.bf16.mxu0 %v15991_v55  ;;  %v13031_v55 = vld [vmem:[%s17525_s19 + $0x40] sm:$0xff] }
0x107e   : > { %v16013_v58 = vpack.c.bf16 %v13033_v57, %v13031_v55  ;;  %v6015_v55 = vld [vmem:[%s17535_s30 + $0xc8] sm:$0xff]  ;;  %v16069_v57 = vpack.c.bf16 %v5997_v12, %v5996_v54 }
0x107f   : > { %13007 = vmatmul.mubr.msk.f32.vlgmr.msra.gmra.mrb[44].mxu0 %vm1322_vm1, %v18435_v27 }
0x1080   : > { %15994 = vmatpush1.bf16.msra.mxu0 %v15993_v49  ;;  %5447 = vmatprep.mubr.f32.mxu0 %v20074_v8 }
0x1081   : > { %15996 = vmatprep.subr.bf16.mxu0 %v15995_v10 }
0x1083   : > { %13008 = vmatmul.mubr.msk.f32.gmra.mrb[46].mxu0 %vm1322_vm1, %v18433_v17 }
0x1084   : > { %15998 = vmatpush1.bf16.msra.mxu0 %v15997_v15  ;;  %5530 = vmatprep.mubr.f32.mxu0 %v20074_v8  ;;  %v5991_v15 = vld [vmem:[%s17535_s30 + $0x8] sm:$0xff] }
0x1085   : > { %16000 = vmatprep.subr.bf16.mxu0 %v15999_v19  ;;  %v6008_v19 = vld [vmem:[%s17535_s30 + $0x90] sm:$0xff]  ;;  %v16057_v25 = vpack.c.bf16 %v5991_v15, %v5990_v9  ;;  %v16073_v15 = vpack.c.bf16 %v5999_v3, %v5998_v2 }
0x1086   : > { %v16059_v32 = vpack.c.bf16 %v6009_v21, %v6008_v19  ;;  %v6016_v9 = vld [vmem:[%s17535_s30 + $0xd0] sm:$0xff] }
0x1087   : > { %16058 = vmatpush3.bf16.msra.mxu1 %v16057_v25  ;;  %v16075_v19 = vpack.c.bf16 %v6017_v14, %v6016_v9  ;;  %v6000_v21 = vld [vmem:[%s17535_s30 + $0x50] sm:$0xff]  ;;  %v6001_v25 = vld [vmem:[%s17535_s30 + $0x58] sm:$0xff] }
0x1088   : > { %16002 = vmatpush1.bf16.msra.mxu0 %v16001_v45  ;;  %v5993_v45 = vld [vmem:[%s17535_s30 + $0x18] sm:$0xff]  ;;  %16060 = vmatprep.subr.bf16.mxu1 %v16059_v32  ;;  %v6018_v32 = vld [vmem:[%s17535_s30 + $0xe0] sm:$0xff] }
0x1089   : > { %16004 = vmatprep.subr.bf16.mxu0 %v16003_v38  ;;  %v6010_v38 = vld [vmem:[%s17535_s30 + $0xa0] sm:$0xff]  ;;  %v16061_v6 = vpack.c.bf16 %v5993_v45, %v5992_v35  ;;  %v6019_v35 = vld [vmem:[%s17535_s30 + $0xe8] sm:$0xff]  ;;  %v16077_v45 = vpack.c.bf16 %v6001_v25, %v6000_v21 }
0x108a   : > { %v16063_v53 = vpack.c.bf16 %v6011_v39, %v6010_v38  ;;  %v16079_v38 = vpack.c.bf16 %v6019_v35, %v6018_v32  ;;  %v6002_v39 = vld [vmem:[%s17535_s30 + $0x60] sm:$0xff]  ;;  %v13058_v35 = vld [vmem:[%s17535_s30 + $0x188] sm:$0xff] }
0x108b   : > { %13021 = vmatmul.mubr.msk.f32.vlgmr.msra.gmra.mrb[44].mxu0 %vm1322_vm1, %v18446_v7  ;;  %16062 = vmatpush3.bf16.msra.mxu1 %v16061_v6  ;;  %v6003_v6 = vld [vmem:[%s17535_s30 + $0x68] sm:$0xff]  ;;  %v13057_v32 = vld [vmem:[%s17535_s30 + $0x180] sm:$0xff] }
0x108c   : > { %5536 = vmatprep.mubr.f32.mxu0 %v20074_v8  ;;  %16006 = vmatpush1.bf16.msra.mxu0 %v16005_v41  ;;  %v5995_v41 = vld [vmem:[%s17535_s30 + $0x28] sm:$0xff] }
0x108d   : > { %16008 = vmatprep.subr.bf16.mxu0 %v16007_v52  ;;  %v6012_v52 = vld [vmem:[%s17535_s30 + $0xb0] sm:$0xff]  ;;  %v16065_v36 = vpack.c.bf16 %v5995_v41, %v5994_v40  ;;  %16064 = vmatprep.subr.bf16.mxu1 %v16063_v53  ;;  %v6021_v40 = vld [vmem:[%s17535_s30 + $0xf8] sm:$0xff]  ;;  %v16081_v41 = vpack.c.bf16 %v6003_v6, %v6002_v39  ;;  %v13042_v39 = vld [vmem:[%s17535_s30 + $0x108] sm:$0xff] }
0x108e   : > { %v6020_v53 = vld [vmem:[%s17535_s30 + $0xf0] sm:$0xff] }
0x108f   : > { %13022 = vmatmul.mubr.msk.f32.gmra.mrb[46].mxu0 %vm1322_vm1, %v18444_v16  ;;  %16066 = vmatpush3.bf16.msra.mxu1 %v16065_v36  ;;  %v13059_v6 = vld [vmem:[%s17535_s30 + $0x190] sm:$0xff] }
0x1090   : > { %5625 = vmatprep.mubr.f32.mxu0 %v20074_v8 }
0x1093   : > { %13027 = vmatmul.mubr.msk.f32.vlgmr.msra.gmra.mrb[44].mxu0 %vm1146_vm0, %v18523_v34 }
0x1094   : > { %5631 = vmatprep.mubr.f32.mxu0 %v20074_v8  ;;  %16010 = vmatpush1.bf16.msra.mxu0 %v16009_v18  ;;  %v16067_v18 = vpack.c.bf16 %v6013_v31, %v6012_v52  ;;  %v16083_v52 = vpack.c.bf16 %v6021_v40, %v6020_v53  ;;  %v5816_v31 = vld [vmem:[%s17530_s24] sm:$0x3]  ;;  %v13060_v53 = vld [vmem:[%s17535_s30 + $0x198] sm:$0xff] }
0x1095   : > { %16012 = vmatprep.subr.bf16.mxu0 %v16011_v46  ;;  %v6014_v46 = vld [vmem:[%s17535_s30 + $0xc0] sm:$0xff]  ;;  %v5821_v54 = vrot.slane %v5816_v31, %v17937_v50 }
0x1096   : > { %16068 = vmatprep.subr.bf16.mxu1 %v16067_v18  ;;  %v5825_v18 = vrot.slane %v5816_v31, %v17934_v48  ;;  %v13061_v31 = vld [vmem:[%s17535_s30 + $0x1a0] sm:$0xff] }
0x1097   : > { %13028 = vmatmul.mubr.msk.f32.gmra.mrb[46].mxu0 %vm1146_vm0, %v18521_v44  ;;  %16070 = vmatpush3.bf16.msra.mxu1 %v16069_v57 }
0x1098   : > { %5708 = vmatprep.mubr.f32.mxu0 %v20074_v8 }
0x1136   : > { %v18612_v60 = vpop.f32.mrb[40].mxu0 }
0x1137   : > { %v18614_v61 = vpop.f32.mrb[41].mxu0 }
0x1138   : > { %13029 = vmatmul.mubr.msk.f32.vlgmr.msra.gmra.mrb[44].mxu0 %vm1146_vm0, %v18614_v61 }
0x1139   : > { %5714 = vmatprep.mubr.f32.mxu0 %v20074_v8  ;;  %16014 = vmatpush1.bf16.msra.mxu0 %v16013_v58  ;;  %v16071_v58 = vpack.c.bf16 %v6015_v55, %v6014_v46 }
0x113a   : > { %v18619_v49 = vpop.f32.mrb[42].mxu0 }
0x113b   : > { %v18621_v10 = vpop.f32.mrb[43].mxu0  ;;  %16072 = vmatprep.subr.bf16.mxu1 %v16071_v58 }
0x113c   : > { %13030 = vmatmul.mubr.msk.f32.gmra.mrb[46].mxu0 %vm1146_vm0, %v18612_v60  ;;  %16074 = vmatpush3.bf16.msra.mxu1 %v16073_v15 }
0x113d   : > { %5795 = vmatprep.mubr.f32.mxu0 %v20074_v8  ;;  %16076 = vmatprep.subr.bf16.mxu1 %v16075_v19 }
0x1140   : > { %13035 = vmatmul.mubr.msk.f32.vlgmr.msra.gmra.mrb[44].mxu0 %vm1146_vm0, %v18621_v10  ;;  %16078 = vmatpush3.bf16.msra.mxu1 %v16077_v45  ;;  %v16023_v45 = vpack.c.bf16 %v13058_v35, %v13057_v32  ;;  %v13049_v32 = vld [vmem:[%s17535_s30 + $0x140] sm:$0xff]  ;;  %v13050_v35 = vld [vmem:[%s17535_s30 + $0x148] sm:$0xff] }
0x1141   : > { %5801 = vmatprep.mubr.f32.mxu0 %v20074_v8  ;;  %16080 = vmatprep.subr.bf16.mxu1 %v16079_v38  ;;  %v13041_v38 = vld [vmem:[%s17535_s30 + $0x100] sm:$0xff] }
0x1142   : > { %v16025_v40 = vpack.c.bf16 %v13042_v39, %v13041_v38  ;;  %v13068_v38 = vld [vmem:[%s17535_s30 + $0x1d8] sm:$0xff]  ;;  %v16041_v39 = vpack.c.bf16 %v13050_v35, %v13049_v32 }
0x1143   : > { %v13092_v32 = vld [vmem:[%s17535_s30 + $0x298] sm:$0xff] }
0x1144   : > { %13036 = vmatmul.mubr.msk.f32.gmra.mrb[46].mxu0 %vm1146_vm0, %v18619_v49  ;;  %16082 = vmatpush3.bf16.msra.mxu1 %v16081_v41  ;;  %v16027_v41 = vpack.c.bf16 %v13060_v53, %v13059_v6  ;;  %v13051_v53 = vld [vmem:[%s17535_s30 + $0x150] sm:$0xff] }
0x1145   : > { %5900 = vmatprep.mubr.f32.mxu0 %v20074_v8  ;;  %16084 = vmatprep.subr.bf16.mxu1 %v16083_v52  ;;  %v13044_v52 = vld [vmem:[%s17535_s30 + $0x118] sm:$0xff] }
0x1213   : > { %v5797_v36 = vpop.f32.mrb[44].mxu0 }
0x1214   : > { %v5799_v12 = vpop.f32.mrb[45].mxu0  ;;  %v5828_v57 = vadd.f32 %v5821_v54, %v5797_v36  ;;  %v13062_v36 = vld [vmem:[%s17535_s30 + $0x1a8] sm:$0xff] }
0x1215   : > { %v5829_v46 = vadd.f32 %v5825_v18, %v5799_v12  ;;  %v13046_v12 = vld [vmem:[%s17535_s30 + $0x128] sm:$0xff] }
0x1216   : > { %v18671_v19 = vmax.f32 %v5828_v57, 0.0 }
0x1217   : > { %v5803_v55 = vpop.f32.mrb[46].mxu0  ;;  %v18667_v14 = vmax.f32 %v5829_v46, 0.0  ;;  %v13063_v46 = vld [vmem:[%s17535_s30 + $0x1b0] sm:$0xff] }
0x1218   : > { %v5830_v58 = vadd.f32 %v5821_v54, %v5803_v55  ;;  %v5805_v2 = vpop.f32.mrb[47].mxu0  ;;  %v13045_v54 = vld [vmem:[%s17535_s30 + $0x120] sm:$0xff]  ;;  %v13064_v55 = vld [vmem:[%s17535_s30 + $0x1b8] sm:$0xff] }
0x1219   : > { %v5831_v3 = vadd.f32 %v5825_v18, %v5805_v2  ;;  %v16031_v18 = vpack.c.bf16 %v13062_v36, %v13061_v31  ;;  %v16035_v57 = vpack.c.bf16 %v13064_v55, %v13063_v46  ;;  %v13048_v2 = vld [vmem:[%s17535_s30 + $0x138] sm:$0xff]  ;;  %v13053_v36 = vld [vmem:[%s17535_s30 + $0x160] sm:$0xff]  ;;  %v13055_v55 = vld [vmem:[%s17535_s30 + $0x170] sm:$0xff] }
0x121a   : > { %v18665_v9 = vmax.f32 %v5830_v58, 0.0  ;;  %v13047_v58 = vld [vmem:[%s17535_s30 + $0x130] sm:$0xff] }
0x121b   : > { %v18669_v15 = vmax.f32 %v5831_v3, 0.0  ;;  %v13065_v3 = vld [vmem:[%s17535_s30 + $0x1c0] sm:$0xff] }
0x121c   : > { %v16017_v25 = vpack.c.bf16 %v18665_v9, %v18671_v19 }
0x121d   : > { %v16015_v21 = vpack.c.bf16 %v18669_v15, %v18667_v14 }
0x121f   : > { %16016 = vmatprep.subr.bf16.mxu0 %v16015_v21 }
0x1220   : > { %16018 = vmatpush1.bf16.msra.mxu0 %v16017_v25 }
0x1221   : > { %16020 = vmatprep.subr.bf16.mxu0 %v16015_v21  ;;  %v13066_v21 = vld [vmem:[%s17535_s30 + $0x1c8] sm:$0xff] }
0x1223   : > { %13037 = vmatmul.mubr.msk.f32.vlgmr.msra.gmra.mrb[48].mxu0 %vm1146_vm0, %v18375_v4  ;;  %v13043_v4 = vld [vmem:[%s17535_s30 + $0x110] sm:$0xff] }
0x1224   : > { %16022 = vmatpush1.bf16.msra.mxu0 %v16017_v25  ;;  %5906 = vmatprep.mubr.f32.mxu0 %v20074_v8  ;;  %v16037_v25 = vpack.c.bf16 %v13048_v2, %v13047_v58  ;;  %v13090_v58 = vld [vmem:[%s17535_s30 + $0x288] sm:$0xff] }
0x1225   : > { %16024 = vmatprep.subr.bf16.mxu0 %v16023_v45  ;;  %v13067_v45 = vld [vmem:[%s17535_s30 + $0x1d0] sm:$0xff] }
0x1226   : > { %v16043_v6 = vpack.c.bf16 %v13068_v38, %v13067_v45  ;;  %v13075_v38 = vld [vmem:[%s17535_s30 + $0x210] sm:$0xff] }
0x1227   : > { %13038 = vmatmul.mubr.msk.f32.gmra.mrb[50].mxu0 %vm1146_vm0, %v18402_v33  ;;  %v16029_v33 = vpack.c.bf16 %v13044_v52, %v13043_v4  ;;  %v13070_v4 = vld [vmem:[%s17535_s30 + $0x1e8] sm:$0xff] }
0x1228   : > { %5977 = vmatprep.mubr.f32.mxu0 %v20074_v8 }
0x122b   : > { %13039 = vmatmul.mubr.msk.f32.vlgmr.msra.gmra.mrb[52].mxu0 %vm1146_vm0, %v18407_v51  ;;  %v16033_v51 = vpack.c.bf16 %v13046_v12, %v13045_v54  ;;  %v13072_v54 = vld [vmem:[%s17535_s30 + $0x1f8] sm:$0xff] }
0x122c   : > { %16026 = vmatpush3.bf16.msra.mxu0 %v16025_v40  ;;  %5983 = vmatprep.mubr.f32.mxu0 %v20074_v8  ;;  %v13052_v40 = vld [vmem:[%s17535_s30 + $0x158] sm:$0xff] }
0x122d   : > { %16028 = vmatprep.subr.bf16.mxu0 %v16027_v41  ;;  %v13069_v41 = vld [vmem:[%s17535_s30 + $0x1e0] sm:$0xff]  ;;  %v16045_v52 = vpack.c.bf16 %v13052_v40, %v13051_v53  ;;  %v13094_v53 = vld [vmem:[%s17535_s30 + $0x2a8] sm:$0xff] }
0x122e   : > { %v16047_v31 = vpack.c.bf16 %v13070_v4, %v13069_v41  ;;  %v13077_v4 = vld [vmem:[%s17535_s30 + $0x220] sm:$0xff] }
0x122f   : > { %13040 = vmatmul.mubr.msk.f32.gmra.mrb[54].mxu0 %vm1146_vm0, %v18414_v30  ;;  %v16039_v30 = vpack.c.bf16 %v13066_v21, %v13065_v3  ;;  %v13073_v21 = vld [vmem:[%s17535_s30 + $0x200] sm:$0xff] }
0x1230   : > { %16030 = vmatpush3.bf16.msra.mxu0 %v16029_v33  ;;  %6118 = vmatprep.mubr.f32.mxu0 %v18667_v14  ;;  %v13054_v33 = vld [vmem:[%s17535_s30 + $0x168] sm:$0xff] }
0x1231   : > { %16032 = vmatprep.subr.bf16.mxu0 %v16031_v18  ;;  %v13071_v18 = vld [vmem:[%s17535_s30 + $0x1f0] sm:$0xff]  ;;  %v16049_v12 = vpack.c.bf16 %v13054_v33, %v13053_v36  ;;  %v13096_v36 = vld [vmem:[%s17535_s30 + $0x2b8] sm:$0xff] }
0x1232   : > { %v16051_v46 = vpack.c.bf16 %v13072_v54, %v13071_v18  ;;  %v13079_v54 = vld [vmem:[%s17535_s30 + $0x230] sm:$0xff] }
0x1234   : > { %16034 = vmatpush3.bf16.msra.mxu0 %v16033_v51  ;;  %v13056_v51 = vld [vmem:[%s17535_s30 + $0x178] sm:$0xff] }
0x1235   : > { %16036 = vmatprep.subr.bf16.mxu0 %v16035_v57  ;;  %v13089_v57 = vld [vmem:[%s17535_s30 + $0x280] sm:$0xff]  ;;  %v16053_v2 = vpack.c.bf16 %v13056_v51, %v13055_v55  ;;  %v13098_v55 = vld [vmem:[%s17535_s30 + $0x2c8] sm:$0xff] }
0x1236   : > { %v16087_v3 = vpack.c.bf16 %v13090_v58, %v13089_v57  ;;  %v13081_v58 = vld [vmem:[%s17535_s30 + $0x240] sm:$0xff] }
0x1238   : > { %16038 = vmatpush3.bf16.msra.mxu0 %v16037_v25  ;;  %v13074_v25 = vld [vmem:[%s17535_s30 + $0x208] sm:$0xff] }
0x1239   : > { %16040 = vmatprep.subr.bf16.mxu0 %v16039_v30  ;;  %v13091_v30 = vld [vmem:[%s17535_s30 + $0x290] sm:$0xff]  ;;  %v16089_v35 = vpack.c.bf16 %v13074_v25, %v13073_v21  ;;  %v13100_v21 = vld [vmem:[%s17535_s30 + $0x2d8] sm:$0xff] }
0x123a   : > { %v16091_v45 = vpack.c.bf16 %v13092_v32, %v13091_v30  ;;  %v6004_v32 = vld [vmem:[%s17535_s30 + $0x70] sm:$0xff] }
0x123c   : > { %16042 = vmatpush3.bf16.msra.mxu0 %v16041_v39  ;;  %v13076_v39 = vld [vmem:[%s17535_s30 + $0x218] sm:$0xff] }
0x123d   : > { %16044 = vmatprep.subr.bf16.mxu0 %v16043_v6  ;;  %v13093_v6 = vld [vmem:[%s17535_s30 + $0x2a0] sm:$0xff]  ;;  %v16093_v40 = vpack.c.bf16 %v13076_v39, %v13075_v38  ;;  %v13084_v39 = vld [vmem:[%s17535_s30 + $0x258] sm:$0xff] }
0x123e   : > { %v16095_v41 = vpack.c.bf16 %v13094_v53, %v13093_v6  ;;  %v13101_v53 = vld [vmem:[%s17535_s30 + $0x2e0] sm:$0xff] }
0x1240   : > { %16046 = vmatpush3.bf16.msra.mxu0 %v16045_v52  ;;  %v13078_v52 = vld [vmem:[%s17535_s30 + $0x228] sm:$0xff] }
0x1241   : > { %16048 = vmatprep.subr.bf16.mxu0 %v16047_v31  ;;  %v13095_v31 = vld [vmem:[%s17535_s30 + $0x2b0] sm:$0xff]  ;;  %v16097_v33 = vpack.c.bf16 %v13078_v52, %v13077_v4  ;;  %v13085_v4 = vld [vmem:[%s17535_s30 + $0x260] sm:$0xff]  ;;  %v13086_v52 = vld [vmem:[%s17535_s30 + $0x268] sm:$0xff] }
0x1242   : > { %v16099_v18 = vpack.c.bf16 %v13096_v36, %v13095_v31  ;;  %v16113_v31 = vpack.c.bf16 %v13086_v52, %v13085_v4  ;;  %v13103_v36 = vld [vmem:[%s17535_s30 + $0x2f0] sm:$0xff] }
0x1244   : > { %16050 = vmatpush3.bf16.msra.mxu0 %v16049_v12  ;;  %v13080_v12 = vld [vmem:[%s17535_s30 + $0x238] sm:$0xff] }
0x1245   : > { %16052 = vmatprep.subr.bf16.mxu0 %v16051_v46  ;;  %v13097_v46 = vld [vmem:[%s17535_s30 + $0x2c0] sm:$0xff]  ;;  %v16101_v51 = vpack.c.bf16 %v13080_v12, %v13079_v54  ;;  %v13087_v54 = vld [vmem:[%s17535_s30 + $0x270] sm:$0xff]  ;;  %v13088_v12 = vld [vmem:[%s17535_s30 + $0x278] sm:$0xff] }
0x1246   : > { %v16103_v57 = vpack.c.bf16 %v13098_v55, %v13097_v46  ;;  %v16117_v46 = vpack.c.bf16 %v13088_v12, %v13087_v54  ;;  %v13105_v12 = vld [vmem:[%s20115_s6] ss:$0 sm:$0xff] }
0x1248   : > { %16054 = vmatpush3.bf16.msra.mxu0 %v16053_v2  ;;  %v13082_v2 = vld [vmem:[%s17535_s30 + $0x248] sm:$0xff] }
0x1249   : > { %16088 = vmatprep.subr.bf16.mxu0 %v16087_v3  ;;  %v13099_v3 = vld [vmem:[%s17535_s30 + $0x2d0] sm:$0xff]  ;;  %v16105_v25 = vpack.c.bf16 %v13082_v2, %v13081_v58 }
0x124a   : > { %v16107_v30 = vpack.c.bf16 %v13100_v21, %v13099_v3 }
0x124b   : > { %6119 = vmatmul.mubr.f32.vlgmr.msra.gmra.mrb[56].mxu0 %v18671_v19 }
0x124c   : > { %6123 = vmatprep.mubr.f32.mxu0 %v18669_v15  ;;  %16090 = vmatpush3.bf16.msra.mxu0 %v16089_v35  ;;  %v6005_v35 = vld [vmem:[%s17535_s30 + $0x78] sm:$0xff] }
0x124d   : > { %16092 = vmatprep.subr.bf16.mxu0 %v16091_v45  ;;  %v13083_v45 = vld [vmem:[%s17535_s30 + $0x250] sm:$0xff]  ;;  %v16085_v38 = vpack.c.bf16 %v6005_v35, %v6004_v32 }
0x124e   : > { %v16109_v6 = vpack.c.bf16 %v13084_v39, %v13083_v45 }
0x124f   : > { %6124 = vmatmul.mubr.f32.gmra.mrb[58].mxu0 %v18665_v9  ;;  %16086 = vmatpush3.bf16.msra.mxu1 %v16085_v38 }
0x1250   : > { %16094 = vmatpush3.bf16.msra.mxu0 %v16093_v40  ;;  %v13102_v40 = vld [vmem:[%s17535_s30 + $0x2e8] sm:$0xff]  ;;  %16120 = vmatprep.subr.bf16.mxu1 %v18107_v22 }
0x1251   : > { %16096 = vmatprep.subr.bf16.mxu0 %v16095_v41  ;;  %v16111_v41 = vpack.c.bf16 %v13102_v40, %v13101_v53 }
0x1254   : > { %16098 = vmatpush3.bf16.msra.mxu0 %v16097_v33  ;;  %v13104_v33 = vld [vmem:[%s17535_s30 + $0x2f8] sm:$0xff] }
0x1255   : > { %16100 = vmatprep.subr.bf16.mxu0 %v16099_v18  ;;  %v16115_v18 = vpack.c.bf16 %v13104_v33, %v13103_v36 }
0x1258   : > { %16102 = vmatpush3.bf16.msra.mxu0 %v16101_v51 }
0x1259   : > { %16104 = vmatprep.subr.bf16.mxu0 %v16103_v57 }
0x125c   : > { %16106 = vmatpush3.bf16.msra.mxu0 %v16105_v25 }
0x125d   : > { %16108 = vmatprep.subr.bf16.mxu0 %v16107_v30 }
0x1260   : > { %16110 = vmatpush3.bf16.msra.mxu0 %v16109_v6 }
0x1261   : > { %16112 = vmatprep.subr.bf16.mxu0 %v16111_v41 }
0x1264   : > { %16114 = vmatpush3.bf16.msra.mxu0 %v16113_v31 }
0x1265   : > { %16116 = vmatprep.subr.bf16.mxu0 %v16115_v18 }
0x1268   : > { %16118 = vmatpush3.bf16.msra.mxu0 %v16117_v46 }
0x1269   : > { %16156 = vmatprep.subr.bf16.mxu0 %v18107_v22 }
0x12f6   : > { %v5902_v55 = vpop.f32.mrb[48].mxu0 }
0x12f7   : > { %v5904_v51 = vpop.f32.mrb[49].mxu0 }
0x12f8   : > { %6193 = vmatprep.mubr.f32.mxu1 %v5904_v51 }
0x12f9   : > { %6194 = vmatmul.mubr.f32.vlgmr.msra.gmra.mrb[38].mxu1 %v5902_v55 }
0x12fa   : > { %v5908_v57 = vpop.f32.mrb[50].mxu0  ;;  %16122 = vmatpush1.bf16.msra.mxu1 %v18110_v47 }
0x12fb   : > { %v5910_v58 = vpop.f32.mrb[51].mxu0  ;;  %16124 = vmatprep.subr.bf16.mxu1 %v18152_v24 }
0x12fc   : > { %6198 = vmatprep.mubr.f32.mxu1 %v5910_v58 }
0x12fd   : > { %6199 = vmatmul.mubr.f32.gmra.mrb[40].mxu1 %v5908_v57 }
0x12fe   : > { %v5979_v2 = vpop.f32.mrb[52].mxu0  ;;  %6537 = vmatprep.mubr.f32.mxu1 %v20074_v8 }
0x12ff   : > { %v5981_v3 = vpop.f32.mrb[53].mxu0 }
0x1300   : > { %6300 = vmatprep.mubr.f32.mxu0 %v5981_v3 }
0x1301   : > { %6301 = vmatmul.mubr.f32.vlgmr.msra.gmra.mrb[60].mxu0 %v5979_v2 }
0x1302   : > { %v5985_v21 = vpop.f32.mrb[54].mxu0  ;;  %16158 = vmatpush1.bf16.msra.mxu0 %v18110_v47 }
0x1303   : > { %v5987_v25 = vpop.f32.mrb[55].mxu0  ;;  %16160 = vmatprep.subr.bf16.mxu0 %v18152_v24 }
0x1304   : > { %6305 = vmatprep.mubr.f32.mxu0 %v5987_v25 }
0x1305   : > { %6306 = vmatmul.mubr.f32.gmra.mrb[62].mxu0 %v5985_v21 }
0x1306   : > { %6728 = vmatprep.mubr.f32.mxu0 %v20074_v8 }
0x131e   : > { %v13982_v30 = vpop.f32.mrb[56].mxu0 }
0x131f   : > { %v13983_v32 = vpop.f32.mrb[57].mxu0 }
0x1320   : > { %v13984_v35 = vadd.f32 %v13983_v32, %v13982_v30 }
0x1322   : > { %v13985_v45 = vpop.f32.mrb[58].mxu0 }
0x1323   : > { %v13986_v38 = vpop.f32.mrb[59].mxu0 }
0x1324   : > { %v13987_v39 = vadd.f32 %v13986_v38, %v13985_v45 }
0x13cc   : > { %v14020_v6 = vpop.f32.mrb[38].mxu1 }
0x13cd   : > { %v14021_v53 = vpop.f32.mrb[39].mxu1 }
0x13ce   : > { %v14022_v40 = vadd.f32 %v14021_v53, %v14020_v6 }
0x13d0   : > { %v6196_v41 = vadd.f32 %v14022_v40, %v13984_v35  ;;  %v14023_v4 = vpop.f32.mrb[40].mxu1 }
0x13d1   : > { %v14024_v52 = vpop.f32.mrb[41].mxu1 }
0x13d2   : > { %v14025_v31 = vadd.f32 %v14024_v52, %v14023_v4 }
0x13d4   : > { %v6201_v36 = vadd.f32 %v14025_v31, %v13987_v39  ;;  %v14058_v33 = vpop.f32.mrb[60].mxu0 }
0x13d5   : > { %v14059_v18 = vpop.f32.mrb[61].mxu0 }
0x13d6   : > { %v14060_v54 = vadd.f32 %v14059_v18, %v14058_v33 }
0x13d8   : > { %v6311_v46 = vadd.f32 %v14060_v54, %v6196_v41  ;;  %v14061_v55 = vpop.f32.mrb[62].mxu0 }
0x13d9   : > { %v14062_v51 = vpop.f32.mrb[63].mxu0 }
0x13da   : > { %v18767_v57 = vadd.f32 %v13105_v12, %v6311_v46  ;;  %v14063_v58 = vadd.f32 %v14062_v51, %v14061_v55 }
0x13dc   : > { %v6312_v2 = vadd.f32 %v14063_v58, %v6201_v36  ;;  %6332 = vrot.lane.b32.xlu0 %v18767_v57, %s20136_s1  ;;  %6324 = vrot.lane.b32.xlu1 %v18767_v57, %s20128_s4 }
0x13de   : > { %v18773_v3 = vadd.f32 %v13105_v12, %v6312_v2 }
0x13e0   : > { %6334 = vrot.lane.b32.xlu0 %v18773_v3, %s20136_s1  ;;  %6340 = vrot.lane.b32.xlu1 %v18767_v57, %s20129_s5 }
0x13e4   : > { %6326 = vrot.lane.b32.xlu1 %v18773_v3, %s20128_s4 }
0x13e8   : > { %6342 = vrot.lane.b32.xlu1 %v18773_v3, %s20129_s5 }
0x144e   : > { %v6325_v21 = vpop.permute.xlu1 %6324  ;;  %v6333_v30 = vpop.permute.xlu0 %6332 }
0x144f   : > { %v6330_v25 = vmax.f32 %v18767_v57, %v6325_v21 }
0x1451   : > { %v6338_v32 = vmax.f32 %v6330_v25, %v6333_v30 }
0x1452   : > { %v6341_v35 = vpop.permute.xlu1 %6340  ;;  %v6335_v6 = vpop.permute.xlu0 %6334 }
0x1453   : > { %v6346_v45 = vmax.f32 %v6338_v32, %v6341_v35 }
0x1455   : > { %6368 = vrot.lane.b32.xlu1 %v6346_v45, %s20133_s11  ;;  %6356 = vrot.lane.b32.xlu0 %v6346_v45, %s20132_s26 }
0x1456   : > { %v6327_v38 = vpop.permute.xlu1 %6326 }
0x1457   : > { %v6331_v39 = vmax.f32 %v18773_v3, %v6327_v38 }
0x1459   : > { %6380 = vrot.lane.b32.xlu1 %v6346_v45, %s20134_s17  ;;  %v6339_v53 = vmax.f32 %v6331_v39, %v6335_v6 }
0x145a   : > { %v6343_v40 = vpop.permute.xlu1 %6342 }
0x145b   : > { %v6347_v41 = vmax.f32 %v6339_v53, %v6343_v40 }
0x145d   : > { %6382 = vrot.lane.b32.xlu1 %v6347_v41, %s20134_s17  ;;  %6358 = vrot.lane.b32.xlu0 %v6347_v41, %s20132_s26 }
0x1461   : > { %6370 = vrot.lane.b32.xlu0 %v6347_v41, %s20133_s11 }
0x14c7   : > { %v6357_v4 = vpop.permute.xlu0 %6356  ;;  %v6369_v52 = vpop.permute.xlu1 %6368 }
0x14c8   : > { %v6362_v31 = vsub.f32 %v18767_v57, %v6357_v4  ;;  %v6374_v36 = vsub.f32 %v18767_v57, %v6369_v52  ;;  %v6348_v52 = vsub.f32 %v18767_v57, %v6346_v45 }
0x14ca   : > { %v6364_v33 = vmul.f32 1.442695, %v6362_v31  ;;  %v6376_v18 = vmul.f32 1.442695, %v6374_v36  ;;  %v6350_v31 = vmul.f32 1.442695, %v6348_v52  ;;  %v6349_v36 = vsub.f32 %v18773_v3, %v6347_v41 }
0x14cb   : > { %v6381_v54 = vpop.permute.xlu1 %6380 }
0x14cc   : > { %17207 = vpow2.f32 %v6364_v33  ;;  %v6386_v12 = vsub.f32 %v18767_v57, %v6381_v54  ;;  %v6352_v33 = vmul.f32 1.442695, %v6349_v36 }
0x14cd   : > { %17209 = vpow2.f32 %v6376_v18 }
0x14ce   : > { %v6388_v46 = vmul.f32 1.442695, %v6386_v12 }
0x14cf   : > { %v6359_v55 = vpop.permute.xlu0 %6358  ;;  %v6383_v51 = vpop.permute.xlu1 %6382 }
0x14d0   : > { %17211 = vpow2.f32 %v6388_v46  ;;  %v6363_v58 = vsub.f32 %v18773_v3, %v6359_v55  ;;  %v6387_v2 = vsub.f32 %v18773_v3, %v6383_v51 }
0x14d2   : > { %v6366_v21 = vmul.f32 1.442695, %v6363_v58  ;;  %v6390_v25 = vmul.f32 1.442695, %v6387_v2 }
0x14d3   : > { %v6371_v30 = vpop.permute.xlu0 %6370 }
0x14d4   : > { %17213 = vpow2.f32 %v6366_v21  ;;  %v6375_v32 = vsub.f32 %v18773_v3, %v6371_v30 }
0x14d5   : > { %17215 = vpow2.f32 %v6390_v25 }
0x14d6   : > { %v18797_v35 = vpop.eup %17207  ;;  %v6378_v38 = vmul.f32 1.442695, %v6375_v32 }
0x14d7   : > { %v18799_v39 = vpop.eup %17209  ;;  %6394 = vrot.lane.b32.xlu0 %v18797_v35, %s20128_s4 }
0x14d8   : > { %17217 = vpow2.f32 %v6378_v38  ;;  %6404 = vrot.lane.b32.xlu1 %v18799_v39, %s20136_s1 }
0x14d9   : > { %17219 = vpow2.f32 %v6350_v31 }
0x14da   : > { %v18805_v6 = vpop.eup %17211  ;;  %17221 = vpow2.f32 %v6352_v33 }
0x14dc   : > { %6414 = vrot.lane.b32.xlu1 %v18805_v6, %s20129_s5 }
0x14de   : > { %v17214_v53 = vpop.eup %17213 }
0x14df   : > { %v18809_v40 = vpop.eup %17215  ;;  %6396 = vrot.lane.b32.xlu0 %v17214_v53, %s20128_s4 }
0x14e0   : > { %6416 = vrot.lane.b32.xlu1 %v18809_v40, %s20129_s5 }
0x14e2   : > { %v18814_v4 = vpop.eup %17217 }
0x14e3   : > { %6406 = vrot.lane.b32.xlu0 %v18814_v4, %s20136_s1  ;;  %v17220_v18 = vpop.eup %17219 }
0x14e4   : > { %v17222_v21 = vpop.eup %17221 }
0x1549   : > { %v6395_v54 = vpop.permute.xlu0 %6394 }
0x154a   : > { %v6400_v12 = vadd.f32 %v17220_v18, %v6395_v54  ;;  %v6405_v46 = vpop.permute.xlu1 %6404 }
0x154c   : > { %v6410_v55 = vadd.f32 %v6405_v46, %v6400_v12 }
0x154e   : > { %v6415_v51 = vpop.permute.xlu1 %6414 }
0x154f   : > { %v6420_v58 = vadd.f32 %v6415_v51, %v6410_v55 }
0x1551   : > { %17223 = vrcp.f32 %v6420_v58  ;;  %6428 = vrot.lane.b32.xlu0 %v6420_v58, %s20132_s26  ;;  %v6397_v2 = vpop.permute.xlu0 %6396 }
0x1552   : > { %v6401_v25 = vadd.f32 %v17222_v21, %v6397_v2  ;;  %v6417_v30 = vpop.permute.xlu1 %6416 }
0x1555   : > { %v6407_v57 = vpop.permute.xlu0 %6406 }
0x1556   : > { %v6411_v45 = vadd.f32 %v6407_v57, %v6401_v25 }
0x1558   : > { %v6421_v32 = vadd.f32 %v6417_v30, %v6411_v45 }
0x155a   : > { %17225 = vrcp.f32 %v6421_v32  ;;  %6430 = vrot.lane.b32.xlu1 %v6421_v32, %s20132_s26 }
0x155b   : > { %v17224_v3 = vpop.eup %17223 }
0x155c   : > { %v18822_v41 = vmul.f32 %v17224_v3, %v17220_v18 }
0x155e   : > { %13108 = vmatmul.mubr.msk.f32.vlgmr.msra.gmra.mrb[42].mxu1 %vm1146_vm0, %v18822_v41 }
0x155f   : > { %6543 = vmatprep.mubr.f32.mxu1 %v20074_v8  ;;  %16126 = vmatpush3.bf16.msra.mxu1 %v18157_v28 }
0x1560   : > { %16128 = vmatprep.subr.bf16.mxu1 %v18159_v29 }
0x1563   : > { %16130 = vmatpush3.bf16.msra.mxu1 %v18168_v37 }
0x1564   : > { %v17226_v38 = vpop.eup %17225  ;;  %16132 = vmatprep.subr.bf16.mxu1 %v18176_v0 }
0x1565   : > { %v18831_v52 = vmul.f32 %v17226_v38, %v17222_v21 }
0x1567   : > { %13109 = vmatmul.mubr.msk.f32.gmra.mrb[44].mxu1 %vm1146_vm0, %v18831_v52 }
0x1568   : > { %16134 = vmatpush3.bf16.msra.mxu1 %v18180_v1 }
0x1569   : > { %16136 = vmatprep.subr.bf16.mxu1 %v18186_v42 }
0x156c   : > { %16138 = vmatpush3.bf16.msra.mxu1 %v18190_v23 }
0x156d   : > { %16140 = vmatprep.subr.bf16.mxu1 %v18196_v11 }
0x1570   : > { %16142 = vmatpush3.bf16.msra.mxu1 %v18200_v56 }
0x1571   : > { %16144 = vmatprep.subr.bf16.mxu1 %v18206_v59 }
0x1574   : > { %16146 = vmatpush3.bf16.msra.mxu1 %v18210_v63 }
0x1575   : > { %16148 = vmatprep.subr.bf16.mxu1 %v18216_v13 }
0x1578   : > { %16150 = vmatpush3.bf16.msra.mxu1 %v18220_v5 }
0x1579   : > { %16152 = vmatprep.subr.bf16.mxu1 %v18226_v20 }
0x157c   : > { %16154 = vmatpush3.bf16.msra.mxu1 %v18230_v26 }
0x157d   : > { %16192 = vmatprep.subr.bf16.mxu1 %v18107_v22 }
0x15c3   : > { %v6429_v31 = vpop.permute.xlu0 %6428 }
0x15c4   : > { %17227 = vrcp.f32 %v6429_v31 }
0x15cc   : > { %v6431_v36 = vpop.permute.xlu1 %6430 }
0x15cd   : > { %17229 = vrcp.f32 %v6431_v36 }
0x15ce   : > { %v17228_v33 = vpop.eup %17227 }
0x15cf   : > { %v18848_v18 = vmul.f32 %v17228_v33, %v18797_v35 }
0x15d1   : > { %6656 = vrot.lane.b32.xlu0 %v18848_v18, %s20128_s4 }
0x15d5   : > { %6438 = vrot.lane.b32.xlu0 %v6420_v58, %s20133_s11 }
0x15d7   : > { %v17230_v54 = vpop.eup %17229 }
0x15d8   : > { %v18853_v12 = vmul.f32 %v17230_v54, %v17214_v53 }
0x15d9   : > { %6440 = vrot.lane.b32.xlu0 %v6421_v32, %s20133_s11 }
0x15da   : > { %6658 = vrot.lane.b32.xlu1 %v18853_v12, %s20128_s4 }
0x15de   : > { %6448 = vrot.lane.b32.xlu1 %v6420_v58, %s20134_s17 }
0x15e2   : > { %6450 = vrot.lane.b32.xlu1 %v6421_v32, %s20134_s17 }
0x1631   : > { %v6539_v46 = vpop.f32.mrb[42].mxu1 }
0x1632   : > { %v6541_v35 = vpop.f32.mrb[43].mxu1  ;;  %v6550_v51 = vmul.f32 %v6539_v46, %v18671_v19 }
0x1633   : > { %v6551_v53 = vmul.f32 %v6541_v35, %v18667_v14 }
0x163a   : > { %v6545_v55 = vpop.f32.mrb[44].mxu1 }
0x163b   : > { %v6552_v2 = vmul.f32 %v6545_v55, %v18665_v9  ;;  %v6547_v21 = vpop.f32.mrb[45].mxu1 }
0x163c   : > { %v6553_v25 = vmul.f32 %v6547_v21, %v18669_v15 }
0x163d   : > { %v6554_v57 = vadd.f32 %v6552_v2, %v6550_v51 }
0x163e   : > { %v6561_v45 = vadd.f32 %v6553_v25, %v6551_v53 }
0x163f   : > { %v6555_v30 = vrot.slane %v6554_v57, 4 }
0x1640   : > { %v6562_v3 = vrot.slane %v6561_v45, 4 }
0x1641   : > { %v6556_v38 = vadd.f32 %v6555_v30, %v6554_v57 }
0x1642   : > { %v6563_v58 = vadd.f32 %v6562_v3, %v6561_v45 }
0x1643   : > { %v6557_v31 = vrot.slane %v6556_v38, 2  ;;  %v18864_v32 = vpop.permute.xlu0 %6656 }
0x1644   : > { %v6564_v36 = vrot.slane %v6563_v58, 2  ;;  %13110 = vmatmul.mubr.msk.f32.vlgmr.msra.gmra.mrb[64].mxu0 %vm1146_vm0, %v18864_v32 }
0x1645   : > { %v6558_v33 = vadd.f32 %v6557_v31, %v6556_v38  ;;  %6734 = vmatprep.mubr.f32.mxu0 %v20074_v8  ;;  %16162 = vmatpush3.bf16.msra.mxu0 %v18157_v28 }
0x1646   : > { %v6565_v54 = vadd.f32 %v6564_v36, %v6563_v58  ;;  %16164 = vmatprep.subr.bf16.mxu0 %v18159_v29 }
0x1647   : > { %v6559_v46 = vrot.slane %v6558_v33, 1  ;;  %v6439_v35 = vpop.permute.xlu0 %6438 }
0x1648   : > { %17231 = vrcp.f32 %v6439_v35  ;;  %v6566_v55 = vrot.slane %v6565_v54, 1  ;;  %v6638_v35 = vsel %vm1146_vm0, %v18822_v41, 0.0 }
0x1649   : > { %16166 = vmatpush3.bf16.msra.mxu0 %v18168_v37  ;;  %v6560_v2 = vadd.f32 %v6559_v46, %v6558_v33 }
0x164a   : > { %v6567_v51 = vadd.f32 %v6566_v55, %v6565_v54  ;;  %16168 = vmatprep.subr.bf16.mxu0 %v18176_v0 }
0x164b   : > { %v6441_v21 = vpop.permute.xlu0 %6440 }
0x164c   : > { %17233 = vrcp.f32 %v6441_v21  ;;  %v6659_v53 = vpop.permute.xlu1 %6658  ;;  %6632 = vmatprep.mubr.f32.mxu1 %v6567_v51 }
0x164d   : > { %6633 = vmatmul.mubr.f32.vlgmr.msra.gmra.mrb[46].mxu1 %v6560_v2  ;;  %13111 = vmatmul.mubr.msk.f32.gmra.mrb[66].mxu0 %vm1146_vm0, %v6659_v53  ;;  %v6834_v55 = vsel %vm1146_vm0, %v6659_v53, 0.0 }
0x164e   : > { %16194 = vmatpush1.bf16.msra.mxu1 %v18110_v47  ;;  %6921 = vmatprep.mubr.f32.mxu1 %v20074_v8 }
0x164f   : > { %16170 = vmatpush3.bf16.msra.mxu0 %v18180_v1  ;;  %16196 = vmatprep.subr.bf16.mxu1 %v18152_v24 }
0x1650   : > { %v6449_v25 = vpop.permute.xlu1 %6448  ;;  %16172 = vmatprep.subr.bf16.mxu0 %v18186_v42 }
0x1651   : > { %17235 = vrcp.f32 %v6449_v25 }
0x1652   : > { %v17232_v57 = vpop.eup %17231 }
0x1653   : > { %v6445_v45 = vmul.f32 %v17232_v57, %v18799_v39  ;;  %16174 = vmatpush3.bf16.msra.mxu0 %v18190_v23  ;;  %v6458_v39 = vsel %vm1146_vm0, %v18822_v41, %v18848_v18  ;;  %v6459_v18 = vsel %vm1146_vm0, %v18831_v52, %v18853_v12  ;;  %v6641_v12 = vsel %vm1146_vm0, %v18831_v52, 0.0 }
0x1654   : > { %v6451_v30 = vpop.permute.xlu1 %6450  ;;  %16176 = vmatprep.subr.bf16.mxu0 %v18196_v11 }
0x1655   : > { %6849 = vrot.lane.b32.xlu0 %v6445_v45, %s20136_s1  ;;  %17237 = vrcp.f32 %v6451_v30 }
0x1656   : > { %v17234_v3 = vpop.eup %17233 }
0x1657   : > { %v6447_v38 = vmul.f32 %v17234_v3, %v18814_v4  ;;  %16178 = vmatpush3.bf16.msra.mxu0 %v18200_v56  ;;  %v6460_v4 = vsel %vm3376_vm2, %v6458_v39, %v6445_v45 }
0x1658   : > { %16180 = vmatprep.subr.bf16.mxu0 %v18206_v59 }
0x1659   : > { %6851 = vrot.lane.b32.xlu0 %v6447_v38, %s20136_s1  ;;  %v6461_v54 = vsel %vm3376_vm2, %v6459_v18, %v6447_v38 }
0x165b   : > { %v17236_v58 = vpop.eup %17235  ;;  %16182 = vmatpush3.bf16.msra.mxu0 %v18210_v63 }
0x165c   : > { %v6455_v31 = vmul.f32 %v17236_v58, %v18805_v6  ;;  %16184 = vmatprep.subr.bf16.mxu0 %v18216_v13 }
0x165e   : > { %7042 = vrot.lane.b32.xlu1 %v6455_v31, %s20129_s5  ;;  %v18896_v36 = vsel %vm1322_vm1, %v6460_v4, %v6455_v31 }
0x165f   : > { %v17238_v33 = vpop.eup %17237  ;;  %13106 = vst.msk [vmem:[%s18285_s7 + $0x10] sm:$0xff] %vm3381_vm3, %v18896_v36  ;;  %16186 = vmatpush3.bf16.msra.mxu0 %v18220_v5 }
0x1660   : > { %v6457_v6 = vmul.f32 %v17238_v33, %v18809_v40  ;;  %16188 = vmatprep.subr.bf16.mxu0 %v18226_v20  ;;  %v6831_v40 = vsel %vm1146_vm0, %v18864_v32, 0.0 }
0x1662   : > { %7044 = vrot.lane.b32.xlu1 %v6457_v6, %s20129_s5  ;;  %v18910_v46 = vsel %vm1322_vm1, %v6461_v54, %v6457_v6 }
0x1663   : > { %13107 = vst.msk [vmem:[%s18285_s7 + $0x18] sm:$0xff] %vm3381_vm3, %v18910_v46  ;;  %16190 = vmatpush3.bf16.msra.mxu0 %v18230_v26 }
0x1664   : > { %16228 = vmatprep.subr.bf16.mxu0 %v18107_v22 }
0x1678   : > { %6642 = vadd.xlane.f32.xlu0 %v6641_v12 }
0x167c   : > { %6832 = vadd.xlane.f32.xlu0 %v6831_v40 }
0x1686   : > { %6639 = vadd.xlane.f32.xlu1 %v6638_v35 }
0x168a   : > { %6835 = vadd.xlane.f32.xlu1 %v6834_v55 }
0x16c7   : > { %v6850_v51 = vpop.permute.xlu0 %6849 }
0x16c8   : > { %13112 = vmatmul.mubr.msk.f32.vlgmr.msra.gmra.mrb[48].mxu1 %vm1146_vm0, %v6850_v51  ;;  %v7024_v2 = vsel %vm1146_vm0, %v6850_v51, 0.0 }
0x16c9   : > { %7025 = vadd.xlane.f32.xlu0 %v7024_v2  ;;  %6927 = vmatprep.mubr.f32.mxu1 %v20074_v8 }
0x16ca   : > { %16198 = vmatpush3.bf16.msra.mxu1 %v18157_v28 }
0x16cb   : > { %v6852_v52 = vpop.permute.xlu0 %6851  ;;  %16200 = vmatprep.subr.bf16.mxu1 %v18159_v29 }
0x16cc   : > { %13113 = vmatmul.mubr.msk.f32.gmra.mrb[50].mxu1 %vm1146_vm0, %v6852_v52  ;;  %v7027_v41 = vsel %vm1146_vm0, %v6852_v52, 0.0 }
0x16cd   : > { %7028 = vadd.xlane.f32.xlu0 %v7027_v41 }
0x16ce   : > { %16202 = vmatpush3.bf16.msra.mxu1 %v18168_v37 }
0x16cf   : > { %16204 = vmatprep.subr.bf16.mxu1 %v18176_v0 }
0x16d0   : > { %v7043_v32 = vpop.permute.xlu1 %7042 }
0x16d1   : > { %v7217_v21 = vsel %vm1146_vm0, %v7043_v32, 0.0 }
0x16d2   : > { %7218 = vadd.xlane.f32.xlu1 %v7217_v21  ;;  %16206 = vmatpush3.bf16.msra.mxu1 %v18180_v1 }
0x16d3   : > { %16208 = vmatprep.subr.bf16.mxu1 %v18186_v42 }
0x16d4   : > { %v7045_v53 = vpop.permute.xlu1 %7044 }
0x16d5   : > { %v7220_v25 = vsel %vm1146_vm0, %v7045_v53, 0.0 }
0x16d6   : > { %7221 = vadd.xlane.f32.xlu0 %v7220_v25  ;;  %16210 = vmatpush3.bf16.msra.mxu1 %v18190_v23 }
0x16d7   : > { %16212 = vmatprep.subr.bf16.mxu1 %v18196_v11 }
0x16da   : > { %16214 = vmatpush3.bf16.msra.mxu1 %v18200_v56 }
0x16db   : > { %16216 = vmatprep.subr.bf16.mxu1 %v18206_v59 }
0x16de   : > { %16218 = vmatpush3.bf16.msra.mxu1 %v18210_v63 }
0x16df   : > { %16220 = vmatprep.subr.bf16.mxu1 %v18216_v13 }
0x16e2   : > { %16222 = vmatpush3.bf16.msra.mxu1 %v18220_v5 }
0x16e3   : > { %16224 = vmatprep.subr.bf16.mxu1 %v18226_v20 }
0x16e6   : > { %16226 = vmatpush3.bf16.msra.mxu1 %v18230_v26 }
0x16e7   : > { %16263 = vmatprep.subr.bf16.mxu1 %v20072_v43  ;;  %v8365_v43 = vld [vmem:[%s20111_s14 + $0x48] sm:$0xff] }
0x1717   : > { %v6730_v57 = vpop.f32.mrb[64].mxu0 }
0x1718   : > { %v6732_v45 = vpop.f32.mrb[65].mxu0  ;;  %v6741_v38 = vmul.f32 %v6730_v57, %v18671_v19 }
0x1719   : > { %v6742_v4 = vmul.f32 %v6732_v45, %v18667_v14 }
0x1720   : > { %v14096_v30 = vpop.f32.mrb[46].mxu1  ;;  %v6736_v3 = vpop.f32.mrb[66].mxu0 }
0x1721   : > { %v6743_v58 = vmul.f32 %v6736_v3, %v18665_v9  ;;  %v14097_v39 = vpop.f32.mrb[47].mxu1  ;;  %v6738_v31 = vpop.f32.mrb[67].mxu0 }
0x1722   : > { %v18950_v33 = vadd.f32 %v14097_v39, %v14096_v30  ;;  %v6744_v18 = vmul.f32 %v6738_v31, %v18669_v15 }
0x1723   : > { %v6745_v6 = vadd.f32 %v6743_v58, %v6741_v38 }
0x1724   : > { %v6752_v54 = vadd.f32 %v6744_v18, %v6742_v4 }
0x1725   : > { %v6746_v12 = vrot.slane %v6745_v6, 4 }
0x1726   : > { %v6753_v40 = vrot.slane %v6752_v54, 4 }
0x1727   : > { %v6747_v35 = vadd.f32 %v6746_v12, %v6745_v6 }
0x1728   : > { %v6754_v55 = vadd.f32 %v6753_v40, %v6752_v54 }
0x1729   : > { %v6748_v51 = vrot.slane %v6747_v35, 2 }
0x172a   : > { %v6755_v2 = vrot.slane %v6754_v55, 2 }
0x172b   : > { %v6749_v52 = vadd.f32 %v6748_v51, %v6747_v35 }
0x172c   : > { %v6756_v41 = vadd.f32 %v6755_v2, %v6754_v55 }
0x172d   : > { %v6750_v21 = vrot.slane %v6749_v52, 1 }
0x172e   : > { %v6757_v25 = vrot.slane %v6756_v41, 1 }
0x172f   : > { %v6751_v3 = vadd.f32 %v6750_v21, %v6749_v52 }
0x1730   : > { %v6758_v57 = vadd.f32 %v6757_v25, %v6756_v41 }
0x1732   : > { %6823 = vmatprep.mubr.f32.mxu0 %v6758_v57  ;;  %v6640_v57 = vpop.xlane.xlu1 %6639 }
0x1733   : > { %6824 = vmatmul.mubr.f32.vlgmr.msra.gmra.mrb[68].mxu0 %v6751_v3  ;;  %v6643_v3 = vpop.xlane.xlu0 %6642 }
0x1734   : > { %16230 = vmatpush1.bf16.msra.mxu0 %v18110_v47  ;;  %7114 = vmatprep.mubr.f32.mxu0 %v20074_v8 }
0x1735   : > { %16232 = vmatprep.subr.bf16.mxu0 %v18152_v24 }
0x1737   : > { %13114 = vmatmul.mubr.msk.f32.vlgmr.msra.gmra.mrb[70].mxu0 %vm1146_vm0, %v7043_v32 }
0x1738   : > { %7120 = vmatprep.mubr.f32.mxu0 %v20074_v8  ;;  %16234 = vmatpush3.bf16.msra.mxu0 %v18157_v28 }
0x1739   : > { %16236 = vmatprep.subr.bf16.mxu0 %v18159_v29 }
0x173b   : > { %13115 = vmatmul.mubr.msk.f32.gmra.mrb[72].mxu0 %vm1146_vm0, %v7045_v53 }
0x173c   : > { %16238 = vmatpush3.bf16.msra.mxu0 %v18168_v37 }
0x173d   : > { %16240 = vmatprep.subr.bf16.mxu0 %v18176_v0 }
0x1740   : > { %16242 = vmatpush3.bf16.msra.mxu0 %v18180_v1 }
0x1741   : > { %16244 = vmatprep.subr.bf16.mxu0 %v18186_v42 }
0x1744   : > { %16246 = vmatpush3.bf16.msra.mxu0 %v18190_v23 }
0x1745   : > { %16248 = vmatprep.subr.bf16.mxu0 %v18196_v11 }
0x1748   : > { %16250 = vmatpush3.bf16.msra.mxu0 %v18200_v56 }
0x1749   : > { %16252 = vmatprep.subr.bf16.mxu0 %v18206_v59 }
0x174c   : > { %16254 = vmatpush3.bf16.msra.mxu0 %v18210_v63 }
0x174d   : > { %16256 = vmatprep.subr.bf16.mxu0 %v18216_v13 }
0x1750   : > { %16258 = vmatpush3.bf16.msra.mxu0 %v18220_v5 }
0x1751   : > { %16260 = vmatprep.subr.bf16.mxu0 %v18226_v20 }
0x1754   : > { %16262 = vmatpush3.bf16.msra.mxu0 %v18230_v26 }
0x179b   : > { %v6923_v32 = vpop.f32.mrb[48].mxu1 }
0x179c   : > { %v6925_v53 = vpop.f32.mrb[49].mxu1  ;;  %v6934_v30 = vmul.f32 %v6923_v32, %v18671_v19  ;;  %v6836_v32 = vpop.xlane.xlu1 %6835 }
0x179d   : > { %v6935_v39 = vmul.f32 %v6925_v53, %v18667_v14  ;;  %v6833_v53 = vpop.xlane.xlu0 %6832 }
0x179f   : > { %v6929_v45 = vpop.f32.mrb[50].mxu1 }
0x17a0   : > { %v6936_v38 = vmul.f32 %v6929_v45, %v18665_v9  ;;  %v6931_v58 = vpop.f32.mrb[51].mxu1  ;;  %v6644_v45 = vadd.f32 %v6643_v3, %v6640_v57 }
0x17a1   : > { %v6937_v31 = vmul.f32 %v6931_v58, %v18669_v15 }
0x17a2   : > { %v6938_v4 = vadd.f32 %v6936_v38, %v6934_v30  ;;  %v6837_v30 = vadd.f32 %v6836_v32, %v6833_v53  ;;  %v6645_v38 = vrot.slane %v6644_v45, 4 }
0x17a3   : > { %v6945_v18 = vadd.f32 %v6937_v31, %v6935_v39 }
0x17a4   : > { %v6939_v6 = vrot.slane %v6938_v4, 4  ;;  %v6838_v58 = vrot.slane %v6837_v30, 4  ;;  %v6646_v39 = vadd.f32 %v6645_v38, %v6644_v45 }
0x17a5   : > { %v6946_v54 = vrot.slane %v6945_v18, 4 }
0x17a6   : > { %v6940_v12 = vadd.f32 %v6939_v6, %v6938_v4  ;;  %v6839_v31 = vadd.f32 %v6838_v58, %v6837_v30  ;;  %v6647_v4 = vrot.slane %v6646_v39, 2 }
0x17a7   : > { %v6947_v40 = vadd.f32 %v6946_v54, %v6945_v18 }
0x17a8   : > { %v6941_v35 = vrot.slane %v6940_v12, 2  ;;  %v6840_v18 = vrot.slane %v6839_v31, 2  ;;  %v6648_v6 = vadd.f32 %v6647_v4, %v6646_v39 }
0x17a9   : > { %v6948_v55 = vrot.slane %v6947_v40, 2 }
0x17aa   : > { %v6942_v51 = vadd.f32 %v6941_v35, %v6940_v12  ;;  %v6841_v54 = vadd.f32 %v6840_v18, %v6839_v31  ;;  %v6649_v12 = vrot.slane %v6648_v6, 1 }
0x17ab   : > { %v6949_v2 = vadd.f32 %v6948_v55, %v6947_v40 }
0x17ac   : > { %v6943_v52 = vrot.slane %v6942_v51, 1  ;;  %v6842_v40 = vrot.slane %v6841_v54, 1  ;;  %v6650_v35 = vadd.f32 %v6649_v12, %v6648_v6 }
0x17ad   : > { %v6950_v41 = vrot.slane %v6949_v2, 1 }
0x17ae   : > { %v6944_v25 = vadd.f32 %v6943_v52, %v6942_v51  ;;  %v6843_v55 = vadd.f32 %v6842_v40, %v6841_v54  ;;  %v6651_v51 = vadd.f32 1e-06, %v6650_v35 }
0x17af   : > { %v6951_v21 = vadd.f32 %v6950_v41, %v6949_v2 }
0x17b0   : > { %v6844_v2 = vadd.f32 1e-06, %v6843_v55  ;;  %17239 = vrcp.f32 %v6651_v51 }
0x17b1   : > { %7016 = vmatprep.mubr.f32.mxu1 %v6951_v21 }
0x17b2   : > { %7017 = vmatmul.mubr.f32.vlgmr.msra.gmra.mrb[52].mxu1 %v6944_v25  ;;  %17241 = vrcp.f32 %v6844_v2 }
0x17b3   : > { %15101 = vmatprep.mubr.msk.f32.mxu1 %vm17464_vm5, %v20074_v8 }
0x17ba   : > { %v17240_v21 = vpop.eup %17239 }
0x17bb   : > { %v6653_v45 = vmul.f32 %v17240_v21, %v18950_v33 }
0x17bc   : > { %v17242_v57 = vpop.eup %17241 }
0x1806   : > { %v14131_v52 = vpop.f32.mrb[68].mxu0 }
0x1807   : > { %v14132_v41 = vpop.f32.mrb[69].mxu0 }
0x1808   : > { %v14133_v25 = vadd.f32 %v14132_v41, %v14131_v52 }
0x180a   : > { %v6846_v3 = vmul.f32 %v17242_v57, %v14133_v25  ;;  %v7116_v32 = vpop.f32.mrb[70].mxu0 }
0x180b   : > { %v7118_v53 = vpop.f32.mrb[71].mxu0  ;;  %v7127_v39 = vmul.f32 %v7116_v32, %v18671_v19 }
0x180c   : > { %v7234_v30 = vrot.slane %v6846_v3, 7  ;;  %v7128_v18 = vmul.f32 %v7118_v53, %v18667_v14  ;;  %v18987_v14 = vld [vmem:[%s20113_s9] sm:$0xff] }
0x180e   : > { %v7242_v38 = vsel %vm4159_vm4, %v6653_v45, %v7234_v30  ;;  %v7122_v58 = vpop.f32.mrb[72].mxu0 }
0x180f   : > { %v7129_v31 = vmul.f32 %v7122_v58, %v18665_v9  ;;  %v7124_v4 = vpop.f32.mrb[73].mxu0 }
0x1810   : > { %v7130_v6 = vmul.f32 %v7124_v4, %v18669_v15  ;;  %v7026_v15 = vpop.xlane.xlu0 %7025  ;;  %v7246_v4 = vld [vmem:[%s20137_s18 + $0x8] sm:$0xff] }
0x1811   : > { %v7131_v54 = vadd.f32 %v7129_v31, %v7127_v39  ;;  %v7245_v31 = vld [vmem:[%s20137_s18] sm:$0xff] }
0x1812   : > { %v7138_v12 = vadd.f32 %v7130_v6, %v7128_v18  ;;  %v16264_v18 = vpack.c.bf16 %v7246_v4, %v7245_v31 }
0x1813   : > { %v7132_v40 = vrot.slane %v7131_v54, 4 }
0x1814   : > { %v7139_v35 = vrot.slane %v7138_v12, 4  ;;  %v7029_v57 = vpop.xlane.xlu0 %7028  ;;  %16265 = vmatpush3.bf16.msra.mxu1 %v16264_v18 }
0x1815   : > { %v7133_v55 = vadd.f32 %v7132_v40, %v7131_v54  ;;  %v7030_v3 = vadd.f32 %v7029_v57, %v7026_v15  ;;  %v18994_v54 = vld [vmem:[%s17711_s22 + $0x20] sm:$0xff] }
0x1816   : > { %v7140_v33 = vadd.f32 %v7139_v35, %v7138_v12  ;;  %v18997_v12 = vld [vmem:[%s17711_s22 + $0x28] sm:$0xff] }
0x1817   : > { %v7134_v51 = vrot.slane %v7133_v55, 2  ;;  %v7031_v32 = vrot.slane %v7030_v3, 4  ;;  %v16266_v40 = vpack.c.bf16 %v18997_v12, %v18994_v54 }
0x1818   : > { %v7141_v2 = vrot.slane %v7140_v33, 2 }
0x1819   : > { %v7135_v52 = vadd.f32 %v7134_v51, %v7133_v55  ;;  %v7032_v53 = vadd.f32 %v7031_v32, %v7030_v3  ;;  %16267 = vmatprep.subr.bf16.mxu1 %v16266_v40 }
0x181a   : > { %v7142_v41 = vadd.f32 %v7141_v2, %v7140_v33 }
0x181b   : > { %v7136_v21 = vrot.slane %v7135_v52, 1  ;;  %v7033_v45 = vrot.slane %v7032_v53, 2 }
0x181c   : > { %v7143_v19 = vrot.slane %v7142_v41, 1 }
0x181d   : > { %v7137_v25 = vadd.f32 %v7136_v21, %v7135_v52  ;;  %v7034_v30 = vadd.f32 %v7033_v45, %v7032_v53  ;;  %v7222_v21 = vpop.xlane.xlu0 %7221 }
0x181e   : > { %v7144_v9 = vadd.f32 %v7143_v19, %v7142_v41  ;;  %v7219_v19 = vpop.xlane.xlu1 %7218 }
0x181f   : > { %v7035_v58 = vrot.slane %v7034_v30, 1 }
0x1820   : > { %7209 = vmatprep.mubr.f32.mxu0 %v7144_v9  ;;  %v7223_v9 = vadd.f32 %v7222_v21, %v7219_v19  ;;  %v13129_v21 = vld [vmem:[%s17500_s25 + $0x50] sm:$0xff]  ;;  %v13130_v19 = vld [vmem:[%s17500_s25 + $0x58] sm:$0xff] }
0x1821   : > { %7210 = vmatmul.mubr.f32.vlgmr.msra.gmra.mrb[74].mxu0 %v7137_v25  ;;  %v7036_v39 = vadd.f32 %v7035_v58, %v7034_v30 }
0x1822   : > { %15167 = vmatprep.mubr.msk.f32.mxu0 %vm1146_vm0, %v18987_v14  ;;  %v7224_v25 = vrot.slane %v7223_v9, 4 }
0x1823   : > { %v7037_v6 = vadd.f32 1e-06, %v7036_v39 }
0x1824   : > { %v7225_v15 = vadd.f32 %v7224_v25, %v7223_v9  ;;  %v19023_v9 = vld [vmem:[%s20112_s13 + $0x8] sm:$0xff]  ;;  %v7483_v25 = vld [vmem:[%s17500_s25] sm:$0xff] }
0x1825   : > { %17243 = vrcp.f32 %v7037_v6  ;;  %v13125_v6 = vld [vmem:[%s17500_s25 + $0x30] sm:$0xff] }
0x1826   : > { %v7226_v57 = vrot.slane %v7225_v15, 2 }
0x1828   : > { %v7227_v3 = vadd.f32 %v7226_v57, %v7225_v15  ;;  %v7484_v15 = vld [vmem:[%s17500_s25 + $0x8] sm:$0xff] }
0x1829   : > { %v16286_v57 = vpack.c.bf16 %v7484_v15, %v7483_v25 }
0x182a   : > { %v7228_v32 = vrot.slane %v7227_v3, 1 }
0x182c   : > { %v7229_v53 = vadd.f32 %v7228_v32, %v7227_v3  ;;  %v7485_v3 = vld [vmem:[%s17500_s25 + $0x10] sm:$0xff]  ;;  %v7486_v32 = vld [vmem:[%s17500_s25 + $0x18] sm:$0xff] }
0x182e   : > { %v7230_v45 = vadd.f32 1e-06, %v7229_v53  ;;  %v16290_v53 = vpack.c.bf16 %v7486_v32, %v7485_v3  ;;  %v13143_v32 = vld [vmem:[%s17505_s29] ss:$0 sm:$0xff] }
0x182f   : > { %v17244_v51 = vpop.eup %17243 }
0x1830   : > { %17245 = vrcp.f32 %v7230_v45  ;;  %v7487_v45 = vld [vmem:[%s17500_s25 + $0x20] sm:$0xff] }
0x1885   : > { %v14166_v35 = vpop.f32.mrb[52].mxu1 }
0x1886   : > { %v14167_v55 = vpop.f32.mrb[53].mxu1 }
0x1887   : > { %v14168_v33 = vadd.f32 %v14167_v55, %v14166_v35  ;;  %v13126_v35 = vld [vmem:[%s17500_s25 + $0x38] sm:$0xff] }
0x1888   : > { %v16274_v55 = vpack.c.bf16 %v13126_v35, %v13125_v6 }
0x1889   : > { %v7039_v2 = vmul.f32 %v17244_v51, %v14168_v33  ;;  %v13127_v33 = vld [vmem:[%s17500_s25 + $0x40] sm:$0xff]  ;;  %v13128_v51 = vld [vmem:[%s17500_s25 + $0x48] sm:$0xff] }
0x188b   : > { %v7237_v52 = vrot.slane %v7039_v2, 6  ;;  %v19011_v2 = vld [vmem:[%s20113_s9 + $0x8] sm:$0xff] }
0x188d   : > { %v7243_v41 = vsel %vm4161_vm6, %v7242_v38, %v7237_v52  ;;  %v17246_v38 = vpop.eup %17245  ;;  %v19016_v52 = vld [vmem:[%s20112_s13] sm:$0xff] }
0x18f4   : > { %v14201_v30 = vpop.f32.mrb[74].mxu0 }
0x18f5   : > { %v14202_v58 = vpop.f32.mrb[75].mxu0 }
0x18f6   : > { %v14203_v39 = vadd.f32 %v14202_v58, %v14201_v30  ;;  %v7488_v30 = vld [vmem:[%s17500_s25 + $0x28] sm:$0xff] }
0x18f7   : > { %v16294_v58 = vpack.c.bf16 %v7488_v30, %v7487_v45 }
0x18f8   : > { %v7232_v31 = vmul.f32 %v17246_v38, %v14203_v39  ;;  %v13135_v39 = vld [vmem:[%s17500_s25 + $0x60] sm:$0xff]  ;;  %v13136_v38 = vld [vmem:[%s17500_s25 + $0x68] sm:$0xff] }
0x18fa   : > { %v7240_v4 = vrot.slane %v7232_v31, 5  ;;  %v16298_v31 = vpack.c.bf16 %v13136_v38, %v13135_v39 }
0x18fc   : > { %v7244_v18 = vsel %vm4163_vm7, %v7243_v41, %v7240_v4  ;;  %v16278_v41 = vpack.c.bf16 %v13128_v51, %v13127_v33  ;;  %v13116_v4 = vld [vmem:[%s20138_s16] ss:$0 sm:$0xff]  ;;  %v13138_v33 = vld [vmem:[%s17500_s25 + $0x78] sm:$0xff] }
0x18fd   : > { %15102 = vmatmul.mubr.msk.f32.vlgmr.msra.gmra.mrb[54].mxu1 %vm1146_vm0, %v7244_v18 }
0x18fe   : > { %16269 = vmatpush3.bf16.msra.mxu1 %v16266_v40  ;;  %15108 = vmatprep.mubr.msk.f32.mxu1 %vm1146_vm0, %v18987_v14 }
0x18ff   : > { %16271 = vmatprep.subr.bf16.mxu1 %v16266_v40 }
0x1901   : > { %15109 = vmatmul.mubr.msk.f32.vlgmr.msra.gmra.mrb[56].mxu1 %vm1146_vm0, %v19011_v2 }
0x1902   : > { %16273 = vmatpush3.bf16.msra.mxu1 %v16266_v40  ;;  %15115 = vmatprep.mubr.msk.f32.mxu1 %vm1146_vm0, %v19016_v52  ;;  %v16282_v40 = vpack.c.bf16 %v13130_v19, %v13129_v21  ;;  %v13139_v19 = vld [vmem:[%s17500_s25 + $0x80] sm:$0xff] }
0x1903   : > { %16275 = vmatprep.subr.bf16.mxu1 %v16274_v55 }
0x1905   : > { %15116 = vmatmul.mubr.msk.f32.vlgmr.msra.gmra.mrb[58].mxu1 %vm1146_vm0, %v19023_v9 }
0x1906   : > { %16277 = vmatpush3.bf16.msra.mxu1 %v16274_v55  ;;  %15130 = vmatprep.mubr.msk.f32.mxu1 %vm1322_vm1, %v18994_v54  ;;  %v13137_v55 = vld [vmem:[%s17500_s25 + $0x70] sm:$0xff] }
0x1907   : > { %16279 = vmatprep.subr.bf16.mxu1 %v16278_v41  ;;  %v16302_v21 = vpack.c.bf16 %v13138_v33, %v13137_v55  ;;  %v13151_v55 = vld [vmem:[%s20116_s3 + $0x98] sm:$0xff] }
0x190a   : > { %16281 = vmatpush3.bf16.msra.mxu1 %v16278_v41 }
0x190b   : > { %16283 = vmatprep.subr.bf16.mxu1 %v16282_v40 }
0x190e   : > { %16285 = vmatpush3.bf16.msra.mxu1 %v16282_v40  ;;  %v13140_v40 = vld [vmem:[%s17500_s25 + $0x88] sm:$0xff] }
0x190f   : > { %16287 = vmatprep.subr.bf16.mxu1 %v16286_v57  ;;  %v16306_v15 = vpack.c.bf16 %v13140_v40, %v13139_v19  ;;  %v13153_v19 = vld [vmem:[%s20116_s3 + $0xa8] sm:$0xff] }
0x1911   : > { %15131 = vmatmul.mubr.msk.f32.vlgmr.msra.gmra.mrb[60].mxu1 %vm1322_vm1, %v18997_v12 }
0x1912   : > { %16289 = vmatpush3.bf16.msra.mxu1 %v16286_v57 }
0x1913   : > { %16291 = vmatprep.subr.bf16.mxu1 %v16290_v53 }
0x1916   : > { %16293 = vmatpush3.bf16.msra.mxu1 %v16290_v53 }
0x1917   : > { %16295 = vmatprep.subr.bf16.mxu1 %v16294_v58 }
0x191a   : > { %16297 = vmatpush3.bf16.msra.mxu1 %v16294_v58 }
0x191b   : > { %16299 = vmatprep.subr.bf16.mxu1 %v16298_v31 }
0x19d0   : > { %v7323_v18 = vpop.f32.mrb[54].mxu1 }
0x19d1   : > { %v7324_v6 = vadd.f32 %v13116_v4, %v7323_v18  ;;  %v15103_v35 = vpop.f32.mrb[55].mxu1  ;;  %v13148_v4 = vld [vmem:[%s20116_s3 + $0x80] sm:$0xff]  ;;  %v13149_v18 = vld [vmem:[%s20116_s3 + $0x88] sm:$0xff] }
0x19d2   : > { %v13150_v35 = vld [vmem:[%s20116_s3 + $0x90] sm:$0xff] }
0x19d3   : > { %17247 = vtanh.f32 %v7324_v6  ;;  %v16318_v6 = vpack.c.bf16 %v13149_v18, %v13148_v4  ;;  %v16322_v33 = vpack.c.bf16 %v13151_v55, %v13150_v35  ;;  %v13160_v18 = vld [vmem:[%s20116_s3 + $0xe0] sm:$0xff]  ;;  %v13162_v55 = vld [vmem:[%s20116_s3 + $0xf0] sm:$0xff] }
0x19d4   : > { %v19042_v51 = vpop.f32.mrb[56].mxu1 }
0x19d5   : > { %v19044_v41 = vpop.f32.mrb[57].mxu1 }
0x19d6   : > { %15145 = vmatprep.mubr.msk.f32.mxu1 %vm1322_vm1, %v19044_v41 }
0x19d7   : > { %15146 = vmatmul.mubr.msk.f32.vlgmr.msra.gmra.mrb[60].mxu1 %vm1322_vm1, %v19042_v51 }
0x19d8   : > { %16301 = vmatpush3.bf16.msra.mxu1 %v16298_v31  ;;  %v19052_v25 = vpop.f32.mrb[58].mxu1 }
0x19d9   : > { %16303 = vmatprep.subr.bf16.mxu1 %v16302_v21  ;;  %v19054_v57 = vpop.f32.mrb[59].mxu1 }
0x19da   : > { %15160 = vmatprep.mubr.msk.f32.mxu1 %vm1322_vm1, %v19054_v57 }
0x19dc   : > { %16305 = vmatpush3.bf16.msra.mxu1 %v16302_v21  ;;  %v13152_v21 = vld [vmem:[%s20116_s3 + $0xa0] sm:$0xff] }
0x19dd   : > { %v19058_v3 = vpop.eup %17247  ;;  %16307 = vmatprep.subr.bf16.mxu1 %v16306_v15  ;;  %v16326_v40 = vpack.c.bf16 %v13153_v19, %v13152_v21  ;;  %v7907_v19 = vld [vmem:[%s20116_s3] sm:$0xff] }
0x19de   : > { %13118 = vst.msk [vmem:[%s18451_s27 + $0x4] sm:$0xf] %vm4248_vm8, %v19058_v3 }
0x19e0   : > { %16309 = vmatpush3.bf16.msra.mxu1 %v16306_v15  ;;  %v13154_v15 = vld [vmem:[%s20116_s3 + $0xb0] sm:$0xff] }
0x19e3   : > { %15161 = vmatmul.mubr.msk.f32.vlgmr.msra.gmra.mrb[60].mxu1 %vm1322_vm1, %v19052_v25 }
0x19e4   : > { %15286 = vmatprep.mubr.msk.f32.mxu1 %vm1146_vm0, %v18987_v14 }
0x1ab6   : > { %v15162_v53 = vpop.f32.mrb[60].mxu1 }
0x1ab7   : > { %v19068_v45 = vadd.f32 %v15162_v53, %v13143_v32  ;;  %v7735_v30 = vpop.f32.mrb[61].mxu1 }
0x1ab8   : > { %v7753_v58 = vadd.f32 %v13143_v32, %v7735_v30  ;;  %v13155_v32 = vld [vmem:[%s20116_s3 + $0xb8] sm:$0xff]  ;;  %v13157_v30 = vld [vmem:[%s20116_s3 + $0xc8] sm:$0xff] }
0x1ab9   : > { %v7756_v39 = vmax.f32 %v19068_v45, 0.0  ;;  %v16330_v53 = vpack.c.bf16 %v13155_v32, %v13154_v15  ;;  %v13156_v45 = vld [vmem:[%s20116_s3 + $0xc0] sm:$0xff]  ;;  %v7909_v32 = vld [vmem:[%s20116_s3 + $0x10] sm:$0xff] }
0x1aba   : > { %v7755_v38 = vmax.f32 %v7753_v58, 0.0  ;;  %v16334_v58 = vpack.c.bf16 %v13157_v30, %v13156_v45  ;;  %v7911_v30 = vld [vmem:[%s20116_s3 + $0x20] sm:$0xff] }
0x1abc   : > { %v16310_v31 = vpack.c.bf16 %v7756_v39, %v7755_v38 }
0x1abe   : > { %16311 = vmatprep.subr.bf16.mxu0 %v16310_v31 }
0x1abf   : > { %16313 = vmatpush3.bf16.msra.mxu0 %v16310_v31 }
0x1ac0   : > { %16315 = vmatprep.subr.bf16.mxu0 %v16310_v31 }
0x1ac2   : > { %15168 = vmatmul.mubr.msk.f32.vlgmr.msra.gmra.mrb[76].mxu0 %vm1146_vm0, %v19011_v2 }
0x1ac3   : > { %16317 = vmatpush3.bf16.msra.mxu0 %v16310_v31  ;;  %15174 = vmatprep.mubr.msk.f32.mxu0 %vm1146_vm0, %v19016_v52  ;;  %v13158_v31 = vld [vmem:[%s20116_s3 + $0xd0] sm:$0xff] }
0x1ac4   : > { %16319 = vmatprep.subr.bf16.mxu0 %v16318_v6 }
0x1ac6   : > { %15175 = vmatmul.mubr.msk.f32.vlgmr.msra.gmra.mrb[78].mxu0 %vm1146_vm0, %v19023_v9 }
0x1ac7   : > { %16321 = vmatpush3.bf16.msra.mxu0 %v16318_v6  ;;  %15209 = vmatprep.mubr.f32.mxu0 %v7755_v38  ;;  %v13159_v38 = vld [vmem:[%s20116_s3 + $0xd8] sm:$0xff]  ;;  %v13161_v6 = vld [vmem:[%s20116_s3 + $0xe8] sm:$0xff] }
0x1ac8   : > { %16323 = vmatprep.subr.bf16.mxu0 %v16322_v33  ;;  %v16338_v4 = vpack.c.bf16 %v13159_v38, %v13158_v31  ;;  %v16342_v35 = vpack.c.bf16 %v13161_v6, %v13160_v18  ;;  %v7913_v38 = vld [vmem:[%s20116_s3 + $0x30] sm:$0xff]  ;;  %v7915_v6 = vld [vmem:[%s20116_s3 + $0x40] sm:$0xff] }
0x1acb   : > { %16325 = vmatpush3.bf16.msra.mxu0 %v16322_v33  ;;  %v13163_v33 = vld [vmem:[%s20116_s3 + $0xf8] sm:$0xff] }
0x1acc   : > { %16327 = vmatprep.subr.bf16.mxu0 %v16326_v40  ;;  %v16346_v21 = vpack.c.bf16 %v13163_v33, %v13162_v55  ;;  %v7917_v33 = vld [vmem:[%s20116_s3 + $0x50] sm:$0xff] }
0x1acf   : > { %16329 = vmatpush3.bf16.msra.mxu0 %v16326_v40  ;;  %v7908_v40 = vld [vmem:[%s20116_s3 + $0x8] sm:$0xff] }
0x1ad0   : > { %16331 = vmatprep.subr.bf16.mxu0 %v16330_v53  ;;  %v16350_v15 = vpack.c.bf16 %v7908_v40, %v7907_v19  ;;  %v7919_v19 = vld [vmem:[%s20116_s3 + $0x60] sm:$0xff]  ;;  %v7920_v40 = vld [vmem:[%s20116_s3 + $0x68] sm:$0xff] }
0x1ad3   : > { %16333 = vmatpush3.bf16.msra.mxu0 %v16330_v53  ;;  %v7910_v53 = vld [vmem:[%s20116_s3 + $0x18] sm:$0xff] }
0x1ad4   : > { %16335 = vmatprep.subr.bf16.mxu0 %v16334_v58  ;;  %v16354_v45 = vpack.c.bf16 %v7910_v53, %v7909_v32  ;;  %v7921_v32 = vld [vmem:[%s20116_s3 + $0x70] sm:$0xff]  ;;  %v7922_v53 = vld [vmem:[%s20116_s3 + $0x78] sm:$0xff] }
0x1ad7   : > { %16337 = vmatpush3.bf16.msra.mxu0 %v16334_v58  ;;  %v7912_v58 = vld [vmem:[%s20116_s3 + $0x28] sm:$0xff] }
0x1ad8   : > { %16339 = vmatprep.subr.bf16.mxu0 %v16338_v4  ;;  %v16358_v31 = vpack.c.bf16 %v7912_v58, %v7911_v30  ;;  %v13164_v30 = vld [vmem:[%s20116_s3 + $0x100] sm:$0xff]  ;;  %v13165_v58 = vld [vmem:[%s20116_s3 + $0x108] sm:$0xff] }
0x1adb   : > { %16341 = vmatpush3.bf16.msra.mxu0 %v16338_v4  ;;  %v7914_v4 = vld [vmem:[%s20116_s3 + $0x38] sm:$0xff] }
0x1adc   : > { %16343 = vmatprep.subr.bf16.mxu0 %v16342_v35  ;;  %v16362_v18 = vpack.c.bf16 %v7914_v4, %v7913_v38  ;;  %v13166_v38 = vld [vmem:[%s20116_s3 + $0x110] sm:$0xff]  ;;  %v13167_v4 = vld [vmem:[%s20116_s3 + $0x118] sm:$0xff] }
0x1adf   : > { %16345 = vmatpush3.bf16.msra.mxu0 %v16342_v35  ;;  %v7916_v35 = vld [vmem:[%s20116_s3 + $0x48] sm:$0xff] }
0x1ae0   : > { %16347 = vmatprep.subr.bf16.mxu0 %v16346_v21  ;;  %v16366_v55 = vpack.c.bf16 %v7916_v35, %v7915_v6  ;;  %v16386_v35 = vpack.c.bf16 %v13167_v4, %v13166_v38  ;;  %v13176_v4 = vld [vmem:[%s20116_s3 + $0x160] sm:$0xff] }
0x1ae3   : > { %16349 = vmatpush3.bf16.msra.mxu0 %v16346_v21  ;;  %v7918_v21 = vld [vmem:[%s20116_s3 + $0x58] sm:$0xff] }
0x1ae4   : > { %16351 = vmatprep.subr.bf16.mxu0 %v16350_v15 }
0x1ae6   : > { %15210 = vmatmul.mubr.f32.vlgmr.msra.gmra.mrb[80].mxu0 %v7756_v39  ;;  %v16370_v39 = vpack.c.bf16 %v7918_v21, %v7917_v33  ;;  %v13169_v33 = vld [vmem:[%s20116_s3 + $0x128] sm:$0xff] }
0x1ae7   : > { %16353 = vmatpush3.bf16.msra.mxu0 %v16350_v15  ;;  %v16374_v15 = vpack.c.bf16 %v7920_v40, %v7919_v19  ;;  %v13170_v40 = vld [vmem:[%s20116_s3 + $0x130] sm:$0xff] }
0x1ae8   : > { %16355 = vmatprep.subr.bf16.mxu0 %v16354_v45 }
0x1aeb   : > { %16357 = vmatpush3.bf16.msra.mxu0 %v16354_v45  ;;  %v16378_v45 = vpack.c.bf16 %v7922_v53, %v7921_v32  ;;  %v13172_v53 = vld [vmem:[%s20116_s3 + $0x140] sm:$0xff] }
0x1aec   : > { %16359 = vmatprep.subr.bf16.mxu0 %v16358_v31 }
0x1aef   : > { %16361 = vmatpush3.bf16.msra.mxu0 %v16358_v31  ;;  %v16382_v31 = vpack.c.bf16 %v13165_v58, %v13164_v30  ;;  %v13174_v58 = vld [vmem:[%s20116_s3 + $0x150] sm:$0xff] }
0x1af0   : > { %16363 = vmatprep.subr.bf16.mxu0 %v16362_v18 }
0x1af3   : > { %16365 = vmatpush3.bf16.msra.mxu0 %v16362_v18 }
0x1af4   : > { %16367 = vmatprep.subr.bf16.mxu0 %v16366_v55 }
0x1af7   : > { %16369 = vmatpush3.bf16.msra.mxu0 %v16366_v55  ;;  %v13168_v55 = vld [vmem:[%s20116_s3 + $0x120] sm:$0xff] }
0x1af8   : > { %16371 = vmatprep.subr.bf16.mxu0 %v16370_v39 }
0x1afb   : > { %16373 = vmatpush3.bf16.msra.mxu0 %v16370_v39  ;;  %v16390_v39 = vpack.c.bf16 %v13169_v33, %v13168_v55  ;;  %v13179_v55 = vld [vmem:[%s20116_s3 + $0x178] sm:$0xff] }
0x1afc   : > { %16375 = vmatprep.subr.bf16.mxu0 %v16374_v15 }
0x1aff   : > { %16377 = vmatpush3.bf16.msra.mxu0 %v16374_v15  ;;  %v13171_v15 = vld [vmem:[%s20116_s3 + $0x138] sm:$0xff] }
0x1b00   : > { %16379 = vmatprep.subr.bf16.mxu0 %v16378_v45  ;;  %v16394_v32 = vpack.c.bf16 %v13171_v15, %v13170_v40 }
0x1b03   : > { %16381 = vmatpush3.bf16.msra.mxu0 %v16378_v45  ;;  %v13173_v45 = vld [vmem:[%s20116_s3 + $0x148] sm:$0xff] }
0x1b04   : > { %16383 = vmatprep.subr.bf16.mxu0 %v16382_v31  ;;  %v16398_v30 = vpack.c.bf16 %v13173_v45, %v13172_v53 }
0x1b95   : > { %v15169_v18 = vpop.f32.mrb[76].mxu0 }
0x1b96   : > { %v7823_v6 = vpop.f32.mrb[77].mxu0 }
0x1b97   : > { %15244 = vmatprep.mubr.f32.mxu0 %v7823_v6 }
0x1b98   : > { %15245 = vmatmul.mubr.f32.vlgmr.msra.gmra.mrb[80].mxu0 %v15169_v18  ;;  %v13177_v18 = vld [vmem:[%s20116_s3 + $0x168] sm:$0xff] }
0x1b99   : > { %16385 = vmatpush3.bf16.msra.mxu0 %v16382_v31  ;;  %v15176_v21 = vpop.f32.mrb[78].mxu0  ;;  %v13175_v31 = vld [vmem:[%s20116_s3 + $0x158] sm:$0xff]  ;;  %v16406_v6 = vpack.c.bf16 %v13177_v18, %v13176_v4 }
0x1b9a   : > { %16387 = vmatprep.subr.bf16.mxu0 %v16386_v35  ;;  %v7898_v19 = vpop.f32.mrb[79].mxu0  ;;  %v16402_v38 = vpack.c.bf16 %v13175_v31, %v13174_v58 }
0x1b9b   : > { %15279 = vmatprep.mubr.f32.mxu0 %v7898_v19 }
0x1b9d   : > { %16389 = vmatpush3.bf16.msra.mxu0 %v16386_v35  ;;  %v13178_v35 = vld [vmem:[%s20116_s3 + $0x170] sm:$0xff] }
0x1b9e   : > { %16391 = vmatprep.subr.bf16.mxu0 %v16390_v39  ;;  %v16410_v33 = vpack.c.bf16 %v13179_v55, %v13178_v35  ;;  %v13192_v35 = vld [vmem:[%s20111_s14 + $0x78] sm:$0xff] }
0x1ba1   : > { %16393 = vmatpush3.bf16.msra.mxu0 %v16390_v39  ;;  %v13180_v39 = vld [vmem:[%s20114_s8] ss:$0 sm:$0xff]  ;;  %s17465_s8 = smov [#allocation2]  }
0x1ba2   : > { %16395 = vmatprep.subr.bf16.mxu0 %v16394_v32 }
0x1ba5   : > { %16397 = vmatpush3.bf16.msra.mxu0 %v16394_v32 }
0x1ba6   : > { %16399 = vmatprep.subr.bf16.mxu0 %v16398_v30 }
0x1ba9   : > { %16401 = vmatpush3.bf16.msra.mxu0 %v16398_v30 }
0x1baa   : > { %16403 = vmatprep.subr.bf16.mxu0 %v16402_v38 }
0x1bad   : > { %16405 = vmatpush3.bf16.msra.mxu0 %v16402_v38 }
0x1bae   : > { %16407 = vmatprep.subr.bf16.mxu0 %v16406_v6 }
0x1bb1   : > { %16409 = vmatpush3.bf16.msra.mxu0 %v16406_v6  ;;  %v13190_v6 = vld [vmem:[%s20111_s14 + $0x68] sm:$0xff] }
0x1bb2   : > { %16411 = vmatprep.subr.bf16.mxu0 %v16410_v33  ;;  %v16422_v55 = vpack.c.bf16 %v13192_v35, %v13190_v6  ;;  %v13199_v6 = vld [vmem:[%s20111_s14 + $0xb0] sm:$0xff]  ;;  %v8357_v35 = vld [vmem:[%s20111_s14 + $0x8] sm:$0xff] }
0x1bb5   : > { %16413 = vmatpush3.bf16.msra.mxu0 %v16410_v33  ;;  %v13189_v33 = vld [vmem:[%s20111_s14 + $0x60] sm:$0xff] }
0x1bb8   : > { %15280 = vmatmul.mubr.f32.vlgmr.msra.gmra.mrb[80].mxu0 %v15176_v21 }
0x1c8b   : > { %v15281_v19 = vpop.f32.mrb[80].mxu0 }
0x1c8c   : > { %v8190_v40 = vadd.f32 %v15281_v19, %v13180_v39  ;;  %v8171_v15 = vpop.f32.mrb[81].mxu0  ;;  %v13194_v19 = vld [vmem:[%s20111_s14 + $0x88] sm:$0xff] }
0x1c8d   : > { %v8189_v32 = vadd.f32 %v13180_v39, %v8171_v15  ;;  %v13191_v39 = vld [vmem:[%s20111_s14 + $0x70] sm:$0xff] }
0x1c8e   : > { %v13182_v53 = vmul.f32 -1.442695, %v8190_v40  ;;  %v13196_v40 = vld [vmem:[%s20111_s14 + $0x98] sm:$0xff]  ;;  %v16424_v15 = vpack.c.bf16 %v13191_v39, %v13189_v33 }
0x1c8f   : > { %v13181_v45 = vmul.f32 -1.442695, %v8189_v32  ;;  %v16426_v32 = vpack.c.bf16 %v13196_v40, %v13194_v19  ;;  %v8356_v19 = vld [vmem:[%s20111_s14] sm:$0xff]  ;;  %v8358_v40 = vld [vmem:[%s20111_s14 + $0x10] sm:$0xff] }
0x1c90   : > { %17249 = vpow2.f32 %v13182_v53  ;;  %v13193_v53 = vld [vmem:[%s20111_s14 + $0x80] sm:$0xff] }
0x1c91   : > { %17251 = vpow2.f32 %v13181_v45  ;;  %v13195_v45 = vld [vmem:[%s20111_s14 + $0x90] sm:$0xff] }
0x1c9a   : > { %v17250_v30 = vpop.eup %17249 }
0x1c9b   : > { %v17252_v58 = vpop.eup %17251  ;;  %v8198_v31 = vadd.f32 1.0, %v17250_v30  ;;  %v13198_v30 = vld [vmem:[%s20111_s14 + $0xa8] sm:$0xff] }
0x1c9c   : > { %v8197_v38 = vadd.f32 1.0, %v17252_v58  ;;  %v13200_v58 = vld [vmem:[%s20111_s14 + $0xb8] sm:$0xff] }
0x1c9d   : > { %17253 = vrcp.f32 %v8198_v31  ;;  %v16428_v31 = vpack.c.bf16 %v13195_v45, %v13193_v53  ;;  %v8363_v53 = vld [vmem:[%s20111_s14 + $0x38] sm:$0xff] }
0x1c9e   : > { %17255 = vrcp.f32 %v8197_v38  ;;  %v16430_v38 = vpack.c.bf16 %v13200_v58, %v13198_v30  ;;  %v8360_v30 = vld [vmem:[%s20111_s14 + $0x20] sm:$0xff]  ;;  %v8362_v58 = vld [vmem:[%s20111_s14 + $0x30] sm:$0xff] }
0x1ca7   : > { %v19126_v21 = vpop.eup %17253 }
0x1ca8   : > { %v19128_v4 = vpop.eup %17255  ;;  %13184 = vst.msk [vmem:[%s17833_s23 + $0x28] sm:$0xff] %vm1146_vm0, %v19126_v21 }
0x1ca9   : > { %13183 = vst.msk [vmem:[%s17833_s23 + $0x20] sm:$0xff] %vm1146_vm0, %v19128_v4  ;;  %v16414_v18 = vpack.c.bf16 %v19126_v21, %v19128_v4 }
0x1cab   : > { %16415 = vmatprep.subr.bf16.mxu1 %v16414_v18 }
0x1cac   : > { %16417 = vmatpush3.bf16.msra.mxu1 %v16414_v18 }
0x1cad   : > { %16419 = vmatprep.subr.bf16.mxu1 %v16414_v18 }
0x1caf   : > { %15287 = vmatmul.mubr.msk.f32.vlgmr.msra.gmra.mrb[62].mxu1 %vm1146_vm0, %v19011_v2 }
0x1cb0   : > { %16421 = vmatpush3.bf16.msra.mxu1 %v16414_v18  ;;  %15293 = vmatprep.mubr.msk.f32.mxu1 %vm1146_vm0, %v19016_v52  ;;  %v13197_v18 = vld [vmem:[%s20111_s14 + $0xa0] sm:$0xff] }
0x1cb1   : > { %16423 = vmatprep.subr.bf16.mxu1 %v16422_v55  ;;  %v8359_v55 = vld [vmem:[%s20111_s14 + $0x18] sm:$0xff]  ;;  %v16432_v33 = vpack.c.bf16 %v13199_v6, %v13197_v18  ;;  %v8364_v6 = vld [vmem:[%s20111_s14 + $0x40] sm:$0xff] }
0x1cb2   : > { %v16434_v39 = vpack.c.bf16 %v8359_v55, %v8357_v35  ;;  %v8366_v35 = vld [vmem:[%s20111_s14 + $0x50] sm:$0xff]  ;;  %v13206_v55 = vld [vmem:[%s20111_s14 + $0xc8] sm:$0xff] }
0x1cb3   : > { %15294 = vmatmul.mubr.msk.f32.vlgmr.msra.gmra.mrb[64].mxu1 %vm1146_vm0, %v19023_v9 }
0x1cb4   : > { %16425 = vmatpush1.bf16.msra.mxu1 %v16424_v15  ;;  %8444 = vmatprep.mubr.f32.mxu1 %v20074_v8  ;;  %v8361_v15 = vld [vmem:[%s20111_s14 + $0x28] sm:$0xff]  ;;  %v8367_v8 = vld [vmem:[%s20111_s14 + $0x58] sm:$0xff] }
0x1cb5   : > { %16427 = vmatprep.subr.bf16.mxu1 %v16426_v32  ;;  %v16436_v32 = vpack.c.bf16 %v8358_v40, %v8356_v19  ;;  %v16438_v45 = vpack.c.bf16 %v8363_v53, %v8361_v15  ;;  %v16442_v18 = vpack.c.bf16 %v8367_v8, %v8365_v43  ;;  %v13205_v19 = vld [vmem:[%s20111_s14 + $0xc0] sm:$0xff]  ;;  %v13207_v40 = vld [vmem:[%s20111_s14 + $0xd0] sm:$0xff]  ;;  %v13210_v8 = vld [vmem:[%s20111_s14 + $0xe8] sm:$0xff] }
0x1cb6   : > { %v13212_v43 = vld [vmem:[%s20111_s14 + $0xf8] sm:$0xff]  ;;  %v16448_v15 = vpack.c.bf16 %v13207_v40, %v13205_v19  ;;  %v13209_v53 = vld [vmem:[%s20111_s14 + $0xe0] sm:$0xff]  ;;  %v8628_v19 = vld [vmem:[%s17525_s19 + $0x8] sm:$0xff] }
0x1cb7   : > { %v8630_v40 = vld [vmem:[%s17525_s19 + $0x18] sm:$0xff] }
0x1cb8   : > { %16429 = vmatpush1.bf16.msra.mxu1 %v16428_v31  ;;  %v16440_v31 = vpack.c.bf16 %v8362_v58, %v8360_v30  ;;  %v13216_v30 = vld [vmem:[%s20111_s14 + $0x118] sm:$0xff] }
0x1cb9   : > { %16431 = vmatprep.subr.bf16.mxu1 %v16430_v38  ;;  %v20140_v38 = vmov 0.0  }
0x1cbc   : > { %16433 = vmatpush1.bf16.msra.mxu1 %v16432_v33  ;;  %v13208_v33 = vld [vmem:[%s20111_s14 + $0xd8] sm:$0xff] }
0x1cbd   : > { %16435 = vmatprep.subr.bf16.mxu1 %v16434_v39  ;;  %v16446_v39 = vpack.c.bf16 %v13208_v33, %v13206_v55  ;;  %v13222_v55 = vld [vmem:[%s17525_s19 + $0x38] sm:$0xff] }
0x1cbf   : > { %13201 = vmatmul.mubr.msk.f32.vlgmr.msra.gmra.mrb[66].mxu1 %vm1322_vm1, %v18994_v54  ;;  %v16444_v54 = vpack.c.bf16 %v8366_v35, %v8364_v6  ;;  %v13215_v6 = vld [vmem:[%s20111_s14 + $0x110] sm:$0xff]  ;;  %v13220_v35 = vld [vmem:[%s17525_s19 + $0x28] sm:$0xff] }
0x1cc0   : > { %16437 = vmatpush1.bf16.msra.mxu1 %v16436_v32  ;;  %8450 = vmatprep.mubr.f32.mxu1 %v20140_v38  ;;  %v13211_v32 = vld [vmem:[%s20111_s14 + $0xf0] sm:$0xff] }
0x1cc1   : > { %16439 = vmatprep.subr.bf16.mxu1 %v16438_v45  ;;  %v13214_v45 = vld [vmem:[%s20111_s14 + $0x108] sm:$0xff]  ;;  %v16452_v58 = vpack.c.bf16 %v13211_v32, %v13209_v53  ;;  %v13230_v53 = vld [vmem:[%s17525_s19 + $0x58] sm:$0xff] }
0x1cc3   : > { %13202 = vmatmul.mubr.msk.f32.gmra.mrb[68].mxu1 %vm1322_vm1, %v18997_v12  ;;  %v16450_v12 = vpack.c.bf16 %v13212_v43, %v13210_v8  ;;  %v16462_v43 = vpack.c.bf16 %v8630_v40, %v8628_v19  ;;  %v9072_v40 = vld [vmem:[%s17535_s30 + $0x10] sm:$0xff] }
0x1cc4   : > { %16441 = vmatpush1.bf16.msra.mxu1 %v16440_v31  ;;  %8521 = vmatprep.mubr.f32.mxu1 %v20140_v38  ;;  %v16454_v31 = vpack.c.bf16 %v13216_v30, %v13214_v45  ;;  %v13227_v45 = vld [vmem:[%s17525_s19 + $0x40] sm:$0xff] }
0x1cc5   : > { %16443 = vmatprep.subr.bf16.mxu1 %v16442_v18  ;;  %v13213_v18 = vld [vmem:[%s20111_s14 + $0x100] sm:$0xff] }
0x1cc6   : > { %v16456_v33 = vpack.c.bf16 %v13215_v6, %v13213_v18  ;;  %v9086_v18 = vld [vmem:[%s17535_s30 + $0x80] sm:$0xff]  ;;  %v9087_v6 = vld [vmem:[%s17535_s30 + $0x88] sm:$0xff] }
0x1cc8   : > { %16445 = vmatpush1.bf16.msra.mxu1 %v16444_v54  ;;  %v13219_v54 = vld [vmem:[%s17525_s19 + $0x20] sm:$0xff] }
0x1cc9   : > { %16447 = vmatprep.subr.bf16.mxu1 %v16446_v39  ;;  %v13221_v39 = vld [vmem:[%s17525_s19 + $0x30] sm:$0xff] }
0x1cca   : > { %v16460_v8 = vpack.c.bf16 %v13221_v39, %v13219_v54  ;;  %v9089_v54 = vld [vmem:[%s17535_s30 + $0x98] sm:$0xff] }
0x1ccb   : > { %13203 = vmatmul.mubr.msk.f32.vlgmr.msra.gmra.mrb[66].mxu1 %vm1322_vm1, %v19044_v41  ;;  %v16458_v41 = vpack.c.bf16 %v13222_v55, %v13220_v35  ;;  %v9070_v35 = vld [vmem:[%s17535_s30] sm:$0xff]  ;;  %v16510_v55 = vpack.c.bf16 %v9087_v6, %v9086_v18 }
0x1ccc   : > { %16449 = vmatpush1.bf16.msra.mxu1 %v16448_v15  ;;  %8527 = vmatprep.mubr.f32.mxu1 %v20140_v38  ;;  %v8629_v15 = vld [vmem:[%s17525_s19 + $0x10] sm:$0xff] }
0x1ccd   : > { %16451 = vmatprep.subr.bf16.mxu1 %v16450_v12  ;;  %16511 = vmatprep.subr.bf16.mxu0 %v16510_v55  ;;  %v9079_v55 = vld [vmem:[%s17535_s30 + $0x48] sm:$0xff] }
0x1ccf   : > { %13204 = vmatmul.mubr.msk.f32.gmra.mrb[68].mxu1 %vm1322_vm1, %v19042_v51  ;;  %v8627_v51 = vld [vmem:[%s17525_s19] sm:$0xff] }
0x1cd0   : > { %16453 = vmatpush1.bf16.msra.mxu1 %v16452_v58  ;;  %8610 = vmatprep.mubr.f32.mxu1 %v20140_v38  ;;  %v16464_v12 = vpack.c.bf16 %v8629_v15, %v8627_v51  ;;  %v9091_v51 = vld [vmem:[%s17535_s30 + $0xa8] sm:$0xff] }
0x1cd1   : > { %16455 = vmatprep.subr.bf16.mxu1 %v16454_v31 }
0x1cd4   : > { %16457 = vmatpush1.bf16.msra.mxu1 %v16456_v33  ;;  %v9071_v33 = vld [vmem:[%s17535_s30 + $0x8] sm:$0xff] }
0x1cd5   : > { %16459 = vmatprep.subr.bf16.mxu1 %v16458_v41  ;;  %v9088_v41 = vld [vmem:[%s17535_s30 + $0x90] sm:$0xff]  ;;  %v16512_v39 = vpack.c.bf16 %v9071_v33, %v9070_v35  ;;  %v9078_v35 = vld [vmem:[%s17535_s30 + $0x40] sm:$0xff] }
0x1cd6   : > { %v16514_v19 = vpack.c.bf16 %v9089_v54, %v9088_v41  ;;  %v9096_v33 = vld [vmem:[%s17535_s30 + $0xd0] sm:$0xff]  ;;  %v9097_v41 = vld [vmem:[%s17535_s30 + $0xd8] sm:$0xff]  ;;  %v16528_v54 = vpack.c.bf16 %v9079_v55, %v9078_v35 }
0x1cd7   : > { %13217 = vmatmul.mubr.msk.f32.vlgmr.msra.gmra.mrb[66].mxu1 %vm1322_vm1, %v19054_v57  ;;  %v13228_v57 = vld [vmem:[%s17525_s19 + $0x48] sm:$0xff]  ;;  %16513 = vmatpush3.bf16.msra.mxu0 %v16512_v39  ;;  %v16530_v39 = vpack.c.bf16 %v9097_v41, %v9096_v33 }
0x1cd8   : > { %8616 = vmatprep.mubr.f32.mxu1 %v20140_v38  ;;  %16461 = vmatpush1.bf16.msra.mxu1 %v16460_v8  ;;  %v16466_v32 = vpack.c.bf16 %v13230_v53, %v13228_v57  ;;  %v9073_v8 = vld [vmem:[%s17535_s30 + $0x18] sm:$0xff]  ;;  %v9074_v57 = vld [vmem:[%s17535_s30 + $0x20] sm:$0xff]  ;;  %v9075_v53 = vld [vmem:[%s17535_s30 + $0x28] sm:$0xff] }
0x1cd9   : > { %16463 = vmatprep.subr.bf16.mxu1 %v16462_v43  ;;  %v9090_v43 = vld [vmem:[%s17535_s30 + $0xa0] sm:$0xff]  ;;  %v16516_v15 = vpack.c.bf16 %v9073_v8, %v9072_v40  ;;  %16515 = vmatprep.subr.bf16.mxu0 %v16514_v19  ;;  %v9080_v19 = vld [vmem:[%s17535_s30 + $0x50] sm:$0xff]  ;;  %v9081_v40 = vld [vmem:[%s17535_s30 + $0x58] sm:$0xff] }
0x1cda   : > { %v9098_v8 = vld [vmem:[%s17535_s30 + $0xe0] sm:$0xff] }
0x1cdb   : > { %13218 = vmatmul.mubr.msk.f32.gmra.mrb[68].mxu1 %vm1322_vm1, %v19052_v25  ;;  %v13229_v25 = vld [vmem:[%s17525_s19 + $0x50] sm:$0xff]  ;;  %16517 = vmatpush3.bf16.msra.mxu0 %v16516_v15 }
0x1cdc   : > { %8705 = vmatprep.mubr.f32.mxu1 %v20140_v38  ;;  %v16468_v30 = vpack.c.bf16 %v13229_v25, %v13227_v45  ;;  %v9093_v45 = vld [vmem:[%s17535_s30 + $0xb8] sm:$0xff]  ;;  %v16520_v25 = vpack.c.bf16 %v9075_v53, %v9074_v57  ;;  %v9083_v57 = vld [vmem:[%s17535_s30 + $0x68] sm:$0xff]  ;;  %v9100_v53 = vld [vmem:[%s17535_s30 + $0xf0] sm:$0xff] }
0x1cdf   : > { %13223 = vmatmul.mubr.msk.f32.vlgmr.msra.gmra.mrb[66].mxu1 %vm1146_vm0, %v19128_v4 }
0x1ce0   : > { %8711 = vmatprep.mubr.f32.mxu1 %v20140_v38  ;;  %16465 = vmatpush1.bf16.msra.mxu1 %v16464_v12  ;;  %v16518_v12 = vpack.c.bf16 %v9091_v51, %v9090_v43  ;;  %v9099_v43 = vld [vmem:[%s17535_s30 + $0xe8] sm:$0xff]  ;;  %v16532_v51 = vpack.c.bf16 %v9081_v40, %v9080_v19 }
0x1ce1   : > { %16467 = vmatprep.subr.bf16.mxu1 %v16466_v32  ;;  %v9092_v32 = vld [vmem:[%s17535_s30 + $0xb0] sm:$0xff]  ;;  %v16534_v15 = vpack.c.bf16 %v9099_v43, %v9098_v8 }
0x1ce2   : > { %16519 = vmatprep.subr.bf16.mxu0 %v16518_v12  ;;  %v9082_v12 = vld [vmem:[%s17535_s30 + $0x60] sm:$0xff] }
0x1ce3   : > { %13224 = vmatmul.mubr.msk.f32.gmra.mrb[68].mxu1 %vm1146_vm0, %v19126_v21  ;;  %16521 = vmatpush3.bf16.msra.mxu0 %v16520_v25 }
0x1ce4   : > { %8788 = vmatprep.mubr.f32.mxu1 %v20140_v38 }
0x1d82   : > { %v15288_v58 = vpop.f32.mrb[62].mxu1 }
0x1d83   : > { %v8272_v4 = vpop.f32.mrb[63].mxu1 }
0x1d84   : > { %13225 = vmatmul.mubr.msk.f32.vlgmr.msra.gmra.mrb[66].mxu1 %vm1146_vm0, %v8272_v4  ;;  %v9077_v4 = vld [vmem:[%s17535_s30 + $0x38] sm:$0xff] }
0x1d85   : > { %8794 = vmatprep.mubr.f32.mxu1 %v20140_v38  ;;  %16469 = vmatpush1.bf16.msra.mxu1 %v16468_v30  ;;  %v16522_v30 = vpack.c.bf16 %v9093_v45, %v9092_v32  ;;  %v9101_v32 = vld [vmem:[%s17535_s30 + $0xf8] sm:$0xff]  ;;  %v16536_v45 = vpack.c.bf16 %v9083_v57, %v9082_v12  ;;  %v13237_v57 = vld [vmem:[%s17535_s30 + $0x100] sm:$0xff] }
0x1d86   : > { %v15295_v21 = vpop.f32.mrb[64].mxu1  ;;  %v16538_v25 = vpack.c.bf16 %v9101_v32, %v9100_v53  ;;  %v13238_v53 = vld [vmem:[%s17535_s30 + $0x108] sm:$0xff]  ;;  %v13255_v32 = vld [vmem:[%s17535_s30 + $0x190] sm:$0xff] }
0x1d87   : > { %v8347_v31 = vpop.f32.mrb[65].mxu1  ;;  %16523 = vmatprep.subr.bf16.mxu0 %v16522_v30  ;;  %v8896_v30 = vld [vmem:[%s17530_s24] sm:$0x3] }
0x1d88   : > { %13226 = vmatmul.mubr.msk.f32.gmra.mrb[68].mxu1 %vm1146_vm0, %v15288_v58  ;;  %v9076_v58 = vld [vmem:[%s17535_s30 + $0x30] sm:$0xff] }
0x1d89   : > { %8875 = vmatprep.mubr.f32.mxu1 %v20140_v38  ;;  %v16524_v18 = vpack.c.bf16 %v9077_v4, %v9076_v58  ;;  %v8905_v4 = vrot.slane %v8896_v30, %v17934_v48 }
0x1d8b   : > { %16525 = vmatpush3.bf16.msra.mxu0 %v16524_v18 }
0x1d8c   : > { %13231 = vmatmul.mubr.msk.f32.vlgmr.msra.gmra.mrb[66].mxu1 %vm1146_vm0, %v8347_v31  ;;  %v9095_v31 = vld [vmem:[%s17535_s30 + $0xc8] sm:$0xff] }
0x1d8d   : > { %8881 = vmatprep.mubr.f32.mxu1 %v20140_v38 }
0x1d90   : > { %13232 = vmatmul.mubr.msk.f32.gmra.mrb[68].mxu1 %vm1146_vm0, %v15295_v21  ;;  %v9094_v21 = vld [vmem:[%s17535_s30 + $0xc0] sm:$0xff] }
0x1d91   : > { %8980 = vmatprep.mubr.f32.mxu1 %v20140_v38  ;;  %v16526_v6 = vpack.c.bf16 %v9095_v31, %v9094_v21  ;;  %v8901_v21 = vrot.slane %v8896_v30, %v17937_v50 }
0x1d93   : > { %16527 = vmatprep.subr.bf16.mxu0 %v16526_v6 }
0x1d94   : > { %16529 = vmatpush3.bf16.msra.mxu0 %v16528_v54 }
0x1d95   : > { %16531 = vmatprep.subr.bf16.mxu0 %v16530_v39 }
0x1d98   : > { %16533 = vmatpush3.bf16.msra.mxu0 %v16532_v51  ;;  %v13253_v51 = vld [vmem:[%s17535_s30 + $0x180] sm:$0xff] }
0x1d99   : > { %16535 = vmatprep.subr.bf16.mxu0 %v16534_v15  ;;  %v13254_v15 = vld [vmem:[%s17535_s30 + $0x188] sm:$0xff] }
0x1d9a   : > { %v16478_v12 = vpack.c.bf16 %v13254_v15, %v13253_v51  ;;  %v13262_v51 = vld [vmem:[%s17535_s30 + $0x1c8] sm:$0xff] }
0x1d9c   : > { %16537 = vmatpush3.bf16.msra.mxu0 %v16536_v45  ;;  %v13256_v45 = vld [vmem:[%s17535_s30 + $0x198] sm:$0xff] }
0x1d9d   : > { %16539 = vmatprep.subr.bf16.mxu0 %v16538_v25  ;;  %v16480_v25 = vpack.c.bf16 %v13238_v53, %v13237_v57  ;;  %v16482_v30 = vpack.c.bf16 %v13256_v45, %v13255_v32  ;;  %v13246_v57 = vld [vmem:[%s17535_s30 + $0x148] sm:$0xff]  ;;  %v13263_v53 = vld [vmem:[%s17535_s30 + $0x1d0] sm:$0xff]  ;;  %v13264_v32 = vld [vmem:[%s17535_s30 + $0x1d8] sm:$0xff] }
0x1e5f   : > { %v8877_v58 = vpop.f32.mrb[66].mxu1 }
0x1e60   : > { %v8879_v31 = vpop.f32.mrb[67].mxu1  ;;  %v8908_v35 = vadd.f32 %v8901_v21, %v8877_v58  ;;  %v13240_v58 = vld [vmem:[%s17535_s30 + $0x118] sm:$0xff] }
0x1e61   : > { %v8909_v18 = vadd.f32 %v8905_v4, %v8879_v31 }
0x1e62   : > { %v19264_v40 = vmax.f32 %v8908_v35, 0.0  ;;  %v13259_v35 = vld [vmem:[%s17535_s30 + $0x1b0] sm:$0xff] }
0x1e63   : > { %v8883_v6 = vpop.f32.mrb[68].mxu1  ;;  %v19260_v39 = vmax.f32 %v8909_v18, 0.0  ;;  %v13241_v18 = vld [vmem:[%s17535_s30 + $0x120] sm:$0xff] }
0x1e64   : > { %v8910_v55 = vadd.f32 %v8901_v21, %v8883_v6  ;;  %v8885_v33 = vpop.f32.mrb[69].mxu1  ;;  %v13258_v21 = vld [vmem:[%s17535_s30 + $0x1a8] sm:$0xff] }
0x1e65   : > { %v8911_v41 = vadd.f32 %v8905_v4, %v8885_v33  ;;  %v13257_v4 = vld [vmem:[%s17535_s30 + $0x1a0] sm:$0xff]  ;;  %v13242_v6 = vld [vmem:[%s17535_s30 + $0x128] sm:$0xff] }
0x1e66   : > { %v19258_v54 = vmax.f32 %v8910_v55, 0.0  ;;  %v16486_v31 = vpack.c.bf16 %v13258_v21, %v13257_v4  ;;  %v13260_v55 = vld [vmem:[%s17535_s30 + $0x1b8] sm:$0xff]  ;;  %v13266_v4 = vld [vmem:[%s17535_s30 + $0x1e8] sm:$0xff] }
0x1e67   : > { %v19262_v19 = vmax.f32 %v8911_v41, 0.0  ;;  %v16490_v33 = vpack.c.bf16 %v13260_v55, %v13259_v35  ;;  %v13243_v41 = vld [vmem:[%s17535_s30 + $0x130] sm:$0xff]  ;;  %v13268_v35 = vld [vmem:[%s17535_s30 + $0x1f8] sm:$0xff] }
0x1e68   : > { %v16472_v43 = vpack.c.bf16 %v19258_v54, %v19264_v40 }
0x1e69   : > { %v16470_v8 = vpack.c.bf16 %v19262_v19, %v19260_v39 }
0x1e6b   : > { %16471 = vmatprep.subr.bf16.mxu1 %v16470_v8 }
0x1e6c   : > { %16473 = vmatpush1.bf16.msra.mxu1 %v16472_v43 }
0x1e6d   : > { %16475 = vmatprep.subr.bf16.mxu1 %v16470_v8  ;;  %v13244_v8 = vld [vmem:[%s17535_s30 + $0x138] sm:$0xff] }
0x1e6e   : > { %v16492_v15 = vpack.c.bf16 %v13244_v8, %v13243_v41  ;;  %v13252_v41 = vld [vmem:[%s17535_s30 + $0x178] sm:$0xff]  ;;  %v13285_v8 = vld [vmem:[%s17535_s30 + $0x280] sm:$0xff] }
0x1e6f   : > { %13233 = vmatmul.mubr.msk.f32.vlgmr.msra.gmra.mrb[70].mxu1 %vm1146_vm0, %v18987_v14  ;;  %v13239_v14 = vld [vmem:[%s17535_s30 + $0x110] sm:$0xff] }
0x1e70   : > { %16477 = vmatpush1.bf16.msra.mxu1 %v16472_v43  ;;  %8986 = vmatprep.mubr.f32.mxu1 %v20140_v38  ;;  %v13261_v43 = vld [vmem:[%s17535_s30 + $0x1c0] sm:$0xff] }
0x1e71   : > { %16479 = vmatprep.subr.bf16.mxu1 %v16478_v12  ;;  %v13245_v12 = vld [vmem:[%s17535_s30 + $0x140] sm:$0xff] }
0x1e72   : > { %v16496_v45 = vpack.c.bf16 %v13246_v57, %v13245_v12  ;;  %v13270_v12 = vld [vmem:[%s17535_s30 + $0x208] sm:$0xff]  ;;  %v13287_v57 = vld [vmem:[%s17535_s30 + $0x290] sm:$0xff] }
0x1e73   : > { %13234 = vmatmul.mubr.msk.f32.gmra.mrb[72].mxu1 %vm1146_vm0, %v19011_v2  ;;  %v16484_v2 = vpack.c.bf16 %v13240_v58, %v13239_v14  ;;  %v13248_v14 = vld [vmem:[%s17535_s30 + $0x158] sm:$0xff]  ;;  %v13265_v58 = vld [vmem:[%s17535_s30 + $0x1e0] sm:$0xff] }
0x1e74   : > { %9057 = vmatprep.mubr.f32.mxu1 %v20140_v38 }
0x1e77   : > { %13235 = vmatmul.mubr.msk.f32.vlgmr.msra.gmra.mrb[74].mxu1 %vm1146_vm0, %v19016_v52  ;;  %v16488_v52 = vpack.c.bf16 %v13242_v6, %v13241_v18  ;;  %v13250_v18 = vld [vmem:[%s17535_s30 + $0x168] sm:$0xff]  ;;  %v13267_v6 = vld [vmem:[%s17535_s30 + $0x1f0] sm:$0xff] }
0x1e78   : > { %16481 = vmatpush3.bf16.msra.mxu1 %v16480_v25  ;;  %9063 = vmatprep.mubr.f32.mxu1 %v20140_v38  ;;  %v16498_v25 = vpack.c.bf16 %v13264_v32, %v13263_v53  ;;  %v13288_v53 = vld [vmem:[%s17535_s30 + $0x298] sm:$0xff] }
0x1e79   : > { %16483 = vmatprep.subr.bf16.mxu1 %v16482_v30  ;;  %v13247_v30 = vld [vmem:[%s17535_s30 + $0x150] sm:$0xff] }
0x1e7a   : > { %v16500_v21 = vpack.c.bf16 %v13248_v14, %v13247_v30  ;;  %v13272_v30 = vld [vmem:[%s17535_s30 + $0x218] sm:$0xff]  ;;  %v13289_v14 = vld [vmem:[%s17535_s30 + $0x2a0] sm:$0xff] }
0x1e7b   : > { %13236 = vmatmul.mubr.msk.f32.gmra.mrb[76].mxu1 %vm1146_vm0, %v19023_v9  ;;  %v16494_v9 = vpack.c.bf16 %v13262_v51, %v13261_v43  ;;  %v13286_v43 = vld [vmem:[%s17535_s30 + $0x288] sm:$0xff] }
0x1e7c   : > { %16485 = vmatpush3.bf16.msra.mxu1 %v16484_v2  ;;  %9198 = vmatprep.mubr.f32.mxu1 %v19260_v39  ;;  %v16502_v2 = vpack.c.bf16 %v13266_v4, %v13265_v58  ;;  %v13290_v58 = vld [vmem:[%s17535_s30 + $0x2a8] sm:$0xff] }
0x1e7d   : > { %16487 = vmatprep.subr.bf16.mxu1 %v16486_v31  ;;  %v13249_v31 = vld [vmem:[%s17535_s30 + $0x160] sm:$0xff] }
0x1e7e   : > { %v16504_v55 = vpack.c.bf16 %v13250_v18, %v13249_v31  ;;  %v13274_v31 = vld [vmem:[%s17535_s30 + $0x228] sm:$0xff]  ;;  %v13291_v18 = vld [vmem:[%s17535_s30 + $0x2b0] sm:$0xff] }
0x1e80   : > { %16489 = vmatpush3.bf16.msra.mxu1 %v16488_v52  ;;  %v16506_v52 = vpack.c.bf16 %v13268_v35, %v13267_v6  ;;  %v13292_v6 = vld [vmem:[%s17535_s30 + $0x2b8] sm:$0xff] }
0x1e81   : > { %16491 = vmatprep.subr.bf16.mxu1 %v16490_v33  ;;  %v13251_v33 = vld [vmem:[%s17535_s30 + $0x170] sm:$0xff] }
0x1e82   : > { %v16508_v51 = vpack.c.bf16 %v13252_v41, %v13251_v33  ;;  %v13276_v33 = vld [vmem:[%s17535_s30 + $0x238] sm:$0xff]  ;;  %v13293_v41 = vld [vmem:[%s17535_s30 + $0x2c0] sm:$0xff] }
0x1e84   : > { %16493 = vmatpush3.bf16.msra.mxu1 %v16492_v15  ;;  %v16542_v15 = vpack.c.bf16 %v13286_v43, %v13285_v8  ;;  %v13294_v8 = vld [vmem:[%s17535_s30 + $0x2c8] sm:$0xff] }
0x1e85   : > { %16495 = vmatprep.subr.bf16.mxu1 %v16494_v9  ;;  %v13269_v9 = vld [vmem:[%s17535_s30 + $0x200] sm:$0xff] }
0x1e86   : > { %v16544_v32 = vpack.c.bf16 %v13270_v12, %v13269_v9  ;;  %v13278_v9 = vld [vmem:[%s17535_s30 + $0x248] sm:$0xff]  ;;  %v13295_v12 = vld [vmem:[%s17535_s30 + $0x2d0] sm:$0xff] }
0x1e88   : > { %16497 = vmatpush3.bf16.msra.mxu1 %v16496_v45  ;;  %v16546_v45 = vpack.c.bf16 %v13288_v53, %v13287_v57  ;;  %v13296_v57 = vld [vmem:[%s17535_s30 + $0x2d8] sm:$0xff] }
0x1e89   : > { %16499 = vmatprep.subr.bf16.mxu1 %v16498_v25  ;;  %v13271_v25 = vld [vmem:[%s17535_s30 + $0x210] sm:$0xff] }
0x1e8a   : > { %v16548_v4 = vpack.c.bf16 %v13272_v30, %v13271_v25  ;;  %v9085_v25 = vld [vmem:[%s17535_s30 + $0x78] sm:$0xff]  ;;  %v13279_v30 = vld [vmem:[%s17535_s30 + $0x250] sm:$0xff] }
0x1e8c   : > { %16501 = vmatpush3.bf16.msra.mxu1 %v16500_v21  ;;  %v16550_v21 = vpack.c.bf16 %v13290_v58, %v13289_v14  ;;  %v13280_v58 = vld [vmem:[%s17535_s30 + $0x258] sm:$0xff] }
0x1e8d   : > { %16503 = vmatprep.subr.bf16.mxu1 %v16502_v2  ;;  %v13273_v2 = vld [vmem:[%s17535_s30 + $0x220] sm:$0xff] }
0x1e8e   : > { %v16552_v35 = vpack.c.bf16 %v13274_v31, %v13273_v2  ;;  %v13298_v2 = vld [vmem:[%s17535_s30 + $0x2e8] sm:$0xff] }
0x1e90   : > { %16505 = vmatpush3.bf16.msra.mxu1 %v16504_v55  ;;  %v16554_v55 = vpack.c.bf16 %v13292_v6, %v13291_v18  ;;  %v13281_v18 = vld [vmem:[%s17535_s30 + $0x260] sm:$0xff]  ;;  %v13282_v6 = vld [vmem:[%s17535_s30 + $0x268] sm:$0xff] }
0x1e91   : > { %16507 = vmatprep.subr.bf16.mxu1 %v16506_v52  ;;  %v13275_v52 = vld [vmem:[%s17535_s30 + $0x230] sm:$0xff] }
0x1e92   : > { %v16556_v43 = vpack.c.bf16 %v13276_v33, %v13275_v52  ;;  %v13300_v52 = vld [vmem:[%s17535_s30 + $0x2f8] sm:$0xff] }
0x1e94   : > { %16509 = vmatpush3.bf16.msra.mxu1 %v16508_v51  ;;  %v16558_v51 = vpack.c.bf16 %v13294_v8, %v13293_v41  ;;  %v13283_v41 = vld [vmem:[%s17535_s30 + $0x270] sm:$0xff]  ;;  %v13284_v8 = vld [vmem:[%s17535_s30 + $0x278] sm:$0xff] }
0x1e95   : > { %16543 = vmatprep.subr.bf16.mxu1 %v16542_v15  ;;  %v13277_v15 = vld [vmem:[%s17535_s30 + $0x240] sm:$0xff] }
0x1e96   : > { %v16560_v53 = vpack.c.bf16 %v13278_v9, %v13277_v15 }
0x1e97   : > { %9199 = vmatmul.mubr.f32.vlgmr.msra.gmra.mrb[78].mxu1 %v19264_v40 }
0x1e98   : > { %9203 = vmatprep.mubr.f32.mxu1 %v19262_v19  ;;  %16545 = vmatpush3.bf16.msra.mxu1 %v16544_v32  ;;  %v16562_v32 = vpack.c.bf16 %v13296_v57, %v13295_v12 }
0x1e99   : > { %16547 = vmatprep.subr.bf16.mxu1 %v16546_v45  ;;  %v9084_v45 = vld [vmem:[%s17535_s30 + $0x70] sm:$0xff] }
0x1e9a   : > { %v16540_v14 = vpack.c.bf16 %v9085_v25, %v9084_v45 }
0x1e9b   : > { %9204 = vmatmul.mubr.f32.gmra.mrb[80].mxu1 %v19258_v54 }
0x1e9c   : > { %16549 = vmatpush3.bf16.msra.mxu1 %v16548_v4  ;;  %v16564_v4 = vpack.c.bf16 %v13280_v58, %v13279_v30  ;;  %16541 = vmatpush3.bf16.msra.mxu0 %v16540_v14 }
0x1e9d   : > { %16551 = vmatprep.subr.bf16.mxu1 %v16550_v21  ;;  %v13297_v21 = vld [vmem:[%s17535_s30 + $0x2e0] sm:$0xff]  ;;  %16575 = vmatprep.subr.bf16.mxu0 %v18107_v22 }
0x1e9e   : > { %v16566_v31 = vpack.c.bf16 %v13298_v2, %v13297_v21 }
0x1ea0   : > { %16553 = vmatpush3.bf16.msra.mxu1 %v16552_v35  ;;  %v16568_v35 = vpack.c.bf16 %v13282_v6, %v13281_v18 }
0x1ea1   : > { %16555 = vmatprep.subr.bf16.mxu1 %v16554_v55  ;;  %v13299_v55 = vld [vmem:[%s17535_s30 + $0x2f0] sm:$0xff] }
0x1ea2   : > { %v16570_v33 = vpack.c.bf16 %v13300_v52, %v13299_v55 }
0x1ea4   : > { %16557 = vmatpush3.bf16.msra.mxu1 %v16556_v43  ;;  %v16572_v43 = vpack.c.bf16 %v13284_v8, %v13283_v41 }
0x1ea5   : > { %16559 = vmatprep.subr.bf16.mxu1 %v16558_v51 }
0x1ea8   : > { %16561 = vmatpush3.bf16.msra.mxu1 %v16560_v53 }
0x1ea9   : > { %16563 = vmatprep.subr.bf16.mxu1 %v16562_v32 }
0x1eac   : > { %16565 = vmatpush3.bf16.msra.mxu1 %v16564_v4 }
0x1ead   : > { %16567 = vmatprep.subr.bf16.mxu1 %v16566_v31 }
0x1eb0   : > { %16569 = vmatpush3.bf16.msra.mxu1 %v16568_v35 }
0x1eb1   : > { %16571 = vmatprep.subr.bf16.mxu1 %v16570_v33 }
0x1eb4   : > { %16573 = vmatpush3.bf16.msra.mxu1 %v16572_v43 }
0x1eb5   : > { %16611 = vmatprep.subr.bf16.mxu1 %v18107_v22 }
0x1f42   : > { %v8982_v51 = vpop.f32.mrb[70].mxu1 }
0x1f43   : > { %v8984_v15 = vpop.f32.mrb[71].mxu1 }
0x1f44   : > { %9273 = vmatprep.mubr.f32.mxu0 %v8984_v15 }
0x1f45   : > { %9274 = vmatmul.mubr.f32.vlgmr.msra.gmra.mrb[82].mxu0 %v8982_v51  ;;  %v13301_v51 = vld [vmem:[%s20115_s6] ss:$0 sm:$0xff] }
0x1f46   : > { %v8988_v9 = vpop.f32.mrb[72].mxu1  ;;  %16577 = vmatpush1.bf16.msra.mxu0 %v18110_v47 }
0x1f47   : > { %v8990_v12 = vpop.f32.mrb[73].mxu1  ;;  %16579 = vmatprep.subr.bf16.mxu0 %v18152_v24 }
0x1f48   : > { %9278 = vmatprep.mubr.f32.mxu0 %v8990_v12 }
0x1f49   : > { %9279 = vmatmul.mubr.f32.gmra.mrb[84].mxu0 %v8988_v9 }
0x1f4a   : > { %v9059_v57 = vpop.f32.mrb[74].mxu1  ;;  %9617 = vmatprep.mubr.f32.mxu0 %v20140_v38 }
0x1f4b   : > { %v9061_v53 = vpop.f32.mrb[75].mxu1 }
0x1f4c   : > { %9380 = vmatprep.mubr.f32.mxu1 %v9061_v53 }
0x1f4d   : > { %9381 = vmatmul.mubr.f32.vlgmr.msra.gmra.mrb[82].mxu1 %v9059_v57 }
0x1f4e   : > { %v9065_v32 = vpop.f32.mrb[76].mxu1  ;;  %16613 = vmatpush1.bf16.msra.mxu1 %v18110_v47 }
0x1f4f   : > { %v9067_v45 = vpop.f32.mrb[77].mxu1  ;;  %16615 = vmatprep.subr.bf16.mxu1 %v18152_v24 }
0x1f50   : > { %9385 = vmatprep.mubr.f32.mxu1 %v9067_v45 }
0x1f51   : > { %9386 = vmatmul.mubr.f32.gmra.mrb[84].mxu1 %v9065_v32 }
0x1f52   : > { %9808 = vmatprep.mubr.f32.mxu1 %v20140_v38 }
0x1f6a   : > { %v14341_v25 = vpop.f32.mrb[78].mxu1 }
0x1f6b   : > { %v14342_v30 = vpop.f32.mrb[79].mxu1 }
0x1f6c   : > { %v14343_v14 = vadd.f32 %v14342_v30, %v14341_v25 }
0x1f6e   : > { %v14344_v58 = vpop.f32.mrb[80].mxu1 }
0x1f6f   : > { %v14345_v4 = vpop.f32.mrb[81].mxu1 }
0x1f70   : > { %v14346_v21 = vadd.f32 %v14345_v4, %v14344_v58 }
0x2018   : > { %v14379_v2 = vpop.f32.mrb[82].mxu0 }
0x2019   : > { %v14380_v31 = vpop.f32.mrb[83].mxu0 }
0x201a   : > { %v14381_v18 = vadd.f32 %v14380_v31, %v14379_v2 }
0x201c   : > { %v9276_v6 = vadd.f32 %v14381_v18, %v14343_v14  ;;  %v14382_v35 = vpop.f32.mrb[84].mxu0 }
0x201d   : > { %v14383_v55 = vpop.f32.mrb[85].mxu0 }
0x201e   : > { %v14384_v52 = vadd.f32 %v14383_v55, %v14382_v35 }
0x2020   : > { %v9281_v33 = vadd.f32 %v14384_v52, %v14346_v21  ;;  %v14417_v41 = vpop.f32.mrb[82].mxu1 }
0x2021   : > { %v14418_v8 = vpop.f32.mrb[83].mxu1 }
0x2022   : > { %v14419_v43 = vadd.f32 %v14418_v8, %v14417_v41 }
0x2024   : > { %v9391_v15 = vadd.f32 %v14419_v43, %v9276_v6  ;;  %v14420_v9 = vpop.f32.mrb[84].mxu1 }
0x2025   : > { %v14421_v12 = vpop.f32.mrb[85].mxu1 }
0x2026   : > { %v19360_v57 = vadd.f32 %v13301_v51, %v9391_v15  ;;  %v14422_v53 = vadd.f32 %v14421_v12, %v14420_v9 }
0x2028   : > { %v9392_v32 = vadd.f32 %v14422_v53, %v9281_v33  ;;  %9412 = vrot.lane.b32.xlu0 %v19360_v57, %s20136_s1  ;;  %9404 = vrot.lane.b32.xlu1 %v19360_v57, %s20128_s4 }
0x202a   : > { %v19366_v45 = vadd.f32 %v13301_v51, %v9392_v32 }
0x202c   : > { %9414 = vrot.lane.b32.xlu0 %v19366_v45, %s20136_s1  ;;  %9420 = vrot.lane.b32.xlu1 %v19360_v57, %s20129_s5 }
0x2030   : > { %9406 = vrot.lane.b32.xlu1 %v19366_v45, %s20128_s4 }
0x2034   : > { %9422 = vrot.lane.b32.xlu1 %v19366_v45, %s20129_s5 }
0x209a   : > { %v9405_v25 = vpop.permute.xlu1 %9404  ;;  %v9413_v14 = vpop.permute.xlu0 %9412 }
0x209b   : > { %v9410_v30 = vmax.f32 %v19360_v57, %v9405_v25 }
0x209d   : > { %v9418_v58 = vmax.f32 %v9410_v30, %v9413_v14 }
0x209e   : > { %v9421_v4 = vpop.permute.xlu1 %9420  ;;  %v9415_v18 = vpop.permute.xlu0 %9414 }
0x209f   : > { %v9426_v21 = vmax.f32 %v9418_v58, %v9421_v4 }
0x20a1   : > { %9448 = vrot.lane.b32.xlu1 %v9426_v21, %s20133_s11  ;;  %9436 = vrot.lane.b32.xlu0 %v9426_v21, %s20132_s26 }
0x20a2   : > { %v9407_v2 = vpop.permute.xlu1 %9406 }
0x20a3   : > { %v9411_v31 = vmax.f32 %v19366_v45, %v9407_v2 }
0x20a5   : > { %9460 = vrot.lane.b32.xlu1 %v9426_v21, %s20134_s17  ;;  %v9419_v6 = vmax.f32 %v9411_v31, %v9415_v18 }
0x20a6   : > { %v9423_v35 = vpop.permute.xlu1 %9422 }
0x20a7   : > { %v9427_v55 = vmax.f32 %v9419_v6, %v9423_v35 }
0x20a9   : > { %9462 = vrot.lane.b32.xlu1 %v9427_v55, %s20134_s17  ;;  %9438 = vrot.lane.b32.xlu0 %v9427_v55, %s20132_s26 }
0x20ad   : > { %9450 = vrot.lane.b32.xlu0 %v9427_v55, %s20133_s11 }
0x2113   : > { %v9437_v52 = vpop.permute.xlu0 %9436  ;;  %v9449_v33 = vpop.permute.xlu1 %9448 }
0x2114   : > { %v9442_v41 = vsub.f32 %v19360_v57, %v9437_v52  ;;  %v9454_v8 = vsub.f32 %v19360_v57, %v9449_v33 }
0x2116   : > { %v9444_v43 = vmul.f32 1.442695, %v9442_v41  ;;  %v9456_v51 = vmul.f32 1.442695, %v9454_v8  ;;  %v9428_v8 = vsub.f32 %v19360_v57, %v9426_v21 }
0x2117   : > { %v9461_v15 = vpop.permute.xlu1 %9460 }
0x2118   : > { %17257 = vpow2.f32 %v9444_v43  ;;  %v9466_v9 = vsub.f32 %v19360_v57, %v9461_v15  ;;  %v9430_v43 = vmul.f32 1.442695, %v9428_v8 }
0x2119   : > { %17259 = vpow2.f32 %v9456_v51  ;;  %v9429_v51 = vsub.f32 %v19366_v45, %v9427_v55 }
0x211a   : > { %v9468_v12 = vmul.f32 1.442695, %v9466_v9 }
0x211b   : > { %v9439_v53 = vpop.permute.xlu0 %9438  ;;  %v9463_v32 = vpop.permute.xlu1 %9462  ;;  %v9432_v15 = vmul.f32 1.442695, %v9429_v51 }
0x211c   : > { %17261 = vpow2.f32 %v9468_v12  ;;  %v9443_v25 = vsub.f32 %v19366_v45, %v9439_v53  ;;  %v9467_v30 = vsub.f32 %v19366_v45, %v9463_v32 }
0x211e   : > { %v9446_v14 = vmul.f32 1.442695, %v9443_v25  ;;  %v9470_v58 = vmul.f32 1.442695, %v9467_v30 }
0x211f   : > { %v9451_v4 = vpop.permute.xlu0 %9450 }
0x2120   : > { %17263 = vpow2.f32 %v9446_v14  ;;  %v9455_v2 = vsub.f32 %v19366_v45, %v9451_v4 }
0x2121   : > { %17265 = vpow2.f32 %v9470_v58 }
0x2122   : > { %v19390_v31 = vpop.eup %17257  ;;  %v9458_v18 = vmul.f32 1.442695, %v9455_v2 }
0x2123   : > { %v19392_v6 = vpop.eup %17259  ;;  %9474 = vrot.lane.b32.xlu0 %v19390_v31, %s20128_s4 }
0x2124   : > { %17267 = vpow2.f32 %v9458_v18  ;;  %9484 = vrot.lane.b32.xlu1 %v19392_v6, %s20136_s1 }
0x2125   : > { %17269 = vpow2.f32 %v9430_v43 }
0x2126   : > { %v19398_v35 = vpop.eup %17261  ;;  %17271 = vpow2.f32 %v9432_v15 }
0x2128   : > { %9494 = vrot.lane.b32.xlu1 %v19398_v35, %s20129_s5 }
0x212a   : > { %v17264_v52 = vpop.eup %17263 }
0x212b   : > { %v19402_v33 = vpop.eup %17265  ;;  %9476 = vrot.lane.b32.xlu0 %v17264_v52, %s20128_s4 }
0x212c   : > { %9496 = vrot.lane.b32.xlu1 %v19402_v33, %s20129_s5 }
0x212e   : > { %v19407_v41 = vpop.eup %17267 }
0x212f   : > { %9486 = vrot.lane.b32.xlu0 %v19407_v41, %s20136_s1  ;;  %v17270_v9 = vpop.eup %17269 }
0x2130   : > { %v17272_v4 = vpop.eup %17271 }
0x2195   : > { %v9475_v12 = vpop.permute.xlu0 %9474 }
0x2196   : > { %v9480_v53 = vadd.f32 %v17270_v9, %v9475_v12  ;;  %v9485_v32 = vpop.permute.xlu1 %9484 }
0x2198   : > { %v9490_v25 = vadd.f32 %v9485_v32, %v9480_v53 }
0x219a   : > { %v9495_v30 = vpop.permute.xlu1 %9494 }
0x219b   : > { %v9500_v14 = vadd.f32 %v9495_v30, %v9490_v25 }
0x219d   : > { %17273 = vrcp.f32 %v9500_v14  ;;  %9508 = vrot.lane.b32.xlu0 %v9500_v14, %s20132_s26  ;;  %v9477_v58 = vpop.permute.xlu0 %9476 }
0x219e   : > { %v9481_v2 = vadd.f32 %v17272_v4, %v9477_v58  ;;  %v9497_v18 = vpop.permute.xlu1 %9496 }
0x21a1   : > { %v9487_v57 = vpop.permute.xlu0 %9486 }
0x21a2   : > { %v9491_v21 = vadd.f32 %v9487_v57, %v9481_v2 }
0x21a4   : > { %v9501_v8 = vadd.f32 %v9497_v18, %v9491_v21 }
0x21a6   : > { %17275 = vrcp.f32 %v9501_v8  ;;  %9510 = vrot.lane.b32.xlu1 %v9501_v8, %s20132_s26  ;;  %s20144_s26 = sld [smem:[#allocation19_spill]] }
0x21a7   : > { %v17274_v45 = vpop.eup %17273 }
0x21a8   : > { %v19415_v55 = vmul.f32 %v17274_v45, %v17270_v9 }
0x21aa   : > { %13304 = vmatmul.mubr.msk.f32.vlgmr.msra.gmra.mrb[86].mxu0 %vm1146_vm0, %v19415_v55 }
0x21ab   : > { %9623 = vmatprep.mubr.f32.mxu0 %v20140_v38  ;;  %16581 = vmatpush3.bf16.msra.mxu0 %v18157_v28 }
0x21ac   : > { %16583 = vmatprep.subr.bf16.mxu0 %v18159_v29 }
0x21af   : > { %16585 = vmatpush3.bf16.msra.mxu0 %v18168_v37 }
0x21b0   : > { %v17276_v43 = vpop.eup %17275  ;;  %16587 = vmatprep.subr.bf16.mxu0 %v18176_v0 }
0x21b1   : > { %v19424_v51 = vmul.f32 %v17276_v43, %v17272_v4 }
0x21b3   : > { %13305 = vmatmul.mubr.msk.f32.gmra.mrb[88].mxu0 %vm1146_vm0, %v19424_v51 }
0x21b4   : > { %16589 = vmatpush3.bf16.msra.mxu0 %v18180_v1 }
0x21b5   : > { %16591 = vmatprep.subr.bf16.mxu0 %v18186_v42 }
0x21b8   : > { %16593 = vmatpush3.bf16.msra.mxu0 %v18190_v23 }
0x21b9   : > { %16595 = vmatprep.subr.bf16.mxu0 %v18196_v11 }
0x21bc   : > { %16597 = vmatpush3.bf16.msra.mxu0 %v18200_v56 }
0x21bd   : > { %16599 = vmatprep.subr.bf16.mxu0 %v18206_v59 }
0x21c0   : > { %16601 = vmatpush3.bf16.msra.mxu0 %v18210_v63 }
0x21c1   : > { %16603 = vmatprep.subr.bf16.mxu0 %v18216_v13 }
0x21c4   : > { %16605 = vmatpush3.bf16.msra.mxu0 %v18220_v5 }
0x21c5   : > { %16607 = vmatprep.subr.bf16.mxu0 %v18226_v20 }
0x21c8   : > { %16609 = vmatpush3.bf16.msra.mxu0 %v18230_v26 }
0x21c9   : > { %16647 = vmatprep.subr.bf16.mxu0 %v18107_v22 }
0x220f   : > { %v9509_v15 = vpop.permute.xlu0 %9508 }
0x2210   : > { %17277 = vrcp.f32 %v9509_v15 }
0x2218   : > { %v9511_v9 = vpop.permute.xlu1 %9510 }
0x2219   : > { %17279 = vrcp.f32 %v9511_v9 }
0x221a   : > { %v17278_v12 = vpop.eup %17277 }
0x221b   : > { %v19441_v53 = vmul.f32 %v17278_v12, %v19390_v31 }
0x221d   : > { %9736 = vrot.lane.b32.xlu0 %v19441_v53, %s20128_s4 }
0x2221   : > { %9518 = vrot.lane.b32.xlu0 %v9500_v14, %s20133_s11 }
0x2223   : > { %v17280_v32 = vpop.eup %17279 }
0x2224   : > { %v19446_v25 = vmul.f32 %v17280_v32, %v17264_v52 }
0x2225   : > { %9520 = vrot.lane.b32.xlu0 %v9501_v8, %s20133_s11  ;;  %s20147_s11 = sld [smem:[#allocation24_spill]] }
0x2226   : > { %9738 = vrot.lane.b32.xlu1 %v19446_v25, %s20128_s4 }
0x222a   : > { %9528 = vrot.lane.b32.xlu1 %v9500_v14, %s20134_s17 }
0x222e   : > { %9530 = vrot.lane.b32.xlu1 %v9501_v8, %s20134_s17 }
0x227d   : > { %v9619_v30 = vpop.f32.mrb[86].mxu0 }
0x227e   : > { %v9621_v31 = vpop.f32.mrb[87].mxu0  ;;  %v9630_v4 = vmul.f32 %v9619_v30, %v19264_v40 }
0x227f   : > { %v9631_v52 = vmul.f32 %v9621_v31, %v19260_v39 }
0x2286   : > { %v9625_v58 = vpop.f32.mrb[88].mxu0 }
0x2287   : > { %v9632_v2 = vmul.f32 %v9625_v58, %v19258_v54  ;;  %v9627_v57 = vpop.f32.mrb[89].mxu0 }
0x2288   : > { %v9633_v21 = vmul.f32 %v9627_v57, %v19262_v19 }
0x2289   : > { %v9634_v18 = vadd.f32 %v9632_v2, %v9630_v4 }
0x228a   : > { %v9641_v45 = vadd.f32 %v9633_v21, %v9631_v52 }
0x228b   : > { %v9635_v43 = vrot.slane %v9634_v18, 4 }
0x228c   : > { %v9642_v15 = vrot.slane %v9641_v45, 4 }
0x228d   : > { %v9636_v9 = vadd.f32 %v9635_v43, %v9634_v18 }
0x228e   : > { %v9643_v14 = vadd.f32 %v9642_v15, %v9641_v45 }
0x228f   : > { %v9637_v12 = vrot.slane %v9636_v9, 2  ;;  %v19457_v8 = vpop.permute.xlu0 %9736 }
0x2290   : > { %v9644_v32 = vrot.slane %v9643_v14, 2  ;;  %13306 = vmatmul.mubr.msk.f32.vlgmr.msra.gmra.mrb[86].mxu1 %vm1146_vm0, %v19457_v8 }
0x2291   : > { %v9638_v30 = vadd.f32 %v9637_v12, %v9636_v9  ;;  %9814 = vmatprep.mubr.f32.mxu1 %v20140_v38  ;;  %16617 = vmatpush3.bf16.msra.mxu1 %v18157_v28 }
0x2292   : > { %v9645_v31 = vadd.f32 %v9644_v32, %v9643_v14  ;;  %16619 = vmatprep.subr.bf16.mxu1 %v18159_v29 }
0x2293   : > { %v9639_v58 = vrot.slane %v9638_v30, 1  ;;  %v9519_v4 = vpop.permute.xlu0 %9518 }
0x2294   : > { %17281 = vrcp.f32 %v9519_v4  ;;  %v9646_v2 = vrot.slane %v9645_v31, 1  ;;  %v9539_v4 = vsel %vm1146_vm0, %v19424_v51, %v19446_v25  ;;  %v9718_v25 = vsel %vm1146_vm0, %v19415_v55, 0.0 }
0x2295   : > { %16621 = vmatpush3.bf16.msra.mxu1 %v18168_v37  ;;  %v9640_v52 = vadd.f32 %v9639_v58, %v9638_v30 }
0x2296   : > { %v9647_v57 = vadd.f32 %v9646_v2, %v9645_v31  ;;  %16623 = vmatprep.subr.bf16.mxu1 %v18176_v0 }
0x2297   : > { %v9521_v21 = vpop.permute.xlu0 %9520 }
0x2298   : > { %17283 = vrcp.f32 %v9521_v21  ;;  %v9739_v18 = vpop.permute.xlu1 %9738  ;;  %9712 = vmatprep.mubr.f32.mxu0 %v9647_v57  ;;  %v9721_v57 = vsel %vm1146_vm0, %v19424_v51, 0.0 }
0x2299   : > { %9713 = vmatmul.mubr.f32.vlgmr.msra.gmra.mrb[90].mxu0 %v9640_v52  ;;  %13307 = vmatmul.mubr.msk.f32.gmra.mrb[88].mxu1 %vm1146_vm0, %v9739_v18  ;;  %v9914_v52 = vsel %vm1146_vm0, %v9739_v18, 0.0 }
0x229a   : > { %16649 = vmatpush1.bf16.msra.mxu0 %v18110_v47  ;;  %10001 = vmatprep.mubr.f32.mxu0 %v20140_v38 }
0x229b   : > { %16625 = vmatpush3.bf16.msra.mxu1 %v18180_v1  ;;  %16651 = vmatprep.subr.bf16.mxu0 %v18152_v24 }
0x229c   : > { %v9529_v45 = vpop.permute.xlu1 %9528  ;;  %16627 = vmatprep.subr.bf16.mxu1 %v18186_v42 }
0x229d   : > { %17285 = vrcp.f32 %v9529_v45 }
0x229e   : > { %v17282_v43 = vpop.eup %17281 }
0x229f   : > { %v9525_v15 = vmul.f32 %v17282_v43, %v19392_v6  ;;  %16629 = vmatpush3.bf16.msra.mxu1 %v18190_v23  ;;  %v9538_v6 = vsel %vm1146_vm0, %v19415_v55, %v19441_v53 }
0x22a0   : > { %v9531_v9 = vpop.permute.xlu1 %9530  ;;  %16631 = vmatprep.subr.bf16.mxu1 %v18196_v11 }
0x22a1   : > { %9929 = vrot.lane.b32.xlu0 %v9525_v15, %s20136_s1  ;;  %17287 = vrcp.f32 %v9531_v9 }
0x22a2   : > { %v17284_v14 = vpop.eup %17283 }
0x22a3   : > { %v9527_v12 = vmul.f32 %v17284_v14, %v19407_v41  ;;  %16633 = vmatpush3.bf16.msra.mxu1 %v18200_v56  ;;  %v9540_v41 = vsel %vm3376_vm2, %v9538_v6, %v9525_v15  ;;  %v20141_v15 = vmov 0.0|0.0  }
0x22a4   : > { %16635 = vmatprep.subr.bf16.mxu1 %v18206_v59 }
0x22a5   : > { %9931 = vrot.lane.b32.xlu0 %v9527_v12, %s20136_s1  ;;  %s20145_s1 = sld [smem:[#allocation22_spill]] }
0x22a7   : > { %v17286_v32 = vpop.eup %17285  ;;  %16637 = vmatpush3.bf16.msra.mxu1 %v18210_v63 }
0x22a8   : > { %v9535_v30 = vmul.f32 %v17286_v32, %v19398_v35  ;;  %16639 = vmatprep.subr.bf16.mxu1 %v18216_v13  ;;  %v9541_v35 = vsel %vm3376_vm2, %v9539_v4, %v9527_v12 }
0x22aa   : > { %10122 = vrot.lane.b32.xlu1 %v9535_v30, %s20129_s5  ;;  %v9542_v31 = vsel %vm1322_vm1, %v9540_v41, %v9535_v30 }
0x22ab   : > { %v17288_v58 = vpop.eup %17287  ;;  %13302 = vst.msk [vmem:[%s18285_s7 + $0x20] sm:$0xff] %vm3381_vm3, %v9542_v31  ;;  %16641 = vmatpush3.bf16.msra.mxu1 %v18220_v5 }
0x22ac   : > { %v9537_v53 = vmul.f32 %v17288_v58, %v19402_v33  ;;  %16643 = vmatprep.subr.bf16.mxu1 %v18226_v20  ;;  %v9911_v33 = vsel %vm1146_vm0, %v19457_v8, 0.0 }
0x22ae   : > { %10124 = vrot.lane.b32.xlu1 %v9537_v53, %s20129_s5  ;;  %v9543_v2 = vsel %vm1322_vm1, %v9541_v35, %v9537_v53  ;;  %s19609_s5 = sand.u32 1, %s17413_s10  }
0x22af   : > { %13303 = vst.msk [vmem:[%s18285_s7 + $0x28] sm:$0xff] %vm3381_vm3, %v9543_v2  ;;  %16645 = vmatpush3.bf16.msra.mxu1 %v18230_v26  ;;  %s12722_s17 = sshll.u32 %s19609_s5, 2  ;;  %s20143_s7 = sld [smem:[#allocation31_spill]] }
0x22b0   : > { %16683 = vmatprep.subr.bf16.mxu1 %v18107_v22  ;;  %s19615_s4 = scalar_lea.vmem [#allocation2], %s12722_s17  ;;  %s19653_s23 = scalar_lea.vmem [#allocation4], %s12722_s17 }
0x22b1   : > { %s20148_s17 = smov %s20147_s11  ;;  %s12355_s3 = scalar_lea.sflag [#allocation3], %s19609_s5 }
0x22c4   : > { %9722 = vadd.xlane.f32.xlu0 %v9721_v57 }
0x22c8   : > { %9912 = vadd.xlane.f32.xlu0 %v9911_v33 }
0x22d2   : > { %9719 = vadd.xlane.f32.xlu1 %v9718_v25 }
0x22d6   : > { %9915 = vadd.xlane.f32.xlu1 %v9914_v52 }
0x2313   : > { %v9930_v21 = vpop.permute.xlu0 %9929 }
0x2314   : > { %13308 = vmatmul.mubr.msk.f32.vlgmr.msra.gmra.mrb[92].mxu0 %vm1146_vm0, %v9930_v21  ;;  %v10104_v22 = vsel %vm1146_vm0, %v9930_v21, 0.0 }
0x2315   : > { %10105 = vadd.xlane.f32.xlu0 %v10104_v22  ;;  %10007 = vmatprep.mubr.f32.mxu0 %v20140_v38 }
0x2316   : > { %16653 = vmatpush3.bf16.msra.mxu0 %v18157_v28 }
0x2317   : > { %v9932_v51 = vpop.permute.xlu0 %9931  ;;  %16655 = vmatprep.subr.bf16.mxu0 %v18159_v29 }
0x2318   : > { %13309 = vmatmul.mubr.msk.f32.gmra.mrb[94].mxu0 %vm1146_vm0, %v9932_v51  ;;  %v10107_v55 = vsel %vm1146_vm0, %v9932_v51, 0.0 }
0x2319   : > { %10108 = vadd.xlane.f32.xlu0 %v10107_v55 }
0x231a   : > { %16657 = vmatpush3.bf16.msra.mxu0 %v18168_v37 }
0x231b   : > { %16659 = vmatprep.subr.bf16.mxu0 %v18176_v0 }
0x231c   : > { %v10123_v8 = vpop.permute.xlu1 %10122 }
0x231d   : > { %v10297_v18 = vsel %vm1146_vm0, %v10123_v8, 0.0 }
0x231e   : > { %10298 = vadd.xlane.f32.xlu1 %v10297_v18  ;;  %16661 = vmatpush3.bf16.msra.mxu0 %v18180_v1 }
0x231f   : > { %16663 = vmatprep.subr.bf16.mxu0 %v18186_v42 }
0x2320   : > { %v10125_v45 = vpop.permute.xlu1 %10124 }
0x2321   : > { %v10300_v43 = vsel %vm1146_vm0, %v10125_v45, 0.0 }
0x2322   : > { %10301 = vadd.xlane.f32.xlu0 %v10300_v43  ;;  %16665 = vmatpush3.bf16.msra.mxu0 %v18190_v23 }
0x2323   : > { %16667 = vmatprep.subr.bf16.mxu0 %v18196_v11 }
0x2326   : > { %16669 = vmatpush3.bf16.msra.mxu0 %v18200_v56 }
0x2327   : > { %16671 = vmatprep.subr.bf16.mxu0 %v18206_v59 }
0x232a   : > { %16673 = vmatpush3.bf16.msra.mxu0 %v18210_v63 }
0x232b   : > { %16675 = vmatprep.subr.bf16.mxu0 %v18216_v13 }
0x232e   : > { %16677 = vmatpush3.bf16.msra.mxu0 %v18220_v5 }
0x232f   : > { %16679 = vmatprep.subr.bf16.mxu0 %v18226_v20 }
0x2332   : > { %16681 = vmatpush3.bf16.msra.mxu0 %v18230_v26 }
0x2333   : > { %16718 = vmatprep.subr.bf16.mxu0 %v20141_v15 }
0x2363   : > { %v9810_v9 = vpop.f32.mrb[86].mxu1 }
0x2364   : > { %v9812_v14 = vpop.f32.mrb[87].mxu1  ;;  %v9821_v6 = vmul.f32 %v9810_v9, %v19264_v40 }
0x2365   : > { %v9822_v58 = vmul.f32 %v9812_v14, %v19260_v39 }
0x236c   : > { %v14455_v12 = vpop.f32.mrb[90].mxu0  ;;  %v9816_v32 = vpop.f32.mrb[88].mxu1 }
0x236d   : > { %v9823_v30 = vmul.f32 %v9816_v32, %v19258_v54  ;;  %v14456_v41 = vpop.f32.mrb[91].mxu0  ;;  %v9818_v31 = vpop.f32.mrb[89].mxu1 }
0x236e   : > { %v19537_v4 = vadd.f32 %v14456_v41, %v14455_v12  ;;  %v9824_v53 = vmul.f32 %v9818_v31, %v19262_v19  ;;  %v9720_v31 = vpop.xlane.xlu1 %9719 }
0x236f   : > { %v9825_v35 = vadd.f32 %v9823_v30, %v9821_v6 }
0x2370   : > { %v9832_v2 = vadd.f32 %v9824_v53, %v9822_v58  ;;  %v9723_v58 = vpop.xlane.xlu0 %9722 }
0x2371   : > { %v9826_v57 = vrot.slane %v9825_v35, 4 }
0x2372   : > { %v9833_v33 = vrot.slane %v9832_v2, 4  ;;  %v9916_v53 = vpop.xlane.xlu1 %9915 }
0x2373   : > { %v9827_v25 = vadd.f32 %v9826_v57, %v9825_v35 }
0x2374   : > { %v9834_v52 = vadd.f32 %v9833_v33, %v9832_v2  ;;  %v9913_v35 = vpop.xlane.xlu0 %9912  ;;  %v9724_v2 = vadd.f32 %v9723_v58, %v9720_v31 }
0x2375   : > { %v9828_v21 = vrot.slane %v9827_v25, 2  ;;  %v9917_v57 = vadd.f32 %v9916_v53, %v9913_v35 }
0x2376   : > { %v9835_v22 = vrot.slane %v9834_v52, 2  ;;  %v9725_v33 = vrot.slane %v9724_v2, 4 }
0x2377   : > { %v9829_v51 = vadd.f32 %v9828_v21, %v9827_v25  ;;  %v9918_v25 = vrot.slane %v9917_v57, 4 }
0x2378   : > { %v9836_v55 = vadd.f32 %v9835_v22, %v9834_v52  ;;  %v9726_v52 = vadd.f32 %v9725_v33, %v9724_v2 }
0x2379   : > { %v9830_v18 = vrot.slane %v9829_v51, 1  ;;  %v9919_v21 = vadd.f32 %v9918_v25, %v9917_v57 }
0x237a   : > { %v9837_v43 = vrot.slane %v9836_v55, 1  ;;  %v9727_v22 = vrot.slane %v9726_v52, 2 }
0x237b   : > { %v9831_v32 = vadd.f32 %v9830_v18, %v9829_v51  ;;  %v9920_v51 = vrot.slane %v9919_v21, 2 }
0x237c   : > { %v9838_v9 = vadd.f32 %v9837_v43, %v9836_v55  ;;  %v9728_v55 = vadd.f32 %v9727_v22, %v9726_v52 }
0x237d   : > { %v9921_v18 = vadd.f32 %v9920_v51, %v9919_v21 }
0x237e   : > { %9903 = vmatprep.mubr.f32.mxu1 %v9838_v9  ;;  %v9729_v43 = vrot.slane %v9728_v55, 1 }
0x237f   : > { %9904 = vmatmul.mubr.f32.vlgmr.msra.gmra.mrb[90].mxu1 %v9831_v32  ;;  %v9922_v9 = vrot.slane %v9921_v18, 1 }
0x2380   : > { %16685 = vmatpush1.bf16.msra.mxu1 %v18110_v47  ;;  %10194 = vmatprep.mubr.f32.mxu1 %v20140_v38  ;;  %v9730_v32 = vadd.f32 %v9729_v43, %v9728_v55 }
0x2381   : > { %16687 = vmatprep.subr.bf16.mxu1 %v18152_v24  ;;  %v19562_v24 = vpack.c.bf16 %v18910_v46, %v18896_v36 }
0x2383   : > { %13310 = vmatmul.mubr.msk.f32.vlgmr.msra.gmra.mrb[92].mxu1 %vm1146_vm0, %v10123_v8 }
0x2384   : > { %16689 = vmatpush3.bf16.msra.mxu1 %v18157_v28  ;;  %10200 = vmatprep.mubr.f32.mxu1 %v20140_v38 }
0x2385   : > { %16691 = vmatprep.subr.bf16.mxu1 %v18159_v29 }
0x2387   : > { %13311 = vmatmul.mubr.msk.f32.gmra.mrb[94].mxu1 %vm1146_vm0, %v10125_v45 }
0x2388   : > { %16693 = vmatpush3.bf16.msra.mxu1 %v18168_v37 }
0x2389   : > { %16695 = vmatprep.subr.bf16.mxu1 %v18176_v0 }
0x238c   : > { %16697 = vmatpush3.bf16.msra.mxu1 %v18180_v1 }
0x238d   : > { %16699 = vmatprep.subr.bf16.mxu1 %v18186_v42 }
0x2390   : > { %16701 = vmatpush3.bf16.msra.mxu1 %v18190_v23 }
0x2391   : > { %16703 = vmatprep.subr.bf16.mxu1 %v18196_v11 }
0x2394   : > { %16705 = vmatpush3.bf16.msra.mxu1 %v18200_v56 }
0x2395   : > { %16707 = vmatprep.subr.bf16.mxu1 %v18206_v59 }
0x2398   : > { %16709 = vmatpush3.bf16.msra.mxu1 %v18210_v63 }
0x2399   : > { %16711 = vmatprep.subr.bf16.mxu1 %v18216_v13 }
0x239c   : > { %16713 = vmatpush3.bf16.msra.mxu1 %v18220_v5 }
0x239d   : > { %16715 = vmatprep.subr.bf16.mxu1 %v18226_v20 }
0x23a0   : > { %16717 = vmatpush3.bf16.msra.mxu1 %v18230_v26 }
0x23a1   : > { %16738 = vmatprep.subr.bf16.mxu1 %v19562_v24 }
0x23a2   : > { %v10106_v21 = vpop.xlane.xlu0 %10105 }
0x23a6   : > { %v10109_v22 = vpop.xlane.xlu0 %10108 }
0x23a7   : > { %v10110_v51 = vadd.f32 %v10109_v22, %v10106_v21 }
0x23a9   : > { %v10111_v55 = vrot.slane %v10110_v51, 4 }
0x23e7   : > { %v10003_v28 = vpop.f32.mrb[92].mxu0 }
0x23e8   : > { %v10005_v29 = vpop.f32.mrb[93].mxu0  ;;  %v10014_v0 = vmul.f32 %v10003_v28, %v19264_v40  ;;  %v9923_v28 = vadd.f32 %v9922_v9, %v9921_v18  ;;  %v10112_v18 = vadd.f32 %v10111_v55, %v10110_v51 }
0x23e9   : > { %v10015_v23 = vmul.f32 %v10005_v29, %v19260_v39  ;;  %v9731_v29 = vadd.f32 1e-06, %v9730_v32 }
0x23ea   : > { %v10113_v43 = vrot.slane %v10112_v18, 2 }
0x23eb   : > { %v10009_v37 = vpop.f32.mrb[94].mxu0  ;;  %17289 = vrcp.f32 %v9731_v29  ;;  %v10326_v29 = vld [vmem:[%s20137_s18 + $0x8] sm:$0xff] }
0x23ec   : > { %v10016_v1 = vmul.f32 %v10009_v37, %v19258_v54  ;;  %v10011_v42 = vpop.f32.mrb[95].mxu0  ;;  %v9924_v37 = vadd.f32 1e-06, %v9923_v28  ;;  %v10114_v9 = vadd.f32 %v10113_v43, %v10112_v18  ;;  %v10325_v28 = vld [vmem:[%s20137_s18] sm:$0xff] }
0x23ed   : > { %v10017_v11 = vmul.f32 %v10011_v42, %v19262_v19 }
0x23ee   : > { %v10018_v56 = vadd.f32 %v10016_v1, %v10014_v0  ;;  %17291 = vrcp.f32 %v9924_v37  ;;  %v10115_v32 = vrot.slane %v10114_v9, 1  ;;  %v16719_v37 = vpack.c.bf16 %v10326_v29, %v10325_v28  ;;  %v10583_v29 = vld [vmem:[%s20142_s21] sm:$0xff] }
0x23ef   : > { %v10025_v59 = vadd.f32 %v10017_v11, %v10015_v23 }
0x23f0   : > { %v10019_v63 = vrot.slane %v10018_v56, 4 }
0x23f1   : > { %v10026_v13 = vrot.slane %v10025_v59, 4 }
0x23f2   : > { %v10020_v5 = vadd.f32 %v10019_v63, %v10018_v56 }
0x23f3   : > { %v10027_v20 = vadd.f32 %v10026_v13, %v10025_v59 }
0x23f4   : > { %v10021_v26 = vrot.slane %v10020_v5, 2 }
0x23f5   : > { %v10028_v8 = vrot.slane %v10027_v20, 2  ;;  %v17290_v42 = vpop.eup %17289 }
0x23f6   : > { %v10022_v45 = vadd.f32 %v10021_v26, %v10020_v5  ;;  %v9733_v13 = vmul.f32 %v17290_v42, %v19537_v4 }
0x23f7   : > { %v10029_v14 = vadd.f32 %v10028_v8, %v10027_v20 }
0x23f8   : > { %v10023_v12 = vrot.slane %v10022_v45, 1  ;;  %v17292_v11 = vpop.eup %17291 }
0x23f9   : > { %v10030_v6 = vrot.slane %v10029_v14, 1 }
0x23fa   : > { %v10024_v41 = vadd.f32 %v10023_v12, %v10022_v45 }
0x23fb   : > { %v10031_v30 = vadd.f32 %v10030_v6, %v10029_v14 }
0x23fd   : > { %10096 = vmatprep.mubr.f32.mxu0 %v10031_v30 }
0x23fe   : > { %10097 = vmatmul.mubr.f32.vlgmr.msra.gmra.mrb[96].mxu0 %v10024_v41 }
0x23ff   : > { %15300 = vmatprep.mubr.msk.f32.mxu0 %vm17464_vm5, %v20140_v38  ;;  %16720 = vmatpush3.bf16.msra.mxu0 %v16719_v37  ;;  %v10584_v37 = vld [vmem:[%s20142_s21 + $0x8] sm:$0xff] }
0x2400   : > { %15303 = vmatprep.subr.mxu0 %v20140_v38 }
0x2452   : > { %v14490_v0 = vpop.f32.mrb[90].mxu1 }
0x2453   : > { %v14491_v1 = vpop.f32.mrb[91].mxu1 }
0x2454   : > { %v14492_v23 = vadd.f32 %v14491_v1, %v14490_v0  ;;  %v10116_v0 = vadd.f32 %v10115_v32, %v10114_v9 }
0x2456   : > { %v9926_v56 = vmul.f32 %v17292_v11, %v14492_v23  ;;  %v10196_v59 = vpop.f32.mrb[92].mxu1  ;;  %v10117_v1 = vadd.f32 1e-06, %v10116_v0 }
0x2457   : > { %v10198_v63 = vpop.f32.mrb[93].mxu1  ;;  %v10207_v8 = vmul.f32 %v10196_v59, %v19264_v40 }
0x2458   : > { %v10314_v5 = vrot.slane %v9926_v56, 7  ;;  %v10208_v12 = vmul.f32 %v10198_v63, %v19260_v39  ;;  %v19580_v39 = vld [vmem:[%s20112_s13] sm:$0xff]  ;;  %17293 = vrcp.f32 %v10117_v1  ;;  %v16722_v1 = vpack.c.bf16 %v10584_v37, %v10583_v29 }
0x2459   : > { %v10895_v37 = vld [vmem:[%s20145_s1 + $0x20] sm:$0xff] }
0x245a   : > { %v10322_v20 = vsel %vm4159_vm4, %v9733_v13, %v10314_v5  ;;  %v10202_v26 = vpop.f32.mrb[94].mxu1  ;;  %v10302_v5 = vpop.xlane.xlu0 %10301 }
0x245b   : > { %v10209_v45 = vmul.f32 %v10202_v26, %v19258_v54  ;;  %v10204_v14 = vpop.f32.mrb[95].mxu1  ;;  %v10299_v26 = vpop.xlane.xlu1 %10298 }
0x245c   : > { %v10210_v6 = vmul.f32 %v10204_v14, %v19262_v19  ;;  %v19585_v19 = vld [vmem:[%s20112_s13 + $0x8] sm:$0xff] }
0x245d   : > { %v10211_v30 = vadd.f32 %v10209_v45, %v10207_v8  ;;  %v10303_v8 = vadd.f32 %v10302_v5, %v10299_v26  ;;  %v10581_v5 = vld [vmem:[%s20144_s26 + $0x10] sm:$0xff]  ;;  %v10582_v26 = vld [vmem:[%s20144_s26 + $0x18] sm:$0xff] }
0x245e   : > { %v10218_v41 = vadd.f32 %v10210_v6, %v10208_v12 }
0x245f   : > { %v10212_v31 = vrot.slane %v10211_v30, 4  ;;  %v10304_v45 = vrot.slane %v10303_v8, 4 }
0x2460   : > { %v10219_v58 = vrot.slane %v10218_v41, 4 }
0x2461   : > { %v10213_v4 = vadd.f32 %v10212_v31, %v10211_v30  ;;  %v10305_v14 = vadd.f32 %v10304_v45, %v10303_v8  ;;  %v16731_v8 = vpack.c.bf16 %v10582_v26, %v10581_v5  ;;  %v13327_v45 = vld [vmem:[%s20145_s1 + $0x68] sm:$0xff]  ;;  %v13345_v5 = vld [vmem:[%s20145_s1 + $0xd8] sm:$0xff] }
0x2462   : > { %v10220_v53 = vadd.f32 %v10219_v58, %v10218_v41  ;;  %v17294_v56 = vpop.eup %17293  ;;  %v19699_v26 = vld [vmem:[%s17711_s22 + $0x18] sm:$0xff] }
0x2463   : > { %v10214_v35 = vrot.slane %v10213_v4, 2  ;;  %v10306_v12 = vrot.slane %v10305_v14, 2 }
0x2464   : > { %v10221_v2 = vrot.slane %v10220_v53, 2 }
0x2465   : > { %v10215_v57 = vadd.f32 %v10214_v35, %v10213_v4  ;;  %v10307_v6 = vadd.f32 %v10306_v12, %v10305_v14  ;;  %v13329_v14 = vld [vmem:[%s20145_s1 + $0x78] sm:$0xff] }
0x2466   : > { %v10222_v33 = vadd.f32 %v10221_v2, %v10220_v53  ;;  %v16741_v12 = vpack.c.bf16 %v13329_v14, %v13327_v45  ;;  %v13342_v14 = vld [vmem:[%s20145_s1 + $0xc0] sm:$0xff] }
0x2467   : > { %v10216_v40 = vrot.slane %v10215_v57, 1  ;;  %v10308_v30 = vrot.slane %v10307_v6, 1 }
0x2468   : > { %v10223_v25 = vrot.slane %v10222_v33, 1 }
0x2469   : > { %v10217_v52 = vadd.f32 %v10216_v40, %v10215_v57  ;;  %v10309_v41 = vadd.f32 %v10308_v30, %v10307_v6  ;;  %v13326_v6 = vld [vmem:[%s20145_s1 + $0x60] sm:$0xff]  ;;  %v13328_v30 = vld [vmem:[%s20145_s1 + $0x70] sm:$0xff] }
0x246a   : > { %v10224_v54 = vadd.f32 %v10223_v25, %v10222_v33  ;;  %v13312_v33 = vld [vmem:[%s20138_s16] ss:$0 sm:$0xff] }
0x246b   : > { %v10310_v31 = vadd.f32 1e-06, %v10309_v41  ;;  %v13331_v41 = vld [vmem:[%s20145_s1 + $0x88] sm:$0xff] }
0x246c   : > { %10289 = vmatprep.mubr.f32.mxu1 %v10224_v54 }
0x246d   : > { %10290 = vmatmul.mubr.f32.vlgmr.msra.gmra.mrb[96].mxu1 %v10217_v52  ;;  %17295 = vrcp.f32 %v10310_v31  ;;  %v13333_v31 = vld [vmem:[%s20145_s1 + $0x98] sm:$0xff] }
0x246e   : > { %16740 = vmatpush3.bf16.msra.mxu1 %v19562_v24  ;;  %15346 = vmatprep.mubr.msk.f32.mxu1 %vm1146_vm0, %v19580_v39 }
0x2471   : > { %15347 = vmatmul.mubr.msk.f32.vlgmr.msra.gmra.mrb[98].mxu1 %vm1146_vm0, %v19585_v19 }
0x2472   : > { %11808 = vmatprep.mubr.f32.mxu1 %v20140_v38 }
0x2477   : > { %v17296_v35 = vpop.eup %17295 }
0x24d1   : > { %v14525_v42 = vpop.f32.mrb[96].mxu0 }
0x24d2   : > { %v14526_v23 = vpop.f32.mrb[97].mxu0 }
0x24d3   : > { %v14527_v11 = vadd.f32 %v14526_v23, %v14525_v42  ;;  %v10585_v23 = vld [vmem:[%s20142_s21 + $0x10] sm:$0xff] }
0x24d5   : > { %v10119_v59 = vmul.f32 %v17294_v56, %v14527_v11  ;;  %v10586_v11 = vld [vmem:[%s20142_s21 + $0x18] sm:$0xff] }
0x24d6   : > { %v16725_v56 = vpack.c.bf16 %v10586_v11, %v10585_v23  ;;  %v19689_v23 = vld [vmem:[%s17711_s22 + $0x10] sm:$0xff]  ;;  %s20146_s22 = sld [smem:[#allocation23_spill]] }
0x24d7   : > { %v10317_v63 = vrot.slane %v10119_v59, 6  ;;  %v10579_v59 = vld [vmem:[%s20144_s26] sm:$0xff] }
0x24d9   : > { %v10323_v13 = vsel %vm4161_vm6, %v10322_v20, %v10317_v63  ;;  %v10580_v63 = vld [vmem:[%s20144_s26 + $0x8] sm:$0xff] }
0x2540   : > { %v14560_v58 = vpop.f32.mrb[96].mxu1 }
0x2541   : > { %v14561_v4 = vpop.f32.mrb[97].mxu1 }
0x2542   : > { %v14562_v53 = vadd.f32 %v14561_v4, %v14560_v58  ;;  %v19660_v58 = vld [vmem:[%s20113_s9] sm:$0xff]  ;;  %v16743_v4 = vpack.c.bf16 %v13328_v30, %v13326_v6  ;;  %v13347_v6 = vld [vmem:[%s20145_s1 + $0xe8] sm:$0xff]  ;;  %v13349_v30 = vld [vmem:[%s20145_s1 + $0xf8] sm:$0xff] }
0x2544   : > { %v10312_v2 = vmul.f32 %v17296_v35, %v14562_v53  ;;  %v16745_v53 = vpack.c.bf16 %v13333_v31, %v13331_v41  ;;  %v13330_v35 = vld [vmem:[%s20145_s1 + $0x80] sm:$0xff]  ;;  %v16769_v41 = vpack.c.bf16 %v13349_v30, %v13347_v6  ;;  %v13385_v6 = vld [vmem:[%s20148_s17 + $0xf8] sm:$0xff] }
0x2545   : > { %v13346_v31 = vld [vmem:[%s20145_s1 + $0xe0] sm:$0xff] }
0x2546   : > { %v10320_v57 = vrot.slane %v10312_v2, 5  ;;  %v13332_v2 = vld [vmem:[%s20145_s1 + $0x90] sm:$0xff] }
0x2548   : > { %v10324_v20 = vsel %vm4163_vm7, %v10323_v13, %v10320_v57  ;;  %v16728_v13 = vpack.c.bf16 %v10580_v63, %v10579_v59  ;;  %v13335_v57 = vld [vmem:[%s20145_s1 + $0xa8] sm:$0xff]  ;;  %v10899_v59 = vld [vmem:[%s20145_s1 + $0x40] sm:$0xff]  ;;  %v10901_v63 = vld [vmem:[%s20145_s1 + $0x50] sm:$0xff] }
0x2549   : > { %15301 = vmatmul.mubr.msk.f32.vlgmr.msra.gmra.mrb[98].mxu0 %vm1146_vm0, %v10324_v20  ;;  %v13337_v20 = vld [vmem:[%s20145_s1 + $0xb8] sm:$0xff] }
0x254a   : > { %15304 = vmatpush3.xpose.msk.msra.mxu0 %vm3376_vm2, %v19058_v3  ;;  %15305 = vmatprep.mubr.msk.f32.mxu0 %vm17464_vm5, %v20140_v38 }
0x254b   : > { %15308 = vmatprep.subr.mxu0 %v20140_v38 }
0x254d   : > { %15306 = vmatmul.mubr.msk.f32.vlgmr.msra.gmra.mrb[100].mxu0 %vm3376_vm2, %v18453_v62 }
0x254e   : > { %15309 = vmatpush3.msk.msra.mxu0 %vm10505_vm9, %v19058_v3  ;;  %15310 = vmatprep.mubr.msk.f32.mxu0 %vm17464_vm5, %v20140_v38 }
0x254f   : > { %16721 = vmatprep.subr.bf16.mxu0 %v20141_v15 }
0x261c   : > { %v10403_v40 = vpop.f32.mrb[98].mxu0 }
0x261d   : > { %v10404_v25 = vadd.f32 %v13312_v33, %v10403_v40  ;;  %v15302_v54 = vpop.f32.mrb[99].mxu0  ;;  %v19669_v33 = vld [vmem:[%s20113_s9 + $0x8] sm:$0xff]  ;;  %v16749_v40 = vpack.c.bf16 %v13337_v20, %v13335_v57  ;;  %v13350_v57 = vld [vmem:[%s20145_s1 + $0x100] sm:$0xff]  ;;  %v13352_v20 = vld [vmem:[%s20145_s1 + $0x110] sm:$0xff]  ;;  %s17331_s9 = sshll.u32 %s17465_s8, 4  ;;  %s17332_s9 = int_to_ptr.vmem [resolvable:$false] %s17331_s9 }
0x261e   : > { %v13336_v54 = vld [vmem:[%s20145_s1 + $0xb0] sm:$0xff]  ;;  %s17333_s13 = scalar_lea.vmem %s17332_s9, 128 }
0x261f   : > { %17297 = vtanh.f32 %v10404_v25  ;;  %v13334_v25 = vld [vmem:[%s20145_s1 + $0xa0] sm:$0xff] }
0x2620   : > { %v10482_v52 = vpop.f32.mrb[100].mxu0 }
0x2621   : > { %v10486_v62 = vmul.f32 0.17677669, %v10482_v52  ;;  %v15307_v21 = vpop.f32.mrb[101].mxu0 }
0x2622   : > { %v10894_v21 = vld [vmem:[%s20145_s1 + $0x18] sm:$0xff] }
0x2623   : > { %v10488_v22 = vsel %vm10487_vm10, %v10486_v62, -inf  ;;  %10500 = vst.msk [vmem:[%s19615_s4] sm:$0xf] %vm10487_vm10, %v10486_v62 }
0x2624   : > { %10489 = vmax.xlane.f32.xlu1 %v10488_v22 }
0x2629   : > { %v17298_v51 = vpop.eup %17297 }
0x262a   : > { %13314 = vst.msk [vmem:[%s18451_s27 + $0x8] sm:$0xf] %vm4248_vm8, %v17298_v51  ;;  %s1089_s27 = scalar_lea.vmem %s20143_s7, %s12728_s15  ;;  %v16751_v51 = vpack.c.bf16 %v13336_v54, %v13334_v25  ;;  %v16775_v25 = vpack.c.bf16 %v13352_v20, %v13350_v57  ;;  %v13356_v54 = vld [vmem:[%s20146_s22 + $0x20] sm:$0xff]  ;;  %v11424_v57 = vld [vmem:[%s20148_s17 + $0x38] sm:$0xff]  ;;  %s20149_s7 = sld [smem:[#allocation21_spill]] }
0x26b1   : > { %v10490_v55 = vpop.xlane.xlu1 %10489 }
0x26b2   : > { %v10491_v18 = vsub.f32 %v10486_v62, %v10490_v55  ;;  %v10892_v62 = vld [vmem:[%s20145_s1 + $0x8] sm:$0xff] }
0x26b3   : > { %v16753_v55 = vpack.c.bf16 %v10894_v21, %v10892_v62  ;;  %v13358_v62 = vld [vmem:[%s20146_s22 + $0x30] sm:$0xff]  ;;  %v11165_v21 = vld [vmem:[%s20146_s22 + $0x8] sm:$0xff] }
0x26b4   : > { %v10492_v43 = vmul.f32 1.442695, %v10491_v18  ;;  %v10891_v18 = vld [vmem:[%s20145_s1] sm:$0xff] }
0x26b6   : > { %17299 = vpow2.f32 %v10492_v43  ;;  %v10893_v43 = vld [vmem:[%s20145_s1 + $0x10] sm:$0xff] }
0x26c0   : > { %v17300_v9 = vpop.eup %17299 }
0x26c1   : > { %v10494_v32 = vsel %vm10487_vm10, %v17300_v9, 0.0 }
0x26c2   : > { %10495 = vadd.xlane.f32.xlu0 %v10494_v32  ;;  %v10898_v32 = vld [vmem:[%s20145_s1 + $0x38] sm:$0xff] }
0x274f   : > { %v10496_v28 = vpop.xlane.xlu0 %10495 }
0x2750   : > { %17301 = vrcp.f32 %v10496_v28  ;;  %v16755_v28 = vpack.c.bf16 %v10893_v43, %v10891_v18  ;;  %v11166_v18 = vld [vmem:[%s20146_s22 + $0x10] sm:$0xff]  ;;  %v13365_v43 = vld [vmem:[%s20146_s22 + $0x48] sm:$0xff] }
0x275a   : > { %v17302_v0 = vpop.eup %17301 }
0x275b   : > { %v10498_v42 = vmul.f32 %v17302_v0, %v17300_v9  ;;  %v10896_v9 = vld [vmem:[%s20145_s1 + $0x28] sm:$0xff]  ;;  %v10897_v0 = vld [vmem:[%s20145_s1 + $0x30] sm:$0xff] }
0x275c   : > { %v16757_v29 = vpack.c.bf16 %v10898_v32, %v10896_v9  ;;  %v16759_v11 = vpack.c.bf16 %v10897_v0, %v10895_v37  ;;  %v13367_v9 = vld [vmem:[%s20146_s22 + $0x58] sm:$0xff]  ;;  %v13371_v37 = vld [vmem:[%s20147_s11 + $0x88] sm:$0xff]  ;;  %s1093_s11 = scalar_lea.vmem %s17630_s20, %s12728_s15  ;;  %s20151_s15 = sld [smem:[#allocation26_spill]] }
0x275d   : > { %10499 = vst.msk [vmem:[%s1089_s27] sm:$0xf] %vm10487_vm10, %v10498_v42  ;;  %15311 = vmatmul.mubr.msk.f32.vlgmr.msra.gmra.mrb[102].mxu0 %vm10501_vm11, %v10498_v42  ;;  %v10902_v42 = vld [vmem:[%s20145_s1 + $0x58] sm:$0xff]  ;;  %s20150_s27 = sld [smem:[#allocation25_spill]] }
0x275e   : > { %16723 = vmatpush3.bf16.msra.mxu0 %v16722_v1  ;;  %15321 = vmatprep.mubr.msk.f32.mxu0 %vm17464_vm5, %v20140_v38  ;;  %v10900_v1 = vld [vmem:[%s20145_s1 + $0x48] sm:$0xff]  ;;  %v13373_v0 = vld [vmem:[%s20148_s17 + $0x98] sm:$0xff] }
0x275f   : > { %16724 = vmatprep.subr.bf16.mxu0 %v20141_v15 }
0x2762   : > { %16726 = vmatpush3.bf16.msra.mxu0 %v16725_v56  ;;  %v16761_v56 = vpack.c.bf16 %v10902_v42, %v10900_v1  ;;  %v13370_v1 = vld [vmem:[%s20148_s17 + $0x80] sm:$0xff]  ;;  %v13372_v42 = vld [vmem:[%s20148_s17 + $0x90] sm:$0xff] }
0x2763   : > { %16727 = vmatprep.subr.bf16.mxu0 %v20141_v15 }
0x2765   : > { %15322 = vmatmul.mubr.msk.f32.vlgmr.msra.gmra.mrb[104].mxu0 %vm3376_vm2, %v19058_v3 }
0x2766   : > { %16729 = vmatpush3.bf16.msra.mxu0 %v16728_v13  ;;  %15332 = vmatprep.mubr.msk.f32.mxu0 %vm17464_vm5, %v20140_v38  ;;  %v13343_v13 = vld [vmem:[%s20145_s1 + $0xc8] sm:$0xff] }
0x2767   : > { %16730 = vmatprep.subr.bf16.mxu0 %v20141_v15  ;;  %v16765_v45 = vpack.c.bf16 %v13345_v5, %v13343_v13  ;;  %v13379_v13 = vld [vmem:[%s20148_s17 + $0xc8] sm:$0xff]  ;;  %v13381_v5 = vld [vmem:[%s20148_s17 + $0xd8] sm:$0xff] }
0x276a   : > { %16732 = vmatpush3.bf16.msra.mxu0 %v16731_v8  ;;  %v16763_v8 = vpack.c.bf16 %v10901_v63, %v10899_v59  ;;  %v13376_v63 = vld [vmem:[%s20148_s17 + $0xb0] sm:$0xff] }
0x276b   : > { %16734 = vmatprep.subr.bf16.mxu0 %v19562_v24 }
0x2830   : > { %v10574_v3 = vpop.f32.mrb[102].mxu0 }
0x2831   : > { %10578 = vst.msk [vmem:[%s19653_s23] sm:$0xf] %vm4248_vm8, %v10574_v3  ;;  %v15312_v15 = vpop.f32.mrb[103].mxu0  ;;  %15333 = vmatmul.mubr.msk.f32.vlgmr.msra.gmra.mrb[106].mxu0 %vm3376_vm2, %v10574_v3 }
0x2832   : > { %16736 = vmatpush3.bf16.msra.mxu0 %v19562_v24  ;;  %15339 = vmatprep.mubr.msk.f32.mxu0 %vm1146_vm0, %v19660_v58  ;;  %v16747_v24 = vpack.c.bf16 %v13332_v2, %v13330_v35  ;;  %v13348_v15 = vld [vmem:[%s20145_s1 + $0xf0] sm:$0xff] }
0x2833   : > { %16742 = vmatprep.subr.bf16.mxu0 %v16741_v12  ;;  %v13344_v12 = vld [vmem:[%s20145_s1 + $0xd0] sm:$0xff]  ;;  %v16771_v35 = vpack.c.bf16 %v13348_v15, %v13346_v31  ;;  %v11418_v31 = vld [vmem:[%s20148_s17 + $0x8] sm:$0xff]  ;;  %v11420_v15 = vld [vmem:[%s20148_s17 + $0x18] sm:$0xff] }
0x2834   : > { %v16767_v3 = vpack.c.bf16 %v13344_v12, %v13342_v14  ;;  %v13380_v14 = vld [vmem:[%s20148_s17 + $0xd0] sm:$0xff]  ;;  %v13383_v12 = vld [vmem:[%s20148_s17 + $0xe8] sm:$0xff] }
0x2835   : > { %15340 = vmatmul.mubr.msk.f32.vlgmr.msra.gmra.mrb[108].mxu0 %vm1146_vm0, %v19669_v33  ;;  %v16801_v30 = vpack.c.bf16 %v13385_v6, %v13383_v12  ;;  %v13399_v12 = vld [vmem:[%s20148_s17 + $0x148] sm:$0xff]  ;;  %v13401_v6 = vld [vmem:[%s20148_s17 + $0x158] sm:$0xff] }
0x2836   : > { %16744 = vmatpush1.bf16.msra.mxu0 %v16743_v4  ;;  %10980 = vmatprep.mubr.f32.mxu0 %v20140_v38  ;;  %v13351_v4 = vld [vmem:[%s20145_s1 + $0x108] sm:$0xff] }
0x2837   : > { %16746 = vmatprep.subr.bf16.mxu0 %v16745_v53  ;;  %v13353_v53 = vld [vmem:[%s20145_s1 + $0x118] sm:$0xff]  ;;  %s20152_s1 = smov %s20151_s15 }
0x2838   : > { %v19676_v52 = vpop.f32.mrb[104].mxu0  ;;  %v16773_v2 = vpack.c.bf16 %v13353_v53, %v13351_v4  ;;  %v11417_v53 = vld [vmem:[%s20148_s17] sm:$0xff] }
0x2839   : > { %v15323_v22 = vpop.f32.mrb[105].mxu0 }
0x283a   : > { %16748 = vmatpush1.bf16.msra.mxu0 %v16747_v24  ;;  %v13357_v24 = vld [vmem:[%s20146_s22 + $0x28] sm:$0xff]  ;;  %v11167_v22 = vld [vmem:[%s20146_s22 + $0x18] sm:$0xff] }
0x283b   : > { %16750 = vmatprep.subr.bf16.mxu0 %v16749_v40  ;;  %v13359_v40 = vld [vmem:[%s20146_s22 + $0x38] sm:$0xff] }
0x283e   : > { %16752 = vmatpush1.bf16.msra.mxu0 %v16751_v51  ;;  %v16779_v51 = vpack.c.bf16 %v13358_v62, %v13356_v54  ;;  %v11428_v54 = vld [vmem:[%s20148_s17 + $0x58] sm:$0xff] }
0x283f   : > { %16754 = vmatprep.subr.bf16.mxu0 %v16753_v55  ;;  %v16781_v55 = vpack.c.bf16 %v11167_v22, %v11165_v21  ;;  %v11425_v22 = vld [vmem:[%s20148_s17 + $0x40] sm:$0xff] }
0x2841   : > { %13338 = vmatmul.mubr.msk.f32.vlgmr.msra.gmra.mrb[110].mxu0 %vm1322_vm1, %v19689_v23 }
0x2842   : > { %16756 = vmatpush1.bf16.msra.mxu0 %v16755_v28  ;;  %10986 = vmatprep.mubr.f32.mxu0 %v20140_v38  ;;  %v16785_v28 = vpack.c.bf16 %v13367_v9, %v13365_v43  ;;  %v11429_v9 = vld [vmem:[%s20148_s17 + $0x60] sm:$0xff] }
0x2843   : > { %16758 = vmatprep.subr.bf16.mxu0 %v16757_v29  ;;  %v13366_v29 = vld [vmem:[%s20146_s22 + $0x50] sm:$0xff] }
0x2845   : > { %13339 = vmatmul.mubr.msk.f32.gmra.mrb[112].mxu0 %vm1322_vm1, %v19699_v26 }
0x2846   : > { %16760 = vmatpush1.bf16.msra.mxu0 %v16759_v11  ;;  %11057 = vmatprep.mubr.f32.mxu0 %v20140_v38  ;;  %v13375_v11 = vld [vmem:[%s20148_s17 + $0xa8] sm:$0xff] }
0x2847   : > { %16762 = vmatprep.subr.bf16.mxu0 %v16761_v56  ;;  %v16791_v56 = vpack.c.bf16 %v13372_v42, %v13370_v1  ;;  %v13321_v1 = vld [vmem:[%s20149_s7] ss:$0 sm:$0xff]  ;;  %s20153_s7 = sld [smem:[#allocation32_spill]] }
0x2848   : > { %v13390_v42 = vld [vmem:[%s20148_s17 + $0x100] sm:$0xff] }
0x284a   : > { %16764 = vmatpush1.bf16.msra.mxu0 %v16763_v8  ;;  %v16797_v8 = vpack.c.bf16 %v13381_v5, %v13379_v13 }
0x284b   : > { %16766 = vmatprep.subr.bf16.mxu0 %v16765_v45  ;;  %v13378_v45 = vld [vmem:[%s20148_s17 + $0xc0] sm:$0xff] }
0x284d   : > { %13340 = vmatmul.mubr.msk.f32.vlgmr.msra.gmra.mrb[110].mxu0 %vm1322_vm1, %v18435_v27  ;;  %v16777_v27 = vpack.c.bf16 %v13359_v40, %v13357_v24  ;;  %v11421_v40 = vld [vmem:[%s20148_s17 + $0x20] sm:$0xff] }
0x284e   : > { %16768 = vmatpush1.bf16.msra.mxu0 %v16767_v3  ;;  %11063 = vmatprep.mubr.f32.mxu0 %v20140_v38  ;;  %v13382_v3 = vld [vmem:[%s20148_s17 + $0xe0] sm:$0xff] }
0x284f   : > { %16770 = vmatprep.subr.bf16.mxu0 %v16769_v41  ;;  %v13384_v41 = vld [vmem:[%s20148_s17 + $0xf0] sm:$0xff] }
0x2850   : > { %v16803_v4 = vpack.c.bf16 %v13384_v41, %v13382_v3  ;;  %v13400_v3 = vld [vmem:[%s20148_s17 + $0x150] sm:$0xff]  ;;  %v13403_v41 = vld [vmem:[%s20148_s17 + $0x168] sm:$0xff] }
0x2851   : > { %13341 = vmatmul.mubr.msk.f32.gmra.mrb[112].mxu0 %vm1322_vm1, %v18433_v17  ;;  %v11164_v17 = vld [vmem:[%s20146_s22] sm:$0xff] }
0x2852   : > { %16772 = vmatpush1.bf16.msra.mxu0 %v16771_v35  ;;  %11147 = vmatprep.mubr.f32.mxu0 %v20140_v38  ;;  %v16783_v32 = vpack.c.bf16 %v11166_v18, %v11164_v17  ;;  %v11419_v35 = vld [vmem:[%s20148_s17 + $0x10] sm:$0xff]  ;;  %v11432_v17 = vld [vmem:[%s20148_s17 + $0x78] sm:$0xff] }
0x2853   : > { %16774 = vmatprep.subr.bf16.mxu0 %v16773_v2  ;;  %v11422_v2 = vld [vmem:[%s20148_s17 + $0x28] sm:$0xff]  ;;  %v16807_v20 = vpack.c.bf16 %v11419_v35, %v11417_v53  ;;  %v13404_v53 = vld [vmem:[%s20148_s17 + $0x170] sm:$0xff] }
0x2854   : > { %v16809_v24 = vpack.c.bf16 %v11424_v57, %v11422_v2  ;;  %v11724_v57 = vld [vmem:[%s20150_s27] sm:$0x3]  ;;  %s20154_s27 = smov %s20153_s7 }
0x2856   : > { %16776 = vmatpush1.bf16.msra.mxu0 %v16775_v25  ;;  %v11423_v25 = vld [vmem:[%s20148_s17 + $0x30] sm:$0xff] }
0x2857   : > { %16778 = vmatprep.subr.bf16.mxu0 %v16777_v27  ;;  %v11426_v27 = vld [vmem:[%s20148_s17 + $0x48] sm:$0xff]  ;;  %v16811_v62 = vpack.c.bf16 %v11423_v25, %v11421_v40  ;;  %v11733_v40 = vrot.slane %v11724_v57, %v17934_v48 }
0x2858   : > { %v16813_v21 = vpack.c.bf16 %v11428_v54, %v11426_v27 }
0x2859   : > { %13354 = vmatmul.mubr.msk.f32.vlgmr.msra.gmra.mrb[110].mxu0 %vm1322_vm1, %v18446_v7  ;;  %v13364_v7 = vld [vmem:[%s20146_s22 + $0x40] sm:$0xff] }
0x285a   : > { %11153 = vmatprep.mubr.f32.mxu0 %v20140_v38  ;;  %16780 = vmatpush1.bf16.msra.mxu0 %v16779_v51  ;;  %v11427_v51 = vld [vmem:[%s20148_s17 + $0x50] sm:$0xff] }
0x285b   : > { %16782 = vmatprep.subr.bf16.mxu0 %v16781_v55  ;;  %v11430_v55 = vld [vmem:[%s20148_s17 + $0x68] sm:$0xff]  ;;  %v16815_v18 = vpack.c.bf16 %v11427_v51, %v11425_v22 }
0x285c   : > { %v16817_v43 = vpack.c.bf16 %v11432_v17, %v11430_v55 }
0x285d   : > { %13355 = vmatmul.mubr.msk.f32.gmra.mrb[112].mxu0 %vm1322_vm1, %v18444_v16  ;;  %v16787_v16 = vpack.c.bf16 %v13366_v29, %v13364_v7  ;;  %v13393_v7 = vld [vmem:[%s20148_s17 + $0x118] sm:$0xff] }
0x285e   : > { %11237 = vmatprep.mubr.f32.mxu0 %v20140_v38 }
0x2861   : > { %13360 = vmatmul.mubr.msk.f32.vlgmr.msra.gmra.mrb[110].mxu0 %vm1146_vm0, %v18523_v34  ;;  %v16789_v34 = vpack.c.bf16 %v13373_v0, %v13371_v37  ;;  %v15348_v0 = vpop.f32.mrb[98].mxu1 }
0x2862   : > { %11243 = vmatprep.mubr.f32.mxu0 %v20140_v38  ;;  %16784 = vmatpush1.bf16.msra.mxu0 %v16783_v32  ;;  %v11431_v32 = vld [vmem:[%s20148_s17 + $0x70] sm:$0xff] }
0x2863   : > { %16786 = vmatprep.subr.bf16.mxu0 %v16785_v28  ;;  %v13391_v28 = vld [vmem:[%s20148_s17 + $0x108] sm:$0xff]  ;;  %v16819_v29 = vpack.c.bf16 %v11431_v32, %v11429_v9 }
0x2864   : > { %v16821_v37 = vpack.c.bf16 %v13393_v7, %v13391_v28  ;;  %v13429_v9 = vld [vmem:[%s20152_s1 + $0x188] sm:$0xff]  ;;  %v13412_v28 = vld [vmem:[%s20152_s1 + $0x100] sm:$0xff] }
0x2865   : > { %13361 = vmatmul.mubr.msk.f32.gmra.mrb[112].mxu0 %vm1146_vm0, %v18521_v44  ;;  %v13377_v44 = vld [vmem:[%s20148_s17 + $0xb8] sm:$0xff]  ;;  %v13413_v7 = vld [vmem:[%s20152_s1 + $0x108] sm:$0xff] }
0x2866   : > { %11314 = vmatprep.mubr.f32.mxu0 %v20140_v38  ;;  %v16793_v59 = vpack.c.bf16 %v13377_v44, %v13375_v11  ;;  %v13392_v11 = vld [vmem:[%s20148_s17 + $0x110] sm:$0xff] }
0x2867   : > { %v16823_v13 = vpack.c.bf16 %v13392_v11, %v13390_v42  ;;  %v13433_v42 = vld [vmem:[%s20152_s1 + $0x1a8] sm:$0xff] }
0x2869   : > { %13362 = vmatmul.mubr.msk.f32.vlgmr.msra.gmra.mrb[110].mxu0 %vm1146_vm0, %v18614_v61  ;;  %v13374_v61 = vld [vmem:[%s20148_s17 + $0xa0] sm:$0xff] }
0x286a   : > { %11320 = vmatprep.mubr.f32.mxu0 %v20140_v38  ;;  %16788 = vmatpush1.bf16.msra.mxu0 %v16787_v16  ;;  %v10882_v16 = vpop.f32.mrb[99].mxu1 }
0x286b   : > { %16790 = vmatprep.subr.bf16.mxu0 %v16789_v34 }
0x286d   : > { %13363 = vmatmul.mubr.msk.f32.gmra.mrb[112].mxu0 %vm1146_vm0, %v18612_v60  ;;  %v16795_v60 = vpack.c.bf16 %v13376_v63, %v13374_v61  ;;  %v13397_v61 = vld [vmem:[%s20148_s17 + $0x138] sm:$0xff] }
0x286e   : > { %11396 = vmatprep.mubr.f32.mxu0 %v20140_v38 }
0x2871   : > { %13368 = vmatmul.mubr.msk.f32.vlgmr.msra.gmra.mrb[110].mxu0 %vm1146_vm0, %v18621_v10  ;;  %v16799_v10 = vpack.c.bf16 %v13380_v14, %v13378_v45  ;;  %v13396_v45 = vld [vmem:[%s20148_s17 + $0x130] sm:$0xff] }
0x2872   : > { %16792 = vmatpush1.bf16.msra.mxu0 %v16791_v56  ;;  %11402 = vmatprep.mubr.f32.mxu0 %v20140_v38 }
0x2873   : > { %16794 = vmatprep.subr.bf16.mxu0 %v16793_v59  ;;  %v13395_v59 = vld [vmem:[%s20148_s17 + $0x128] sm:$0xff] }
0x2875   : > { %13369 = vmatmul.mubr.msk.f32.gmra.mrb[112].mxu0 %vm1146_vm0, %v18619_v49  ;;  %v16805_v49 = vpack.c.bf16 %v11420_v15, %v11418_v31  ;;  %v13405_v31 = vld [vmem:[%s20148_s17 + $0x178] sm:$0xff] }
0x2876   : > { %16796 = vmatpush1.bf16.msra.mxu0 %v16795_v60  ;;  %11520 = vmatprep.mubr.f32.mxu0 %v20140_v38  ;;  %v16825_v60 = vpack.c.bf16 %v13397_v61, %v13395_v59  ;;  %v13434_v59 = vld [vmem:[%s20152_s1 + $0x1b0] sm:$0xff]  ;;  %v13435_v61 = vld [vmem:[%s20152_s1 + $0x1b8] sm:$0xff] }
0x2877   : > { %16798 = vmatprep.subr.bf16.mxu0 %v16797_v8  ;;  %v13394_v8 = vld [vmem:[%s20148_s17 + $0x120] sm:$0xff] }
0x287a   : > { %16800 = vmatpush1.bf16.msra.mxu0 %v16799_v10  ;;  %v16829_v10 = vpack.c.bf16 %v13401_v6, %v13399_v12  ;;  %v13438_v12 = vld [vmem:[%s20152_s1 + $0x1d0] sm:$0xff]  ;;  %v13439_v6 = vld [vmem:[%s20152_s1 + $0x1d8] sm:$0xff] }
0x287b   : > { %16802 = vmatprep.subr.bf16.mxu0 %v16801_v30  ;;  %v13398_v30 = vld [vmem:[%s20148_s17 + $0x140] sm:$0xff] }
0x287c   : > { %v16831_v15 = vpack.c.bf16 %v13400_v3, %v13398_v30  ;;  %v13422_v30 = vld [vmem:[%s20152_s1 + $0x150] sm:$0xff]  ;;  %v13423_v3 = vld [vmem:[%s20152_s1 + $0x158] sm:$0xff] }
0x287e   : > { %16804 = vmatpush1.bf16.msra.mxu0 %v16803_v4  ;;  %v16833_v4 = vpack.c.bf16 %v13405_v31, %v13403_v41  ;;  %v13440_v41 = vld [vmem:[%s20152_s1 + $0x1e0] sm:$0xff]  ;;  %v13441_v31 = vld [vmem:[%s20152_s1 + $0x1e8] sm:$0xff] }
0x287f   : > { %16806 = vmatprep.subr.bf16.mxu0 %v16805_v49  ;;  %v13402_v49 = vld [vmem:[%s20148_s17 + $0x160] sm:$0xff] }
0x2880   : > { %v16835_v2 = vpack.c.bf16 %v13404_v53, %v13402_v49  ;;  %v13424_v49 = vld [vmem:[%s20152_s1 + $0x160] sm:$0xff]  ;;  %v13425_v53 = vld [vmem:[%s20152_s1 + $0x168] sm:$0xff] }
0x2881   : > { %13386 = vmatmul.mubr.msk.f32.vlgmr.msra.gmra.mrb[110].mxu0 %vm3381_vm3, %v18896_v36 }
0x2882   : > { %11526 = vmatprep.mubr.f32.mxu0 %v20140_v38  ;;  %16808 = vmatpush1.bf16.msra.mxu0 %v16807_v20  ;;  %v11729_v20 = vrot.slane %v11724_v57, %v17937_v50  ;;  %v16871_v57 = vpack.c.bf16 %v13425_v53, %v13424_v49  ;;  %v13444_v49 = vld [vmem:[%s20152_s1 + $0x200] sm:$0xff]  ;;  %v13445_v53 = vld [vmem:[%s20152_s1 + $0x208] sm:$0xff] }
0x2883   : > { %16810 = vmatprep.subr.bf16.mxu0 %v16809_v24 }
0x2885   : > { %13387 = vmatmul.mubr.msk.f32.gmra.mrb[112].mxu0 %vm3381_vm3, %v18910_v46 }
0x2886   : > { %16812 = vmatpush1.bf16.msra.mxu0 %v16811_v62  ;;  %11603 = vmatprep.mubr.f32.mxu0 %v20140_v38 }
0x2887   : > { %16814 = vmatprep.subr.bf16.mxu0 %v16813_v21 }
0x288a   : > { %16816 = vmatpush1.bf16.msra.mxu0 %v16815_v18 }
0x288b   : > { %16818 = vmatprep.subr.bf16.mxu0 %v16817_v43  ;;  %v13428_v43 = vld [vmem:[%s20151_s15 + $0x180] sm:$0xff]  ;;  %s12399_s15 = sshll.u32 %s19615_s4, 4  ;;  %s12400_s15 = int_to_ptr.vmem [resolvable:$true] %s12399_s15 }
0x288c   : > { %v16845_v32 = vpack.c.bf16 %v13429_v9, %v13428_v43  ;;  %v11917_v43 = vld [vmem:[%s20152_s1 + $0x98] sm:$0xff]  ;;  %s17327_s6 = scalar_lea.vmem %s12400_s15, 64  ;;  %p17334_p0 = scmp.lt.s32.totalorder %s12400_s15, %s17332_s9 }
0x288d   : > { %p17328_p11 = scmp.ne.s32.totalorder %s12400_s15, %s17327_s6  ;;  %p17335_p1 = scmp.lt.s32.totalorder %s17333_s13, %s17327_s6 }
0x288e   : > { %16820 = vmatpush1.bf16.msra.mxu0 %v16819_v29  ;;  %v13430_v29 = vld [vmem:[%s20152_s1 + $0x190] sm:$0xff] }
0x288f   : > { %16822 = vmatprep.subr.bf16.mxu0 %v16821_v37  ;;  %v13431_v37 = vld [vmem:[%s20152_s1 + $0x198] sm:$0xff]  ;;  %p17329_p12 = pnand %p17328_p11, %p17680_p5  ;;  %p17336_p2 = por %p17335_p1, %p17334_p0 }
0x2891   : > { %p17330_p13 = pneg %p17329_p12 }
0x2893   : > { %p17337_p3 = pnand %p17336_p2, %p17330_p13 }
0x2904   : > { %v10726_v34 = vpop.f32.mrb[106].mxu0 }
0x2905   : > { %v10727_v44 = vadd.f32 %v10726_v34, %v19676_v52  ;;  %v15334_v56 = vpop.f32.mrb[107].mxu0  ;;  %v16827_v52 = vpack.c.bf16 %v13396_v45, %v13394_v8  ;;  %v13415_v34 = vld [vmem:[%s20152_s1 + $0x118] sm:$0xff] }
0x2906   : > { %v13417_v56 = vld [vmem:[%s20152_s1 + $0x128] sm:$0xff] }
0x2907   : > { %v10737_v63 = vadd.f32 %v13321_v1, %v10727_v44  ;;  %v13432_v1 = vld [vmem:[%s20152_s1 + $0x1a0] sm:$0xff] }
0x2908   : > { %v15341_v5 = vpop.f32.mrb[108].mxu0  ;;  %v16853_v11 = vpack.c.bf16 %v13433_v42, %v13432_v1  ;;  %v13416_v44 = vld [vmem:[%s20152_s1 + $0x120] sm:$0xff]  ;;  %v11920_v1 = vld [vmem:[%s20152_s1 + $0xb0] sm:$0xff]  ;;  %v11921_v42 = vld [vmem:[%s20152_s1 + $0xb8] sm:$0xff] }
0x2909   : > { %17303 = vtanh.f32 %v10737_v63  ;;  %v10807_v14 = vpop.f32.mrb[109].mxu0  ;;  %v13418_v63 = vld [vmem:[%s20152_s1 + $0x130] sm:$0xff] }
0x290a   : > { %13388 = vmatmul.mubr.msk.f32.vlgmr.msra.gmra.mrb[110].mxu0 %vm3381_vm3, %v10807_v14  ;;  %v13421_v14 = vld [vmem:[%s20152_s1 + $0x148] sm:$0xff] }
0x290b   : > { %16824 = vmatpush1.bf16.msra.mxu0 %v16823_v13  ;;  %11609 = vmatprep.mubr.f32.mxu0 %v20140_v38  ;;  %v13419_v13 = vld [vmem:[%s20152_s1 + $0x138] sm:$0xff] }
0x290c   : > { %16826 = vmatprep.subr.bf16.mxu0 %v16825_v60  ;;  %v13437_v60 = vld [vmem:[%s20152_s1 + $0x1c8] sm:$0xff]  ;;  %v16859_v8 = vpack.c.bf16 %v13419_v13, %v13418_v63  ;;  %v11908_v63 = vld [vmem:[%s20152_s1 + $0x50] sm:$0xff]  ;;  %v11909_v13 = vld [vmem:[%s20152_s1 + $0x58] sm:$0xff] }
0x290e   : > { %13389 = vmatmul.mubr.msk.f32.gmra.mrb[112].mxu0 %vm3381_vm3, %v15341_v5  ;;  %v13436_v5 = vld [vmem:[%s20152_s1 + $0x1c0] sm:$0xff] }
0x290f   : > { %16828 = vmatpush1.bf16.msra.mxu0 %v16827_v52  ;;  %11703 = vmatprep.mubr.f32.mxu0 %v20140_v38  ;;  %v16861_v45 = vpack.c.bf16 %v13437_v60, %v13436_v5  ;;  %v11926_v5 = vld [vmem:[%s20152_s1 + $0xe0] sm:$0xff]  ;;  %v11927_v60 = vld [vmem:[%s20152_s1 + $0xe8] sm:$0xff] }
0x2910   : > { %16830 = vmatprep.subr.bf16.mxu0 %v16829_v10  ;;  %v16865_v10 = vpack.c.bf16 %v13439_v6, %v13438_v12  ;;  %v11928_v12 = vld [vmem:[%s20152_s1 + $0xf0] sm:$0xff]  ;;  %v11929_v6 = vld [vmem:[%s20152_s1 + $0xf8] sm:$0xff] }
0x2913   : > { %v17304_v35 = vpop.eup %17303  ;;  %16832 = vmatpush1.bf16.msra.mxu0 %v16831_v15  ;;  %v16867_v15 = vpack.c.bf16 %v13423_v3, %v13422_v30  ;;  %v11912_v30 = vld [vmem:[%s20152_s1 + $0x70] sm:$0xff]  ;;  %v11913_v3 = vld [vmem:[%s20152_s1 + $0x78] sm:$0xff] }
0x2914   : > { %10740 = vst.msk [vmem:[%s1093_s11] sm:$0xf] %vm10739_vm12, %v17304_v35  ;;  %16834 = vmatprep.subr.bf16.mxu0 %v16833_v4  ;;  %v16869_v4 = vpack.c.bf16 %v13441_v31, %v13440_v41  ;;  %v13442_v35 = vld [vmem:[%s20152_s1 + $0x1f0] sm:$0xff]  ;;  %v16907_v41 = vpack.c.bf16 %v11913_v3, %v11912_v30  ;;  %v13460_v31 = vld [vmem:[%s20152_s1 + $0x280] sm:$0xff]  ;;  %s13483_s11 = sshll.u32 %s17663_s0, 6 }
0x2917   : > { %16836 = vmatpush1.bf16.msra.mxu0 %v16835_v2  ;;  %v13443_v2 = vld [vmem:[%s20152_s1 + $0x1f8] sm:$0xff] }
0x2918   : > { %16942 = vmatprep.subr.bf16.mxu0 %v18110_v47 }
0x291a   : > { %13406 = vmatmul.mubr.msk.f32.vlgmr.msra.gmra.mrb[110].mxu0 %vm3381_vm3, %v10882_v16  ;;  %v16849_v16 = vpack.c.bf16 %v13431_v37, %v13430_v29  ;;  %v11918_v29 = vld [vmem:[%s20152_s1 + $0xa0] sm:$0xff]  ;;  %v11919_v37 = vld [vmem:[%s20152_s1 + $0xa8] sm:$0xff] }
0x291b   : > { %11709 = vmatprep.mubr.f32.mxu0 %v20140_v38  ;;  %16944 = vmatpush3.bf16.msra.mxu0 %v18110_v47 }
0x291e   : > { %13407 = vmatmul.mubr.msk.f32.gmra.mrb[112].mxu0 %vm3381_vm3, %v15348_v0  ;;  %v16847_v0 = vpack.c.bf16 %v13413_v7, %v13412_v28  ;;  %v11900_v28 = vld [vmem:[%s20152_s1 + $0x10] sm:$0xff]  ;;  %v11901_v7 = vld [vmem:[%s20152_s1 + $0x18] sm:$0xff] }
0x291f   : > { %15353 = vmatprep.mubr.msk.f32.mxu0 %vm1146_vm0, %v18896_v36 }
0x2922   : > { %15354 = vmatmul.mubr.msk.f32.vlgmr.msra.gmra.mrb[114].mxu0 %vm1146_vm0, %v18910_v46 }
0x29ed   : > { %v11705_v24 = vpop.f32.mrb[110].mxu0 }
0x29ee   : > { %v11707_v25 = vpop.f32.mrb[111].mxu0  ;;  %v19831_v27 = vadd.f32 %v11729_v20, %v11705_v24  ;;  %v13426_v24 = vld [vmem:[%s20152_s1 + $0x170] sm:$0xff] }
0x29ef   : > { %v11737_v47 = vadd.f32 %v11733_v40, %v11707_v25  ;;  %v11914_v25 = vld [vmem:[%s20152_s1 + $0x80] sm:$0xff] }
0x29f0   : > { %v11740_v46 = vmax.f32 %v19831_v27, 0.0 }
0x29f1   : > { %v11711_v54 = vpop.f32.mrb[112].mxu0  ;;  %v11741_v50 = vmax.f32 %v11737_v47, 0.0  ;;  %v11915_v47 = vld [vmem:[%s20152_s1 + $0x88] sm:$0xff] }
0x29f2   : > { %v19833_v62 = vadd.f32 %v11729_v20, %v11711_v54  ;;  %v11713_v21 = vpop.f32.mrb[113].mxu0  ;;  %v16873_v20 = vpack.c.bf16 %v13443_v2, %v13442_v35  ;;  %v13462_v35 = vld [vmem:[%s20152_s1 + $0x290] sm:$0xff]  ;;  %v13463_v2 = vld [vmem:[%s20152_s1 + $0x298] sm:$0xff] }
0x29f3   : > { %v19835_v36 = vadd.f32 %v11733_v40, %v11713_v21  ;;  %v13427_v40 = vld [vmem:[%s20152_s1 + $0x178] sm:$0xff]  ;;  %v16877_v21 = vpack.c.bf16 %v11915_v47, %v11914_v25  ;;  %v13446_v25 = vld [vmem:[%s20152_s1 + $0x210] sm:$0xff] }
0x29f4   : > { %v11742_v22 = vmax.f32 %v19833_v62, 0.0  ;;  %v16875_v54 = vpack.c.bf16 %v13427_v40, %v13426_v24  ;;  %v11906_v62 = vld [vmem:[%s20152_s1 + $0x40] sm:$0xff]  ;;  %v16913_v40 = vpack.c.bf16 %v13463_v2, %v13462_v35  ;;  %v13447_v47 = vld [vmem:[%s20152_s1 + $0x218] sm:$0xff] }
0x29f5   : > { %v11743_v48 = vmax.f32 %v19835_v36, 0.0  ;;  %v19840_v51 = vpop.f32.mrb[114].mxu0  ;;  %v16889_v36 = vpack.c.bf16 %v11921_v42, %v11920_v1  ;;  %v13468_v1 = vld [vmem:[%s20152_s1 + $0x2c0] sm:$0xff]  ;;  %v13469_v42 = vld [vmem:[%s20152_s1 + $0x2c8] sm:$0xff] }
0x29f6   : > { %v16839_v55 = vpack.c.bf16 %v11742_v22, %v11740_v46  ;;  %v19846_v17 = vpop.f32.mrb[115].mxu0 }
0x29f7   : > { %v16837_v18 = vpack.c.bf16 %v11743_v48, %v11741_v50 }
0x29f9   : > { %16838 = vmatprep.subr.bf16.mxu1 %v16837_v18 }
0x29fa   : > { %16840 = vmatpush1.bf16.msra.mxu1 %v16839_v55 }
0x29fb   : > { %16842 = vmatprep.subr.bf16.mxu1 %v16837_v18  ;;  %v11916_v18 = vld [vmem:[%s20152_s1 + $0x90] sm:$0xff] }
0x29fd   : > { %13408 = vmatmul.mubr.msk.f32.vlgmr.msra.gmra.mrb[100].mxu1 %vm1146_vm0, %v19660_v58  ;;  %v13414_v58 = vld [vmem:[%s20152_s1 + $0x110] sm:$0xff] }
0x29fe   : > { %16844 = vmatpush1.bf16.msra.mxu1 %v16839_v55  ;;  %11814 = vmatprep.mubr.f32.mxu1 %v20140_v38  ;;  %v11899_v55 = vld [vmem:[%s20152_s1 + $0x8] sm:$0xff] }
0x29ff   : > { %16846 = vmatprep.subr.bf16.mxu1 %v16845_v32  ;;  %v16881_v32 = vpack.c.bf16 %v11917_v43, %v11916_v18 }
0x2a01   : > { %13409 = vmatmul.mubr.msk.f32.gmra.mrb[102].mxu1 %vm1146_vm0, %v19669_v33  ;;  %v16851_v33 = vpack.c.bf16 %v13415_v34, %v13414_v58  ;;  %v11902_v58 = vld [vmem:[%s20152_s1 + $0x20] sm:$0xff]  ;;  %v11903_v34 = vld [vmem:[%s20152_s1 + $0x28] sm:$0xff] }
0x2a02   : > { %11885 = vmatprep.mubr.f32.mxu1 %v20140_v38  ;;  %v16887_v27 = vpack.c.bf16 %v11903_v34, %v11902_v58  ;;  %v13451_v58 = vld [vmem:[%s20152_s1 + $0x238] sm:$0xff] }
0x2a05   : > { %13410 = vmatmul.mubr.msk.f32.vlgmr.msra.gmra.mrb[104].mxu1 %vm1146_vm0, %v19580_v39  ;;  %v16855_v39 = vpack.c.bf16 %v13417_v56, %v13416_v44 }
0x2a06   : > { %16848 = vmatpush3.bf16.msra.mxu1 %v16847_v0  ;;  %11891 = vmatprep.mubr.f32.mxu1 %v20140_v38  ;;  %v16857_v38 = vpack.c.bf16 %v13435_v61, %v13434_v59  ;;  %v16883_v0 = vpack.c.bf16 %v11901_v7, %v11900_v28  ;;  %v11924_v59 = vld [vmem:[%s20152_s1 + $0xd0] sm:$0xff]  ;;  %v11925_v61 = vld [vmem:[%s20152_s1 + $0xd8] sm:$0xff] }
0x2a07   : > { %16850 = vmatprep.subr.bf16.mxu1 %v16849_v16  ;;  %v16885_v16 = vpack.c.bf16 %v11919_v37, %v11918_v29  ;;  %v13466_v28 = vld [vmem:[%s20152_s1 + $0x2b0] sm:$0xff]  ;;  %v13467_v7 = vld [vmem:[%s20152_s1 + $0x2b8] sm:$0xff] }
0x2a09   : > { %13411 = vmatmul.mubr.msk.f32.gmra.mrb[106].mxu1 %vm1146_vm0, %v19585_v19  ;;  %v13420_v19 = vld [vmem:[%s20152_s1 + $0x140] sm:$0xff] }
0x2a0a   : > { %16852 = vmatpush3.bf16.msra.mxu1 %v16851_v33  ;;  %12027 = vmatprep.mubr.f32.mxu1 %v11741_v50  ;;  %v16863_v52 = vpack.c.bf16 %v13421_v14, %v13420_v19  ;;  %v11898_v50 = vld [vmem:[%s20152_s1] sm:$0xff]  ;;  %v11911_v14 = vld [vmem:[%s20152_s1 + $0x68] sm:$0xff] }
0x2a0b   : > { %16854 = vmatprep.subr.bf16.mxu1 %v16853_v11  ;;  %v16879_v9 = vpack.c.bf16 %v11899_v55, %v11898_v50  ;;  %v11922_v33 = vld [vmem:[%s20152_s1 + $0xc0] sm:$0xff]  ;;  %v11923_v11 = vld [vmem:[%s20152_s1 + $0xc8] sm:$0xff]  ;;  %v16915_v55 = vpack.c.bf16 %v13447_v47, %v13446_v25 }
0x2a0c   : > { %v16893_v56 = vpack.c.bf16 %v11923_v11, %v11922_v33  ;;  %v11910_v19 = vld [vmem:[%s20152_s1 + $0x60] sm:$0xff]  ;;  %v13453_v33 = vld [vmem:[%s20152_s1 + $0x248] sm:$0xff] }
0x2a0e   : > { %16856 = vmatpush3.bf16.msra.mxu1 %v16855_v39 }
0x2a0f   : > { %16858 = vmatprep.subr.bf16.mxu1 %v16857_v38  ;;  %v16897_v38 = vpack.c.bf16 %v11925_v61, %v11924_v59  ;;  %v13454_v59 = vld [vmem:[%s20152_s1 + $0x250] sm:$0xff]  ;;  %v13455_v61 = vld [vmem:[%s20152_s1 + $0x258] sm:$0xff] }
0x2a12   : > { %16860 = vmatpush3.bf16.msra.mxu1 %v16859_v8  ;;  %v16899_v8 = vpack.c.bf16 %v11909_v13, %v11908_v63  ;;  %v16931_v63 = vpack.c.bf16 %v13455_v61, %v13454_v59 }
0x2a13   : > { %16862 = vmatprep.subr.bf16.mxu1 %v16861_v45  ;;  %v16901_v45 = vpack.c.bf16 %v11927_v60, %v11926_v5  ;;  %v13456_v5 = vld [vmem:[%s20152_s1 + $0x260] sm:$0xff]  ;;  %v13457_v60 = vld [vmem:[%s20152_s1 + $0x268] sm:$0xff] }
0x2a16   : > { %16864 = vmatpush3.bf16.msra.mxu1 %v16863_v52  ;;  %v16903_v52 = vpack.c.bf16 %v11911_v14, %v11910_v19  ;;  %v16935_v19 = vpack.c.bf16 %v13457_v60, %v13456_v5 }
0x2a17   : > { %16866 = vmatprep.subr.bf16.mxu1 %v16865_v10  ;;  %v16905_v10 = vpack.c.bf16 %v11929_v6, %v11928_v12  ;;  %v13458_v12 = vld [vmem:[%s20152_s1 + $0x270] sm:$0xff]  ;;  %v13459_v6 = vld [vmem:[%s20152_s1 + $0x278] sm:$0xff] }
0x2a1a   : > { %16868 = vmatpush3.bf16.msra.mxu1 %v16867_v15  ;;  %v13461_v15 = vld [vmem:[%s20152_s1 + $0x288] sm:$0xff] }
0x2a1b   : > { %16870 = vmatprep.subr.bf16.mxu1 %v16869_v4  ;;  %v16909_v4 = vpack.c.bf16 %v13461_v15, %v13460_v31 }
0x2a1e   : > { %16872 = vmatpush3.bf16.msra.mxu1 %v16871_v57 }
0x2a1f   : > { %16874 = vmatprep.subr.bf16.mxu1 %v16873_v20  ;;  %v16911_v20 = vpack.c.bf16 %v13445_v53, %v13444_v49 }
0x2a22   : > { %16876 = vmatpush3.bf16.msra.mxu1 %v16875_v54  ;;  %v13464_v54 = vld [vmem:[%s20152_s1 + $0x2a0] sm:$0xff] }
0x2a23   : > { %16878 = vmatprep.subr.bf16.mxu1 %v16877_v21  ;;  %v13465_v21 = vld [vmem:[%s20152_s1 + $0x2a8] sm:$0xff] }
0x2a24   : > { %v16917_v43 = vpack.c.bf16 %v13465_v21, %v13464_v54 }
0x2a25   : > { %12028 = vmatmul.mubr.f32.vlgmr.msra.gmra.mrb[108].mxu1 %v11740_v46  ;;  %v11904_v46 = vld [vmem:[%s20152_s1 + $0x30] sm:$0xff] }
0x2a26   : > { %12032 = vmatprep.mubr.f32.mxu1 %v11743_v48  ;;  %16880 = vmatpush3.bf16.msra.mxu1 %v16879_v9  ;;  %v11905_v48 = vld [vmem:[%s20152_s1 + $0x38] sm:$0xff]  ;;  %v13448_v9 = vld [vmem:[%s20152_s1 + $0x220] sm:$0xff] }
0x2a27   : > { %16882 = vmatprep.subr.bf16.mxu1 %v16881_v32  ;;  %v16891_v44 = vpack.c.bf16 %v11905_v48, %v11904_v46  ;;  %v13449_v32 = vld [vmem:[%s20152_s1 + $0x228] sm:$0xff]  ;;  %v16925_v46 = vpack.c.bf16 %v13469_v42, %v13468_v1  ;;  %v13452_v48 = vld [vmem:[%s20152_s1 + $0x240] sm:$0xff] }
0x2a28   : > { %v16919_v29 = vpack.c.bf16 %v13449_v32, %v13448_v9 }
0x2a29   : > { %12033 = vmatmul.mubr.f32.gmra.mrb[110].mxu1 %v11742_v22  ;;  %v11907_v22 = vld [vmem:[%s20152_s1 + $0x48] sm:$0xff] }
0x2a2a   : > { %16884 = vmatpush3.bf16.msra.mxu1 %v16883_v0  ;;  %v16895_v39 = vpack.c.bf16 %v11907_v22, %v11906_v62  ;;  %v16921_v0 = vpack.c.bf16 %v13467_v7, %v13466_v28  ;;  %v16927_v62 = vpack.c.bf16 %v13453_v33, %v13452_v48 }
0x2a2b   : > { %16886 = vmatprep.subr.bf16.mxu1 %v16885_v16  ;;  %v13450_v16 = vld [vmem:[%s20152_s1 + $0x230] sm:$0xff] }
0x2a2e   : > { %16888 = vmatpush3.bf16.msra.mxu1 %v16887_v27  ;;  %v16923_v27 = vpack.c.bf16 %v13451_v58, %v13450_v16 }
0x2a2f   : > { %16890 = vmatprep.subr.bf16.mxu1 %v16889_v36 }
0x2a32   : > { %16892 = vmatpush3.bf16.msra.mxu1 %v16891_v44  ;;  %v13470_v44 = vld [vmem:[%s20152_s1 + $0x2d0] sm:$0xff] }
0x2a33   : > { %16894 = vmatprep.subr.bf16.mxu1 %v16893_v56  ;;  %v13471_v56 = vld [vmem:[%s20152_s1 + $0x2d8] sm:$0xff] }
0x2a34   : > { %v16929_v22 = vpack.c.bf16 %v13471_v56, %v13470_v44 }
0x2a36   : > { %16896 = vmatpush3.bf16.msra.mxu1 %v16895_v39  ;;  %v13472_v39 = vld [vmem:[%s20152_s1 + $0x2e0] sm:$0xff] }
0x2a37   : > { %16898 = vmatprep.subr.bf16.mxu1 %v16897_v38  ;;  %v13473_v38 = vld [vmem:[%s20152_s1 + $0x2e8] sm:$0xff] }
0x2a38   : > { %v16933_v13 = vpack.c.bf16 %v13473_v38, %v13472_v39 }
0x2a3a   : > { %16900 = vmatpush3.bf16.msra.mxu1 %v16899_v8  ;;  %v13474_v8 = vld [vmem:[%s20152_s1 + $0x2f0] sm:$0xff] }
0x2a3b   : > { %16902 = vmatprep.subr.bf16.mxu1 %v16901_v45  ;;  %v13475_v45 = vld [vmem:[%s20152_s1 + $0x2f8] sm:$0xff]  ;;  %s19972_s1 = scalar_lea.hbm %s20153_s7, %s13483_s11 }
0x2a3c   : > { %v16937_v14 = vpack.c.bf16 %v13475_v45, %v13474_v8 }
0x2a3e   : > { %16904 = vmatpush3.bf16.msra.mxu1 %v16903_v52  ;;  %v16939_v52 = vpack.c.bf16 %v13459_v6, %v13458_v12 }
0x2a3f   : > { %16906 = vmatprep.subr.bf16.mxu1 %v16905_v10 }
0x2a42   : > { %16908 = vmatpush3.bf16.msra.mxu1 %v16907_v41 }
0x2a43   : > { %16910 = vmatprep.subr.bf16.mxu1 %v16909_v4 }
0x2ad0   : > { %v11810_v57 = vpop.f32.mrb[100].mxu1 }
0x2ad1   : > { %v11812_v24 = vpop.f32.mrb[101].mxu1 }
0x2ad2   : > { %12102 = vmatprep.mubr.f32.mxu1 %v11812_v24 }
0x2ad3   : > { %12103 = vmatmul.mubr.f32.vlgmr.msra.gmra.mrb[112].mxu1 %v11810_v57 }
0x2ad4   : > { %16912 = vmatpush3.bf16.msra.mxu1 %v16911_v20  ;;  %v11816_v50 = vpop.f32.mrb[102].mxu1 }
0x2ad5   : > { %v11818_v18 = vpop.f32.mrb[103].mxu1  ;;  %16914 = vmatprep.subr.bf16.mxu1 %v16913_v40 }
0x2ad6   : > { %12107 = vmatprep.mubr.f32.mxu1 %v11818_v18 }
0x2ad7   : > { %12108 = vmatmul.mubr.f32.gmra.mrb[114].mxu1 %v11816_v50 }
0x2ad8   : > { %16916 = vmatpush3.bf16.msra.mxu1 %v16915_v55  ;;  %v11887_v37 = vpop.f32.mrb[104].mxu1 }
0x2ad9   : > { %16918 = vmatprep.subr.bf16.mxu1 %v16917_v43  ;;  %v11889_v34 = vpop.f32.mrb[105].mxu1 }
0x2ada   : > { %12210 = vmatprep.mubr.f32.mxu1 %v11889_v34 }
0x2adc   : > { %16920 = vmatpush3.bf16.msra.mxu1 %v16919_v29  ;;  %v11893_v36 = vpop.f32.mrb[106].mxu1 }
0x2add   : > { %16922 = vmatprep.subr.bf16.mxu1 %v16921_v0  ;;  %v11895_v11 = vpop.f32.mrb[107].mxu1 }
0x2ae0   : > { %16924 = vmatpush3.bf16.msra.mxu1 %v16923_v27 }
0x2ae1   : > { %16926 = vmatprep.subr.bf16.mxu1 %v16925_v46 }
0x2ae4   : > { %16928 = vmatpush3.bf16.msra.mxu1 %v16927_v62 }
0x2ae5   : > { %16930 = vmatprep.subr.bf16.mxu1 %v16929_v22 }
0x2ae8   : > { %16932 = vmatpush3.bf16.msra.mxu1 %v16931_v63 }
0x2ae9   : > { %16934 = vmatprep.subr.bf16.mxu1 %v16933_v13 }
0x2aec   : > { %16936 = vmatpush3.bf16.msra.mxu1 %v16935_v19 }
0x2aed   : > { %16938 = vmatprep.subr.bf16.mxu1 %v16937_v14 }
0x2af0   : > { %16940 = vmatpush3.bf16.msra.mxu1 %v16939_v52 }
0x2af3   : > { %12211 = vmatmul.mubr.f32.vlgmr.msra.gmra.mrb[116].mxu1 %v11887_v37 }
0x2af4   : > { %12215 = vmatprep.mubr.f32.mxu1 %v11895_v11 }
0x2af7   : > { %12216 = vmatmul.mubr.f32.gmra.mrb[118].mxu1 %v11893_v36 }
0x2af8   : > { %v14620_v10 = vpop.f32.mrb[108].mxu1 }
0x2af9   : > { %v14621_v30 = vpop.f32.mrb[109].mxu1 }
0x2afa   : > { %v19963_v3 = vadd.f32 %v14621_v30, %v14620_v10 }
0x2afc   : > { %v14623_v41 = vpop.f32.mrb[110].mxu1 }
0x2afd   : > { %v14624_v31 = vpop.f32.mrb[111].mxu1 }
0x2afe   : > { %v19965_v15 = vadd.f32 %v14624_v31, %v14623_v41 }
0x2aff   : > { %17340 = shalt.err (!%p17337_p3)
}
0x2b00   : > { %s17341_s4 = scalar_lea.hbm %s19972_s1, 64  ;;  %s17345_s8 = scalar_lea.hbm %s20154_s27, 128 }
0x2b01   : > { %p17342_p4 = scmp.ne.s32.totalorder %s19972_s1, %s17341_s4  ;;  %p17346_p9 = scmp.lt.u32.totalorder %s19972_s1, %s20154_s27 }
0x2b02   : > { %p17347_p10 = scmp.lt.u32.totalorder %s17345_s8, %s17341_s4  ;;  %p17349_p12 = scmp.lt.u32.totalorder %s17341_s4, %s19972_s1 }
0x2b03   : > { %p17343_p7 = pnand %p17342_p4, %p17680_p5 }
0x2b04   : > { %p17348_p11 = por %p17347_p10, %p17346_p9 }
0x2b05   : > { %p17344_p8 = pneg %p17343_p7 }
0x2b06   : > { %p17350_p0 = por %p17349_p12, %p17348_p11 }
0x2b08   : > { %p17351_p13 = pnand %p17350_p0, %p17344_p8 }
0x2b0a   : > { %17354 = shalt.err (!%p17351_p13)
}
0x2b0b   : > { %17063 = dma.vmem_to_hbm [thread:$0]  (%p17680_p5), %s12400_s15, 64, %s19972_s1, %s12355_s3  }
0x2b0c   : > { %s19991_s9 = scalar_lea.hbm %s17625_s12, %s13483_s11  ;;  %s12412_s13 = sshll.u32 %s19653_s23, 4  ;;  %s12413_s13 = int_to_ptr.vmem [resolvable:$true] %s12412_s13 }
0x2b0d   : > { %s12360_s6 = scalar_lea.sflag [#allocation5], %s19609_s5  ;;  %s17355_s7 = scalar_lea.vmem %s12413_s13, 64 }
0x2b0e   : > { %p17356_p1 = scmp.ne.s32.totalorder %s12413_s13, %s17355_s7  ;;  %s17466_s4 = smov [#allocation4]  }
0x2b0f   : > { %s17359_s8 = sshll.u32 %s17466_s4, 4  ;;  %s17360_s8 = int_to_ptr.vmem [resolvable:$false] %s17359_s8 }
0x2b10   : > { %p17357_p2 = pnand %p17356_p1, %p17680_p5  ;;  %s17361_s14 = scalar_lea.vmem %s17360_s8, 128 }
0x2b11   : > { %p17362_p4 = scmp.lt.s32.totalorder %s12413_s13, %s17360_s8  ;;  %p17363_p7 = scmp.lt.s32.totalorder %s17361_s14, %s17355_s7 }
0x2b12   : > { %p17358_p3 = pneg %p17357_p2 }
0x2b13   : > { %p17364_p8 = por %p17363_p7, %p17362_p4 }
0x2b15   : > { %p17365_p9 = pnand %p17364_p8, %p17358_p3 }
0x2b17   : > { %17368 = shalt.err (!%p17365_p9)
}
0x2b18   : > { %s17369_s3 = scalar_lea.hbm %s19991_s9, 64  ;;  %s17373_s0 = scalar_lea.hbm %s17625_s12, 128 }
0x2b19   : > { %p17370_p10 = scmp.ne.s32.totalorder %s19991_s9, %s17369_s3  ;;  %p17374_p0 = scmp.lt.u32.totalorder %s19991_s9, %s17625_s12 }
0x2b1a   : > { %p17375_p13 = scmp.lt.u32.totalorder %s17373_s0, %s17369_s3  ;;  %p17377_p2 = scmp.lt.u32.totalorder %s17369_s3, %s19991_s9 }
0x2b1b   : > { %p17371_p11 = pnand %p17370_p10, %p17680_p5 }
0x2b1c   : > { %p17376_p1 = por %p17375_p13, %p17374_p0 }
0x2b1d   : > { %p17372_p12 = pneg %p17371_p11 }
0x2b1e   : > { %p17378_p4 = por %p17377_p2, %p17376_p1 }
0x2b20   : > { %p17379_p3 = pnand %p17378_p4, %p17372_p12 }
0x2b22   : > { %17382 = shalt.err (!%p17379_p3)
}
0x2b23   : > { %s20155_s14 = sld [smem:[#allocation27_spill]]  ;;  %s20156_s28 = sld [smem:[#allocation33_spill]]  ;;  %v12327_v58 = vsub.f32 1.0, %v19846_v17  ;;  %v12328_v1 = vsub.f32 1.0, %v19840_v51 }
0x2b24   : > { %17064 = dma.vmem_to_hbm [thread:$0]  (%p17680_p5), %s12413_s13, 64, %s19991_s9, %s12360_s6  }
0x2b25   : > { %s20157_s5 = sld [smem:[#allocation34_spill]]  ;;  %s13487_s1 = sshll.u32 %s17702_s2, 4  ;;  %v12329_v42 = vmul.f32 %v19689_v23, %v12327_v58  ;;  %v12330_v48 = vmul.f32 %v19699_v26, %v12328_v1 }
0x2b29   : > { %v13476_v54 = vld [vmem:[%s20155_s14] ss:$0 sm:$0xff]  ;;  %s1098_s23 = scalar_lea.vmem %s20156_s28, %s13487_s1 }
0x2b2b   : > { %s1103_s11 = scalar_lea.vmem %s20157_s5, %s13487_s1 }
0x2ba6   : > { %v14658_v4 = vpop.f32.mrb[112].mxu1 }
0x2ba7   : > { %v14659_v49 = vpop.f32.mrb[113].mxu1 }
0x2ba8   : > { %v14660_v53 = vadd.f32 %v14659_v49, %v14658_v4 }
0x2baa   : > { %v12105_v35 = vadd.f32 %v14660_v53, %v19963_v3  ;;  %v14661_v2 = vpop.f32.mrb[114].mxu1 }
0x2bab   : > { %v14662_v57 = vpop.f32.mrb[115].mxu1 }
0x2bac   : > { %v14663_v20 = vadd.f32 %v14662_v57, %v14661_v2 }
0x2bae   : > { %v12110_v24 = vadd.f32 %v14663_v20, %v19965_v15 }
0x2bc6   : > { %v14696_v40 = vpop.f32.mrb[116].mxu1 }
0x2bc7   : > { %v14697_v25 = vpop.f32.mrb[117].mxu1 }
0x2bc8   : > { %v14698_v47 = vadd.f32 %v14697_v25, %v14696_v40 }
0x2bca   : > { %v12221_v21 = vadd.f32 %v14698_v47, %v12105_v35  ;;  %v14699_v50 = vpop.f32.mrb[118].mxu1 }
0x2bcb   : > { %v14700_v55 = vpop.f32.mrb[119].mxu1 }
0x2bcc   : > { %v12230_v18 = vadd.f32 %v13476_v54, %v12221_v21  ;;  %v14701_v43 = vadd.f32 %v14700_v55, %v14699_v50 }
0x2bce   : > { %v13477_v9 = vmul.f32 -1.442695, %v12230_v18  ;;  %v12222_v32 = vadd.f32 %v14701_v43, %v12110_v24 }
0x2bd0   : > { %17305 = vpow2.f32 %v13477_v9  ;;  %v12231_v28 = vadd.f32 %v13476_v54, %v12222_v32 }
0x2bd2   : > { %v13478_v7 = vmul.f32 -1.442695, %v12231_v28 }
0x2bd4   : > { %17307 = vpow2.f32 %v13478_v7 }
0x2bda   : > { %v17306_v29 = vpop.eup %17305 }
0x2bdb   : > { %v12238_v37 = vadd.f32 1.0, %v17306_v29 }
0x2bdd   : > { %17309 = vrcp.f32 %v12238_v37 }
0x2bde   : > { %v17308_v0 = vpop.eup %17307 }
0x2bdf   : > { %v12239_v16 = vadd.f32 1.0, %v17308_v0 }
0x2be1   : > { %17311 = vrcp.f32 %v12239_v16 }
0x2be7   : > { %v17310_v34 = vpop.eup %17309 }
0x2be8   : > { %12244 = vst.msk [vmem:[%s1098_s23] sm:$0xff] %vm1322_vm1, %v17310_v34  ;;  %v12325_v27 = vmul.f32 %v17310_v34, %v19846_v17 }
0x2bea   : > { %v12331_v36 = vadd.f32 %v12329_v42, %v12325_v27 }
0x2beb   : > { %v17312_v46 = vpop.eup %17311 }
0x2bec   : > { %12333 = vst.msk [vmem:[%s1103_s11] sm:$0xff] %vm1322_vm1, %v12331_v36  ;;  %12245 = vst.msk [vmem:[%s1098_s23 + $0x8] sm:$0xff] %vm1322_vm1, %v17312_v46  ;;  %v12326_v33 = vmul.f32 %v17312_v46, %v19840_v51 }
0x2bee   : > { %v12332_v11 = vadd.f32 %v12330_v48, %v12326_v33 }
0x2bf0   : > { %12334 = vst.msk [vmem:[%s1103_s11 + $0x8] sm:$0xff] %vm1322_vm1, %v12332_v11 }
0x2bf1 PF: > { %s20158_s2 = sld [smem:[#allocation37_spill]]  ;;  %s20159_s15 = sld [smem:[#allocation35_spill]] }
0x2bf7   : > { %p17074_p5 = scmp.ge.s32.totalorder %s20158_s2, 2  ;;  %s12464_s13 = sand.u32 1, %s20159_s15  }
0x2bf8   : > { %s12465_s6 = scalar_lea.sflag [#allocation3], %s12464_s13 }
0x2bf9   : > { %p17068_p7 = pnand %p17074_p5, %p17684_p6 }
0x2bfb   : > { %17400 = dma.done.wait (!%p17068_p7), %s12465_s6, 64  }
0x2bfc   : > { %17402 = vsyncadd (!%p17068_p7), %s12465_s6, 4294967232  ;;  %s12474_s7 = scalar_lea.sflag [#allocation5], %s12464_s13 }
0x2bfd   : > { %17404 = dma.done.wait (!%p17068_p7), %s12474_s7, 64  }
0x2bfe   : > { %17406 = vsyncadd (!%p17068_p7), %s12474_s7, 4294967232  ;;  %s20161_s15 = sld [smem:[#allocation38_spill]]  ;;  %s20162_s4 = sld [smem:[#allocation36_spill]] }
0x2bff   : > { %s20163_s11 = sld [smem:[#allocation39_spill]]  ;;  %s20164_s7 = smov %s17413_s10 }
0x2c04   : > { %p81_p8 = scmp.ge.s32.totalorder %s20161_s15, 4   ;;  %s20165_s10 = smov %s20162_s4 }
0x2c06   :  { %83 = sbr.rel (!%p81_p8) target bundleno = 76 (0x4c), region = 315 }
0x2c0d   :  { %12502 = vsyncpa [#allocation3], 1 }
0x2c0e   :  { %12504 = vsyncpa [#allocation3 + $0x1], 1 }
0x2c0f   :  { %12505 = vsyncpa [#allocation5], 1 }
0x2c10   :  { %12507 = vsyncpa [#allocation5 + $0x1], 1 }

</bundles_post_ra>
